<compile_context>
chip_gen: v7x
topology: tpu7x:2x2x1
jax: 0.10.0
libtpu: 0.0.40
codegen_flags: <defaults>
</compile_context>

<pallas_src>
import functools
import math

import jax
import jax.numpy as jnp
from jax import lax
from jax.experimental import pallas as pl
from jax.experimental.pallas import tpu as pltpu


# ----------------------------------------------------------------------------
# Fused kernel: one grid step handles a block of (direction, batch) elements.
# ----------------------------------------------------------------------------
def _coam_kernel(xq_ref, xref_ref, wq_ref, bq_ref, wkv_ref, bkv_ref,
                 wo_ref, bo_ref, relh_ref, relw_ref,
                 roww_ref, rowh_ref, cmaj_ref, cmin_ref, o_ref,
                 *, num_heads, hidden_channels, out_channels,
                 tokens_per_elem, ref_map):
    heads, hc, C = num_heads, hidden_channels, out_channels
    D = heads * hc
    WH = tokens_per_elem

    # Token projections over *all* elements in this block: row-dense (G_blk*WH rows)
    # and lane-dense (D / 2D cols) MXU matmuls.  1/sqrt(hc) is pre-folded into Wq/bq.
    q = jnp.dot(xq_ref[...], wq_ref[...],
                preferred_element_type=jnp.float32) + bq_ref[...]        # [R, D]
    kv = jnp.dot(xref_ref[...], wkv_ref[...],
                 preferred_element_type=jnp.float32) + bkv_ref[...]      # [R, 2D]

    relh = relh_ref[...]        # [(h', k), hc]  rel-height embeddings
    relw = relw_ref[...]        # [(w', k), hc]  rel-width embeddings (key-token order)

    # Rebuild the score-assembly masks in-kernel from tiny O(H^2) index vectors
    # (instead of DMA-ing O(H^4) dense tables).  Hoisted out of all loops.
    rw, rh = roww_ref[...], rowh_ref[...]          # [WH, 1]  w / h of each token row
    cmaj, cmin = cmaj_ref[...], cmin_ref[...]      # [1, WH]  major (w'/h') / minor (k) of col
    same_w = rw == cmaj                            # [WH, WK] keep key columns with w' == w
    mask_h = (rh == cmaj).astype(jnp.float32)      # [WH, HK] select h' == h rel-h scores
    fold_k = (rh == cmin).astype(jnp.float32)      # [HK, WK] fold rel-h cols onto (w', k)

    wo = wo_ref[...]
    bo = bo_ref[...]

    for gl in range(len(ref_map)):
        qg = q[gl * WH:(gl + 1) * WH, :]                          # [WH, D]
        kvg = kv[ref_map[gl] * WH:(ref_map[gl] + 1) * WH, :]      # [WH, 2D]
        acc = jnp.zeros((WH, C), jnp.float32)
        for n in range(heads):
            qn = qg[:, n * hc:(n + 1) * hc]                       # [WH, hc]
            kn = kvg[:, n * hc:(n + 1) * hc]                      # [WH, hc]  keys
            vn = kvg[:, D + n * hc:D + (n + 1) * hc]              # [WH, hc]  values

            # main + relative-width scores over all key tokens (w', k)
            g_main = lax.dot_general(qn, kn + relw, (((1,), (1,)), ((), ())),
                                     preferred_element_type=jnp.float32)   # [WH, WK]
            # relative-height scores: dense MXU matmul, then masked fold onto (w', k)
            g_relh = lax.dot_general(qn, relh, (((1,), (1,)), ((), ())),
                                     preferred_element_type=jnp.float32)   # [WH, HK]
            s_relh = jnp.dot(g_relh * mask_h, fold_k,
                             preferred_element_type=jnp.float32)           # [WH, WK]

            # only key tokens with w' == w survive (select-masking, already scaled)
            s = jnp.where(same_w, g_main + s_relh, -1e9)

            # softmax over the key axis
            m = jnp.max(s, axis=-1, keepdims=True)
            e = jnp.exp(s - m)
            p = e * pl.reciprocal(jnp.sum(e, axis=-1, keepdims=True), approx=True)

            # attend + per-head slice of the output projection, accumulated
            att = jnp.dot(p, vn, preferred_element_type=jnp.float32)       # [WH, hc]
            acc = acc + jnp.dot(att, wo[n * hc:(n + 1) * hc, :],
                                preferred_element_type=jnp.float32)        # [WH, C]

        # lane-packed output: element gl owns lanes [gl*C, (gl+1)*C)
        o_ref[:, gl * C:(gl + 1) * C] = (acc + bo).astype(o_ref.dtype)


# ----------------------------------------------------------------------------
# Grid-shape choice: fully collapse on single-TC chips, 2 parallel steps on dual-TC.
# ----------------------------------------------------------------------------
def _num_direction_steps():
    try:
        kind = jax.devices()[0].device_kind.lower()
    except Exception:
        return 1
    if "v7" in kind or "7x" in kind or "v4" in kind:   # dual TensorCore / megacore
        return 2
    return 1                                            # v5e / v6e: single TC


# ----------------------------------------------------------------------------
# CoAttentionModule forward (both directions in one pallas_call)
# ----------------------------------------------------------------------------
def co_attention_module(left_features, right_features, params, rel_emb,
                        num_heads, hidden_channels, num_dir_steps=None):
    B, C, H, W = left_features.shape
    assert H == W, "CoAttentionLayer (as written) requires square feature maps"
    heads, hc = num_heads, hidden_channels
    D = heads * hc
    L = 2 * max(H, W) - 1
    WH = W * H
    G = 2 * B
    scale = 1.0 / math.sqrt(float(hc))

    n_steps = _num_direction_steps() if num_dir_steps is None else int(num_dir_steps)
    if n_steps != 1 and (G % n_steps != 0 or ((G // n_steps) * WH) % 8 != 0):
        n_steps = 1
    G_blk = G // n_steps
    RPB = G_blk * WH                                   # token rows per block

    # NCHW -> [B, W*H, C]: rows are (w, h)-ordered tokens, channels on lanes.
    def to_tokens(x):
        return jnp.transpose(x, (0, 3, 2, 1)).reshape(B, WH, C)

    # One direction-major stack of tokens; queries of element g pair with the
    # keys/values of element (g + B) % G (the other direction, same batch index).
    x_all = jnp.concatenate([to_tokens(left_features),
                             to_tokens(right_features)], axis=0).reshape(G * WH, C)

    if n_steps == 2:
        ref_map = tuple(range(G_blk))                  # same local slot, opposite block
        xref_index_map = lambda d: (1 - d, 0)
    else:
        ref_map = tuple((g + B) % G for g in range(G))
        xref_index_map = lambda d: (d, 0)

    # Fold 1/sqrt(hc) into the query projection; fuse K|V into one [C, 2D] matmul.
    wq_s = params["Wq"] * scale
    bq_s = (params["bq"] * scale).reshape(1, D)
    wkv = jnp.concatenate([params["Wk"], params["Wv"]], axis=1)
    bkv = jnp.concatenate([params["bk"], params["bv"]], axis=0).reshape(1, 2 * D)

    # Relative-position tables (shared by both directions), hoisted out of the kernel.
    idx_h = (jnp.arange(H)[None, :] - jnp.arange(H)[:, None]) % L
    idx_w = (jnp.arange(W)[None, :] - jnp.arange(W)[:, None]) % L
    rel_h = rel_emb[idx_h].reshape(H * H, hc)          # rows ordered (h', k)
    rel_w = rel_emb[idx_w].reshape(W * W, hc)          # rows ordered (w', k)

    # Tiny index vectors; the O(H^4) masks are rebuilt inside the kernel from these.
    major = jnp.repeat(jnp.arange(W), H).astype(jnp.float32)   # index // H  (w / w' / h')
    minor = jnp.tile(jnp.arange(H), W).astype(jnp.float32)     # index %  H  (h / k)
    roww, rowh = major.reshape(WH, 1), minor.reshape(WH, 1)
    cmaj, cmin = major.reshape(1, WH), minor.reshape(1, WH)

    kern = functools.partial(
        _coam_kernel, num_heads=heads, hidden_channels=hc, out_channels=C,
        tokens_per_elem=WH, ref_map=ref_map)
    const2 = lambda d: (0, 0)

    out = pl.pallas_call(
        kern,
        out_shape=jax.ShapeDtypeStruct((n_steps, WH, G_blk * C),
                                       left_features.dtype),
        grid=(n_steps,),
        in_specs=[
            pl.BlockSpec((RPB, C), lambda d: (d, 0)),     # query tokens
            pl.BlockSpec((RPB, C), xref_index_map),       # reference tokens
            pl.BlockSpec((C, D), const2),                 # Wq * scale
            pl.BlockSpec((1, D), const2),                 # bq * scale
            pl.BlockSpec((C, 2 * D), const2),             # Wk | Wv
            pl.BlockSpec((1, 2 * D), const2),             # bk | bv
            pl.BlockSpec((D, C), const2),                 # Wo
            pl.BlockSpec((1, C), const2),                 # bo
            pl.BlockSpec((H * H, hc), const2),            # rel_h
            pl.BlockSpec((W * H, hc), const2),            # rel_w
            pl.BlockSpec((WH, 1), const2),                # row w-index
            pl.BlockSpec((WH, 1), const2),                # row h-index
            pl.BlockSpec((1, WH), const2),                # column major index
            pl.BlockSpec((1, WH), const2),                # column minor index
        ],
        out_specs=pl.BlockSpec((None, WH, G_blk * C), lambda d: (d, 0, 0)),
        compiler_params=pltpu.CompilerParams(
            dimension_semantics=("parallel",)),
    )(x_all, x_all, wq_s, bq_s, wkv, bkv, params["Wo"],
      params["bo"].reshape(1, C), rel_h, rel_w, roww, rowh, cmaj, cmin)

    # [n_steps, W*H, G_blk*C] (lane-packed, w-major tokens) -> [G, C, H, W]
    out = out.reshape(n_steps, W, H, G_blk, C)
    out = jnp.transpose(out, (0, 3, 4, 2, 1)).reshape(G, C, H, W)
    weighted_r, weighted_l = out[:B], out[B:]

    left_attended = jnp.concatenate([left_features, weighted_r], axis=1)
    right_attended = jnp.concatenate([right_features, weighted_l], axis=1)
    return left_attended, right_attended


# ----------------------------------------------------------------------------
# Pure-JAX reference (mirrors the PyTorch einsums) for a sanity check
# ----------------------------------------------------------------------------
def co_attention_layer_ref(qf, rf, params, rel_emb, heads, hc):
    B, C, H, W = qf.shape
    xq = jnp.transpose(qf, (0, 2, 3, 1)).reshape(B, H * W, C)
    xr = jnp.transpose(rf, (0, 2, 3, 1)).reshape(B, H * W, C)
    q = xq @ params["Wq"] + params["bq"]
    k = xr @ params["Wk"] + params["bk"]
    v = xr @ params["Wv"] + params["bv"]

    def rearr(x):
        return jnp.transpose(x.reshape(B, H, W, heads, hc), (0, 3, 1, 2, 4))

    q, k, v = rearr(q), rearr(k), rearr(v)
    scores = jnp.einsum("bnhwc,bnkwc->bnhwk", q, k)
    L = 2 * max(H, W) - 1
    idx_h = (jnp.arange(H)[None, :] - jnp.arange(H)[:, None]) % L
    idx_w = (jnp.arange(W)[None, :] - jnp.arange(W)[:, None]) % L
    rel_h = rel_emb[idx_h]
    rel_w = rel_emb[idx_w]
    scores = scores + jnp.einsum("bnhwc,hkc->bnhwk", q, rel_h)
    scores = scores + jnp.einsum("bnhwc,wkc->bnhwk", q, rel_w)
    scores = scores / (hc ** 0.5)
    probs = jax.nn.softmax(scores, axis=-1)
    att = jnp.einsum("bnhwk,bnkwc->bnhwc", probs, v)
    att = jnp.transpose(att, (0, 2, 3, 1, 4)).reshape(B, H * W, heads * hc)
    out = att @ params["Wo"] + params["bo"]
    return jnp.transpose(out.reshape(B, H, W, C), (0, 3, 1, 2))


def co_attention_module_ref(left, right, params, rel_emb, heads, hc):
    wr = co_attention_layer_ref(left, right, params, rel_emb, heads, hc)
    wl = co_attention_layer_ref(right, left, params, rel_emb, heads, hc)
    return (jnp.concatenate([left, wr], axis=1),
            jnp.concatenate([right, wl], axis=1))


# ----------------------------------------------------------------------------
if __name__ == "__main__":
    # Small shapes consistent with the module's forward.
    B, C, H, W = 2, 32, 8, 8            # input_channels = 32
    hidden_channels, num_heads = 16, 4  # projection dim = 64

    key = jax.random.PRNGKey(0)
    ks = jax.random.split(key, 12)
    D = hidden_channels * num_heads

    params = {
        "Wq": jax.random.normal(ks[0], (C, D), jnp.float32) * 0.05,
        "bq": jax.random.normal(ks[1], (D,), jnp.float32) * 0.05,
        "Wk": jax.random.normal(ks[2], (C, D), jnp.float32) * 0.05,
        "bk": jax.random.normal(ks[3], (D,), jnp.float32) * 0.05,
        "Wv": jax.random.normal(ks[4], (C, D), jnp.float32) * 0.05,
        "bv": jax.random.normal(ks[5], (D,), jnp.float32) * 0.05,
        "Wo": jax.random.normal(ks[6], (D, C), jnp.float32) * 0.05,
        "bo": jax.random.normal(ks[7], (C,), jnp.float32) * 0.05,
    }
    rel_emb = jax.random.normal(ks[8], (2 * max(H, W) - 1, hidden_channels),
                                jnp.float32) * 0.05

    left = jax.random.normal(ks[9], (B, C, H, W), jnp.float32)
    right = jax.random.normal(ks[10], (B, C, H, W), jnp.float32)

    left_att, right_att = co_attention_module(
        left, right, params, rel_emb, num_heads, hidden_channels)
    jax.block_until_ready((left_att, right_att))

    # sanity check against a pure-JAX reference of the PyTorch einsums
    left_ref, right_ref = co_attention_module_ref(
        left, right, params, rel_emb, num_heads, hidden_channels)
    assert left_att.shape == (B, 2 * C, H, W)
    assert right_att.shape == (B, 2 * C, H, W)
    assert jnp.allclose(left_att, left_ref, rtol=1e-2, atol=1e-2)
    assert jnp.allclose(right_att, right_ref, rtol=1e-2, atol=1e-2)

    print("KERNEL_OK")
</pallas_src>

<mosaic_0001>
module attributes {stable_mosaic.version = 11 : i64} {
  func.func @_coam_kernel(%arg0: i32, %arg1: memref<256x32xf32, #tpu.memory_space<vmem>>, %arg2: memref<256x32xf32, #tpu.memory_space<vmem>>, %arg3: memref<32x64xf32, #tpu.memory_space<vmem>>, %arg4: memref<1x64xf32, #tpu.memory_space<vmem>>, %arg5: memref<32x128xf32, #tpu.memory_space<vmem>>, %arg6: memref<1x128xf32, #tpu.memory_space<vmem>>, %arg7: memref<64x32xf32, #tpu.memory_space<vmem>>, %arg8: memref<1x32xf32, #tpu.memory_space<vmem>>, %arg9: memref<64x16xf32, #tpu.memory_space<vmem>>, %arg10: memref<64x16xf32, #tpu.memory_space<vmem>>, %arg11: memref<64x1xf32, #tpu.memory_space<vmem>>, %arg12: memref<64x1xf32, #tpu.memory_space<vmem>>, %arg13: memref<1x64xf32, #tpu.memory_space<vmem>>, %arg14: memref<1x64xf32, #tpu.memory_space<vmem>>, %arg15: memref<1x64x128xf32, #tpu.memory_space<vmem>>) attributes {dimension_semantics = [#tpu.dimension_semantics<parallel>], iteration_bounds = array<i64: 1>, scalar_prefetch = 0 : i64, scratch_operands = 0 : i64, tpu.core_type = #tpu.core_type<tc>, window_params = [{transform_indices = @transform_0, window_bounds = array<i64: 256, 32>}, {transform_indices = @transform_1, window_bounds = array<i64: 256, 32>}, {pipeline_mode = #tpu.pipeline_mode<synchronous>, transform_indices = @transform_2, window_bounds = array<i64: 32, 64>}, {pipeline_mode = #tpu.pipeline_mode<synchronous>, transform_indices = @transform_3, window_bounds = array<i64: 1, 64>}, {pipeline_mode = #tpu.pipeline_mode<synchronous>, transform_indices = @transform_4, window_bounds = array<i64: 32, 128>}, {pipeline_mode = #tpu.pipeline_mode<synchronous>, transform_indices = @transform_5, window_bounds = array<i64: 1, 128>}, {pipeline_mode = #tpu.pipeline_mode<synchronous>, transform_indices = @transform_6, window_bounds = array<i64: 64, 32>}, {pipeline_mode = #tpu.pipeline_mode<synchronous>, transform_indices = @transform_7, window_bounds = array<i64: 1, 32>}, {pipeline_mode = #tpu.pipeline_mode<synchronous>, transform_indices = @transform_8, window_bounds = array<i64: 64, 16>}, {pipeline_mode = #tpu.pipeline_mode<synchronous>, transform_indices = @transform_9, window_bounds = array<i64: 64, 16>}, {pipeline_mode = #tpu.pipeline_mode<synchronous>, transform_indices = @transform_10, window_bounds = array<i64: 64, 1>}, {pipeline_mode = #tpu.pipeline_mode<synchronous>, transform_indices = @transform_11, window_bounds = array<i64: 64, 1>}, {pipeline_mode = #tpu.pipeline_mode<synchronous>, transform_indices = @transform_12, window_bounds = array<i64: 1, 64>}, {pipeline_mode = #tpu.pipeline_mode<synchronous>, transform_indices = @transform_13, window_bounds = array<i64: 1, 64>}, {transform_indices = @transform_14, window_bounds = array<i64: 1, 64, 128>}]} {
    %c0 = arith.constant 0 : index
    %c0_0 = arith.constant 0 : index
    %0 = vector.load %arg1[%c0, %c0_0] : memref<256x32xf32, #tpu.memory_space<vmem>>, vector<256x32xf32>
    %c0_1 = arith.constant 0 : index
    %c0_2 = arith.constant 0 : index
    %1 = vector.load %arg3[%c0_1, %c0_2] : memref<32x64xf32, #tpu.memory_space<vmem>>, vector<32x64xf32>
    %cst = arith.constant dense<0.000000e+00> : vector<256x64xf32>
    %2 = tpu.matmul %0, %1, %cst {dimension_numbers = #tpu.dot_dimension_numbers<[1], [0], [0], [1], [0, 0, 1, 1], [], []>} : vector<256x32xf32>, vector<32x64xf32>, vector<256x64xf32> -> vector<256x64xf32>
    %c0_3 = arith.constant 0 : index
    %c0_4 = arith.constant 0 : index
    %3 = vector.load %arg4[%c0_3, %c0_4] : memref<1x64xf32, #tpu.memory_space<vmem>>, vector<1x64xf32>
    %4 = vector.broadcast %3 : vector<1x64xf32> to vector<256x64xf32>
    %5 = arith.addf %2, %4 : vector<256x64xf32>
    %c0_5 = arith.constant 0 : index
    %c0_6 = arith.constant 0 : index
    %6 = vector.load %arg2[%c0_5, %c0_6] : memref<256x32xf32, #tpu.memory_space<vmem>>, vector<256x32xf32>
    %c0_7 = arith.constant 0 : index
    %c0_8 = arith.constant 0 : index
    %7 = vector.load %arg5[%c0_7, %c0_8] : memref<32x128xf32, #tpu.memory_space<vmem>>, vector<32x128xf32>
    %cst_9 = arith.constant dense<0.000000e+00> : vector<256x128xf32>
    %8 = tpu.matmul %6, %7, %cst_9 {dimension_numbers = #tpu.dot_dimension_numbers<[1], [0], [0], [1], [0, 0, 1, 1], [], []>} : vector<256x32xf32>, vector<32x128xf32>, vector<256x128xf32> -> vector<256x128xf32>
    %c0_10 = arith.constant 0 : index
    %c0_11 = arith.constant 0 : index
    %9 = vector.load %arg6[%c0_10, %c0_11] : memref<1x128xf32, #tpu.memory_space<vmem>>, vector<1x128xf32>
    %10 = vector.broadcast %9 : vector<1x128xf32> to vector<256x128xf32>
    %11 = arith.addf %8, %10 : vector<256x128xf32>
    %c0_12 = arith.constant 0 : index
    %c0_13 = arith.constant 0 : index
    %12 = vector.load %arg9[%c0_12, %c0_13] : memref<64x16xf32, #tpu.memory_space<vmem>>, vector<64x16xf32>
    %c0_14 = arith.constant 0 : index
    %c0_15 = arith.constant 0 : index
    %13 = vector.load %arg10[%c0_14, %c0_15] : memref<64x16xf32, #tpu.memory_space<vmem>>, vector<64x16xf32>
    %c0_16 = arith.constant 0 : index
    %c0_17 = arith.constant 0 : index
    %14 = vector.load %arg11[%c0_16, %c0_17] : memref<64x1xf32, #tpu.memory_space<vmem>>, vector<64x1xf32>
    %c0_18 = arith.constant 0 : index
    %c0_19 = arith.constant 0 : index
    %15 = vector.load %arg12[%c0_18, %c0_19] : memref<64x1xf32, #tpu.memory_space<vmem>>, vector<64x1xf32>
    %c0_20 = arith.constant 0 : index
    %c0_21 = arith.constant 0 : index
    %16 = vector.load %arg13[%c0_20, %c0_21] : memref<1x64xf32, #tpu.memory_space<vmem>>, vector<1x64xf32>
    %c0_22 = arith.constant 0 : index
    %c0_23 = arith.constant 0 : index
    %17 = vector.load %arg14[%c0_22, %c0_23] : memref<1x64xf32, #tpu.memory_space<vmem>>, vector<1x64xf32>
    %18 = vector.broadcast %14 : vector<64x1xf32> to vector<64x64xf32>
    %19 = vector.broadcast %16 : vector<1x64xf32> to vector<64x64xf32>
    %20 = arith.cmpf oeq, %18, %19 : vector<64x64xf32>
    %21 = vector.broadcast %15 : vector<64x1xf32> to vector<64x64xf32>
    %22 = vector.broadcast %16 : vector<1x64xf32> to vector<64x64xf32>
    %23 = arith.cmpf oeq, %21, %22 : vector<64x64xf32>
    %24 = arith.extui %23 : vector<64x64xi1> to vector<64x64xi32>
    %25 = arith.sitofp %24 : vector<64x64xi32> to vector<64x64xf32>
    %26 = vector.broadcast %15 : vector<64x1xf32> to vector<64x64xf32>
    %27 = vector.broadcast %17 : vector<1x64xf32> to vector<64x64xf32>
    %28 = arith.cmpf oeq, %26, %27 : vector<64x64xf32>
    %29 = arith.extui %28 : vector<64x64xi1> to vector<64x64xi32>
    %30 = arith.sitofp %29 : vector<64x64xi32> to vector<64x64xf32>
    %c0_24 = arith.constant 0 : index
    %c0_25 = arith.constant 0 : index
    %31 = vector.load %arg7[%c0_24, %c0_25] : memref<64x32xf32, #tpu.memory_space<vmem>>, vector<64x32xf32>
    %c0_26 = arith.constant 0 : index
    %c0_27 = arith.constant 0 : index
    %32 = vector.load %arg8[%c0_26, %c0_27] : memref<1x32xf32, #tpu.memory_space<vmem>>, vector<1x32xf32>
    %33 = vector.extract_strided_slice %5 {offsets = [0, 0], sizes = [64, 64], strides = [1, 1]} : vector<256x64xf32> to vector<64x64xf32>
    %34 = vector.extract_strided_slice %11 {offsets = [128, 0], sizes = [64, 128], strides = [1, 1]} : vector<256x128xf32> to vector<64x128xf32>
    %cst_28 = arith.constant 0.000000e+00 : f32
    %35 = vector.broadcast %cst_28 : f32 to vector<64x32xf32>
    %36 = vector.extract_strided_slice %33 {offsets = [0, 0], sizes = [64, 16], strides = [1, 1]} : vector<64x64xf32> to vector<64x16xf32>
    %37 = vector.extract_strided_slice %34 {offsets = [0, 0], sizes = [64, 16], strides = [1, 1]} : vector<64x128xf32> to vector<64x16xf32>
    %38 = vector.extract_strided_slice %34 {offsets = [0, 64], sizes = [64, 16], strides = [1, 1]} : vector<64x128xf32> to vector<64x16xf32>
    %39 = arith.addf %37, %13 : vector<64x16xf32>
    %cst_29 = arith.constant dense<0.000000e+00> : vector<64x64xf32>
    %40 = tpu.matmul %36, %39, %cst_29 {dimension_numbers = #tpu.dot_dimension_numbers<[1], [1], [0], [0], [0, 0, 1, 0], [], []>} : vector<64x16xf32>, vector<64x16xf32>, vector<64x64xf32> -> vector<64x64xf32>
    %cst_30 = arith.constant dense<0.000000e+00> : vector<64x64xf32>
    %41 = tpu.matmul %36, %12, %cst_30 {dimension_numbers = #tpu.dot_dimension_numbers<[1], [1], [0], [0], [0, 0, 1, 0], [], []>} : vector<64x16xf32>, vector<64x16xf32>, vector<64x64xf32> -> vector<64x64xf32>
    %42 = arith.mulf %41, %25 : vector<64x64xf32>
    %cst_31 = arith.constant dense<0.000000e+00> : vector<64x64xf32>
    %43 = tpu.matmul %42, %30, %cst_31 {dimension_numbers = #tpu.dot_dimension_numbers<[1], [0], [0], [1], [0, 0, 1, 1], [], []>} : vector<64x64xf32>, vector<64x64xf32>, vector<64x64xf32> -> vector<64x64xf32>
    %44 = arith.addf %40, %43 : vector<64x64xf32>
    %cst_32 = arith.constant -1.000000e+09 : f32
    %45 = vector.broadcast %cst_32 : f32 to vector<64x64xf32>
    %46 = arith.select %20, %44, %45 : vector<64x64xi1>, vector<64x64xf32>
    %cst_33 = arith.constant dense<0xFF800000> : vector<64xf32>
    %47 = vector.multi_reduction <maximumf>, %46, %cst_33 [1] : vector<64x64xf32> to vector<64xf32>
    %48 = vector.shape_cast %47 : vector<64xf32> to vector<64x1xf32>
    %49 = vector.broadcast %48 : vector<64x1xf32> to vector<64x64xf32>
    %50 = arith.subf %46, %49 : vector<64x64xf32>
    %51 = math.exp %50 : vector<64x64xf32>
    %cst_34 = arith.constant dense<0.000000e+00> : vector<64xf32>
    %52 = vector.multi_reduction <add>, %51, %cst_34 [1] : vector<64x64xf32> to vector<64xf32>
    %53 = vector.shape_cast %52 : vector<64xf32> to vector<64x1xf32>
    %54 = tpu.reciprocal %53 {approx = true} : vector<64x1xf32> -> vector<64x1xf32>
    %55 = vector.broadcast %54 : vector<64x1xf32> to vector<64x64xf32>
    %56 = arith.mulf %51, %55 : vector<64x64xf32>
    %cst_35 = arith.constant dense<0.000000e+00> : vector<64x16xf32>
    %57 = tpu.matmul %56, %38, %cst_35 {dimension_numbers = #tpu.dot_dimension_numbers<[1], [0], [0], [1], [0, 0, 1, 1], [], []>} : vector<64x64xf32>, vector<64x16xf32>, vector<64x16xf32> -> vector<64x16xf32>
    %58 = vector.extract_strided_slice %31 {offsets = [0, 0], sizes = [16, 32], strides = [1, 1]} : vector<64x32xf32> to vector<16x32xf32>
    %cst_36 = arith.constant dense<0.000000e+00> : vector<64x32xf32>
    %59 = tpu.matmul %57, %58, %cst_36 {dimension_numbers = #tpu.dot_dimension_numbers<[1], [0], [0], [1], [0, 0, 1, 1], [], []>} : vector<64x16xf32>, vector<16x32xf32>, vector<64x32xf32> -> vector<64x32xf32>
    %60 = arith.addf %35, %59 : vector<64x32xf32>
    %61 = vector.extract_strided_slice %33 {offsets = [0, 16], sizes = [64, 16], strides = [1, 1]} : vector<64x64xf32> to vector<64x16xf32>
    %62 = vector.extract_strided_slice %34 {offsets = [0, 16], sizes = [64, 16], strides = [1, 1]} : vector<64x128xf32> to vector<64x16xf32>
    %63 = vector.extract_strided_slice %34 {offsets = [0, 80], sizes = [64, 16], strides = [1, 1]} : vector<64x128xf32> to vector<64x16xf32>
    %64 = arith.addf %62, %13 : vector<64x16xf32>
    %cst_37 = arith.constant dense<0.000000e+00> : vector<64x64xf32>
    %65 = tpu.matmul %61, %64, %cst_37 {dimension_numbers = #tpu.dot_dimension_numbers<[1], [1], [0], [0], [0, 0, 1, 0], [], []>} : vector<64x16xf32>, vector<64x16xf32>, vector<64x64xf32> -> vector<64x64xf32>
    %cst_38 = arith.constant dense<0.000000e+00> : vector<64x64xf32>
    %66 = tpu.matmul %61, %12, %cst_38 {dimension_numbers = #tpu.dot_dimension_numbers<[1], [1], [0], [0], [0, 0, 1, 0], [], []>} : vector<64x16xf32>, vector<64x16xf32>, vector<64x64xf32> -> vector<64x64xf32>
    %67 = arith.mulf %66, %25 : vector<64x64xf32>
    %cst_39 = arith.constant dense<0.000000e+00> : vector<64x64xf32>
    %68 = tpu.matmul %67, %30, %cst_39 {dimension_numbers = #tpu.dot_dimension_numbers<[1], [0], [0], [1], [0, 0, 1, 1], [], []>} : vector<64x64xf32>, vector<64x64xf32>, vector<64x64xf32> -> vector<64x64xf32>
    %69 = arith.addf %65, %68 : vector<64x64xf32>
    %cst_40 = arith.constant -1.000000e+09 : f32
    %70 = vector.broadcast %cst_40 : f32 to vector<64x64xf32>
    %71 = arith.select %20, %69, %70 : vector<64x64xi1>, vector<64x64xf32>
    %cst_41 = arith.constant dense<0xFF800000> : vector<64xf32>
    %72 = vector.multi_reduction <maximumf>, %71, %cst_41 [1] : vector<64x64xf32> to vector<64xf32>
    %73 = vector.shape_cast %72 : vector<64xf32> to vector<64x1xf32>
    %74 = vector.broadcast %73 : vector<64x1xf32> to vector<64x64xf32>
    %75 = arith.subf %71, %74 : vector<64x64xf32>
    %76 = math.exp %75 : vector<64x64xf32>
    %cst_42 = arith.constant dense<0.000000e+00> : vector<64xf32>
    %77 = vector.multi_reduction <add>, %76, %cst_42 [1] : vector<64x64xf32> to vector<64xf32>
    %78 = vector.shape_cast %77 : vector<64xf32> to vector<64x1xf32>
    %79 = tpu.reciprocal %78 {approx = true} : vector<64x1xf32> -> vector<64x1xf32>
    %80 = vector.broadcast %79 : vector<64x1xf32> to vector<64x64xf32>
    %81 = arith.mulf %76, %80 : vector<64x64xf32>
    %cst_43 = arith.constant dense<0.000000e+00> : vector<64x16xf32>
    %82 = tpu.matmul %81, %63, %cst_43 {dimension_numbers = #tpu.dot_dimension_numbers<[1], [0], [0], [1], [0, 0, 1, 1], [], []>} : vector<64x64xf32>, vector<64x16xf32>, vector<64x16xf32> -> vector<64x16xf32>
    %83 = vector.extract_strided_slice %31 {offsets = [16, 0], sizes = [16, 32], strides = [1, 1]} : vector<64x32xf32> to vector<16x32xf32>
    %cst_44 = arith.constant dense<0.000000e+00> : vector<64x32xf32>
    %84 = tpu.matmul %82, %83, %cst_44 {dimension_numbers = #tpu.dot_dimension_numbers<[1], [0], [0], [1], [0, 0, 1, 1], [], []>} : vector<64x16xf32>, vector<16x32xf32>, vector<64x32xf32> -> vector<64x32xf32>
    %85 = arith.addf %60, %84 : vector<64x32xf32>
    %86 = vector.extract_strided_slice %33 {offsets = [0, 32], sizes = [64, 16], strides = [1, 1]} : vector<64x64xf32> to vector<64x16xf32>
    %87 = vector.extract_strided_slice %34 {offsets = [0, 32], sizes = [64, 16], strides = [1, 1]} : vector<64x128xf32> to vector<64x16xf32>
    %88 = vector.extract_strided_slice %34 {offsets = [0, 96], sizes = [64, 16], strides = [1, 1]} : vector<64x128xf32> to vector<64x16xf32>
    %89 = arith.addf %87, %13 : vector<64x16xf32>
    %cst_45 = arith.constant dense<0.000000e+00> : vector<64x64xf32>
    %90 = tpu.matmul %86, %89, %cst_45 {dimension_numbers = #tpu.dot_dimension_numbers<[1], [1], [0], [0], [0, 0, 1, 0], [], []>} : vector<64x16xf32>, vector<64x16xf32>, vector<64x64xf32> -> vector<64x64xf32>
    %cst_46 = arith.constant dense<0.000000e+00> : vector<64x64xf32>
    %91 = tpu.matmul %86, %12, %cst_46 {dimension_numbers = #tpu.dot_dimension_numbers<[1], [1], [0], [0], [0, 0, 1, 0], [], []>} : vector<64x16xf32>, vector<64x16xf32>, vector<64x64xf32> -> vector<64x64xf32>
    %92 = arith.mulf %91, %25 : vector<64x64xf32>
    %cst_47 = arith.constant dense<0.000000e+00> : vector<64x64xf32>
    %93 = tpu.matmul %92, %30, %cst_47 {dimension_numbers = #tpu.dot_dimension_numbers<[1], [0], [0], [1], [0, 0, 1, 1], [], []>} : vector<64x64xf32>, vector<64x64xf32>, vector<64x64xf32> -> vector<64x64xf32>
    %94 = arith.addf %90, %93 : vector<64x64xf32>
    %cst_48 = arith.constant -1.000000e+09 : f32
    %95 = vector.broadcast %cst_48 : f32 to vector<64x64xf32>
    %96 = arith.select %20, %94, %95 : vector<64x64xi1>, vector<64x64xf32>
    %cst_49 = arith.constant dense<0xFF800000> : vector<64xf32>
    %97 = vector.multi_reduction <maximumf>, %96, %cst_49 [1] : vector<64x64xf32> to vector<64xf32>
    %98 = vector.shape_cast %97 : vector<64xf32> to vector<64x1xf32>
    %99 = vector.broadcast %98 : vector<64x1xf32> to vector<64x64xf32>
    %100 = arith.subf %96, %99 : vector<64x64xf32>
    %101 = math.exp %100 : vector<64x64xf32>
    %cst_50 = arith.constant dense<0.000000e+00> : vector<64xf32>
    %102 = vector.multi_reduction <add>, %101, %cst_50 [1] : vector<64x64xf32> to vector<64xf32>
    %103 = vector.shape_cast %102 : vector<64xf32> to vector<64x1xf32>
    %104 = tpu.reciprocal %103 {approx = true} : vector<64x1xf32> -> vector<64x1xf32>
    %105 = vector.broadcast %104 : vector<64x1xf32> to vector<64x64xf32>
    %106 = arith.mulf %101, %105 : vector<64x64xf32>
    %cst_51 = arith.constant dense<0.000000e+00> : vector<64x16xf32>
    %107 = tpu.matmul %106, %88, %cst_51 {dimension_numbers = #tpu.dot_dimension_numbers<[1], [0], [0], [1], [0, 0, 1, 1], [], []>} : vector<64x64xf32>, vector<64x16xf32>, vector<64x16xf32> -> vector<64x16xf32>
    %108 = vector.extract_strided_slice %31 {offsets = [32, 0], sizes = [16, 32], strides = [1, 1]} : vector<64x32xf32> to vector<16x32xf32>
    %cst_52 = arith.constant dense<0.000000e+00> : vector<64x32xf32>
    %109 = tpu.matmul %107, %108, %cst_52 {dimension_numbers = #tpu.dot_dimension_numbers<[1], [0], [0], [1], [0, 0, 1, 1], [], []>} : vector<64x16xf32>, vector<16x32xf32>, vector<64x32xf32> -> vector<64x32xf32>
    %110 = arith.addf %85, %109 : vector<64x32xf32>
    %111 = vector.extract_strided_slice %33 {offsets = [0, 48], sizes = [64, 16], strides = [1, 1]} : vector<64x64xf32> to vector<64x16xf32>
    %112 = vector.extract_strided_slice %34 {offsets = [0, 48], sizes = [64, 16], strides = [1, 1]} : vector<64x128xf32> to vector<64x16xf32>
    %113 = vector.extract_strided_slice %34 {offsets = [0, 112], sizes = [64, 16], strides = [1, 1]} : vector<64x128xf32> to vector<64x16xf32>
    %114 = arith.addf %112, %13 : vector<64x16xf32>
    %cst_53 = arith.constant dense<0.000000e+00> : vector<64x64xf32>
    %115 = tpu.matmul %111, %114, %cst_53 {dimension_numbers = #tpu.dot_dimension_numbers<[1], [1], [0], [0], [0, 0, 1, 0], [], []>} : vector<64x16xf32>, vector<64x16xf32>, vector<64x64xf32> -> vector<64x64xf32>
    %cst_54 = arith.constant dense<0.000000e+00> : vector<64x64xf32>
    %116 = tpu.matmul %111, %12, %cst_54 {dimension_numbers = #tpu.dot_dimension_numbers<[1], [1], [0], [0], [0, 0, 1, 0], [], []>} : vector<64x16xf32>, vector<64x16xf32>, vector<64x64xf32> -> vector<64x64xf32>
    %117 = arith.mulf %116, %25 : vector<64x64xf32>
    %cst_55 = arith.constant dense<0.000000e+00> : vector<64x64xf32>
    %118 = tpu.matmul %117, %30, %cst_55 {dimension_numbers = #tpu.dot_dimension_numbers<[1], [0], [0], [1], [0, 0, 1, 1], [], []>} : vector<64x64xf32>, vector<64x64xf32>, vector<64x64xf32> -> vector<64x64xf32>
    %119 = arith.addf %115, %118 : vector<64x64xf32>
    %cst_56 = arith.constant -1.000000e+09 : f32
    %120 = vector.broadcast %cst_56 : f32 to vector<64x64xf32>
    %121 = arith.select %20, %119, %120 : vector<64x64xi1>, vector<64x64xf32>
    %cst_57 = arith.constant dense<0xFF800000> : vector<64xf32>
    %122 = vector.multi_reduction <maximumf>, %121, %cst_57 [1] : vector<64x64xf32> to vector<64xf32>
    %123 = vector.shape_cast %122 : vector<64xf32> to vector<64x1xf32>
    %124 = vector.broadcast %123 : vector<64x1xf32> to vector<64x64xf32>
    %125 = arith.subf %121, %124 : vector<64x64xf32>
    %126 = math.exp %125 : vector<64x64xf32>
    %cst_58 = arith.constant dense<0.000000e+00> : vector<64xf32>
    %127 = vector.multi_reduction <add>, %126, %cst_58 [1] : vector<64x64xf32> to vector<64xf32>
    %128 = vector.shape_cast %127 : vector<64xf32> to vector<64x1xf32>
    %129 = tpu.reciprocal %128 {approx = true} : vector<64x1xf32> -> vector<64x1xf32>
    %130 = vector.broadcast %129 : vector<64x1xf32> to vector<64x64xf32>
    %131 = arith.mulf %126, %130 : vector<64x64xf32>
    %cst_59 = arith.constant dense<0.000000e+00> : vector<64x16xf32>
    %132 = tpu.matmul %131, %113, %cst_59 {dimension_numbers = #tpu.dot_dimension_numbers<[1], [0], [0], [1], [0, 0, 1, 1], [], []>} : vector<64x64xf32>, vector<64x16xf32>, vector<64x16xf32> -> vector<64x16xf32>
    %133 = vector.extract_strided_slice %31 {offsets = [48, 0], sizes = [16, 32], strides = [1, 1]} : vector<64x32xf32> to vector<16x32xf32>
    %cst_60 = arith.constant dense<0.000000e+00> : vector<64x32xf32>
    %134 = tpu.matmul %132, %133, %cst_60 {dimension_numbers = #tpu.dot_dimension_numbers<[1], [0], [0], [1], [0, 0, 1, 1], [], []>} : vector<64x16xf32>, vector<16x32xf32>, vector<64x32xf32> -> vector<64x32xf32>
    %135 = arith.addf %110, %134 : vector<64x32xf32>
    %136 = vector.broadcast %32 : vector<1x32xf32> to vector<64x32xf32>
    %137 = arith.addf %135, %136 : vector<64x32xf32>
    %c0_61 = arith.constant 0 : index
    %c0_62 = arith.constant 0 : index
    %c0_63 = arith.constant 0 : index
    %138 = vector.load %arg15[%c0_61, %c0_62, %c0_63] : memref<1x64x128xf32, #tpu.memory_space<vmem>>, vector<1x64x32xf32>
    %139 = vector.shape_cast %138 : vector<1x64x32xf32> to vector<64x32xf32>
    %140 = vector.shape_cast %137 : vector<64x32xf32> to vector<1x64x32xf32>
    tpu.vector_store %arg15[%c0_61, %c0_62, %c0_63], %140 {strides = array<i32>} : memref<1x64x128xf32, #tpu.memory_space<vmem>>, vector<1x64x32xf32>,
    %141 = vector.extract_strided_slice %5 {offsets = [64, 0], sizes = [64, 64], strides = [1, 1]} : vector<256x64xf32> to vector<64x64xf32>
    %142 = vector.extract_strided_slice %11 {offsets = [192, 0], sizes = [64, 128], strides = [1, 1]} : vector<256x128xf32> to vector<64x128xf32>
    %cst_64 = arith.constant 0.000000e+00 : f32
    %143 = vector.broadcast %cst_64 : f32 to vector<64x32xf32>
    %144 = vector.extract_strided_slice %141 {offsets = [0, 0], sizes = [64, 16], strides = [1, 1]} : vector<64x64xf32> to vector<64x16xf32>
    %145 = vector.extract_strided_slice %142 {offsets = [0, 0], sizes = [64, 16], strides = [1, 1]} : vector<64x128xf32> to vector<64x16xf32>
    %146 = vector.extract_strided_slice %142 {offsets = [0, 64], sizes = [64, 16], strides = [1, 1]} : vector<64x128xf32> to vector<64x16xf32>
    %147 = arith.addf %145, %13 : vector<64x16xf32>
    %cst_65 = arith.constant dense<0.000000e+00> : vector<64x64xf32>
    %148 = tpu.matmul %144, %147, %cst_65 {dimension_numbers = #tpu.dot_dimension_numbers<[1], [1], [0], [0], [0, 0, 1, 0], [], []>} : vector<64x16xf32>, vector<64x16xf32>, vector<64x64xf32> -> vector<64x64xf32>
    %cst_66 = arith.constant dense<0.000000e+00> : vector<64x64xf32>
    %149 = tpu.matmul %144, %12, %cst_66 {dimension_numbers = #tpu.dot_dimension_numbers<[1], [1], [0], [0], [0, 0, 1, 0], [], []>} : vector<64x16xf32>, vector<64x16xf32>, vector<64x64xf32> -> vector<64x64xf32>
    %150 = arith.mulf %149, %25 : vector<64x64xf32>
    %cst_67 = arith.constant dense<0.000000e+00> : vector<64x64xf32>
    %151 = tpu.matmul %150, %30, %cst_67 {dimension_numbers = #tpu.dot_dimension_numbers<[1], [0], [0], [1], [0, 0, 1, 1], [], []>} : vector<64x64xf32>, vector<64x64xf32>, vector<64x64xf32> -> vector<64x64xf32>
    %152 = arith.addf %148, %151 : vector<64x64xf32>
    %cst_68 = arith.constant -1.000000e+09 : f32
    %153 = vector.broadcast %cst_68 : f32 to vector<64x64xf32>
    %154 = arith.select %20, %152, %153 : vector<64x64xi1>, vector<64x64xf32>
    %cst_69 = arith.constant dense<0xFF800000> : vector<64xf32>
    %155 = vector.multi_reduction <maximumf>, %154, %cst_69 [1] : vector<64x64xf32> to vector<64xf32>
    %156 = vector.shape_cast %155 : vector<64xf32> to vector<64x1xf32>
    %157 = vector.broadcast %156 : vector<64x1xf32> to vector<64x64xf32>
    %158 = arith.subf %154, %157 : vector<64x64xf32>
    %159 = math.exp %158 : vector<64x64xf32>
    %cst_70 = arith.constant dense<0.000000e+00> : vector<64xf32>
    %160 = vector.multi_reduction <add>, %159, %cst_70 [1] : vector<64x64xf32> to vector<64xf32>
    %161 = vector.shape_cast %160 : vector<64xf32> to vector<64x1xf32>
    %162 = tpu.reciprocal %161 {approx = true} : vector<64x1xf32> -> vector<64x1xf32>
    %163 = vector.broadcast %162 : vector<64x1xf32> to vector<64x64xf32>
    %164 = arith.mulf %159, %163 : vector<64x64xf32>
    %cst_71 = arith.constant dense<0.000000e+00> : vector<64x16xf32>
    %165 = tpu.matmul %164, %146, %cst_71 {dimension_numbers = #tpu.dot_dimension_numbers<[1], [0], [0], [1], [0, 0, 1, 1], [], []>} : vector<64x64xf32>, vector<64x16xf32>, vector<64x16xf32> -> vector<64x16xf32>
    %166 = vector.extract_strided_slice %31 {offsets = [0, 0], sizes = [16, 32], strides = [1, 1]} : vector<64x32xf32> to vector<16x32xf32>
    %cst_72 = arith.constant dense<0.000000e+00> : vector<64x32xf32>
    %167 = tpu.matmul %165, %166, %cst_72 {dimension_numbers = #tpu.dot_dimension_numbers<[1], [0], [0], [1], [0, 0, 1, 1], [], []>} : vector<64x16xf32>, vector<16x32xf32>, vector<64x32xf32> -> vector<64x32xf32>
    %168 = arith.addf %143, %167 : vector<64x32xf32>
    %169 = vector.extract_strided_slice %141 {offsets = [0, 16], sizes = [64, 16], strides = [1, 1]} : vector<64x64xf32> to vector<64x16xf32>
    %170 = vector.extract_strided_slice %142 {offsets = [0, 16], sizes = [64, 16], strides = [1, 1]} : vector<64x128xf32> to vector<64x16xf32>
    %171 = vector.extract_strided_slice %142 {offsets = [0, 80], sizes = [64, 16], strides = [1, 1]} : vector<64x128xf32> to vector<64x16xf32>
    %172 = arith.addf %170, %13 : vector<64x16xf32>
    %cst_73 = arith.constant dense<0.000000e+00> : vector<64x64xf32>
    %173 = tpu.matmul %169, %172, %cst_73 {dimension_numbers = #tpu.dot_dimension_numbers<[1], [1], [0], [0], [0, 0, 1, 0], [], []>} : vector<64x16xf32>, vector<64x16xf32>, vector<64x64xf32> -> vector<64x64xf32>
    %cst_74 = arith.constant dense<0.000000e+00> : vector<64x64xf32>
    %174 = tpu.matmul %169, %12, %cst_74 {dimension_numbers = #tpu.dot_dimension_numbers<[1], [1], [0], [0], [0, 0, 1, 0], [], []>} : vector<64x16xf32>, vector<64x16xf32>, vector<64x64xf32> -> vector<64x64xf32>
    %175 = arith.mulf %174, %25 : vector<64x64xf32>
    %cst_75 = arith.constant dense<0.000000e+00> : vector<64x64xf32>
    %176 = tpu.matmul %175, %30, %cst_75 {dimension_numbers = #tpu.dot_dimension_numbers<[1], [0], [0], [1], [0, 0, 1, 1], [], []>} : vector<64x64xf32>, vector<64x64xf32>, vector<64x64xf32> -> vector<64x64xf32>
    %177 = arith.addf %173, %176 : vector<64x64xf32>
    %cst_76 = arith.constant -1.000000e+09 : f32
    %178 = vector.broadcast %cst_76 : f32 to vector<64x64xf32>
    %179 = arith.select %20, %177, %178 : vector<64x64xi1>, vector<64x64xf32>
    %cst_77 = arith.constant dense<0xFF800000> : vector<64xf32>
    %180 = vector.multi_reduction <maximumf>, %179, %cst_77 [1] : vector<64x64xf32> to vector<64xf32>
    %181 = vector.shape_cast %180 : vector<64xf32> to vector<64x1xf32>
    %182 = vector.broadcast %181 : vector<64x1xf32> to vector<64x64xf32>
    %183 = arith.subf %179, %182 : vector<64x64xf32>
    %184 = math.exp %183 : vector<64x64xf32>
    %cst_78 = arith.constant dense<0.000000e+00> : vector<64xf32>
    %185 = vector.multi_reduction <add>, %184, %cst_78 [1] : vector<64x64xf32> to vector<64xf32>
    %186 = vector.shape_cast %185 : vector<64xf32> to vector<64x1xf32>
    %187 = tpu.reciprocal %186 {approx = true} : vector<64x1xf32> -> vector<64x1xf32>
    %188 = vector.broadcast %187 : vector<64x1xf32> to vector<64x64xf32>
    %189 = arith.mulf %184, %188 : vector<64x64xf32>
    %cst_79 = arith.constant dense<0.000000e+00> : vector<64x16xf32>
    %190 = tpu.matmul %189, %171, %cst_79 {dimension_numbers = #tpu.dot_dimension_numbers<[1], [0], [0], [1], [0, 0, 1, 1], [], []>} : vector<64x64xf32>, vector<64x16xf32>, vector<64x16xf32> -> vector<64x16xf32>
    %191 = vector.extract_strided_slice %31 {offsets = [16, 0], sizes = [16, 32], strides = [1, 1]} : vector<64x32xf32> to vector<16x32xf32>
    %cst_80 = arith.constant dense<0.000000e+00> : vector<64x32xf32>
    %192 = tpu.matmul %190, %191, %cst_80 {dimension_numbers = #tpu.dot_dimension_numbers<[1], [0], [0], [1], [0, 0, 1, 1], [], []>} : vector<64x16xf32>, vector<16x32xf32>, vector<64x32xf32> -> vector<64x32xf32>
    %193 = arith.addf %168, %192 : vector<64x32xf32>
    %194 = vector.extract_strided_slice %141 {offsets = [0, 32], sizes = [64, 16], strides = [1, 1]} : vector<64x64xf32> to vector<64x16xf32>
    %195 = vector.extract_strided_slice %142 {offsets = [0, 32], sizes = [64, 16], strides = [1, 1]} : vector<64x128xf32> to vector<64x16xf32>
    %196 = vector.extract_strided_slice %142 {offsets = [0, 96], sizes = [64, 16], strides = [1, 1]} : vector<64x128xf32> to vector<64x16xf32>
    %197 = arith.addf %195, %13 : vector<64x16xf32>
    %cst_81 = arith.constant dense<0.000000e+00> : vector<64x64xf32>
    %198 = tpu.matmul %194, %197, %cst_81 {dimension_numbers = #tpu.dot_dimension_numbers<[1], [1], [0], [0], [0, 0, 1, 0], [], []>} : vector<64x16xf32>, vector<64x16xf32>, vector<64x64xf32> -> vector<64x64xf32>
    %cst_82 = arith.constant dense<0.000000e+00> : vector<64x64xf32>
    %199 = tpu.matmul %194, %12, %cst_82 {dimension_numbers = #tpu.dot_dimension_numbers<[1], [1], [0], [0], [0, 0, 1, 0], [], []>} : vector<64x16xf32>, vector<64x16xf32>, vector<64x64xf32> -> vector<64x64xf32>
    %200 = arith.mulf %199, %25 : vector<64x64xf32>
    %cst_83 = arith.constant dense<0.000000e+00> : vector<64x64xf32>
    %201 = tpu.matmul %200, %30, %cst_83 {dimension_numbers = #tpu.dot_dimension_numbers<[1], [0], [0], [1], [0, 0, 1, 1], [], []>} : vector<64x64xf32>, vector<64x64xf32>, vector<64x64xf32> -> vector<64x64xf32>
    %202 = arith.addf %198, %201 : vector<64x64xf32>
    %cst_84 = arith.constant -1.000000e+09 : f32
    %203 = vector.broadcast %cst_84 : f32 to vector<64x64xf32>
    %204 = arith.select %20, %202, %203 : vector<64x64xi1>, vector<64x64xf32>
    %cst_85 = arith.constant dense<0xFF800000> : vector<64xf32>
    %205 = vector.multi_reduction <maximumf>, %204, %cst_85 [1] : vector<64x64xf32> to vector<64xf32>
    %206 = vector.shape_cast %205 : vector<64xf32> to vector<64x1xf32>
    %207 = vector.broadcast %206 : vector<64x1xf32> to vector<64x64xf32>
    %208 = arith.subf %204, %207 : vector<64x64xf32>
    %209 = math.exp %208 : vector<64x64xf32>
    %cst_86 = arith.constant dense<0.000000e+00> : vector<64xf32>
    %210 = vector.multi_reduction <add>, %209, %cst_86 [1] : vector<64x64xf32> to vector<64xf32>
    %211 = vector.shape_cast %210 : vector<64xf32> to vector<64x1xf32>
    %212 = tpu.reciprocal %211 {approx = true} : vector<64x1xf32> -> vector<64x1xf32>
    %213 = vector.broadcast %212 : vector<64x1xf32> to vector<64x64xf32>
    %214 = arith.mulf %209, %213 : vector<64x64xf32>
    %cst_87 = arith.constant dense<0.000000e+00> : vector<64x16xf32>
    %215 = tpu.matmul %214, %196, %cst_87 {dimension_numbers = #tpu.dot_dimension_numbers<[1], [0], [0], [1], [0, 0, 1, 1], [], []>} : vector<64x64xf32>, vector<64x16xf32>, vector<64x16xf32> -> vector<64x16xf32>
    %216 = vector.extract_strided_slice %31 {offsets = [32, 0], sizes = [16, 32], strides = [1, 1]} : vector<64x32xf32> to vector<16x32xf32>
    %cst_88 = arith.constant dense<0.000000e+00> : vector<64x32xf32>
    %217 = tpu.matmul %215, %216, %cst_88 {dimension_numbers = #tpu.dot_dimension_numbers<[1], [0], [0], [1], [0, 0, 1, 1], [], []>} : vector<64x16xf32>, vector<16x32xf32>, vector<64x32xf32> -> vector<64x32xf32>
    %218 = arith.addf %193, %217 : vector<64x32xf32>
    %219 = vector.extract_strided_slice %141 {offsets = [0, 48], sizes = [64, 16], strides = [1, 1]} : vector<64x64xf32> to vector<64x16xf32>
    %220 = vector.extract_strided_slice %142 {offsets = [0, 48], sizes = [64, 16], strides = [1, 1]} : vector<64x128xf32> to vector<64x16xf32>
    %221 = vector.extract_strided_slice %142 {offsets = [0, 112], sizes = [64, 16], strides = [1, 1]} : vector<64x128xf32> to vector<64x16xf32>
    %222 = arith.addf %220, %13 : vector<64x16xf32>
    %cst_89 = arith.constant dense<0.000000e+00> : vector<64x64xf32>
    %223 = tpu.matmul %219, %222, %cst_89 {dimension_numbers = #tpu.dot_dimension_numbers<[1], [1], [0], [0], [0, 0, 1, 0], [], []>} : vector<64x16xf32>, vector<64x16xf32>, vector<64x64xf32> -> vector<64x64xf32>
    %cst_90 = arith.constant dense<0.000000e+00> : vector<64x64xf32>
    %224 = tpu.matmul %219, %12, %cst_90 {dimension_numbers = #tpu.dot_dimension_numbers<[1], [1], [0], [0], [0, 0, 1, 0], [], []>} : vector<64x16xf32>, vector<64x16xf32>, vector<64x64xf32> -> vector<64x64xf32>
    %225 = arith.mulf %224, %25 : vector<64x64xf32>
    %cst_91 = arith.constant dense<0.000000e+00> : vector<64x64xf32>
    %226 = tpu.matmul %225, %30, %cst_91 {dimension_numbers = #tpu.dot_dimension_numbers<[1], [0], [0], [1], [0, 0, 1, 1], [], []>} : vector<64x64xf32>, vector<64x64xf32>, vector<64x64xf32> -> vector<64x64xf32>
    %227 = arith.addf %223, %226 : vector<64x64xf32>
    %cst_92 = arith.constant -1.000000e+09 : f32
    %228 = vector.broadcast %cst_92 : f32 to vector<64x64xf32>
    %229 = arith.select %20, %227, %228 : vector<64x64xi1>, vector<64x64xf32>
    %cst_93 = arith.constant dense<0xFF800000> : vector<64xf32>
    %230 = vector.multi_reduction <maximumf>, %229, %cst_93 [1] : vector<64x64xf32> to vector<64xf32>
    %231 = vector.shape_cast %230 : vector<64xf32> to vector<64x1xf32>
    %232 = vector.broadcast %231 : vector<64x1xf32> to vector<64x64xf32>
    %233 = arith.subf %229, %232 : vector<64x64xf32>
    %234 = math.exp %233 : vector<64x64xf32>
    %cst_94 = arith.constant dense<0.000000e+00> : vector<64xf32>
    %235 = vector.multi_reduction <add>, %234, %cst_94 [1] : vector<64x64xf32> to vector<64xf32>
    %236 = vector.shape_cast %235 : vector<64xf32> to vector<64x1xf32>
    %237 = tpu.reciprocal %236 {approx = true} : vector<64x1xf32> -> vector<64x1xf32>
    %238 = vector.broadcast %237 : vector<64x1xf32> to vector<64x64xf32>
    %239 = arith.mulf %234, %238 : vector<64x64xf32>
    %cst_95 = arith.constant dense<0.000000e+00> : vector<64x16xf32>
    %240 = tpu.matmul %239, %221, %cst_95 {dimension_numbers = #tpu.dot_dimension_numbers<[1], [0], [0], [1], [0, 0, 1, 1], [], []>} : vector<64x64xf32>, vector<64x16xf32>, vector<64x16xf32> -> vector<64x16xf32>
    %241 = vector.extract_strided_slice %31 {offsets = [48, 0], sizes = [16, 32], strides = [1, 1]} : vector<64x32xf32> to vector<16x32xf32>
    %cst_96 = arith.constant dense<0.000000e+00> : vector<64x32xf32>
    %242 = tpu.matmul %240, %241, %cst_96 {dimension_numbers = #tpu.dot_dimension_numbers<[1], [0], [0], [1], [0, 0, 1, 1], [], []>} : vector<64x16xf32>, vector<16x32xf32>, vector<64x32xf32> -> vector<64x32xf32>
    %243 = arith.addf %218, %242 : vector<64x32xf32>
    %244 = vector.broadcast %32 : vector<1x32xf32> to vector<64x32xf32>
    %245 = arith.addf %243, %244 : vector<64x32xf32>
    %c0_97 = arith.constant 0 : index
    %c0_98 = arith.constant 0 : index
    %c32 = arith.constant 32 : index
    %246 = vector.load %arg15[%c0_97, %c0_98, %c32] : memref<1x64x128xf32, #tpu.memory_space<vmem>>, vector<1x64x32xf32>
    %247 = vector.shape_cast %246 : vector<1x64x32xf32> to vector<64x32xf32>
    %248 = vector.shape_cast %245 : vector<64x32xf32> to vector<1x64x32xf32>
    tpu.vector_store %arg15[%c0_97, %c0_98, %c32], %248 {strides = array<i32>} : memref<1x64x128xf32, #tpu.memory_space<vmem>>, vector<1x64x32xf32>,
    %249 = vector.extract_strided_slice %5 {offsets = [128, 0], sizes = [64, 64], strides = [1, 1]} : vector<256x64xf32> to vector<64x64xf32>
    %250 = vector.extract_strided_slice %11 {offsets = [0, 0], sizes = [64, 128], strides = [1, 1]} : vector<256x128xf32> to vector<64x128xf32>
    %cst_99 = arith.constant 0.000000e+00 : f32
    %251 = vector.broadcast %cst_99 : f32 to vector<64x32xf32>
    %252 = vector.extract_strided_slice %249 {offsets = [0, 0], sizes = [64, 16], strides = [1, 1]} : vector<64x64xf32> to vector<64x16xf32>
    %253 = vector.extract_strided_slice %250 {offsets = [0, 0], sizes = [64, 16], strides = [1, 1]} : vector<64x128xf32> to vector<64x16xf32>
    %254 = vector.extract_strided_slice %250 {offsets = [0, 64], sizes = [64, 16], strides = [1, 1]} : vector<64x128xf32> to vector<64x16xf32>
    %255 = arith.addf %253, %13 : vector<64x16xf32>
    %cst_100 = arith.constant dense<0.000000e+00> : vector<64x64xf32>
    %256 = tpu.matmul %252, %255, %cst_100 {dimension_numbers = #tpu.dot_dimension_numbers<[1], [1], [0], [0], [0, 0, 1, 0], [], []>} : vector<64x16xf32>, vector<64x16xf32>, vector<64x64xf32> -> vector<64x64xf32>
    %cst_101 = arith.constant dense<0.000000e+00> : vector<64x64xf32>
    %257 = tpu.matmul %252, %12, %cst_101 {dimension_numbers = #tpu.dot_dimension_numbers<[1], [1], [0], [0], [0, 0, 1, 0], [], []>} : vector<64x16xf32>, vector<64x16xf32>, vector<64x64xf32> -> vector<64x64xf32>
    %258 = arith.mulf %257, %25 : vector<64x64xf32>
    %cst_102 = arith.constant dense<0.000000e+00> : vector<64x64xf32>
    %259 = tpu.matmul %258, %30, %cst_102 {dimension_numbers = #tpu.dot_dimension_numbers<[1], [0], [0], [1], [0, 0, 1, 1], [], []>} : vector<64x64xf32>, vector<64x64xf32>, vector<64x64xf32> -> vector<64x64xf32>
    %260 = arith.addf %256, %259 : vector<64x64xf32>
    %cst_103 = arith.constant -1.000000e+09 : f32
    %261 = vector.broadcast %cst_103 : f32 to vector<64x64xf32>
    %262 = arith.select %20, %260, %261 : vector<64x64xi1>, vector<64x64xf32>
    %cst_104 = arith.constant dense<0xFF800000> : vector<64xf32>
    %263 = vector.multi_reduction <maximumf>, %262, %cst_104 [1] : vector<64x64xf32> to vector<64xf32>
    %264 = vector.shape_cast %263 : vector<64xf32> to vector<64x1xf32>
    %265 = vector.broadcast %264 : vector<64x1xf32> to vector<64x64xf32>
    %266 = arith.subf %262, %265 : vector<64x64xf32>
    %267 = math.exp %266 : vector<64x64xf32>
    %cst_105 = arith.constant dense<0.000000e+00> : vector<64xf32>
    %268 = vector.multi_reduction <add>, %267, %cst_105 [1] : vector<64x64xf32> to vector<64xf32>
    %269 = vector.shape_cast %268 : vector<64xf32> to vector<64x1xf32>
    %270 = tpu.reciprocal %269 {approx = true} : vector<64x1xf32> -> vector<64x1xf32>
    %271 = vector.broadcast %270 : vector<64x1xf32> to vector<64x64xf32>
    %272 = arith.mulf %267, %271 : vector<64x64xf32>
    %cst_106 = arith.constant dense<0.000000e+00> : vector<64x16xf32>
    %273 = tpu.matmul %272, %254, %cst_106 {dimension_numbers = #tpu.dot_dimension_numbers<[1], [0], [0], [1], [0, 0, 1, 1], [], []>} : vector<64x64xf32>, vector<64x16xf32>, vector<64x16xf32> -> vector<64x16xf32>
    %274 = vector.extract_strided_slice %31 {offsets = [0, 0], sizes = [16, 32], strides = [1, 1]} : vector<64x32xf32> to vector<16x32xf32>
    %cst_107 = arith.constant dense<0.000000e+00> : vector<64x32xf32>
    %275 = tpu.matmul %273, %274, %cst_107 {dimension_numbers = #tpu.dot_dimension_numbers<[1], [0], [0], [1], [0, 0, 1, 1], [], []>} : vector<64x16xf32>, vector<16x32xf32>, vector<64x32xf32> -> vector<64x32xf32>
    %276 = arith.addf %251, %275 : vector<64x32xf32>
    %277 = vector.extract_strided_slice %249 {offsets = [0, 16], sizes = [64, 16], strides = [1, 1]} : vector<64x64xf32> to vector<64x16xf32>
    %278 = vector.extract_strided_slice %250 {offsets = [0, 16], sizes = [64, 16], strides = [1, 1]} : vector<64x128xf32> to vector<64x16xf32>
    %279 = vector.extract_strided_slice %250 {offsets = [0, 80], sizes = [64, 16], strides = [1, 1]} : vector<64x128xf32> to vector<64x16xf32>
    %280 = arith.addf %278, %13 : vector<64x16xf32>
    %cst_108 = arith.constant dense<0.000000e+00> : vector<64x64xf32>
    %281 = tpu.matmul %277, %280, %cst_108 {dimension_numbers = #tpu.dot_dimension_numbers<[1], [1], [0], [0], [0, 0, 1, 0], [], []>} : vector<64x16xf32>, vector<64x16xf32>, vector<64x64xf32> -> vector<64x64xf32>
    %cst_109 = arith.constant dense<0.000000e+00> : vector<64x64xf32>
    %282 = tpu.matmul %277, %12, %cst_109 {dimension_numbers = #tpu.dot_dimension_numbers<[1], [1], [0], [0], [0, 0, 1, 0], [], []>} : vector<64x16xf32>, vector<64x16xf32>, vector<64x64xf32> -> vector<64x64xf32>
    %283 = arith.mulf %282, %25 : vector<64x64xf32>
    %cst_110 = arith.constant dense<0.000000e+00> : vector<64x64xf32>
    %284 = tpu.matmul %283, %30, %cst_110 {dimension_numbers = #tpu.dot_dimension_numbers<[1], [0], [0], [1], [0, 0, 1, 1], [], []>} : vector<64x64xf32>, vector<64x64xf32>, vector<64x64xf32> -> vector<64x64xf32>
    %285 = arith.addf %281, %284 : vector<64x64xf32>
    %cst_111 = arith.constant -1.000000e+09 : f32
    %286 = vector.broadcast %cst_111 : f32 to vector<64x64xf32>
    %287 = arith.select %20, %285, %286 : vector<64x64xi1>, vector<64x64xf32>
    %cst_112 = arith.constant dense<0xFF800000> : vector<64xf32>
    %288 = vector.multi_reduction <maximumf>, %287, %cst_112 [1] : vector<64x64xf32> to vector<64xf32>
    %289 = vector.shape_cast %288 : vector<64xf32> to vector<64x1xf32>
    %290 = vector.broadcast %289 : vector<64x1xf32> to vector<64x64xf32>
    %291 = arith.subf %287, %290 : vector<64x64xf32>
    %292 = math.exp %291 : vector<64x64xf32>
    %cst_113 = arith.constant dense<0.000000e+00> : vector<64xf32>
    %293 = vector.multi_reduction <add>, %292, %cst_113 [1] : vector<64x64xf32> to vector<64xf32>
    %294 = vector.shape_cast %293 : vector<64xf32> to vector<64x1xf32>
    %295 = tpu.reciprocal %294 {approx = true} : vector<64x1xf32> -> vector<64x1xf32>
    %296 = vector.broadcast %295 : vector<64x1xf32> to vector<64x64xf32>
    %297 = arith.mulf %292, %296 : vector<64x64xf32>
    %cst_114 = arith.constant dense<0.000000e+00> : vector<64x16xf32>
    %298 = tpu.matmul %297, %279, %cst_114 {dimension_numbers = #tpu.dot_dimension_numbers<[1], [0], [0], [1], [0, 0, 1, 1], [], []>} : vector<64x64xf32>, vector<64x16xf32>, vector<64x16xf32> -> vector<64x16xf32>
    %299 = vector.extract_strided_slice %31 {offsets = [16, 0], sizes = [16, 32], strides = [1, 1]} : vector<64x32xf32> to vector<16x32xf32>
    %cst_115 = arith.constant dense<0.000000e+00> : vector<64x32xf32>
    %300 = tpu.matmul %298, %299, %cst_115 {dimension_numbers = #tpu.dot_dimension_numbers<[1], [0], [0], [1], [0, 0, 1, 1], [], []>} : vector<64x16xf32>, vector<16x32xf32>, vector<64x32xf32> -> vector<64x32xf32>
    %301 = arith.addf %276, %300 : vector<64x32xf32>
    %302 = vector.extract_strided_slice %249 {offsets = [0, 32], sizes = [64, 16], strides = [1, 1]} : vector<64x64xf32> to vector<64x16xf32>
    %303 = vector.extract_strided_slice %250 {offsets = [0, 32], sizes = [64, 16], strides = [1, 1]} : vector<64x128xf32> to vector<64x16xf32>
    %304 = vector.extract_strided_slice %250 {offsets = [0, 96], sizes = [64, 16], strides = [1, 1]} : vector<64x128xf32> to vector<64x16xf32>
    %305 = arith.addf %303, %13 : vector<64x16xf32>
    %cst_116 = arith.constant dense<0.000000e+00> : vector<64x64xf32>
    %306 = tpu.matmul %302, %305, %cst_116 {dimension_numbers = #tpu.dot_dimension_numbers<[1], [1], [0], [0], [0, 0, 1, 0], [], []>} : vector<64x16xf32>, vector<64x16xf32>, vector<64x64xf32> -> vector<64x64xf32>
    %cst_117 = arith.constant dense<0.000000e+00> : vector<64x64xf32>
    %307 = tpu.matmul %302, %12, %cst_117 {dimension_numbers = #tpu.dot_dimension_numbers<[1], [1], [0], [0], [0, 0, 1, 0], [], []>} : vector<64x16xf32>, vector<64x16xf32>, vector<64x64xf32> -> vector<64x64xf32>
    %308 = arith.mulf %307, %25 : vector<64x64xf32>
    %cst_118 = arith.constant dense<0.000000e+00> : vector<64x64xf32>
    %309 = tpu.matmul %308, %30, %cst_118 {dimension_numbers = #tpu.dot_dimension_numbers<[1], [0], [0], [1], [0, 0, 1, 1], [], []>} : vector<64x64xf32>, vector<64x64xf32>, vector<64x64xf32> -> vector<64x64xf32>
    %310 = arith.addf %306, %309 : vector<64x64xf32>
    %cst_119 = arith.constant -1.000000e+09 : f32
    %311 = vector.broadcast %cst_119 : f32 to vector<64x64xf32>
    %312 = arith.select %20, %310, %311 : vector<64x64xi1>, vector<64x64xf32>
    %cst_120 = arith.constant dense<0xFF800000> : vector<64xf32>
    %313 = vector.multi_reduction <maximumf>, %312, %cst_120 [1] : vector<64x64xf32> to vector<64xf32>
    %314 = vector.shape_cast %313 : vector<64xf32> to vector<64x1xf32>
    %315 = vector.broadcast %314 : vector<64x1xf32> to vector<64x64xf32>
    %316 = arith.subf %312, %315 : vector<64x64xf32>
    %317 = math.exp %316 : vector<64x64xf32>
    %cst_121 = arith.constant dense<0.000000e+00> : vector<64xf32>
    %318 = vector.multi_reduction <add>, %317, %cst_121 [1] : vector<64x64xf32> to vector<64xf32>
    %319 = vector.shape_cast %318 : vector<64xf32> to vector<64x1xf32>
    %320 = tpu.reciprocal %319 {approx = true} : vector<64x1xf32> -> vector<64x1xf32>
    %321 = vector.broadcast %320 : vector<64x1xf32> to vector<64x64xf32>
    %322 = arith.mulf %317, %321 : vector<64x64xf32>
    %cst_122 = arith.constant dense<0.000000e+00> : vector<64x16xf32>
    %323 = tpu.matmul %322, %304, %cst_122 {dimension_numbers = #tpu.dot_dimension_numbers<[1], [0], [0], [1], [0, 0, 1, 1], [], []>} : vector<64x64xf32>, vector<64x16xf32>, vector<64x16xf32> -> vector<64x16xf32>
    %324 = vector.extract_strided_slice %31 {offsets = [32, 0], sizes = [16, 32], strides = [1, 1]} : vector<64x32xf32> to vector<16x32xf32>
    %cst_123 = arith.constant dense<0.000000e+00> : vector<64x32xf32>
    %325 = tpu.matmul %323, %324, %cst_123 {dimension_numbers = #tpu.dot_dimension_numbers<[1], [0], [0], [1], [0, 0, 1, 1], [], []>} : vector<64x16xf32>, vector<16x32xf32>, vector<64x32xf32> -> vector<64x32xf32>
    %326 = arith.addf %301, %325 : vector<64x32xf32>
    %327 = vector.extract_strided_slice %249 {offsets = [0, 48], sizes = [64, 16], strides = [1, 1]} : vector<64x64xf32> to vector<64x16xf32>
    %328 = vector.extract_strided_slice %250 {offsets = [0, 48], sizes = [64, 16], strides = [1, 1]} : vector<64x128xf32> to vector<64x16xf32>
    %329 = vector.extract_strided_slice %250 {offsets = [0, 112], sizes = [64, 16], strides = [1, 1]} : vector<64x128xf32> to vector<64x16xf32>
    %330 = arith.addf %328, %13 : vector<64x16xf32>
    %cst_124 = arith.constant dense<0.000000e+00> : vector<64x64xf32>
    %331 = tpu.matmul %327, %330, %cst_124 {dimension_numbers = #tpu.dot_dimension_numbers<[1], [1], [0], [0], [0, 0, 1, 0], [], []>} : vector<64x16xf32>, vector<64x16xf32>, vector<64x64xf32> -> vector<64x64xf32>
    %cst_125 = arith.constant dense<0.000000e+00> : vector<64x64xf32>
    %332 = tpu.matmul %327, %12, %cst_125 {dimension_numbers = #tpu.dot_dimension_numbers<[1], [1], [0], [0], [0, 0, 1, 0], [], []>} : vector<64x16xf32>, vector<64x16xf32>, vector<64x64xf32> -> vector<64x64xf32>
    %333 = arith.mulf %332, %25 : vector<64x64xf32>
    %cst_126 = arith.constant dense<0.000000e+00> : vector<64x64xf32>
    %334 = tpu.matmul %333, %30, %cst_126 {dimension_numbers = #tpu.dot_dimension_numbers<[1], [0], [0], [1], [0, 0, 1, 1], [], []>} : vector<64x64xf32>, vector<64x64xf32>, vector<64x64xf32> -> vector<64x64xf32>
    %335 = arith.addf %331, %334 : vector<64x64xf32>
    %cst_127 = arith.constant -1.000000e+09 : f32
    %336 = vector.broadcast %cst_127 : f32 to vector<64x64xf32>
    %337 = arith.select %20, %335, %336 : vector<64x64xi1>, vector<64x64xf32>
    %cst_128 = arith.constant dense<0xFF800000> : vector<64xf32>
    %338 = vector.multi_reduction <maximumf>, %337, %cst_128 [1] : vector<64x64xf32> to vector<64xf32>
    %339 = vector.shape_cast %338 : vector<64xf32> to vector<64x1xf32>
    %340 = vector.broadcast %339 : vector<64x1xf32> to vector<64x64xf32>
    %341 = arith.subf %337, %340 : vector<64x64xf32>
    %342 = math.exp %341 : vector<64x64xf32>
    %cst_129 = arith.constant dense<0.000000e+00> : vector<64xf32>
    %343 = vector.multi_reduction <add>, %342, %cst_129 [1] : vector<64x64xf32> to vector<64xf32>
    %344 = vector.shape_cast %343 : vector<64xf32> to vector<64x1xf32>
    %345 = tpu.reciprocal %344 {approx = true} : vector<64x1xf32> -> vector<64x1xf32>
    %346 = vector.broadcast %345 : vector<64x1xf32> to vector<64x64xf32>
    %347 = arith.mulf %342, %346 : vector<64x64xf32>
    %cst_130 = arith.constant dense<0.000000e+00> : vector<64x16xf32>
    %348 = tpu.matmul %347, %329, %cst_130 {dimension_numbers = #tpu.dot_dimension_numbers<[1], [0], [0], [1], [0, 0, 1, 1], [], []>} : vector<64x64xf32>, vector<64x16xf32>, vector<64x16xf32> -> vector<64x16xf32>
    %349 = vector.extract_strided_slice %31 {offsets = [48, 0], sizes = [16, 32], strides = [1, 1]} : vector<64x32xf32> to vector<16x32xf32>
    %cst_131 = arith.constant dense<0.000000e+00> : vector<64x32xf32>
    %350 = tpu.matmul %348, %349, %cst_131 {dimension_numbers = #tpu.dot_dimension_numbers<[1], [0], [0], [1], [0, 0, 1, 1], [], []>} : vector<64x16xf32>, vector<16x32xf32>, vector<64x32xf32> -> vector<64x32xf32>
    %351 = arith.addf %326, %350 : vector<64x32xf32>
    %352 = vector.broadcast %32 : vector<1x32xf32> to vector<64x32xf32>
    %353 = arith.addf %351, %352 : vector<64x32xf32>
    %c0_132 = arith.constant 0 : index
    %c0_133 = arith.constant 0 : index
    %c64 = arith.constant 64 : index
    %354 = vector.load %arg15[%c0_132, %c0_133, %c64] : memref<1x64x128xf32, #tpu.memory_space<vmem>>, vector<1x64x32xf32>
    %355 = vector.shape_cast %354 : vector<1x64x32xf32> to vector<64x32xf32>
    %356 = vector.shape_cast %353 : vector<64x32xf32> to vector<1x64x32xf32>
    tpu.vector_store %arg15[%c0_132, %c0_133, %c64], %356 {strides = array<i32>} : memref<1x64x128xf32, #tpu.memory_space<vmem>>, vector<1x64x32xf32>,
    %357 = vector.extract_strided_slice %5 {offsets = [192, 0], sizes = [64, 64], strides = [1, 1]} : vector<256x64xf32> to vector<64x64xf32>
    %358 = vector.extract_strided_slice %11 {offsets = [64, 0], sizes = [64, 128], strides = [1, 1]} : vector<256x128xf32> to vector<64x128xf32>
    %cst_134 = arith.constant 0.000000e+00 : f32
    %359 = vector.broadcast %cst_134 : f32 to vector<64x32xf32>
    %360 = vector.extract_strided_slice %357 {offsets = [0, 0], sizes = [64, 16], strides = [1, 1]} : vector<64x64xf32> to vector<64x16xf32>
    %361 = vector.extract_strided_slice %358 {offsets = [0, 0], sizes = [64, 16], strides = [1, 1]} : vector<64x128xf32> to vector<64x16xf32>
    %362 = vector.extract_strided_slice %358 {offsets = [0, 64], sizes = [64, 16], strides = [1, 1]} : vector<64x128xf32> to vector<64x16xf32>
    %363 = arith.addf %361, %13 : vector<64x16xf32>
    %cst_135 = arith.constant dense<0.000000e+00> : vector<64x64xf32>
    %364 = tpu.matmul %360, %363, %cst_135 {dimension_numbers = #tpu.dot_dimension_numbers<[1], [1], [0], [0], [0, 0, 1, 0], [], []>} : vector<64x16xf32>, vector<64x16xf32>, vector<64x64xf32> -> vector<64x64xf32>
    %cst_136 = arith.constant dense<0.000000e+00> : vector<64x64xf32>
    %365 = tpu.matmul %360, %12, %cst_136 {dimension_numbers = #tpu.dot_dimension_numbers<[1], [1], [0], [0], [0, 0, 1, 0], [], []>} : vector<64x16xf32>, vector<64x16xf32>, vector<64x64xf32> -> vector<64x64xf32>
    %366 = arith.mulf %365, %25 : vector<64x64xf32>
    %cst_137 = arith.constant dense<0.000000e+00> : vector<64x64xf32>
    %367 = tpu.matmul %366, %30, %cst_137 {dimension_numbers = #tpu.dot_dimension_numbers<[1], [0], [0], [1], [0, 0, 1, 1], [], []>} : vector<64x64xf32>, vector<64x64xf32>, vector<64x64xf32> -> vector<64x64xf32>
    %368 = arith.addf %364, %367 : vector<64x64xf32>
    %cst_138 = arith.constant -1.000000e+09 : f32
    %369 = vector.broadcast %cst_138 : f32 to vector<64x64xf32>
    %370 = arith.select %20, %368, %369 : vector<64x64xi1>, vector<64x64xf32>
    %cst_139 = arith.constant dense<0xFF800000> : vector<64xf32>
    %371 = vector.multi_reduction <maximumf>, %370, %cst_139 [1] : vector<64x64xf32> to vector<64xf32>
    %372 = vector.shape_cast %371 : vector<64xf32> to vector<64x1xf32>
    %373 = vector.broadcast %372 : vector<64x1xf32> to vector<64x64xf32>
    %374 = arith.subf %370, %373 : vector<64x64xf32>
    %375 = math.exp %374 : vector<64x64xf32>
    %cst_140 = arith.constant dense<0.000000e+00> : vector<64xf32>
    %376 = vector.multi_reduction <add>, %375, %cst_140 [1] : vector<64x64xf32> to vector<64xf32>
    %377 = vector.shape_cast %376 : vector<64xf32> to vector<64x1xf32>
    %378 = tpu.reciprocal %377 {approx = true} : vector<64x1xf32> -> vector<64x1xf32>
    %379 = vector.broadcast %378 : vector<64x1xf32> to vector<64x64xf32>
    %380 = arith.mulf %375, %379 : vector<64x64xf32>
    %cst_141 = arith.constant dense<0.000000e+00> : vector<64x16xf32>
    %381 = tpu.matmul %380, %362, %cst_141 {dimension_numbers = #tpu.dot_dimension_numbers<[1], [0], [0], [1], [0, 0, 1, 1], [], []>} : vector<64x64xf32>, vector<64x16xf32>, vector<64x16xf32> -> vector<64x16xf32>
    %382 = vector.extract_strided_slice %31 {offsets = [0, 0], sizes = [16, 32], strides = [1, 1]} : vector<64x32xf32> to vector<16x32xf32>
    %cst_142 = arith.constant dense<0.000000e+00> : vector<64x32xf32>
    %383 = tpu.matmul %381, %382, %cst_142 {dimension_numbers = #tpu.dot_dimension_numbers<[1], [0], [0], [1], [0, 0, 1, 1], [], []>} : vector<64x16xf32>, vector<16x32xf32>, vector<64x32xf32> -> vector<64x32xf32>
    %384 = arith.addf %359, %383 : vector<64x32xf32>
    %385 = vector.extract_strided_slice %357 {offsets = [0, 16], sizes = [64, 16], strides = [1, 1]} : vector<64x64xf32> to vector<64x16xf32>
    %386 = vector.extract_strided_slice %358 {offsets = [0, 16], sizes = [64, 16], strides = [1, 1]} : vector<64x128xf32> to vector<64x16xf32>
    %387 = vector.extract_strided_slice %358 {offsets = [0, 80], sizes = [64, 16], strides = [1, 1]} : vector<64x128xf32> to vector<64x16xf32>
    %388 = arith.addf %386, %13 : vector<64x16xf32>
    %cst_143 = arith.constant dense<0.000000e+00> : vector<64x64xf32>
    %389 = tpu.matmul %385, %388, %cst_143 {dimension_numbers = #tpu.dot_dimension_numbers<[1], [1], [0], [0], [0, 0, 1, 0], [], []>} : vector<64x16xf32>, vector<64x16xf32>, vector<64x64xf32> -> vector<64x64xf32>
    %cst_144 = arith.constant dense<0.000000e+00> : vector<64x64xf32>
    %390 = tpu.matmul %385, %12, %cst_144 {dimension_numbers = #tpu.dot_dimension_numbers<[1], [1], [0], [0], [0, 0, 1, 0], [], []>} : vector<64x16xf32>, vector<64x16xf32>, vector<64x64xf32> -> vector<64x64xf32>
    %391 = arith.mulf %390, %25 : vector<64x64xf32>
    %cst_145 = arith.constant dense<0.000000e+00> : vector<64x64xf32>
    %392 = tpu.matmul %391, %30, %cst_145 {dimension_numbers = #tpu.dot_dimension_numbers<[1], [0], [0], [1], [0, 0, 1, 1], [], []>} : vector<64x64xf32>, vector<64x64xf32>, vector<64x64xf32> -> vector<64x64xf32>
    %393 = arith.addf %389, %392 : vector<64x64xf32>
    %cst_146 = arith.constant -1.000000e+09 : f32
    %394 = vector.broadcast %cst_146 : f32 to vector<64x64xf32>
    %395 = arith.select %20, %393, %394 : vector<64x64xi1>, vector<64x64xf32>
    %cst_147 = arith.constant dense<0xFF800000> : vector<64xf32>
    %396 = vector.multi_reduction <maximumf>, %395, %cst_147 [1] : vector<64x64xf32> to vector<64xf32>
    %397 = vector.shape_cast %396 : vector<64xf32> to vector<64x1xf32>
    %398 = vector.broadcast %397 : vector<64x1xf32> to vector<64x64xf32>
    %399 = arith.subf %395, %398 : vector<64x64xf32>
    %400 = math.exp %399 : vector<64x64xf32>
    %cst_148 = arith.constant dense<0.000000e+00> : vector<64xf32>
    %401 = vector.multi_reduction <add>, %400, %cst_148 [1] : vector<64x64xf32> to vector<64xf32>
    %402 = vector.shape_cast %401 : vector<64xf32> to vector<64x1xf32>
    %403 = tpu.reciprocal %402 {approx = true} : vector<64x1xf32> -> vector<64x1xf32>
    %404 = vector.broadcast %403 : vector<64x1xf32> to vector<64x64xf32>
    %405 = arith.mulf %400, %404 : vector<64x64xf32>
    %cst_149 = arith.constant dense<0.000000e+00> : vector<64x16xf32>
    %406 = tpu.matmul %405, %387, %cst_149 {dimension_numbers = #tpu.dot_dimension_numbers<[1], [0], [0], [1], [0, 0, 1, 1], [], []>} : vector<64x64xf32>, vector<64x16xf32>, vector<64x16xf32> -> vector<64x16xf32>
    %407 = vector.extract_strided_slice %31 {offsets = [16, 0], sizes = [16, 32], strides = [1, 1]} : vector<64x32xf32> to vector<16x32xf32>
    %cst_150 = arith.constant dense<0.000000e+00> : vector<64x32xf32>
    %408 = tpu.matmul %406, %407, %cst_150 {dimension_numbers = #tpu.dot_dimension_numbers<[1], [0], [0], [1], [0, 0, 1, 1], [], []>} : vector<64x16xf32>, vector<16x32xf32>, vector<64x32xf32> -> vector<64x32xf32>
    %409 = arith.addf %384, %408 : vector<64x32xf32>
    %410 = vector.extract_strided_slice %357 {offsets = [0, 32], sizes = [64, 16], strides = [1, 1]} : vector<64x64xf32> to vector<64x16xf32>
    %411 = vector.extract_strided_slice %358 {offsets = [0, 32], sizes = [64, 16], strides = [1, 1]} : vector<64x128xf32> to vector<64x16xf32>
    %412 = vector.extract_strided_slice %358 {offsets = [0, 96], sizes = [64, 16], strides = [1, 1]} : vector<64x128xf32> to vector<64x16xf32>
    %413 = arith.addf %411, %13 : vector<64x16xf32>
    %cst_151 = arith.constant dense<0.000000e+00> : vector<64x64xf32>
    %414 = tpu.matmul %410, %413, %cst_151 {dimension_numbers = #tpu.dot_dimension_numbers<[1], [1], [0], [0], [0, 0, 1, 0], [], []>} : vector<64x16xf32>, vector<64x16xf32>, vector<64x64xf32> -> vector<64x64xf32>
    %cst_152 = arith.constant dense<0.000000e+00> : vector<64x64xf32>
    %415 = tpu.matmul %410, %12, %cst_152 {dimension_numbers = #tpu.dot_dimension_numbers<[1], [1], [0], [0], [0, 0, 1, 0], [], []>} : vector<64x16xf32>, vector<64x16xf32>, vector<64x64xf32> -> vector<64x64xf32>
    %416 = arith.mulf %415, %25 : vector<64x64xf32>
    %cst_153 = arith.constant dense<0.000000e+00> : vector<64x64xf32>
    %417 = tpu.matmul %416, %30, %cst_153 {dimension_numbers = #tpu.dot_dimension_numbers<[1], [0], [0], [1], [0, 0, 1, 1], [], []>} : vector<64x64xf32>, vector<64x64xf32>, vector<64x64xf32> -> vector<64x64xf32>
    %418 = arith.addf %414, %417 : vector<64x64xf32>
    %cst_154 = arith.constant -1.000000e+09 : f32
    %419 = vector.broadcast %cst_154 : f32 to vector<64x64xf32>
    %420 = arith.select %20, %418, %419 : vector<64x64xi1>, vector<64x64xf32>
    %cst_155 = arith.constant dense<0xFF800000> : vector<64xf32>
    %421 = vector.multi_reduction <maximumf>, %420, %cst_155 [1] : vector<64x64xf32> to vector<64xf32>
    %422 = vector.shape_cast %421 : vector<64xf32> to vector<64x1xf32>
    %423 = vector.broadcast %422 : vector<64x1xf32> to vector<64x64xf32>
    %424 = arith.subf %420, %423 : vector<64x64xf32>
    %425 = math.exp %424 : vector<64x64xf32>
    %cst_156 = arith.constant dense<0.000000e+00> : vector<64xf32>
    %426 = vector.multi_reduction <add>, %425, %cst_156 [1] : vector<64x64xf32> to vector<64xf32>
    %427 = vector.shape_cast %426 : vector<64xf32> to vector<64x1xf32>
    %428 = tpu.reciprocal %427 {approx = true} : vector<64x1xf32> -> vector<64x1xf32>
    %429 = vector.broadcast %428 : vector<64x1xf32> to vector<64x64xf32>
    %430 = arith.mulf %425, %429 : vector<64x64xf32>
    %cst_157 = arith.constant dense<0.000000e+00> : vector<64x16xf32>
    %431 = tpu.matmul %430, %412, %cst_157 {dimension_numbers = #tpu.dot_dimension_numbers<[1], [0], [0], [1], [0, 0, 1, 1], [], []>} : vector<64x64xf32>, vector<64x16xf32>, vector<64x16xf32> -> vector<64x16xf32>
    %432 = vector.extract_strided_slice %31 {offsets = [32, 0], sizes = [16, 32], strides = [1, 1]} : vector<64x32xf32> to vector<16x32xf32>
    %cst_158 = arith.constant dense<0.000000e+00> : vector<64x32xf32>
    %433 = tpu.matmul %431, %432, %cst_158 {dimension_numbers = #tpu.dot_dimension_numbers<[1], [0], [0], [1], [0, 0, 1, 1], [], []>} : vector<64x16xf32>, vector<16x32xf32>, vector<64x32xf32> -> vector<64x32xf32>
    %434 = arith.addf %409, %433 : vector<64x32xf32>
    %435 = vector.extract_strided_slice %357 {offsets = [0, 48], sizes = [64, 16], strides = [1, 1]} : vector<64x64xf32> to vector<64x16xf32>
    %436 = vector.extract_strided_slice %358 {offsets = [0, 48], sizes = [64, 16], strides = [1, 1]} : vector<64x128xf32> to vector<64x16xf32>
    %437 = vector.extract_strided_slice %358 {offsets = [0, 112], sizes = [64, 16], strides = [1, 1]} : vector<64x128xf32> to vector<64x16xf32>
    %438 = arith.addf %436, %13 : vector<64x16xf32>
    %cst_159 = arith.constant dense<0.000000e+00> : vector<64x64xf32>
    %439 = tpu.matmul %435, %438, %cst_159 {dimension_numbers = #tpu.dot_dimension_numbers<[1], [1], [0], [0], [0, 0, 1, 0], [], []>} : vector<64x16xf32>, vector<64x16xf32>, vector<64x64xf32> -> vector<64x64xf32>
    %cst_160 = arith.constant dense<0.000000e+00> : vector<64x64xf32>
    %440 = tpu.matmul %435, %12, %cst_160 {dimension_numbers = #tpu.dot_dimension_numbers<[1], [1], [0], [0], [0, 0, 1, 0], [], []>} : vector<64x16xf32>, vector<64x16xf32>, vector<64x64xf32> -> vector<64x64xf32>
    %441 = arith.mulf %440, %25 : vector<64x64xf32>
    %cst_161 = arith.constant dense<0.000000e+00> : vector<64x64xf32>
    %442 = tpu.matmul %441, %30, %cst_161 {dimension_numbers = #tpu.dot_dimension_numbers<[1], [0], [0], [1], [0, 0, 1, 1], [], []>} : vector<64x64xf32>, vector<64x64xf32>, vector<64x64xf32> -> vector<64x64xf32>
    %443 = arith.addf %439, %442 : vector<64x64xf32>
    %cst_162 = arith.constant -1.000000e+09 : f32
    %444 = vector.broadcast %cst_162 : f32 to vector<64x64xf32>
    %445 = arith.select %20, %443, %444 : vector<64x64xi1>, vector<64x64xf32>
    %cst_163 = arith.constant dense<0xFF800000> : vector<64xf32>
    %446 = vector.multi_reduction <maximumf>, %445, %cst_163 [1] : vector<64x64xf32> to vector<64xf32>
    %447 = vector.shape_cast %446 : vector<64xf32> to vector<64x1xf32>
    %448 = vector.broadcast %447 : vector<64x1xf32> to vector<64x64xf32>
    %449 = arith.subf %445, %448 : vector<64x64xf32>
    %450 = math.exp %449 : vector<64x64xf32>
    %cst_164 = arith.constant dense<0.000000e+00> : vector<64xf32>
    %451 = vector.multi_reduction <add>, %450, %cst_164 [1] : vector<64x64xf32> to vector<64xf32>
    %452 = vector.shape_cast %451 : vector<64xf32> to vector<64x1xf32>
    %453 = tpu.reciprocal %452 {approx = true} : vector<64x1xf32> -> vector<64x1xf32>
    %454 = vector.broadcast %453 : vector<64x1xf32> to vector<64x64xf32>
    %455 = arith.mulf %450, %454 : vector<64x64xf32>
    %cst_165 = arith.constant dense<0.000000e+00> : vector<64x16xf32>
    %456 = tpu.matmul %455, %437, %cst_165 {dimension_numbers = #tpu.dot_dimension_numbers<[1], [0], [0], [1], [0, 0, 1, 1], [], []>} : vector<64x64xf32>, vector<64x16xf32>, vector<64x16xf32> -> vector<64x16xf32>
    %457 = vector.extract_strided_slice %31 {offsets = [48, 0], sizes = [16, 32], strides = [1, 1]} : vector<64x32xf32> to vector<16x32xf32>
    %cst_166 = arith.constant dense<0.000000e+00> : vector<64x32xf32>
    %458 = tpu.matmul %456, %457, %cst_166 {dimension_numbers = #tpu.dot_dimension_numbers<[1], [0], [0], [1], [0, 0, 1, 1], [], []>} : vector<64x16xf32>, vector<16x32xf32>, vector<64x32xf32> -> vector<64x32xf32>
    %459 = arith.addf %434, %458 : vector<64x32xf32>
    %460 = vector.broadcast %32 : vector<1x32xf32> to vector<64x32xf32>
    %461 = arith.addf %459, %460 : vector<64x32xf32>
    %c0_167 = arith.constant 0 : index
    %c0_168 = arith.constant 0 : index
    %c96 = arith.constant 96 : index
    %462 = vector.load %arg15[%c0_167, %c0_168, %c96] : memref<1x64x128xf32, #tpu.memory_space<vmem>>, vector<1x64x32xf32>
    %463 = vector.shape_cast %462 : vector<1x64x32xf32> to vector<64x32xf32>
    %464 = vector.shape_cast %461 : vector<64x32xf32> to vector<1x64x32xf32>
    tpu.vector_store %arg15[%c0_167, %c0_168, %c96], %464 {strides = array<i32>} : memref<1x64x128xf32, #tpu.memory_space<vmem>>, vector<1x64x32xf32>,
    return
  }
  func.func @transform_0(%arg0: i32) -> (i32, i32) {
    %c0_i32 = arith.constant 0 : i32
    %c0_i32_0 = arith.constant 0 : i32
    return %arg0, %c0_i32 : i32, i32
  }
  func.func @transform_1(%arg0: i32) -> (i32, i32) {
    %c0_i32 = arith.constant 0 : i32
    %c0_i32_0 = arith.constant 0 : i32
    return %arg0, %c0_i32 : i32, i32
  }
  func.func @transform_2(%arg0: i32) -> (i32, i32) {
    %c0_i32 = arith.constant 0 : i32
    %c0_i32_0 = arith.constant 0 : i32
    %c0_i32_1 = arith.constant 0 : i32
    return %c0_i32, %c0_i32_0 : i32, i32
  }
  func.func @transform_3(%arg0: i32) -> (i32, i32) {
    %c0_i32 = arith.constant 0 : i32
    %c0_i32_0 = arith.constant 0 : i32
    %c0_i32_1 = arith.constant 0 : i32
    return %c0_i32, %c0_i32_0 : i32, i32
  }
  func.func @transform_4(%arg0: i32) -> (i32, i32) {
    %c0_i32 = arith.constant 0 : i32
    %c0_i32_0 = arith.constant 0 : i32
    %c0_i32_1 = arith.constant 0 : i32
    return %c0_i32, %c0_i32_0 : i32, i32
  }
  func.func @transform_5(%arg0: i32) -> (i32, i32) {
    %c0_i32 = arith.constant 0 : i32
    %c0_i32_0 = arith.constant 0 : i32
    %c0_i32_1 = arith.constant 0 : i32
    return %c0_i32, %c0_i32_0 : i32, i32
  }
  func.func @transform_6(%arg0: i32) -> (i32, i32) {
    %c0_i32 = arith.constant 0 : i32
    %c0_i32_0 = arith.constant 0 : i32
    %c0_i32_1 = arith.constant 0 : i32
    return %c0_i32, %c0_i32_0 : i32, i32
  }
  func.func @transform_7(%arg0: i32) -> (i32, i32) {
    %c0_i32 = arith.constant 0 : i32
    %c0_i32_0 = arith.constant 0 : i32
    %c0_i32_1 = arith.constant 0 : i32
    return %c0_i32, %c0_i32_0 : i32, i32
  }
  func.func @transform_8(%arg0: i32) -> (i32, i32) {
    %c0_i32 = arith.constant 0 : i32
    %c0_i32_0 = arith.constant 0 : i32
    %c0_i32_1 = arith.constant 0 : i32
    return %c0_i32, %c0_i32_0 : i32, i32
  }
  func.func @transform_9(%arg0: i32) -> (i32, i32) {
    %c0_i32 = arith.constant 0 : i32
    %c0_i32_0 = arith.constant 0 : i32
    %c0_i32_1 = arith.constant 0 : i32
    return %c0_i32, %c0_i32_0 : i32, i32
  }
  func.func @transform_10(%arg0: i32) -> (i32, i32) {
    %c0_i32 = arith.constant 0 : i32
    %c0_i32_0 = arith.constant 0 : i32
    %c0_i32_1 = arith.constant 0 : i32
    return %c0_i32, %c0_i32_0 : i32, i32
  }
  func.func @transform_11(%arg0: i32) -> (i32, i32) {
    %c0_i32 = arith.constant 0 : i32
    %c0_i32_0 = arith.constant 0 : i32
    %c0_i32_1 = arith.constant 0 : i32
    return %c0_i32, %c0_i32_0 : i32, i32
  }
  func.func @transform_12(%arg0: i32) -> (i32, i32) {
    %c0_i32 = arith.constant 0 : i32
    %c0_i32_0 = arith.constant 0 : i32
    %c0_i32_1 = arith.constant 0 : i32
    return %c0_i32, %c0_i32_0 : i32, i32
  }
  func.func @transform_13(%arg0: i32) -> (i32, i32) {
    %c0_i32 = arith.constant 0 : i32
    %c0_i32_0 = arith.constant 0 : i32
    %c0_i32_1 = arith.constant 0 : i32
    return %c0_i32, %c0_i32_0 : i32, i32
  }
  func.func @transform_14(%arg0: i32) -> (i32, i32, i32) {
    %c0_i32 = arith.constant 0 : i32
    %c0_i32_0 = arith.constant 0 : i32
    %c0_i32_1 = arith.constant 0 : i32
    return %arg0, %c0_i32, %c0_i32_0 : i32, i32, i32
  }
}

</mosaic_0001>

<bundles_post_ra>
// kernel: tpu_custom_call.1
= control target key start
LH: loop header
LB: loop body
LE: loop exit
PB: predicated region body
PF: predicated region fallthrough
CT: control target
= control target key end

     0   :  { %vm91_vm0 = vcmask 261120   ;;  %v21397_v6 = vmov 0   ;;  %vm976_vm1 = vcmask 130048   ;;  %s26811_s0 = inlined_call_operand.vmem [shape: f32[256,32], index: 0, kind: input, shape index: {}]   ;;  %s26812_s1 = inlined_call_operand.vmem [shape: f32[256,32], index: 1, kind: input, shape index: {}]   ;;  %s26813_s2 = inlined_call_operand.vmem [shape: f32[32,64], index: 2, kind: input, shape index: {}]   ;;  %s26814_s3 = inlined_call_operand.vmem [shape: f32[1,64], index: 3, kind: input, shape index: {}]   ;;  %s26815_s4 = inlined_call_operand.vmem [shape: f32[32,128], index: 4, kind: input, shape index: {}]   ;;  %s26816_s5 = inlined_call_operand.vmem [shape: f32[1,128], index: 5, kind: input, shape index: {}]   ;;  %s26817_s6 = inlined_call_operand.vmem [shape: f32[64,32], index: 6, kind: input, shape index: {}]   ;;  %s26818_s7 = inlined_call_operand.vmem [shape: f32[1,32], index: 7, kind: input, shape index: {}]   ;;  %s26819_s8 = inlined_call_operand.vmem [shape: f32[64,16], index: 8, kind: input, shape index: {}]   ;;  %s26820_s9 = inlined_call_operand.vmem [shape: f32[64,16], index: 9, kind: input, shape index: {}]   ;;  %s26821_s10 = inlined_call_operand.vmem [shape: f32[64,1], index: 10, kind: input, shape index: {}]   ;;  %s26822_s11 = inlined_call_operand.vmem [shape: f32[64,1], index: 11, kind: input, shape index: {}]   ;;  %s26823_s12 = inlined_call_operand.vmem [shape: f32[1,64], index: 12, kind: input, shape index: {}]   ;;  %s26824_s13 = inlined_call_operand.vmem [shape: f32[1,64], index: 13, kind: input, shape index: {}]   ;;  %s26825_s14 = inlined_call_operand.hbm [shape: f32[1,64,128], index: 14, kind: output, shape index: {}]  }
   0x1   :  { %v80_v0 = vld [vmem:[%s26813_s2] sm:$0xff]  ;;  %v81_v1 = vld [vmem:[%s26813_s2 + $0x8] sm:$0xff]  ;;  %v82_v2 = vld [vmem:[%s26813_s2 + $0x10] sm:$0xff]  ;;  %20265 = vset.pattern.permute.xlu0 %v21397_v6  ;;  %20266 = vset.pattern.permute.xlu1 %v21397_v6 }
   0x2   :  { %v18664_v3 = vpack.c.bf16 %v81_v1, %v80_v0  ;;  %v83_v4 = vld [vmem:[%s26813_s2 + $0x18] sm:$0xff]  ;;  %v48_v5 = vld [vmem:[%s26811_s0] sm:$0xff]  ;;  %v446_v10 = vld [vmem:[%s26815_s4 + $0x8] sm:$0xff] }
   0x3   :  { %v18668_v7 = vpack.c.bf16 %v83_v4, %v82_v2  ;;  %16512 = vmatprep.mubr.msk.f32.mxu0 %vm91_vm0, %v48_v5  ;;  %v68_v8 = vld [vmem:[%s26811_s0 + $0xa0] sm:$0xff]  ;;  %v447_v12 = vld [vmem:[%s26815_s4 + $0x10] sm:$0xff]  ;;  %v448_v13 = vld [vmem:[%s26815_s4 + $0x18] sm:$0xff] }
   0x4   :  { %18665 = vmatprep.subr.bf16.mxu0 %v18664_v3  ;;  %20024 = vmatprep.subr.bf16.mxu1 %v18664_v3  ;;  %v445_v9 = vld [vmem:[%s26815_s4] sm:$0xff]  ;;  %v49_v14 = vld [vmem:[%s26811_s0 + $0x8] sm:$0xff]  ;;  %v50_v16 = vld [vmem:[%s26811_s0 + $0x10] sm:$0xff]  ;;  %v18676_v17 = vpack.c.bf16 %v448_v13, %v447_v12 }
   0x5   :  { %18667 = vmatpush3.bf16.msra.mxu0 %v18664_v3  ;;  %20026 = vmatpush3.bf16.msra.mxu1 %v18664_v3  ;;  %v18672_v11 = vpack.c.bf16 %v446_v10, %v445_v9  ;;  %v69_v15 = vld [vmem:[%s26811_s0 + $0xa8] sm:$0xff]  ;;  %v777_v18 = vld [vmem:[%s26819_s8] sm:$0xff]  ;;  %v70_v20 = vld [vmem:[%s26811_s0 + $0xb0] sm:$0xff] }
   0x6   :  { %18669 = vmatprep.subr.bf16.mxu0 %v18668_v7  ;;  %20025 = vmatprep.subr.bf16.mxu1 %v18668_v7  ;;  %v778_v19 = vld [vmem:[%s26819_s8 + $0x8] sm:$0xff]  ;;  %v51_v22 = vld [vmem:[%s26811_s0 + $0x18] sm:$0xff]  ;;  %vm21544_vm2 = vmpackc.low %vm976_vm1, %vm976_vm1 }
   0x7   :  { %16542 = vmatprep.mubr.msk.f32.mxu1 %vm91_vm0, %v68_v8  ;;  %v21535_v21 = vpack.c.bf16 %v778_v19, %v777_v18  ;;  %v71_v24 = vld [vmem:[%s26811_s0 + $0xb8] sm:$0xff]  ;;  %v779_v25 = vld [vmem:[%s26819_s8 + $0x10] sm:$0xff]  ;;  %v52_v27 = vld [vmem:[%s26811_s0 + $0x20] sm:$0xff] }
   0x8   :  { %v780_v26 = vld [vmem:[%s26819_s8 + $0x18] sm:$0xff]  ;;  %v72_v28 = vld [vmem:[%s26811_s0 + $0xc0] sm:$0xff]  ;;  %v53_v30 = vld [vmem:[%s26811_s0 + $0x28] sm:$0xff] }
   0x9   :  { %18671 = vmatpush3.bf16.msra.mxu0 %v18668_v7  ;;  %20027 = vmatpush3.bf16.msra.mxu1 %v18668_v7  ;;  %27015 = vst [vmem:[#allocation5_spill] sm:$0xff] %v21535_v21  ;;  %v21568_v29 = vpack.c.bf16 %v780_v26, %v779_v25  ;;  %v73_v31 = vld [vmem:[%s26811_s0 + $0xc8] sm:$0xff]  ;;  %v54_v32 = vld [vmem:[%s26811_s0 + $0x30] sm:$0xff]  ;;  %v781_v34 = vld [vmem:[%s26819_s8 + $0x20] sm:$0xff] }
   0xa   :  { %18673 = vmatprep.subr.bf16.mxu1 %v18672_v11  ;;  %18682 = vmatprep.subr.msk.bf16.mxu0 %vm21544_vm2, %v21535_v21  ;;  %v74_v33 = vld [vmem:[%s26811_s0 + $0xd0] sm:$0xff]  ;;  %v782_v35 = vld [vmem:[%s26819_s8 + $0x28] sm:$0xff]  ;;  %v801_v36 = vld [vmem:[%s26822_s11] sm:$0xff] }
   0xb   :  { %27018 = vst [vmem:[#allocation6_spill] sm:$0xff] %v21568_v29  ;;  %v55_v37 = vld [vmem:[%s26811_s0 + $0x38] sm:$0xff]  ;;  %v76_v39 = vld [vmem:[%s26811_s0 + $0xe0] sm:$0xff]  ;;  %867 = vperm.xlu0 %20265, %v801_v36   ;;  %v21617_v41 = vpack.c.bf16 %v782_v35, %v781_v34  ;;  %v802_v42 = vld [vmem:[%s26822_s11 + $0x8] sm:$0xff] }
   0xc   :  { %16513 = vmatmul.mubr.msk.f32.vlgmr.msra.gmra.mrb[0].mxu0 %vm91_vm0, %v49_v14  ;;  %16543 = vmatmul.mubr.msk.f32.vlgmr.msra.gmra.mrb[0].mxu1 %vm91_vm0, %v69_v15  ;;  %v75_v38 = vld [vmem:[%s26811_s0 + $0xd8] sm:$0xff]  ;;  %v56_v40 = vld [vmem:[%s26811_s0 + $0x40] sm:$0xff] }
   0xd   :  { %16515 = vmatprep.mubr.msk.f32.mxu0 %vm91_vm0, %v50_v16  ;;  %18675 = vmatpush3.bf16.msra.mxu1 %v18672_v11  ;;  %27019 = vst [vmem:[#allocation7_spill] sm:$0xff] %v21617_v41 }
   0xe   :  { %16545 = vmatprep.mubr.msk.f32.mxu1 %vm91_vm0, %v70_v20  ;;  %18677 = vmatprep.subr.bf16.mxu1 %v18676_v17 }
  0x10   :  { %16516 = vmatmul.mubr.msk.f32.gmra.mrb[2].mxu0 %vm91_vm0, %v51_v22  ;;  %16546 = vmatmul.mubr.msk.f32.gmra.mrb[2].mxu1 %vm91_vm0, %v71_v24 }
  0x11   :  { %16518 = vmatprep.mubr.msk.f32.mxu0 %vm91_vm0, %v52_v27  ;;  %16548 = vmatprep.mubr.msk.f32.mxu1 %vm91_vm0, %v72_v28 }
  0x12   :  { %18679 = vmatpush3.bf16.msra.mxu1 %v18676_v17  ;;  %18685 = vmatpush3.bf16.xpose.msk.msra.mxu0 %vm21544_vm2, %v21535_v21 }
  0x13   :  { %18688 = vmatprep.subr.msk.bf16.mxu0 %vm21544_vm2, %v21568_v29 }
  0x14   :  { %16519 = vmatmul.mubr.msk.f32.gmra.mrb[4].mxu0 %vm91_vm0, %v53_v30  ;;  %16549 = vmatmul.mubr.msk.f32.gmra.mrb[4].mxu1 %vm91_vm0, %v73_v31 }
  0x15   :  { %16521 = vmatprep.mubr.msk.f32.mxu0 %vm91_vm0, %v54_v32  ;;  %16551 = vmatprep.mubr.msk.f32.mxu1 %vm91_vm0, %v74_v33 }
  0x16   :  { %19 = vsyncpa [#allocation3], 0  ;;  %v77_v43 = vld [vmem:[%s26811_s0 + $0xe8] sm:$0xff]  ;;  %v78_v45 = vld [vmem:[%s26811_s0 + $0xf0] sm:$0xff]  ;;  %872 = vperm.xlu0 %20265, %v802_v42   ;;  %s21400_s29 = smov 64   ;;  %s21401_s30 = smov 112  }
  0x17   :  { %v57_v44 = vld [vmem:[%s26811_s0 + $0x48] sm:$0xff]  ;;  %v58_v46 = vld [vmem:[%s26811_s0 + $0x50] sm:$0xff]  ;;  %v784_v48 = vld [vmem:[%s26819_s8 + $0x38] sm:$0xff]  ;;  %s21402_s15 = smov 16   ;;  %s21403_s16 = smov 48  }
  0x18   :  { %16522 = vmatmul.mubr.msk.f32.gmra.mrb[6].mxu0 %vm91_vm0, %v55_v37  ;;  %16552 = vmatmul.mubr.msk.f32.gmra.mrb[6].mxu1 %vm91_vm0, %v75_v38  ;;  %v783_v47 = vld [vmem:[%s26819_s8 + $0x30] sm:$0xff]  ;;  %v79_v49 = vld [vmem:[%s26811_s0 + $0xf8] sm:$0xff]  ;;  %v413_v51 = vld [vmem:[%s26812_s1] sm:$0xff]  ;;  %s21405_s18 = smov 32   ;;  %s21406_s28 = smov 80  }
  0x19   :  { %16554 = vmatprep.mubr.msk.f32.mxu1 %vm91_vm0, %v76_v39  ;;  %16524 = vmatprep.mubr.msk.f32.mxu0 %vm91_vm0, %v56_v40  ;;  %v59_v50 = vld [vmem:[%s26811_s0 + $0x58] sm:$0xff]  ;;  %v60_v52 = vld [vmem:[%s26811_s0 + $0x60] sm:$0xff]  ;;  %v21666_v53 = vpack.c.bf16 %v784_v48, %v783_v47  ;;  %v414_v54 = vld [vmem:[%s26812_s1 + $0x8] sm:$0xff] }
  0x1a   :  { %18691 = vmatpush3.bf16.xpose.msk.msra.mxu0 %vm21544_vm2, %v21568_v29  ;;  %v61_v55 = vld [vmem:[%s26811_s0 + $0x68] sm:$0xff]  ;;  %v415_v56 = vld [vmem:[%s26812_s1 + $0x10] sm:$0xff]  ;;  %v416_v58 = vld [vmem:[%s26812_s1 + $0x18] sm:$0xff] }
  0x1b   :  { %18694 = vmatprep.subr.msk.bf16.mxu0 %vm21544_vm2, %v21617_v41  ;;  %27020 = vst [vmem:[#allocation8_spill] sm:$0xff] %v21666_v53  ;;  %v62_v57 = vld [vmem:[%s26811_s0 + $0x70] sm:$0xff]  ;;  %v63_v59 = vld [vmem:[%s26811_s0 + $0x78] sm:$0xff]  ;;  %v417_v60 = vld [vmem:[%s26812_s1 + $0x20] sm:$0xff] }
  0x1c   :  { %16555 = vmatmul.mubr.msk.f32.gmra.mrb[8].mxu1 %vm91_vm0, %v77_v43  ;;  %16525 = vmatmul.mubr.msk.f32.gmra.mrb[8].mxu0 %vm91_vm0, %v57_v44  ;;  %v64_v61 = vld [vmem:[%s26811_s0 + $0x80] sm:$0xff]  ;;  %v418_v62 = vld [vmem:[%s26812_s1 + $0x28] sm:$0xff]  ;;  %v419_v0 = vld [vmem:[%s26812_s1 + $0x30] sm:$0xff] }
  0x1d   :  { %16557 = vmatprep.mubr.msk.f32.mxu1 %vm91_vm0, %v78_v45  ;;  %16527 = vmatprep.mubr.msk.f32.mxu0 %vm91_vm0, %v58_v46  ;;  %v65_v63 = vld [vmem:[%s26811_s0 + $0x88] sm:$0xff]  ;;  %v66_v1 = vld [vmem:[%s26811_s0 + $0x90] sm:$0xff]  ;;  %v420_v2 = vld [vmem:[%s26812_s1 + $0x38] sm:$0xff]  ;;  %v27021_v45 = vmov 0  ;;  %v26826_v46 = vmov 1.0|1.0  }
  0x1e   :  { %v421_v3 = vld [vmem:[%s26812_s1 + $0x40] sm:$0xff]  ;;  %v422_v4 = vld [vmem:[%s26812_s1 + $0x48] sm:$0xff]  ;;  %v423_v5 = vld [vmem:[%s26812_s1 + $0x50] sm:$0xff] }
  0x1f   :  { %v424_v6 = vld [vmem:[%s26812_s1 + $0x58] sm:$0xff]  ;;  %v425_v7 = vld [vmem:[%s26812_s1 + $0x60] sm:$0xff]  ;;  %v426_v8 = vld [vmem:[%s26812_s1 + $0x68] sm:$0xff] }
  0x20   :  { %16558 = vmatmul.mubr.msk.f32.gmra.mrb[10].mxu1 %vm91_vm0, %v79_v49  ;;  %16528 = vmatmul.mubr.msk.f32.gmra.mrb[10].mxu0 %vm91_vm0, %v59_v50  ;;  %v427_v9 = vld [vmem:[%s26812_s1 + $0x70] sm:$0xff]  ;;  %v428_v10 = vld [vmem:[%s26812_s1 + $0x78] sm:$0xff]  ;;  %v429_v11 = vld [vmem:[%s26812_s1 + $0x80] sm:$0xff] }
  0x21   :  { %16568 = vmatprep.mubr.msk.f32.mxu1 %vm91_vm0, %v413_v51  ;;  %16530 = vmatprep.mubr.msk.f32.mxu0 %vm91_vm0, %v60_v52  ;;  %v67_v12 = vld [vmem:[%s26811_s0 + $0x98] sm:$0xff]  ;;  %v430_v13 = vld [vmem:[%s26812_s1 + $0x88] sm:$0xff]  ;;  %v805_v14 = vld [vmem:[%s26822_s11 + $0x20] sm:$0xff] }
  0x22   :  { %18697 = vmatpush3.bf16.xpose.msk.msra.mxu0 %vm21544_vm2, %v21617_v41  ;;  %887 = vperm.xlu0 %20265, %v805_v14   ;;  %v807_v15 = vld [vmem:[%s26822_s11 + $0x30] sm:$0xff]  ;;  %v432_v17 = vld [vmem:[%s26812_s1 + $0x98] sm:$0xff]  ;;  %v793_v19 = vld [vmem:[%s26821_s10] sm:$0xff] }
  0x23   :  { %18700 = vmatprep.subr.msk.bf16.mxu0 %vm21544_vm2, %v21666_v53  ;;  %v431_v16 = vld [vmem:[%s26812_s1 + $0x90] sm:$0xff]  ;;  %v804_v20 = vld [vmem:[%s26822_s11 + $0x18] sm:$0xff]  ;;  %v433_v24 = vld [vmem:[%s26812_s1 + $0xa0] sm:$0xff] }
  0x24   :  { %16569 = vmatmul.mubr.msk.f32.vlgmr.msra.gmra.mrb[12].mxu1 %vm91_vm0, %v414_v54  ;;  %16531 = vmatmul.mubr.msk.f32.gmra.mrb[12].mxu0 %vm91_vm0, %v61_v55  ;;  %v803_v18 = vld [vmem:[%s26822_s11 + $0x10] sm:$0xff]  ;;  %v434_v25 = vld [vmem:[%s26812_s1 + $0xa8] sm:$0xff]  ;;  %v797_v27 = vld [vmem:[%s26821_s10 + $0x20] sm:$0xff] }
  0x25   :  { %16571 = vmatprep.mubr.msk.f32.mxu1 %vm91_vm0, %v415_v56  ;;  %16533 = vmatprep.mubr.msk.f32.mxu0 %vm91_vm0, %v62_v57  ;;  %v795_v22 = vld [vmem:[%s26821_s10 + $0x10] sm:$0xff]  ;;  %v806_v26 = vld [vmem:[%s26822_s11 + $0x28] sm:$0xff]  ;;  %v436_v30 = vld [vmem:[%s26812_s1 + $0xb8] sm:$0xff] }
  0x26   :  { %897 = vperm.xlu0 %20265, %v807_v15   ;;  %877 = vperm.xlu1 %20266, %v803_v18   ;;  %v435_v28 = vld [vmem:[%s26812_s1 + $0xb0] sm:$0xff]  ;;  %v808_v31 = vld [vmem:[%s26822_s11 + $0x38] sm:$0xff]  ;;  %v794_v33 = vld [vmem:[%s26821_s10 + $0x8] sm:$0xff]  ;;  %s21404_s11 = smov 96  }
  0x27   :  { %v799_v32 = vld [vmem:[%s26821_s10 + $0x30] sm:$0xff]  ;;  %v796_v34 = vld [vmem:[%s26821_s10 + $0x18] sm:$0xff]  ;;  %v798_v35 = vld [vmem:[%s26821_s10 + $0x28] sm:$0xff] }
  0x28   :  { %16572 = vmatmul.mubr.msk.f32.gmra.mrb[14].mxu1 %vm91_vm0, %v416_v58  ;;  %16534 = vmatmul.mubr.msk.f32.gmra.mrb[14].mxu0 %vm91_vm0, %v63_v59  ;;  %v800_v36 = vld [vmem:[%s26821_s10 + $0x38] sm:$0xff]  ;;  %v437_v37 = vld [vmem:[%s26812_s1 + $0xc0] sm:$0xff]  ;;  %v438_v38 = vld [vmem:[%s26812_s1 + $0xc8] sm:$0xff] }
  0x29   :  { %16574 = vmatprep.mubr.msk.f32.mxu1 %vm91_vm0, %v417_v60  ;;  %16536 = vmatprep.mubr.msk.f32.mxu0 %vm91_vm0, %v64_v61  ;;  %v439_v39 = vld [vmem:[%s26812_s1 + $0xd0] sm:$0xff]  ;;  %v21857_v40 = vld [vmem:[%s26824_s13] ss:$0 sm:$0xff]  ;;  %v440_v43 = vld [vmem:[%s26812_s1 + $0xd8] sm:$0xff] }
  0x2a   :  { %18703 = vmatpush3.bf16.xpose.msk.msra.mxu0 %vm21544_vm2, %v21666_v53  ;;  %813 = vperm.xlu0 %20265, %v793_v19   ;;  %v441_v47 = vld [vmem:[%s26812_s1 + $0xe0] sm:$0xff]  ;;  %v442_v48 = vld [vmem:[%s26812_s1 + $0xe8] sm:$0xff]  ;;  %v443_v49 = vld [vmem:[%s26812_s1 + $0xf0] sm:$0xff] }
  0x2b   :  { %882 = vperm.xlu1 %20266, %v804_v20   ;;  %v444_v50 = vld [vmem:[%s26812_s1 + $0xf8] sm:$0xff]  ;;  %v14139_v51 = vld [vmem:[%s26814_s3] ss:$0 sm:$0xff] }
  0x2c   :  { %16575 = vmatmul.mubr.msk.f32.gmra.mrb[16].mxu1 %vm91_vm0, %v418_v62  ;;  %16537 = vmatmul.mubr.msk.f32.gmra.mrb[16].mxu0 %vm91_vm0, %v65_v63 }
  0x2d   :  { %16577 = vmatprep.mubr.msk.f32.mxu1 %vm91_vm0, %v419_v0  ;;  %16539 = vmatprep.mubr.msk.f32.mxu0 %vm91_vm0, %v66_v1 }
  0x2e   :  { %823 = vperm.xlu0 %20265, %v795_v22  }
  0x2f   :  { %892 = vperm.xlu1 %20266, %v806_v26  }
  0x30   :  { %16578 = vmatmul.mubr.msk.f32.gmra.mrb[18].mxu1 %vm91_vm0, %v420_v2  ;;  %16540 = vmatmul.mubr.msk.f32.gmra.mrb[18].mxu0 %vm91_vm0, %v67_v12 }
  0x31   :  { %16580 = vmatprep.mubr.msk.f32.mxu1 %vm91_vm0, %v421_v3 }
  0x32   :  { %833 = vperm.xlu0 %20265, %v797_v27  }
  0x33   :  { %902 = vperm.xlu1 %20266, %v808_v31  }
  0x34   :  { %16581 = vmatmul.mubr.msk.f32.gmra.mrb[20].mxu1 %vm91_vm0, %v422_v4 }
  0x35   :  { %16583 = vmatprep.mubr.msk.f32.mxu1 %vm91_vm0, %v423_v5 }
  0x36   :  { %843 = vperm.xlu0 %20265, %v799_v32   ;;  %v27047_v32 = vmov 0 }
  0x37   :  { %818 = vperm.xlu1 %20266, %v794_v33  }
  0x38   :  { %16584 = vmatmul.mubr.msk.f32.gmra.mrb[22].mxu1 %vm91_vm0, %v424_v6 }
  0x39   :  { %16586 = vmatprep.mubr.msk.f32.mxu1 %vm91_vm0, %v425_v7 }
  0x3b   :  { %828 = vperm.xlu1 %20266, %v796_v34  }
  0x3c   :  { %16587 = vmatmul.mubr.msk.f32.gmra.mrb[24].mxu1 %vm91_vm0, %v426_v8 }
  0x3d   :  { %16589 = vmatprep.mubr.msk.f32.mxu1 %vm91_vm0, %v427_v9 }
  0x3f   :  { %838 = vperm.xlu1 %20266, %v798_v35  }
  0x40   :  { %16590 = vmatmul.mubr.msk.f32.gmra.mrb[26].mxu1 %vm91_vm0, %v428_v10 }
  0x41   :  { %16592 = vmatprep.mubr.msk.f32.mxu1 %vm91_vm0, %v429_v11 }
  0x43   :  { %848 = vperm.xlu1 %20266, %v800_v36  }
  0x44   :  { %16593 = vmatmul.mubr.msk.f32.gmra.mrb[28].mxu1 %vm91_vm0, %v430_v13 }
  0x45   :  { %16595 = vmatprep.mubr.msk.f32.mxu1 %vm91_vm0, %v431_v16  ;;  %v27033_v16 = vmov 0 }
  0x48   :  { %16596 = vmatmul.mubr.msk.f32.gmra.mrb[30].mxu1 %vm91_vm0, %v432_v17 }
  0x49   :  { %16598 = vmatprep.mubr.msk.f32.mxu1 %vm91_vm0, %v433_v24 }
  0x4c   :  { %16599 = vmatmul.mubr.msk.f32.gmra.mrb[32].mxu1 %vm91_vm0, %v434_v25  ;;  %v27040_v25 = vmov 0 }
  0x4d   :  { %16601 = vmatprep.mubr.msk.f32.mxu1 %vm91_vm0, %v435_v28 }
  0x50   :  { %16602 = vmatmul.mubr.msk.f32.gmra.mrb[34].mxu1 %vm91_vm0, %v436_v30 }
  0x51   :  { %16604 = vmatprep.mubr.msk.f32.mxu1 %vm91_vm0, %v437_v37 }
  0x54   :  { %16605 = vmatmul.mubr.msk.f32.gmra.mrb[36].mxu1 %vm91_vm0, %v438_v38 }
  0x55   :  { %16607 = vmatprep.mubr.msk.f32.mxu1 %vm91_vm0, %v439_v39 }
  0x58   :  { %16608 = vmatmul.mubr.msk.f32.gmra.mrb[38].mxu1 %vm91_vm0, %v440_v43 }
  0x59   :  { %16610 = vmatprep.mubr.msk.f32.mxu1 %vm91_vm0, %v441_v47 }
  0x5c   :  { %16611 = vmatmul.mubr.msk.f32.gmra.mrb[40].mxu1 %vm91_vm0, %v442_v48 }
  0x5d   :  { %16613 = vmatprep.mubr.msk.f32.mxu1 %vm91_vm0, %v443_v49 }
  0x60   :  { %16614 = vmatmul.mubr.msk.f32.gmra.mrb[42].mxu1 %vm91_vm0, %v444_v50 }
  0x8a   :  { %v21859_v42 = vpop.permute.xlu0 %867 }
  0x8b   :  { %vm935_vm3 = vcmp.eq.f32.partialorder %v21859_v42, %v21857_v40 }
  0x95   :  { %v21868_v44 = vpop.permute.xlu0 %872 }
  0x96   :  { %vm936_vm4 = vcmp.eq.f32.partialorder %v21868_v44, %v21857_v40 }
  0x97   :  { %vm21872_vm5 = vmpackc.low %vm936_vm4, %vm935_vm3  ;;  %vm1138_vm4 = vcmask 523264  }
  0x98   :  { %v27022_v45 = vsel %vm21872_vm5, 4294967295, %v27021_v45  ;;  %18705 = vmatprep.subr.msk.bf16.mxu1 %vm21872_vm5, %v26826_v46 }
  0x99   :  { %27023 = vst [vmem:[#allocation9_spill] sm:$0xff] %v27022_v45  ;;  %18707 = vmatpush3.bf16.msk.msra.mxu1 %vm21872_vm5, %v26826_v46 }
  0xa1   :  { %v21935_v8 = vpop.permute.xlu0 %887 }
  0xa2   :  { %vm939_vm9 = vcmp.eq.f32.partialorder %v21935_v8, %v21857_v40 }
  0xa5   :  { %v21933_v7 = vpop.permute.xlu1 %877  ;;  %v21981_v24 = vpop.permute.xlu0 %897 }
  0xa6   :  { %vm937_vm6 = vcmp.eq.f32.partialorder %v21933_v7, %v21857_v40  ;;  %vm941_vm12 = vcmp.eq.f32.partialorder %v21981_v24, %v21857_v40 }
  0xaa   :  { %v21951_v15 = vpop.permute.xlu1 %882 }
  0xab   :  { %vm938_vm7 = vcmp.eq.f32.partialorder %v21951_v15, %v21857_v40 }
  0xac   :  { %vm21957_vm8 = vmpackc.low %vm938_vm7, %vm937_vm6 }
  0xad   :  { %v27034_v16 = vsel %vm21957_vm8, 4294967295, %v27033_v16  ;;  %18709 = vmatprep.subr.msk.bf16.mxu1 %vm21957_vm8, %v26826_v46 }
  0xae   :  { %27035 = vst [vmem:[#allocation19_spill] sm:$0xff] %v27034_v16  ;;  %v21976_v22 = vpop.permute.xlu1 %892  ;;  %18711 = vmatpush3.bf16.msk.msra.mxu1 %vm21957_vm8, %v26826_v46 }
  0xaf   :  { %vm940_vm10 = vcmp.eq.f32.partialorder %v21976_v22, %v21857_v40 }
  0xb0   :  { %vm21985_vm11 = vmpackc.low %vm940_vm10, %vm939_vm9 }
  0xb1   :  { %v27041_v25 = vsel %vm21985_vm11, 4294967295, %v27040_v25  ;;  %18713 = vmatprep.subr.msk.bf16.mxu1 %vm21985_vm11, %v26826_v46 }
  0xb2   :  { %27042 = vst [vmem:[#allocation24_spill] sm:$0xff] %v27041_v25  ;;  %v22002_v31 = vpop.permute.xlu1 %902  ;;  %18715 = vmatpush3.bf16.msk.msra.mxu1 %vm21985_vm11, %v26826_v46 }
  0xb3   :  { %vm942_vm13 = vcmp.eq.f32.partialorder %v22002_v31, %v21857_v40 }
  0xb4   :  { %vm22009_vm14 = vmpackc.low %vm942_vm13, %vm941_vm12 }
  0xb5   :  { %v27048_v32 = vsel %vm22009_vm14, 4294967295, %v27047_v32  ;;  %18717 = vmatprep.subr.msk.bf16.mxu1 %vm22009_vm14, %v26826_v46 }
  0xb6   :  { %27049 = vst [vmem:[#allocation29_spill] sm:$0xff] %v27048_v32  ;;  %18719 = vmatpush3.bf16.msk.msra.mxu1 %vm22009_vm14, %v26826_v46  ;;  %v22066_v46 = vld [vmem:[%s26816_s5] ss:$0 sm:$0xff] }
  0xdf   :  { %v16514_v52 = vpop.f32.mrb[0].mxu0  ;;  %v21901_v54 = vpop.f32.mrb[0].mxu1 }
  0xe0   :  { %27024 = vst [vmem:[#allocation10_spill] sm:$0xff] %v21901_v54  ;;  %v254_v55 = vpop.f32.mrb[1].mxu0  ;;  %v21903_v56 = vpop.f32.mrb[1].mxu1  ;;  %v21907_v58 = vadd.f32 %v16514_v52, %v14139_v51  ;;  %v22126_v54 = vld [vmem:[%s26820_s9 + $0x10] sm:$0xff] }
  0xe1   :  { %27025 = vst [vmem:[#allocation11_spill] sm:$0xff] %v21903_v56  ;;  %v21905_v57 = vadd.f32 %v14139_v51, %v254_v55 }
  0xe3   :  { %v16517_v59 = vpop.f32.mrb[2].mxu0  ;;  %16632 = vmatprep.mubr.msk.f32.mxu0 %vm976_vm1, %v21905_v57  ;;  %v21911_v60 = vpop.f32.mrb[2].mxu1 }
  0xe4   :  { %27026 = vst [vmem:[#allocation12_spill] sm:$0xff] %v21911_v60  ;;  %v21913_v61 = vadd.f32 %v16517_v59, %v14139_v51  ;;  %v264_v62 = vpop.f32.mrb[3].mxu0  ;;  %16633 = vmatmul.mubr.msk.f32.vlgmr.msra.gmra.mrb[20].mxu0 %vm976_vm1, %v21907_v58  ;;  %v21917_v63 = vpop.f32.mrb[3].mxu1 }
  0xe5   :  { %27027 = vst [vmem:[#allocation13_spill] sm:$0xff] %v21917_v63  ;;  %v21919_v0 = vadd.f32 %v14139_v51, %v264_v62 }
  0xe7   :  { %v16520_v1 = vpop.f32.mrb[4].mxu0  ;;  %16635 = vmatprep.mubr.msk.f32.mxu0 %vm976_vm1, %v21919_v0  ;;  %v21923_v2 = vpop.f32.mrb[4].mxu1 }
  0xe8   :  { %27028 = vst [vmem:[#allocation14_spill] sm:$0xff] %v21923_v2  ;;  %v21925_v3 = vadd.f32 %v16520_v1, %v14139_v51  ;;  %v274_v4 = vpop.f32.mrb[5].mxu0  ;;  %16636 = vmatmul.mubr.msk.f32.gmra.mrb[22].mxu0 %vm976_vm1, %v21913_v61  ;;  %v21929_v5 = vpop.f32.mrb[5].mxu1 }
  0xe9   :  { %27029 = vst [vmem:[#allocation15_spill] sm:$0xff] %v21929_v5  ;;  %v21931_v6 = vadd.f32 %v14139_v51, %v274_v4 }
  0xeb   :  { %v16523_v9 = vpop.f32.mrb[6].mxu0  ;;  %16638 = vmatprep.mubr.msk.f32.mxu0 %vm976_vm1, %v21931_v6  ;;  %v21939_v10 = vpop.f32.mrb[6].mxu1 }
  0xec   :  { %27030 = vst [vmem:[#allocation16_spill] sm:$0xff] %v21939_v10  ;;  %v21941_v11 = vadd.f32 %v16523_v9, %v14139_v51  ;;  %v284_v12 = vpop.f32.mrb[7].mxu0  ;;  %16639 = vmatmul.mubr.msk.f32.gmra.mrb[24].mxu0 %vm976_vm1, %v21925_v3  ;;  %v21947_v13 = vpop.f32.mrb[7].mxu1 }
  0xed   :  { %27032 = vst [vmem:[#allocation18_spill] sm:$0xff] %v21947_v13  ;;  %v21949_v14 = vadd.f32 %v14139_v51, %v284_v12 }
  0xee   :  { %27031 = vst [vmem:[#allocation17_spill] sm:$0xff] %v21941_v11 }
  0xef   :  { %16641 = vmatprep.mubr.msk.f32.mxu0 %vm976_vm1, %v21949_v14  ;;  %v21961_v17 = vpop.f32.mrb[8].mxu1  ;;  %v21963_v18 = vpop.f32.mrb[8].mxu0 }
  0xf0   :  { %27036 = vst [vmem:[#allocation20_spill] sm:$0xff] %v21961_v17  ;;  %27037 = vst [vmem:[#allocation21_spill] sm:$0xff] %v21963_v18  ;;  %16642 = vmatmul.mubr.msk.f32.gmra.mrb[26].mxu0 %vm976_vm1, %v21941_v11  ;;  %v21972_v19 = vpop.f32.mrb[9].mxu1  ;;  %v21974_v20 = vpop.f32.mrb[9].mxu0 }
  0xf1   :  { %27038 = vst [vmem:[#allocation22_spill] sm:$0xff] %v21972_v19  ;;  %27039 = vst [vmem:[#allocation23_spill] sm:$0xff] %v21974_v20 }
  0xf3   :  { %v21989_v26 = vpop.f32.mrb[10].mxu1  ;;  %v21991_v27 = vpop.f32.mrb[10].mxu0 }
  0xf4   :  { %27043 = vst [vmem:[#allocation25_spill] sm:$0xff] %v21989_v26  ;;  %27044 = vst [vmem:[#allocation26_spill] sm:$0xff] %v21991_v27  ;;  %v21998_v28 = vpop.f32.mrb[11].mxu1  ;;  %v22000_v30 = vpop.f32.mrb[11].mxu0 }
  0xf5   :  { %27045 = vst [vmem:[#allocation27_spill] sm:$0xff] %v21998_v28  ;;  %27046 = vst [vmem:[#allocation28_spill] sm:$0xff] %v22000_v30 }
  0xf7   :  { %v22013_v33 = vpop.f32.mrb[12].mxu1  ;;  %v22015_v34 = vpop.f32.mrb[12].mxu0 }
  0xf8   :  { %27050 = vst [vmem:[#allocation30_spill] sm:$0xff] %v22013_v33  ;;  %27051 = vst [vmem:[#allocation31_spill] sm:$0xff] %v22015_v34  ;;  %v22020_v35 = vpop.f32.mrb[13].mxu1  ;;  %v22022_v36 = vpop.f32.mrb[13].mxu0  ;;  %v21399_v33 = vmov 0.0  }
  0xf9   :  { %27052 = vst [vmem:[#allocation32_spill] sm:$0xff] %v22020_v35  ;;  %27053 = vst [vmem:[#allocation33_spill] sm:$0xff] %v22022_v36  ;;  %v22131_v35 = vld [vmem:[%s26820_s9 + $0x18] sm:$0xff]  ;;  %v27099_v36 = vmov 0 }
  0xfb   :  { %v22027_v37 = vpop.f32.mrb[14].mxu1  ;;  %v22029_v38 = vpop.f32.mrb[14].mxu0 }
  0xfc   :  { %27054 = vst [vmem:[#allocation34_spill] sm:$0xff] %v22027_v37  ;;  %27055 = vst [vmem:[#allocation35_spill] sm:$0xff] %v22029_v38  ;;  %v22031_v39 = vpop.f32.mrb[15].mxu1  ;;  %v22033_v40 = vpop.f32.mrb[15].mxu0  ;;  %v22113_v37 = vld [vmem:[%s26823_s12] ss:$0 sm:$0xff] }
  0xfd   :  { %27056 = vst [vmem:[#allocation36_spill] sm:$0xff] %v22031_v39  ;;  %27057 = vst [vmem:[#allocation37_spill] sm:$0xff] %v22033_v40  ;;  %vm905_vm15 = vcmp.eq.f32.partialorder %v21859_v42, %v22113_v37  ;;  %vm906_vm3 = vcmp.eq.f32.partialorder %v21868_v44, %v22113_v37  ;;  %vm907_vm6 = vcmp.eq.f32.partialorder %v21933_v7, %v22113_v37 }
  0xfe   :  { %v22139_v56 = vsel %vm905_vm15, 1.0, %v21399_v33  ;;  %vm908_vm7 = vcmp.eq.f32.partialorder %v21951_v15, %v22113_v37  ;;  %vm909_vm9 = vcmp.eq.f32.partialorder %v21935_v8, %v22113_v37  ;;  %vm910_vm10 = vcmp.eq.f32.partialorder %v21976_v22, %v22113_v37 }
  0xff   :  { %v22035_v43 = vpop.f32.mrb[16].mxu1  ;;  %v22037_v47 = vpop.f32.mrb[16].mxu0  ;;  %v22161_v15 = vsel %vm908_vm7, 1.0, %v21399_v33  ;;  %vm911_vm12 = vcmp.eq.f32.partialorder %v21981_v24, %v22113_v37  ;;  %v22191_v22 = vsel %vm910_vm10, 1.0, %v21399_v33  ;;  %vm912_vm13 = vcmp.eq.f32.partialorder %v22002_v31, %v22113_v37 }
 0x100   :  { %27058 = vst [vmem:[#allocation38_spill] sm:$0xff] %v22035_v43  ;;  %27059 = vst [vmem:[#allocation39_spill] sm:$0xff] %v22037_v47  ;;  %v22039_v48 = vpop.f32.mrb[17].mxu1  ;;  %v22041_v49 = vpop.f32.mrb[17].mxu0  ;;  %v22204_v24 = vsel %vm911_vm12, 1.0, %v21399_v33  ;;  %v22207_v31 = vsel %vm912_vm13, 1.0, %v21399_v33 }
 0x101   :  { %27060 = vst [vmem:[#allocation40_spill] sm:$0xff] %v22039_v48  ;;  %27061 = vst [vmem:[#allocation41_spill] sm:$0xff] %v22041_v49 }
 0x102   :  { %27083 = vst [vmem:[#allocation63_spill] sm:$0xff] %v22161_v15 }
 0x103   :  { %v22043_v50 = vpop.f32.mrb[18].mxu1  ;;  %v22068_v26 = vpop.f32.mrb[18].mxu0 }
 0x104   :  { %27062 = vst [vmem:[#allocation42_spill] sm:$0xff] %v22043_v50  ;;  %v22045_v51 = vpop.f32.mrb[19].mxu1  ;;  %27072 = vst [vmem:[#allocation52_spill] sm:$0xff] %v22068_v26 }
 0x105   :  { %27063 = vst [vmem:[#allocation43_spill] sm:$0xff] %v22045_v51 }
 0x107   :  { %v22047_v52 = vpop.f32.mrb[20].mxu1 }
 0x108   :  { %27064 = vst [vmem:[#allocation44_spill] sm:$0xff] %v22047_v52  ;;  %v22049_v55 = vpop.f32.mrb[21].mxu1 }
 0x109   :  { %27065 = vst [vmem:[#allocation45_spill] sm:$0xff] %v22049_v55 }
 0x10b   :  { %v22051_v59 = vpop.f32.mrb[22].mxu1 }
 0x10c   :  { %27066 = vst [vmem:[#allocation46_spill] sm:$0xff] %v22051_v59  ;;  %v22053_v62 = vpop.f32.mrb[23].mxu1 }
 0x10d   :  { %27067 = vst [vmem:[#allocation47_spill] sm:$0xff] %v22053_v62  ;;  %v22073_v62 = vpop.f32.mrb[19].mxu0 }
 0x10e   :  { %27073 = vst [vmem:[#allocation53_spill] sm:$0xff] %v22073_v62  ;;  %v22141_v62 = vsel %vm906_vm3, 1.0, %v21399_v33 }
 0x10f   :  { %v22055_v1 = vpop.f32.mrb[24].mxu1 }
 0x110   :  { %27068 = vst [vmem:[#allocation48_spill] sm:$0xff] %v22055_v1  ;;  %v22057_v4 = vpop.f32.mrb[25].mxu1 }
 0x111   :  { %27069 = vst [vmem:[#allocation49_spill] sm:$0xff] %v22057_v4 }
 0x113   :  { %v22059_v9 = vpop.f32.mrb[26].mxu1 }
 0x114   :  { %27070 = vst [vmem:[#allocation50_spill] sm:$0xff] %v22059_v9  ;;  %v22061_v12 = vpop.f32.mrb[27].mxu1  ;;  %v22086_v9 = vld [vmem:[%s26820_s9 + $0x8] sm:$0xff] }
 0x115   :  { %27071 = vst [vmem:[#allocation51_spill] sm:$0xff] %v22061_v12  ;;  %v22081_v12 = vld [vmem:[%s26820_s9] sm:$0xff] }
 0x117   :  { %v16594_v28 = vpop.f32.mrb[28].mxu1 }
 0x118   :  { %v22071_v59 = vadd.f32 %v16594_v28, %v22066_v46  ;;  %v698_v1 = vpop.f32.mrb[29].mxu1 }
 0x119   :  { %v22076_v4 = vadd.f32 %v22066_v46, %v698_v1 }
 0x11a   :  { %v969_v17 = vadd.f32 %v22086_v9, %v22071_v59 }
 0x11b   :  { %v968_v28 = vadd.f32 %v22081_v12, %v22076_v4  ;;  %v16597_v52 = vpop.f32.mrb[30].mxu1 }
 0x11c   :  { %v708_v1 = vpop.f32.mrb[31].mxu1  ;;  %v22116_v60 = vadd.f32 %v16597_v52, %v22066_v46 }
 0x11d   :  { %v18720_v55 = vpack.c.bf16 %v969_v17, %v968_v28  ;;  %v22119_v63 = vadd.f32 %v22066_v46, %v708_v1 }
 0x11e   :  { %v971_v1 = vadd.f32 %v22131_v35, %v22116_v60 }
 0x11f   :  { %18722 = vmatprep.subr.msk.bf16.mxu1 %vm21544_vm2, %v18720_v55  ;;  %v16600_v19 = vpop.f32.mrb[32].mxu1  ;;  %v970_v52 = vadd.f32 %v22126_v54, %v22119_v63 }
 0x120   :  { %v718_v10 = vpop.f32.mrb[33].mxu1  ;;  %v22150_v49 = vadd.f32 %v16600_v19, %v22066_v46 }
 0x123   :  { %v16603_v13 = vpop.f32.mrb[34].mxu1 }
 0x124   :  { %v728_v2 = vpop.f32.mrb[35].mxu1 }
 0x127   :  { %v22094_v5 = vpop.f32.mrb[36].mxu1 }
 0x128   :  { %27074 = vst [vmem:[#allocation54_spill] sm:$0xff] %v22094_v5  ;;  %v22096_v51 = vpop.f32.mrb[37].mxu1  ;;  %v27096_v5 = vmov 0 }
 0x129   :  { %27075 = vst [vmem:[#allocation55_spill] sm:$0xff] %v22096_v51 }
 0x12b   :  { %v22098_v50 = vpop.f32.mrb[38].mxu1 }
 0x12c   :  { %27076 = vst [vmem:[#allocation56_spill] sm:$0xff] %v22098_v50  ;;  %v22100_v48 = vpop.f32.mrb[39].mxu1 }
 0x12d   :  { %27077 = vst [vmem:[#allocation57_spill] sm:$0xff] %v22100_v48  ;;  %v22201_v48 = vadd.f32 %v22066_v46, %v728_v2  ;;  %v22220_v2 = vld [vmem:[%s26820_s9 + $0x38] sm:$0xff] }
 0x12f   :  { %v22102_v43 = vpop.f32.mrb[40].mxu1 }
 0x130   :  { %27078 = vst [vmem:[#allocation58_spill] sm:$0xff] %v22102_v43  ;;  %v22104_v17 = vpop.f32.mrb[41].mxu1  ;;  %v22156_v43 = vsel %vm907_vm6, 1.0, %v21399_v33 }
 0x131   :  { %27079 = vst [vmem:[#allocation59_spill] sm:$0xff] %v22104_v17  ;;  %27082 = vst [vmem:[#allocation62_spill] sm:$0xff] %v22156_v43 }
 0x133   :  { %v22106_v28 = vpop.f32.mrb[42].mxu1 }
 0x134   :  { %27080 = vst [vmem:[#allocation60_spill] sm:$0xff] %v22106_v28  ;;  %v22108_v39 = vpop.f32.mrb[43].mxu1  ;;  %v22153_v28 = vadd.f32 %v22066_v46, %v718_v10  ;;  %v22169_v10 = vld [vmem:[%s26820_s9 + $0x20] sm:$0xff] }
 0x135   :  { %27081 = vst [vmem:[#allocation61_spill] sm:$0xff] %v22108_v39  ;;  %v18726_v39 = vpack.c.bf16 %v971_v1, %v970_v52  ;;  %v22186_v1 = vsel %vm909_vm9, 1.0, %v21399_v33 }
 0x1b7   :  { %v16634_v42 = vpop.f32.mrb[20].mxu0 }
 0x1b8   :  { %v1091_v26 = vpop.f32.mrb[21].mxu0  ;;  %v1131_v47 = vmul.f32 %v16634_v42, %v22141_v62 }
 0x1b9   :  { %v1130_v44 = vmul.f32 %v22139_v56, %v1091_v26  ;;  %v22174_v26 = vld [vmem:[%s26820_s9 + $0x28] sm:$0xff] }
 0x1bb   :  { %v16637_v17 = vpop.f32.mrb[22].mxu0  ;;  %16660 = vmatprep.mubr.msk.f32.mxu1 %vm1138_vm4, %v1130_v44 }
 0x1bc   :  { %v1101_v7 = vpop.f32.mrb[23].mxu0  ;;  %16661 = vmatmul.mubr.msk.f32.vlgmr.msra.gmra.mrb[44].mxu1 %vm1138_vm4, %v1131_v47  ;;  %v1133_v8 = vmul.f32 %v16637_v17, %v22161_v15  ;;  %v972_v47 = vadd.f32 %v22169_v10, %v22153_v28 }
 0x1bd   :  { %v1132_v19 = vmul.f32 %v22156_v43, %v1101_v7  ;;  %18725 = vmatpush3.bf16.xpose.msk.msra.mxu1 %vm21544_vm2, %v18720_v55  ;;  %v973_v55 = vadd.f32 %v22174_v26, %v22150_v49  ;;  %v22198_v7 = vadd.f32 %v16603_v13, %v22066_v46  ;;  %v22215_v46 = vld [vmem:[%s26820_s9 + $0x30] sm:$0xff] }
 0x1be   :  { %18728 = vmatprep.subr.msk.bf16.mxu1 %vm21544_vm2, %v18726_v39  ;;  %v974_v33 = vadd.f32 %v22215_v46, %v22201_v48 }
 0x1bf   :  { %v16640_v52 = vpop.f32.mrb[24].mxu0  ;;  %16663 = vmatprep.mubr.msk.f32.mxu1 %vm1138_vm4, %v1132_v19  ;;  %v18732_v19 = vpack.c.bf16 %v973_v55, %v972_v47  ;;  %v27084_v47 = vmov 1.0|1.0   ;;  %v819_v55 = vpop.permute.xlu1 %818 }
 0x1c0   :  { %v1111_v42 = vpop.f32.mrb[25].mxu0  ;;  %16664 = vmatmul.mubr.msk.f32.gmra.mrb[46].mxu1 %vm1138_vm4, %v1133_v8  ;;  %v1135_v44 = vmul.f32 %v16640_v52, %v22191_v22  ;;  %v814_v52 = vpop.permute.xlu0 %813  ;;  %vm22278_vm15 = vcmp.eq.f32.partialorder %v819_v55, %v22113_v37 }
 0x1c1   :  { %v1134_v17 = vmul.f32 %v22186_v1, %v1111_v42  ;;  %vm22283_vm3 = vcmp.eq.f32.partialorder %v814_v52, %v22113_v37  ;;  %v27090_v52 = vmov 0 }
 0x1c3   :  { %v16643_v8 = vpop.f32.mrb[26].mxu0  ;;  %16666 = vmatprep.mubr.msk.f32.mxu1 %vm1138_vm4, %v1134_v17 }
 0x1c4   :  { %v1121_v50 = vpop.f32.mrb[27].mxu0  ;;  %16667 = vmatmul.mubr.msk.f32.gmra.mrb[48].mxu1 %vm1138_vm4, %v1135_v44  ;;  %v1137_v13 = vmul.f32 %v16643_v8, %v22207_v31  ;;  %v829_v44 = vpop.permute.xlu1 %828  ;;  %v27087_v8 = vmov 0 }
 0x1c5   :  { %v1136_v42 = vmul.f32 %v22204_v24, %v1121_v50  ;;  %18731 = vmatpush3.bf16.xpose.msk.msra.mxu1 %vm21544_vm2, %v18726_v39  ;;  %v975_v39 = vadd.f32 %v22220_v2, %v22198_v7  ;;  %v27088_v8 = vsel %vm22283_vm3, 4294967295, %v27087_v8  ;;  %vm22303_vm7 = vcmp.eq.f32.partialorder %v829_v44, %v22113_v37 }
 0x1c6   :  { %18734 = vmatprep.subr.msk.bf16.mxu1 %vm21544_vm2, %v18732_v19  ;;  %27089 = vst [vmem:[#allocation64_spill] sm:$0xff] %v27088_v8 }
 0x1c7   :  { %16669 = vmatprep.mubr.msk.f32.mxu1 %vm1138_vm4, %v1136_v42  ;;  %v18738_v50 = vpack.c.bf16 %v975_v39, %v974_v33  ;;  %v824_v33 = vpop.permute.xlu0 %823 }
 0x1c8   :  { %16670 = vmatmul.mubr.msk.f32.gmra.mrb[50].mxu1 %vm1138_vm4, %v1137_v13  ;;  %vm22294_vm6 = vcmp.eq.f32.partialorder %v824_v33, %v22113_v37  ;;  %v839_v34 = vpop.permute.xlu1 %838 }
 0x1c9   :  { %16688 = vmatprep.mubr.msk.f32.mxu1 %vm976_vm1, %v21905_v57  ;;  %v27091_v52 = vsel %vm22294_vm6, 4294967295, %v27090_v52  ;;  %vm22321_vm10 = vcmp.eq.f32.partialorder %v839_v34, %v22113_v37 }
 0x1ca   :  { %27092 = vst [vmem:[#allocation65_spill] sm:$0xff] %v27091_v52  ;;  %v27100_v36 = vsel %vm22321_vm10, 4294967295, %v27099_v36 }
 0x1cb   :  { %27101 = vst [vmem:[#allocation68_spill] sm:$0xff] %v27100_v36 }
 0x1cc   :  { %v849_v27 = vpop.permute.xlu1 %848 }
 0x1cd   :  { %18737 = vmatpush3.bf16.xpose.msk.msra.mxu1 %vm21544_vm2, %v18732_v19  ;;  %vm22331_vm12 = vcmp.eq.f32.partialorder %v849_v27, %v22113_v37 }
 0x1ce   :  { %18740 = vmatprep.subr.msk.bf16.mxu1 %vm21544_vm2, %v18738_v50 }
 0x1d5   :  { %18743 = vmatpush3.bf16.xpose.msk.msra.mxu1 %vm21544_vm2, %v18738_v50 }
 0x1d6   :  { %18785 = vmatprep.subr.msk.bf16.mxu1 %vm21872_vm5, %v27084_v47 }
 0x1dc   :  { %16689 = vmatmul.mubr.msk.f32.vlgmr.msra.gmra.mrb[44].mxu1 %vm976_vm1, %v21907_v58 }
 0x1dd   :  { %16691 = vmatprep.mubr.msk.f32.mxu1 %vm976_vm1, %v21919_v0  ;;  %18787 = vmatpush3.bf16.msk.msra.mxu1 %vm21872_vm5, %v27084_v47 }
 0x1de   :  { %18789 = vmatprep.subr.msk.bf16.mxu1 %vm21957_vm8, %v27084_v47 }
 0x1e0   :  { %16692 = vmatmul.mubr.msk.f32.gmra.mrb[46].mxu1 %vm976_vm1, %v21913_v61 }
 0x1e1   :  { %16694 = vmatprep.mubr.msk.f32.mxu1 %vm976_vm1, %v21931_v6  ;;  %18791 = vmatpush3.bf16.msk.msra.mxu1 %vm21957_vm8, %v27084_v47 }
 0x1e2   :  { %18793 = vmatprep.subr.msk.bf16.mxu1 %vm21985_vm11, %v27084_v47 }
 0x1e4   :  { %16695 = vmatmul.mubr.msk.f32.gmra.mrb[48].mxu1 %vm976_vm1, %v21925_v3 }
 0x1e5   :  { %16697 = vmatprep.mubr.msk.f32.mxu1 %vm976_vm1, %v21949_v14  ;;  %18795 = vmatpush3.bf16.msk.msra.mxu1 %vm21985_vm11, %v27084_v47 }
 0x1e6   :  { %18797 = vmatprep.subr.msk.bf16.mxu1 %vm22009_vm14, %v27084_v47 }
 0x1e8   :  { %16698 = vmatmul.mubr.msk.f32.gmra.mrb[50].mxu1 %vm976_vm1, %v21941_v11 }
 0x1e9   :  { %18799 = vmatpush3.bf16.msk.msra.mxu1 %vm22009_vm14, %v27084_v47 }
 0x2af   :  { %v16690_v19 = vpop.f32.mrb[44].mxu1 }
 0x2b0   :  { %v1398_v42 = vsel %vm22278_vm15, %v16690_v19, -1e+09  ;;  %v1358_v13 = vpop.f32.mrb[45].mxu1 }
 0x2b1   :  { %v1397_v39 = vsel %vm22283_vm3, %v1358_v13, -1e+09  ;;  %v1408_v50 = vsel %vm1138_vm4, %v1398_v42, -inf  ;;  %v27093_v13 = vmov 0 }
 0x2b2   :  { %1409 = vmax.xlane.f32.xlu1 %v1408_v50  ;;  %v1405_v55 = vsel %vm1138_vm4, %v1397_v39, -inf  ;;  %v27094_v13 = vsel %vm22303_vm7, 4294967295, %v27093_v13 }
 0x2b3   :  { %1406 = vmax.xlane.f32.xlu0 %v1405_v55  ;;  %v16693_v38 = vpop.f32.mrb[46].mxu1  ;;  %27095 = vst [vmem:[#allocation66_spill] sm:$0xff] %v27094_v13  ;;  %v834_v55 = vpop.permute.xlu0 %833 }
 0x2b4   :  { %v1368_v40 = vpop.f32.mrb[47].mxu1  ;;  %v22311_v33 = vsel %vm22303_vm7, %v16693_v38, -1e+09  ;;  %vm22314_vm9 = vcmp.eq.f32.partialorder %v834_v55, %v22113_v37 }
 0x2b5   :  { %v22300_v19 = vsel %vm22294_vm6, %v1368_v40, -1e+09  ;;  %v27097_v5 = vsel %vm22314_vm9, 4294967295, %v27096_v5  ;;  %v1414_v38 = vsel %vm1138_vm4, %v22311_v33, -inf }
 0x2b6   :  { %v1411_v50 = vsel %vm1138_vm4, %v22300_v19, -inf  ;;  %27098 = vst [vmem:[#allocation67_spill] sm:$0xff] %v27097_v5 }
 0x2b7   :  { %1412 = vmax.xlane.f32.xlu0 %v1411_v50  ;;  %v16696_v51 = vpop.f32.mrb[48].mxu1  ;;  %v844_v27 = vpop.permute.xlu0 %843 }
 0x2b8   :  { %v1378_v40 = vpop.f32.mrb[49].mxu1  ;;  %v1402_v55 = vsel %vm22321_vm10, %v16696_v51, -1e+09  ;;  %v22341_v51 = vpack.i.bf16 %v22071_v59, %v22076_v4  ;;  %vm22346_vm13 = vcmp.eq.f32.partialorder %v844_v27, %v22113_v37 }
 0x2b9   :  { %v1401_v44 = vsel %vm22314_vm9, %v1378_v40, -1e+09  ;;  %v27102_v40 = vmov 0  ;;  %v1420_v34 = vsel %vm1138_vm4, %v1402_v55, -inf }
 0x2ba   :  { %v1417_v50 = vsel %vm1138_vm4, %v1401_v44, -inf  ;;  %v27103_v40 = vsel %vm22331_vm12, 4294967295, %v27102_v40  ;;  %27105 = vst [vmem:[#allocation70_spill] sm:$0xff] %v22341_v51 }
 0x2bb   :  { %1415 = vmax.xlane.f32.xlu0 %v1414_v38  ;;  %1418 = vmax.xlane.f32.xlu1 %v1417_v50  ;;  %v16699_v30 = vpop.f32.mrb[50].mxu1  ;;  %27104 = vst [vmem:[#allocation69_spill] sm:$0xff] %v27103_v40  ;;  %v27106_v38 = vmov 0 }
 0x2bc   :  { %v1388_v18 = vpop.f32.mrb[51].mxu1  ;;  %v1404_v20 = vsel %vm22331_vm12, %v16699_v30, -1e+09  ;;  %v27107_v38 = vsel %vm22346_vm13, 4294967295, %v27106_v38 }
 0x2bd   :  { %v1426_v32 = vsel %vm1138_vm4, %v1404_v20, -inf  ;;  %27108 = vst [vmem:[#allocation71_spill] sm:$0xff] %v27107_v38  ;;  %v1403_v30 = vsel %vm22346_vm13, %v1388_v18, -1e+09 }
 0x2be   :  { %v1423_v50 = vsel %vm1138_vm4, %v1403_v30, -inf }
 0x2bf   :  { %1421 = vmax.xlane.f32.xlu0 %v1420_v34 }
 0x2c3   :  { %1427 = vmax.xlane.f32.xlu0 %v1426_v32  ;;  %v22355_v32 = vpack.i.bf16 %v22150_v49, %v22153_v28 }
 0x2c5   :  { %27109 = vst [vmem:[#allocation72_spill] sm:$0xff] %v22355_v32 }
 0x2cc   :  { %20268 = vrot.lane.b32.xlu1 %v22341_v51, %s21400_s29 }
 0x2f0   :  { %1424 = vmax.xlane.f32.xlu1 %v1423_v50 }
 0x301   :  { %20278 = vrot.lane.b32.xlu1 %v22355_v32, %s21400_s29 }
 0x33f   :  { %v1410_v34 = vpop.xlane.xlu1 %1409 }
 0x340   :  { %v1430_v25 = vsub.f32 %v1398_v42, %v1410_v34  ;;  %v1407_v16 = vpop.xlane.xlu0 %1406 }
 0x341   :  { %v1429_v37 = vsub.f32 %v1397_v39, %v1407_v16 }
 0x342   :  { %v1439_v27 = vmul.f32 1.442695, %v1430_v25  ;;  %v22375_v25 = vpack.i.bf16 %v22116_v60, %v22119_v63 }
 0x343   :  { %v1437_v45 = vmul.f32 1.442695, %v1429_v37 }
 0x344   :  { %20827 = vpow2.f32 %v1439_v27  ;;  %27111 = vst [vmem:[#allocation74_spill] sm:$0xff] %v22375_v25  ;;  %v1413_v42 = vpop.xlane.xlu0 %1412 }
 0x345   :  { %20829 = vpow2.f32 %v1437_v45  ;;  %v22369_v45 = vpack.i.bf16 %v22198_v7, %v22201_v48  ;;  %v1431_v39 = vsub.f32 %v22300_v19, %v1413_v42 }
 0x347   :  { %27110 = vst [vmem:[#allocation73_spill] sm:$0xff] %v22369_v45 }
 0x348   :  { %v1419_v47 = vpop.xlane.xlu1 %1418 }
 0x349   :  { %v1433_v34 = vsub.f32 %v1401_v44, %v1419_v47 }
 0x34b   :  { %v1445_v27 = vmul.f32 1.442695, %v1433_v34 }
 0x34c   :  { %v20269_v18 = vpop.permute.xlu1 %20268 }
 0x34d   :  { %v20271_v51 = vunpack.i.h.bf16 %v20269_v18  ;;  %v20270_v40 = vunpack.i.l.bf16 %v20269_v18 }
 0x34e   :  { %v22359_v50 = vpop.eup %20827 }
 0x34f   :  { %v22361_v38 = vpop.eup %20829  ;;  %v1456_v36 = vsel %vm1138_vm4, %v22359_v50, 0.0  ;;  %v18744_v32 = vpack.c.bf16 %v20271_v51, %v20270_v40 }
 0x350   :  { %1457 = vadd.xlane.f32.xlu0 %v1456_v36  ;;  %v1453_v16 = vsel %vm1138_vm4, %v22361_v38, 0.0  ;;  %v1416_v36 = vpop.xlane.xlu0 %1415 }
 0x351   :  { %18745 = vmatprep.subr.bf16.mxu0 %v18744_v32  ;;  %1454 = vadd.xlane.f32.xlu1 %v1453_v16  ;;  %v1432_v40 = vsub.f32 %v22311_v33, %v1416_v36 }
 0x352   :  { %18747 = vmatpush3.bf16.msra.mxu0 %v18744_v32  ;;  %v1441_v32 = vmul.f32 1.442695, %v1431_v39 }
 0x353   :  { %v1443_v37 = vmul.f32 1.442695, %v1432_v40 }
 0x354   :  { %v1422_v51 = vpop.xlane.xlu0 %1421  ;;  %20831 = vpow2.f32 %v1441_v32 }
 0x355   :  { %v1434_v18 = vsub.f32 %v1402_v55, %v1422_v51  ;;  %20833 = vpow2.f32 %v1443_v37 }
 0x356   :  { %20835 = vpow2.f32 %v1445_v27 }
 0x358   :  { %v1428_v16 = vpop.xlane.xlu0 %1427 }
 0x359   :  { %v1436_v5 = vsub.f32 %v1404_v20, %v1428_v16 }
 0x35e   :  { %v22381_v19 = vpop.eup %20831 }
 0x35f   :  { %v22383_v33 = vpop.eup %20833  ;;  %v1459_v47 = vsel %vm1138_vm4, %v22381_v19, 0.0 }
 0x360   :  { %v22387_v44 = vpop.eup %20835  ;;  %v1462_v20 = vsel %vm1138_vm4, %v22383_v33, 0.0 }
 0x362   :  { %20283 = vrot.lane.b32.xlu1 %v22369_v45, %s21400_s29  ;;  %v1447_v45 = vmul.f32 1.442695, %v1434_v18 }
 0x364   :  { %20837 = vpow2.f32 %v1447_v45 }
 0x366   :  { %20273 = vrot.lane.b32.xlu0 %v22375_v25, %s21400_s29  ;;  %v1451_v25 = vmul.f32 1.442695, %v1436_v5  ;;  %v1465_v5 = vsel %vm1138_vm4, %v22387_v44, 0.0 }
 0x37d   :  { %v1425_v13 = vpop.xlane.xlu1 %1424 }
 0x37e   :  { %v1435_v52 = vsub.f32 %v1403_v30, %v1425_v13 }
 0x380   :  { %v1449_v8 = vmul.f32 1.442695, %v1435_v52  ;;  %v22393_v52 = vpop.eup %20837 }
 0x382   :  { %20839 = vpow2.f32 %v1449_v8  ;;  %v1468_v8 = vsel %vm1138_vm4, %v22393_v52, 0.0 }
 0x383   :  { %20841 = vpow2.f32 %v1451_v25 }
 0x385   :  { %1460 = vadd.xlane.f32.xlu0 %v1459_v47 }
 0x386   :  { %1463 = vadd.xlane.f32.xlu1 %v1462_v20 }
 0x389   :  { %1466 = vadd.xlane.f32.xlu0 %v1465_v5 }
 0x38c   :  { %v22395_v13 = vpop.eup %20839 }
 0x38d   :  { %v22399_v55 = vpop.eup %20841  ;;  %1469 = vadd.xlane.f32.xlu0 %v1468_v8  ;;  %v1471_v30 = vsel %vm1138_vm4, %v22395_v13, 0.0 }
 0x38e   :  { %1472 = vadd.xlane.f32.xlu1 %v1471_v30  ;;  %v1474_v45 = vsel %vm1138_vm4, %v22399_v55, 0.0 }
 0x391   :  { %1475 = vadd.xlane.f32.xlu0 %v1474_v45 }
 0x39f   :  { %1694 = vrot.lane.b32.xlu1 %v21905_v57, %s21401_s30 }
 0x3a3   :  { %1698 = vrot.lane.b32.xlu1 %v21919_v0, %s21401_s30 }
 0x3a7   :  { %1696 = vrot.lane.b32.xlu0 %v21907_v58, %s21401_s30  ;;  %1700 = vrot.lane.b32.xlu1 %v21913_v61, %s21401_s30 }
 0x3ab   :  { %1702 = vrot.lane.b32.xlu0 %v21931_v6, %s21401_s30  ;;  %1704 = vrot.lane.b32.xlu1 %v21925_v3, %s21401_s30 }
 0x3af   :  { %1706 = vrot.lane.b32.xlu0 %v21949_v14, %s21401_s30  ;;  %1708 = vrot.lane.b32.xlu1 %v21941_v11, %s21401_s30 }
 0x3b3   :  { %1662 = vrot.lane.b32.xlu0 %v22081_v12, %s21402_s15  ;;  %1664 = vrot.lane.b32.xlu1 %v22086_v9, %s21402_s15  ;;  %v20279_v12 = vpop.permute.xlu1 %20278 }
 0x3b4   :  { %v20281_v42 = vunpack.i.h.bf16 %v20279_v12  ;;  %v20280_v36 = vunpack.i.l.bf16 %v20279_v12 }
 0x3b6   :  { %v18752_v27 = vpack.c.bf16 %v20281_v42, %v20280_v36 }
 0x3b7   :  { %1666 = vrot.lane.b32.xlu0 %v22126_v54, %s21402_s15  ;;  %1668 = vrot.lane.b32.xlu1 %v22131_v35, %s21402_s15 }
 0x3bb   :  { %1670 = vrot.lane.b32.xlu0 %v22169_v10, %s21402_s15  ;;  %1672 = vrot.lane.b32.xlu1 %v22174_v26, %s21402_s15 }
 0x3bf   :  { %1674 = vrot.lane.b32.xlu0 %v22215_v46, %s21402_s15  ;;  %1676 = vrot.lane.b32.xlu1 %v22220_v2, %s21402_s15 }
 0x3dd   :  { %v1458_v9 = vpop.xlane.xlu0 %1457 }
 0x3de   :  { %v1455_v25 = vpop.xlane.xlu1 %1454 }
 0x3df   :  { %20843 = vrcp.f32 %v1455_v25 }
 0x3e0   :  { %20845 = vrcp.f32 %v1458_v9 }
 0x3e1   :  { %v20274_v54 = vpop.permute.xlu0 %20273 }
 0x3e2   :  { %v20276_v39 = vunpack.i.h.bf16 %v20274_v54  ;;  %v20275_v40 = vunpack.i.l.bf16 %v20274_v54  ;;  %v20284_v51 = vpop.permute.xlu1 %20283 }
 0x3e3   :  { %v20286_v34 = vunpack.i.h.bf16 %v20284_v51  ;;  %v20285_v37 = vunpack.i.l.bf16 %v20284_v51 }
 0x3e4   :  { %v18748_v32 = vpack.c.bf16 %v20276_v39, %v20275_v40 }
 0x3e5   :  { %v18756_v16 = vpack.c.bf16 %v20286_v34, %v20285_v37 }
 0x3e6   :  { %18749 = vmatprep.subr.bf16.mxu0 %v18748_v32 }
 0x3e7   :  { %18751 = vmatpush3.bf16.msra.mxu0 %v18748_v32 }
 0x3e8   :  { %18753 = vmatprep.subr.bf16.mxu0 %v18752_v27 }
 0x3e9   :  { %v20844_v18 = vpop.eup %20843 }
 0x3ea   :  { %v1485_v47 = vmul.f32 %v20844_v18, %v22361_v38  ;;  %v20846_v20 = vpop.eup %20845 }
 0x3eb   :  { %18755 = vmatpush3.bf16.msra.mxu0 %v18752_v27  ;;  %v1486_v5 = vmul.f32 %v20846_v20, %v22359_v50 }
 0x3ec   :  { %18757 = vmatprep.subr.bf16.mxu0 %v18756_v16  ;;  %16716 = vmatprep.mubr.msk.f32.mxu0 %vm1138_vm4, %v1485_v47 }
 0x3ef   :  { %18759 = vmatpush3.bf16.msra.mxu0 %v18756_v16 }
 0x3f0   :  { %18762 = vmatprep.subr.msk.bf16.mxu0 %vm21544_vm2, %v21535_v21 }
 0x3f2   :  { %16717 = vmatmul.mubr.msk.f32.vlgmr.msra.gmra.mrb[28].mxu0 %vm1138_vm4, %v1486_v5 }
 0x3f8   :  { %18765 = vmatpush3.bf16.xpose.msk.msra.mxu0 %vm21544_vm2, %v21535_v21 }
 0x3f9   :  { %18768 = vmatprep.subr.msk.bf16.mxu0 %vm21544_vm2, %v21568_v29 }
 0x400   :  { %18771 = vmatpush3.bf16.xpose.msk.msra.mxu0 %vm21544_vm2, %v21568_v29 }
 0x401   :  { %18774 = vmatprep.subr.msk.bf16.mxu0 %vm21544_vm2, %v21617_v41 }
 0x408   :  { %18777 = vmatpush3.bf16.xpose.msk.msra.mxu0 %vm21544_vm2, %v21617_v41 }
 0x409   :  { %18780 = vmatprep.subr.msk.bf16.mxu0 %vm21544_vm2, %v21666_v53 }
 0x410   :  { %18783 = vmatpush3.bf16.xpose.msk.msra.mxu0 %vm21544_vm2, %v21666_v53 }
 0x412   :  { %v1461_v38 = vpop.xlane.xlu0 %1460 }
 0x413   :  { %20847 = vrcp.f32 %v1461_v38  ;;  %v1464_v50 = vpop.xlane.xlu1 %1463 }
 0x414   :  { %20849 = vrcp.f32 %v1464_v50 }
 0x416   :  { %v1467_v8 = vpop.xlane.xlu0 %1466 }
 0x417   :  { %20851 = vrcp.f32 %v1467_v8 }
 0x41a   :  { %v1470_v30 = vpop.xlane.xlu0 %1469 }
 0x41b   :  { %20853 = vrcp.f32 %v1470_v30  ;;  %v1473_v45 = vpop.xlane.xlu1 %1472 }
 0x41c   :  { %20855 = vrcp.f32 %v1473_v45 }
 0x41d   :  { %v20848_v12 = vpop.eup %20847 }
 0x41e   :  { %v20850_v9 = vpop.eup %20849  ;;  %v1476_v25 = vpop.xlane.xlu0 %1475  ;;  %v1487_v54 = vmul.f32 %v20848_v12, %v22381_v19 }
 0x41f   :  { %20857 = vrcp.f32 %v1476_v25  ;;  %v22466_v42 = vpop.permute.xlu1 %1694  ;;  %v1488_v36 = vmul.f32 %v20850_v9, %v22383_v33 }
 0x420   :  { %16719 = vmatprep.mubr.msk.f32.mxu0 %vm1138_vm4, %v1487_v54 }
 0x421   :  { %v20852_v39 = vpop.eup %20851  ;;  %16720 = vmatmul.mubr.msk.f32.gmra.mrb[30].mxu0 %vm1138_vm4, %v1488_v36 }
 0x422   :  { %v22471_v40 = vpop.permute.xlu0 %1696  ;;  %v1489_v51 = vmul.f32 %v20852_v39, %v22387_v44 }
 0x423   :  { %v22474_v32 = vpop.permute.xlu1 %1698 }
 0x424   :  { %16722 = vmatprep.mubr.msk.f32.mxu0 %vm1138_vm4, %v1489_v51 }
 0x425   :  { %v20854_v34 = vpop.eup %20853 }
 0x426   :  { %v20856_v19 = vpop.eup %20855  ;;  %v22477_v37 = vpop.permute.xlu0 %1702  ;;  %v1490_v27 = vmul.f32 %v20854_v34, %v22393_v52 }
 0x427   :  { %v22480_v33 = vpop.permute.xlu1 %1700  ;;  %v1491_v18 = vmul.f32 %v20856_v19, %v22395_v13 }
 0x428   :  { %16723 = vmatmul.mubr.msk.f32.gmra.mrb[32].mxu0 %vm1138_vm4, %v1490_v27 }
 0x429   :  { %v20858_v16 = vpop.eup %20857  ;;  %16725 = vmatprep.mubr.msk.f32.mxu0 %vm1138_vm4, %v1491_v18 }
 0x42a   :  { %v22485_v44 = vpop.permute.xlu0 %1706  ;;  %v1492_v47 = vmul.f32 %v20858_v16, %v22399_v55 }
 0x42b   :  { %v22488_v20 = vpop.permute.xlu1 %1704 }
 0x42c   :  { %16726 = vmatmul.mubr.msk.f32.gmra.mrb[34].mxu0 %vm1138_vm4, %v1492_v47 }
 0x42d   :  { %16744 = vmatprep.mubr.msk.f32.mxu0 %vm976_vm1, %v22466_v42 }
 0x42e   :  { %v22493_v52 = vpop.permute.xlu0 %1662 }
 0x42f   :  { %27112 = vst [vmem:[#allocation75_spill] sm:$0xff] %v22493_v52  ;;  %v22495_v5 = vpop.permute.xlu1 %1708  ;;  %v1686_v38 = vadd.f32 %v22493_v52, %v22076_v4 }
 0x430   :  { %16745 = vmatmul.mubr.msk.f32.vlgmr.msra.gmra.mrb[36].mxu0 %vm976_vm1, %v22471_v40 }
 0x431   :  { %16747 = vmatprep.mubr.msk.f32.mxu0 %vm976_vm1, %v22474_v32 }
 0x432   :  { %v22501_v13 = vpop.permute.xlu0 %1666 }
 0x433   :  { %27113 = vst [vmem:[#allocation76_spill] sm:$0xff] %v22501_v13  ;;  %v22503_v55 = vpop.permute.xlu1 %1664  ;;  %v1688_v12 = vadd.f32 %v22501_v13, %v22119_v63 }
 0x434   :  { %27114 = vst [vmem:[#allocation77_spill] sm:$0xff] %v22503_v55  ;;  %16748 = vmatmul.mubr.msk.f32.gmra.mrb[38].mxu0 %vm976_vm1, %v22480_v33  ;;  %v1687_v50 = vadd.f32 %v22503_v55, %v22071_v59 }
 0x435   :  { %16750 = vmatprep.mubr.msk.f32.mxu0 %vm976_vm1, %v22477_v37 }
 0x436   :  { %v20287_v8 = vpack.i.bf16 %v1687_v50, %v1686_v38  ;;  %v22513_v30 = vpop.permute.xlu0 %1670 }
 0x437   :  { %27115 = vst [vmem:[#allocation78_spill] sm:$0xff] %v22513_v30  ;;  %v22515_v45 = vpop.permute.xlu1 %1668  ;;  %v1690_v36 = vadd.f32 %v22513_v30, %v22153_v28 }
 0x438   :  { %27116 = vst [vmem:[#allocation79_spill] sm:$0xff] %v22515_v45  ;;  %20288 = vrot.lane.b32.xlu0 %v20287_v8, %s21401_s30  ;;  %16751 = vmatmul.mubr.msk.f32.gmra.mrb[40].mxu0 %vm976_vm1, %v22488_v20  ;;  %v1689_v9 = vadd.f32 %v22515_v45, %v22116_v60 }
 0x439   :  { %16753 = vmatprep.mubr.msk.f32.mxu0 %vm976_vm1, %v22485_v44 }
 0x43a   :  { %v20292_v54 = vpack.i.bf16 %v1689_v9, %v1688_v12  ;;  %v22534_v51 = vpop.permute.xlu0 %1674 }
 0x43b   :  { %v22526_v25 = vpop.permute.xlu1 %1672  ;;  %27118 = vst [vmem:[#allocation81_spill] sm:$0xff] %v22534_v51  ;;  %v1692_v27 = vadd.f32 %v22534_v51, %v22201_v48 }
 0x43c   :  { %27117 = vst [vmem:[#allocation80_spill] sm:$0xff] %v22526_v25  ;;  %16754 = vmatmul.mubr.msk.f32.gmra.mrb[42].mxu0 %vm976_vm1, %v22495_v5  ;;  %v1691_v39 = vadd.f32 %v22526_v25, %v22150_v49  ;;  %20293 = vrot.lane.b32.xlu1 %v20292_v54, %s21401_s30 }
 0x43e   :  { %v20297_v34 = vpack.i.bf16 %v1691_v39, %v1690_v36 }
 0x43f   :  { %v22537_v19 = vpop.permute.xlu1 %1676 }
 0x440   :  { %27119 = vst [vmem:[#allocation82_spill] sm:$0xff] %v22537_v19  ;;  %20298 = vrot.lane.b32.xlu0 %v20297_v34, %s21401_s30  ;;  %v1693_v18 = vadd.f32 %v22537_v19, %v22198_v7 }
 0x442   :  { %v20302_v16 = vpack.i.bf16 %v1693_v18, %v1692_v27 }
 0x444   :  { %20303 = vrot.lane.b32.xlu1 %v20302_v16, %s21401_s30 }
 0x4aa   :  { %v20289_v47 = vpop.permute.xlu0 %20288 }
 0x4ab   :  { %v20291_v38 = vunpack.i.h.bf16 %v20289_v47  ;;  %v20290_v50 = vunpack.i.l.bf16 %v20289_v47 }
 0x4ad   :  { %v18800_v8 = vpack.c.bf16 %v20291_v38, %v20290_v50 }
 0x4ae   :  { %v20294_v16 = vpop.permute.xlu1 %20293 }
 0x4af   :  { %18802 = vmatprep.subr.msk.bf16.mxu1 %vm21544_vm2, %v18800_v8  ;;  %v20296_v38 = vunpack.i.h.bf16 %v20294_v16  ;;  %v20295_v50 = vunpack.i.l.bf16 %v20294_v16 }
 0x4b1   :  { %v18806_v13 = vpack.c.bf16 %v20296_v38, %v20295_v50 }
 0x4b2   :  { %v20299_v45 = vpop.permute.xlu0 %20298 }
 0x4c5   :  { %v22547_v12 = vpop.f32.mrb[28].mxu0 }
 0x4c6   :  { %v22549_v9 = vpop.f32.mrb[29].mxu0 }
 0x4f4   :  { %v22551_v54 = vpop.f32.mrb[30].mxu0 }
 0x4f5   :  { %v22553_v36 = vpop.f32.mrb[31].mxu0 }
 0x4fb   :  { %v22555_v39 = vpop.f32.mrb[32].mxu0 }
 0x4fc   :  { %v22557_v34 = vpop.f32.mrb[33].mxu0 }
 0x4ff   :  { %v22559_v27 = vpop.f32.mrb[34].mxu0 }
 0x500   :  { %v22561_v18 = vpop.f32.mrb[35].mxu0 }
 0x503   :  { %v16746_v47 = vpop.f32.mrb[36].mxu0 }
 0x504   :  { %v1792_v51 = vpop.f32.mrb[37].mxu0  ;;  %v1832_v19 = vmul.f32 %v16746_v47, %v22141_v62  ;;  %v20301_v47 = vunpack.i.h.bf16 %v20299_v45 }
 0x505   :  { %v1831_v30 = vmul.f32 %v22139_v56, %v1792_v51 }
 0x507   :  { %v16749_v25 = vpop.f32.mrb[38].mxu0  ;;  %16772 = vmatprep.mubr.msk.f32.mxu1 %vm1138_vm4, %v1831_v30  ;;  %v20300_v30 = vunpack.i.l.bf16 %v20299_v45 }
 0x508   :  { %v1802_v52 = vpop.f32.mrb[39].mxu0  ;;  %16773 = vmatmul.mubr.msk.f32.vlgmr.msra.gmra.mrb[52].mxu1 %vm1138_vm4, %v1832_v19  ;;  %v1834_v16 = vmul.f32 %v16749_v25, %v22161_v15  ;;  %v20304_v15 = vpop.permute.xlu1 %20303 }
 0x509   :  { %v1833_v55 = vmul.f32 %v22156_v43, %v1802_v52  ;;  %18805 = vmatpush3.bf16.xpose.msk.msra.mxu1 %vm21544_vm2, %v18800_v8  ;;  %v18812_v8 = vpack.c.bf16 %v20301_v47, %v20300_v30  ;;  %v20306_v45 = vunpack.i.h.bf16 %v20304_v15 }
 0x50a   :  { %18808 = vmatprep.subr.msk.bf16.mxu1 %vm21544_vm2, %v18806_v13 }
 0x50b   :  { %v16752_v51 = vpop.f32.mrb[40].mxu0  ;;  %16775 = vmatprep.mubr.msk.f32.mxu1 %vm1138_vm4, %v1833_v55 }
 0x50c   :  { %v1812_v38 = vpop.f32.mrb[41].mxu0  ;;  %16776 = vmatmul.mubr.msk.f32.gmra.mrb[54].mxu1 %vm1138_vm4, %v1834_v16  ;;  %v1836_v52 = vmul.f32 %v16752_v51, %v22191_v22  ;;  %v20305_v16 = vunpack.i.l.bf16 %v20304_v15 }
 0x50d   :  { %v1835_v19 = vmul.f32 %v22186_v1, %v1812_v38 }
 0x50e   :  { %v18818_v51 = vpack.c.bf16 %v20306_v45, %v20305_v16 }
 0x50f   :  { %v16755_v50 = vpop.f32.mrb[42].mxu0  ;;  %16778 = vmatprep.mubr.msk.f32.mxu1 %vm1138_vm4, %v1835_v19 }
 0x510   :  { %v1822_v25 = vpop.f32.mrb[43].mxu0  ;;  %16779 = vmatmul.mubr.msk.f32.gmra.mrb[56].mxu1 %vm1138_vm4, %v1836_v52  ;;  %v1838_v55 = vmul.f32 %v16755_v50, %v22207_v31 }
 0x511   :  { %v1837_v43 = vmul.f32 %v22204_v24, %v1822_v25  ;;  %18811 = vmatpush3.bf16.xpose.msk.msra.mxu1 %vm21544_vm2, %v18806_v13 }
 0x512   :  { %18814 = vmatprep.subr.msk.bf16.mxu1 %vm21544_vm2, %v18812_v8 }
 0x513   :  { %16781 = vmatprep.mubr.msk.f32.mxu1 %vm1138_vm4, %v1837_v43 }
 0x514   :  { %16782 = vmatmul.mubr.msk.f32.gmra.mrb[58].mxu1 %vm1138_vm4, %v1838_v55 }
 0x515   :  { %16800 = vmatprep.mubr.msk.f32.mxu1 %vm976_vm1, %v22466_v42 }
 0x519   :  { %18817 = vmatpush3.bf16.xpose.msk.msra.mxu1 %vm21544_vm2, %v18812_v8 }
 0x51a   :  { %18820 = vmatprep.subr.msk.bf16.mxu1 %vm21544_vm2, %v18818_v51 }
 0x521   :  { %18823 = vmatpush3.bf16.xpose.msk.msra.mxu1 %vm21544_vm2, %v18818_v51 }
 0x522   :  { %18850 = vmatprep.subr.msk.bf16.mxu1 %vm21544_vm2, %v21535_v21 }
 0x528   :  { %16801 = vmatmul.mubr.msk.f32.vlgmr.msra.gmra.mrb[52].mxu1 %vm976_vm1, %v22471_v40 }
 0x529   :  { %16803 = vmatprep.mubr.msk.f32.mxu1 %vm976_vm1, %v22474_v32  ;;  %18853 = vmatpush3.bf16.xpose.msk.msra.mxu1 %vm21544_vm2, %v21535_v21 }
 0x52a   :  { %18856 = vmatprep.subr.msk.bf16.mxu1 %vm21544_vm2, %v21568_v29 }
 0x52c   :  { %16804 = vmatmul.mubr.msk.f32.gmra.mrb[54].mxu1 %vm976_vm1, %v22480_v33 }
 0x52d   :  { %16806 = vmatprep.mubr.msk.f32.mxu1 %vm976_vm1, %v22477_v37 }
 0x530   :  { %16807 = vmatmul.mubr.msk.f32.gmra.mrb[56].mxu1 %vm976_vm1, %v22488_v20 }
 0x531   :  { %16809 = vmatprep.mubr.msk.f32.mxu1 %vm976_vm1, %v22485_v44  ;;  %18859 = vmatpush3.bf16.xpose.msk.msra.mxu1 %vm21544_vm2, %v21568_v29 }
 0x532   :  { %18862 = vmatprep.subr.msk.bf16.mxu1 %vm21544_vm2, %v21617_v41 }
 0x534   :  { %16810 = vmatmul.mubr.msk.f32.gmra.mrb[58].mxu1 %vm976_vm1, %v22495_v5 }
 0x539   :  { %18865 = vmatpush3.bf16.xpose.msk.msra.mxu1 %vm21544_vm2, %v21617_v41 }
 0x53a   :  { %18868 = vmatprep.subr.msk.bf16.mxu1 %vm21544_vm2, %v21666_v53 }
 0x541   :  { %18871 = vmatpush3.bf16.xpose.msk.msra.mxu1 %vm21544_vm2, %v21666_v53 }
 0x5fb   :  { %v16802_v43 = vpop.f32.mrb[52].mxu1 }
 0x5fc   :  { %v2114_v15 = vsel %vm22278_vm15, %v16802_v43, -1e+09  ;;  %v2074_v42 = vpop.f32.mrb[53].mxu1 }
 0x5fd   :  { %v2113_v32 = vsel %vm22283_vm3, %v2074_v42, -1e+09  ;;  %v2124_v37 = vsel %vm1138_vm4, %v2114_v15, -inf }
 0x5fe   :  { %2125 = vmax.xlane.f32.xlu1 %v2124_v37  ;;  %v2121_v33 = vsel %vm1138_vm4, %v2113_v32, -inf }
 0x5ff   :  { %2122 = vmax.xlane.f32.xlu0 %v2121_v33  ;;  %v16805_v44 = vpop.f32.mrb[54].mxu1 }
 0x600   :  { %v2084_v20 = vpop.f32.mrb[55].mxu1  ;;  %v2116_v38 = vsel %vm22303_vm7, %v16805_v44, -1e+09 }
 0x601   :  { %v2115_v13 = vsel %vm22294_vm6, %v2084_v20, -1e+09  ;;  %v2130_v25 = vsel %vm1138_vm4, %v2116_v38, -inf }
 0x602   :  { %v2127_v47 = vsel %vm1138_vm4, %v2115_v13, -inf }
 0x603   :  { %2128 = vmax.xlane.f32.xlu0 %v2127_v47  ;;  %v16808_v19 = vpop.f32.mrb[56].mxu1 }
 0x604   :  { %v2094_v52 = vpop.f32.mrb[57].mxu1  ;;  %v2118_v16 = vsel %vm22321_vm10, %v16808_v19, -1e+09  ;;  %v27127_v19 = vld [vmem:[#allocation70_spill] sm:$0xff] }
 0x605   :  { %v2117_v8 = vsel %vm22314_vm9, %v2094_v52, -1e+09  ;;  %v2136_v33 = vsel %vm1138_vm4, %v2118_v16, -inf }
 0x606   :  { %v2133_v55 = vsel %vm1138_vm4, %v2117_v8, -inf }
 0x607   :  { %2131 = vmax.xlane.f32.xlu0 %v2130_v25  ;;  %2134 = vmax.xlane.f32.xlu1 %v2133_v55  ;;  %v16811_v51 = vpop.f32.mrb[58].mxu1 }
 0x608   :  { %v2104_v43 = vpop.f32.mrb[59].mxu1  ;;  %v2120_v47 = vsel %vm22331_vm12, %v16811_v51, -1e+09 }
 0x609   :  { %v2119_v37 = vsel %vm22346_vm13, %v2104_v43, -1e+09  ;;  %v2142_v52 = vsel %vm1138_vm4, %v2120_v47, -inf }
 0x60a   :  { %v2139_v44 = vsel %vm1138_vm4, %v2119_v37, -inf }
 0x60b   :  { %2137 = vmax.xlane.f32.xlu0 %v2136_v33  ;;  %2140 = vmax.xlane.f32.xlu1 %v2139_v44 }
 0x60f   :  { %2143 = vmax.xlane.f32.xlu0 %v2142_v52 }
 0x61c   :  { %20308 = vrot.lane.b32.xlu1 %v27127_v19, %s21403_s16 }
 0x68b   :  { %v2126_v25 = vpop.xlane.xlu1 %2125 }
 0x68c   :  { %v2146_v55 = vsub.f32 %v2114_v15, %v2126_v25  ;;  %v2123_v53 = vpop.xlane.xlu0 %2122 }
 0x68d   :  { %v2145_v43 = vsub.f32 %v2113_v32, %v2123_v53 }
 0x68e   :  { %v2155_v41 = vmul.f32 1.442695, %v2146_v55 }
 0x68f   :  { %v2153_v29 = vmul.f32 1.442695, %v2145_v43 }
 0x690   :  { %20859 = vpow2.f32 %v2155_v41  ;;  %v2129_v21 = vpop.xlane.xlu0 %2128 }
 0x691   :  { %20861 = vpow2.f32 %v2153_v29  ;;  %v2147_v42 = vsub.f32 %v2115_v13, %v2129_v21 }
 0x693   :  { %v2157_v51 = vmul.f32 1.442695, %v2147_v42 }
 0x694   :  { %v2132_v33 = vpop.xlane.xlu0 %2131  ;;  %v2135_v44 = vpop.xlane.xlu1 %2134 }
 0x695   :  { %20863 = vpow2.f32 %v2157_v51  ;;  %v2148_v20 = vsub.f32 %v2116_v38, %v2132_v33  ;;  %v2149_v52 = vsub.f32 %v2117_v8, %v2135_v44 }
 0x697   :  { %v2159_v45 = vmul.f32 1.442695, %v2148_v20  ;;  %v2161_v50 = vmul.f32 1.442695, %v2149_v52 }
 0x698   :  { %v2138_v30 = vpop.xlane.xlu0 %2137  ;;  %v2141_v19 = vpop.xlane.xlu1 %2140 }
 0x699   :  { %20865 = vpow2.f32 %v2159_v45  ;;  %v2150_v15 = vsub.f32 %v2118_v16, %v2138_v30  ;;  %v2151_v29 = vsub.f32 %v2119_v37, %v2141_v19 }
 0x69a   :  { %v22659_v25 = vpop.eup %20859  ;;  %20867 = vpow2.f32 %v2161_v50 }
 0x69b   :  { %v22661_v53 = vpop.eup %20861  ;;  %v2163_v41 = vmul.f32 1.442695, %v2150_v15  ;;  %v2172_v21 = vsel %vm1138_vm4, %v22659_v25, 0.0  ;;  %v2165_v50 = vmul.f32 1.442695, %v2151_v29  ;;  %v27128_v29 = vld [vmem:[#allocation72_spill] sm:$0xff] }
 0x69c   :  { %2173 = vadd.xlane.f32.xlu0 %v2172_v21  ;;  %v2144_v32 = vpop.xlane.xlu0 %2143  ;;  %v20309_v13 = vpop.permute.xlu1 %20308  ;;  %v2169_v38 = vsel %vm1138_vm4, %v22661_v53, 0.0  ;;  %v27129_v21 = vld [vmem:[#allocation73_spill] sm:$0xff] }
 0x69d   :  { %20869 = vpow2.f32 %v2163_v41  ;;  %v2152_v8 = vsub.f32 %v2120_v47, %v2144_v32  ;;  %v20311_v45 = vunpack.i.h.bf16 %v20309_v13  ;;  %v20310_v30 = vunpack.i.l.bf16 %v20309_v13  ;;  %2170 = vadd.xlane.f32.xlu1 %v2169_v38  ;;  %v27130_v32 = vld [vmem:[#allocation74_spill] sm:$0xff]  ;;  %v22723_v38 = vld [vmem:[%s26820_s9] sm:$0xff] }
 0x69e   :  { %v22716_v13 = vld [vmem:[%s26820_s9 + $0x8] sm:$0xff]  ;;  %27132 = vst [vmem:[#allocation65_spill] sm:$0xff] %v22723_v38 }
 0x69f   :  { %v22667_v16 = vpop.eup %20863  ;;  %v2167_v42 = vmul.f32 1.442695, %v2152_v8  ;;  %v18824_v20 = vpack.c.bf16 %v20311_v45, %v20310_v30  ;;  %27131 = vst [vmem:[#allocation64_spill] sm:$0xff] %v22716_v13  ;;  %v22732_v8 = vld [vmem:[%s26820_s9 + $0x10] sm:$0xff] }
 0x6a0   :  { %v2175_v37 = vsel %vm1138_vm4, %v22667_v16, 0.0  ;;  %27133 = vst [vmem:[#allocation83_spill] sm:$0xff] %v22732_v8 }
 0x6a1   :  { %20871 = vpow2.f32 %v2167_v42  ;;  %2176 = vadd.xlane.f32.xlu1 %v2175_v37  ;;  %18825 = vmatprep.subr.bf16.mxu0 %v18824_v20 }
 0x6a2   :  { %18827 = vmatpush3.bf16.msra.mxu0 %v18824_v20  ;;  %20873 = vpow2.f32 %v2165_v50 }
 0x6a3   :  { %v22671_v19 = vpop.eup %20865 }
 0x6a4   :  { %v22673_v55 = vpop.eup %20867  ;;  %v2178_v47 = vsel %vm1138_vm4, %v22671_v19, 0.0 }
 0x6a5   :  { %2179 = vadd.xlane.f32.xlu0 %v2178_v47  ;;  %v2181_v43 = vsel %vm1138_vm4, %v22673_v55, 0.0 }
 0x6a6   :  { %2182 = vadd.xlane.f32.xlu1 %v2181_v43 }
 0x6a7   :  { %v22679_v51 = vpop.eup %20869 }
 0x6a8   :  { %v2184_v33 = vsel %vm1138_vm4, %v22679_v51, 0.0 }
 0x6a9   :  { %2185 = vadd.xlane.f32.xlu0 %v2184_v33 }
 0x6ab   :  { %v22683_v44 = vpop.eup %20871 }
 0x6ac   :  { %v2190_v52 = vsel %vm1138_vm4, %v22683_v44, 0.0  ;;  %v22687_v15 = vpop.eup %20873 }
 0x6ad   :  { %2191 = vadd.xlane.f32.xlu0 %v2190_v52  ;;  %v2187_v41 = vsel %vm1138_vm4, %v22687_v15, 0.0 }
 0x6b1   :  { %2188 = vadd.xlane.f32.xlu0 %v2187_v41 }
 0x6b7   :  { %20318 = vrot.lane.b32.xlu1 %v27128_v29, %s21403_s16 }
 0x6bb   :  { %20323 = vrot.lane.b32.xlu1 %v27129_v21, %s21403_s16 }
 0x6bf   :  { %2652 = vrot.lane.b32.xlu1 %v21905_v57, %s21404_s11 }
 0x6c3   :  { %2654 = vrot.lane.b32.xlu1 %v21907_v58, %s21404_s11 }
 0x6c7   :  { %2658 = vrot.lane.b32.xlu1 %v21913_v61, %s21404_s11  ;;  %20313 = vrot.lane.b32.xlu0 %v27130_v32, %s21403_s16 }
 0x6cb   :  { %2662 = vrot.lane.b32.xlu1 %v21925_v3, %s21404_s11  ;;  %2656 = vrot.lane.b32.xlu0 %v21919_v0, %s21404_s11 }
 0x6cf   :  { %2666 = vrot.lane.b32.xlu1 %v21941_v11, %s21404_s11  ;;  %2660 = vrot.lane.b32.xlu0 %v21931_v6, %s21404_s11 }
 0x6d3   :  { %2664 = vrot.lane.b32.xlu0 %v21949_v14, %s21404_s11  ;;  %2622 = vrot.lane.b32.xlu1 %v22716_v13, %s21405_s18 }
 0x6d7   :  { %2620 = vrot.lane.b32.xlu0 %v22723_v38, %s21405_s18  ;;  %2626 = vrot.lane.b32.xlu1 %v22131_v35, %s21405_s18 }
 0x6db   :  { %2624 = vrot.lane.b32.xlu0 %v22732_v8, %s21405_s18  ;;  %2630 = vrot.lane.b32.xlu1 %v22174_v26, %s21405_s18 }
 0x6df   :  { %2628 = vrot.lane.b32.xlu0 %v22169_v10, %s21405_s18  ;;  %2634 = vrot.lane.b32.xlu1 %v22220_v2, %s21405_s18 }
 0x6e3   :  { %2632 = vrot.lane.b32.xlu0 %v22215_v46, %s21405_s18 }
 0x729   :  { %v2174_v45 = vpop.xlane.xlu0 %2173 }
 0x72a   :  { %v2171_v35 = vpop.xlane.xlu1 %2170 }
 0x72b   :  { %20875 = vrcp.f32 %v2171_v35 }
 0x72c   :  { %20877 = vrcp.f32 %v2174_v45 }
 0x72e   :  { %v2177_v30 = vpop.xlane.xlu1 %2176 }
 0x72f   :  { %20879 = vrcp.f32 %v2177_v30 }
 0x732   :  { %v2180_v50 = vpop.xlane.xlu0 %2179 }
 0x733   :  { %v2183_v42 = vpop.xlane.xlu1 %2182  ;;  %20881 = vrcp.f32 %v2180_v50 }
 0x734   :  { %20883 = vrcp.f32 %v2183_v42 }
 0x735   :  { %v20876_v20 = vpop.eup %20875 }
 0x736   :  { %v2186_v37 = vpop.xlane.xlu0 %2185  ;;  %v2201_v47 = vmul.f32 %v20876_v20, %v22661_v53  ;;  %v20878_v50 = vpop.eup %20877 }
 0x737   :  { %v20319_v26 = vpop.permute.xlu1 %20318  ;;  %20885 = vrcp.f32 %v2186_v37 }
 0x738   :  { %16828 = vmatprep.mubr.msk.f32.mxu0 %vm1138_vm4, %v2201_v47  ;;  %v20321_v52 = vunpack.i.h.bf16 %v20319_v26  ;;  %v20320_v41 = vunpack.i.l.bf16 %v20319_v26 }
 0x739   :  { %v20880_v42 = vpop.eup %20879 }
 0x73a   :  { %v2192_v10 = vpop.xlane.xlu0 %2191  ;;  %v18832_v26 = vpack.c.bf16 %v20321_v52, %v20320_v41 }
 0x73b   :  { %v20324_v43 = vpop.permute.xlu1 %20323 }
 0x73c   :  { %v20326_v47 = vunpack.i.h.bf16 %v20324_v43  ;;  %v20325_v38 = vunpack.i.l.bf16 %v20324_v43 }
 0x73d   :  { %v20882_v37 = vpop.eup %20881 }
 0x73e   :  { %v2189_v33 = vpop.xlane.xlu0 %2188  ;;  %v18836_v30 = vpack.c.bf16 %v20326_v47, %v20325_v38  ;;  %v2202_v38 = vmul.f32 %v20878_v50, %v22659_v25  ;;  %v20884_v41 = vpop.eup %20883  ;;  %v2204_v25 = vmul.f32 %v20882_v37, %v22671_v19 }
 0x73f   :  { %v22746_v2 = vpop.permute.xlu1 %2652  ;;  %20887 = vrcp.f32 %v2189_v33  ;;  %v2203_v33 = vmul.f32 %v20880_v42, %v22667_v16  ;;  %v2205_v16 = vmul.f32 %v20884_v41, %v22673_v55 }
 0x740   :  { %16888 = vmatprep.mubr.msk.f32.mxu1 %vm976_vm1, %v22746_v2  ;;  %20889 = vrcp.f32 %v2192_v10 }
 0x741   :  { %v20886_v47 = vpop.eup %20885 }
 0x742   :  { %v20314_v46 = vpop.permute.xlu0 %20313  ;;  %v2206_v37 = vmul.f32 %v20886_v47, %v22679_v51 }
 0x743   :  { %v20316_v35 = vunpack.i.h.bf16 %v20314_v46  ;;  %v20315_v8 = vunpack.i.l.bf16 %v20314_v46  ;;  %v22750_v13 = vpop.permute.xlu1 %2654 }
 0x744   :  { %16889 = vmatmul.mubr.msk.f32.vlgmr.msra.gmra.mrb[60].mxu1 %vm976_vm1, %v22750_v13 }
 0x745   :  { %v18828_v53 = vpack.c.bf16 %v20316_v35, %v20315_v8 }
 0x746   :  { %v22754_v20 = vpop.permute.xlu0 %2656 }
 0x747   :  { %v22756_v11 = vpop.permute.xlu1 %2658  ;;  %18829 = vmatprep.subr.bf16.mxu0 %v18828_v53  ;;  %16891 = vmatprep.mubr.msk.f32.mxu1 %vm976_vm1, %v22754_v20 }
 0x748   :  { %18831 = vmatpush3.bf16.msra.mxu0 %v18828_v53  ;;  %16892 = vmatmul.mubr.msk.f32.gmra.mrb[62].mxu1 %vm976_vm1, %v22756_v11 }
 0x749   :  { %18833 = vmatprep.subr.bf16.mxu0 %v18832_v26  ;;  %v20888_v50 = vpop.eup %20887 }
 0x74a   :  { %v22762_v45 = vpop.permute.xlu0 %2660  ;;  %v2207_v55 = vmul.f32 %v20888_v50, %v22687_v15 }
 0x74b   :  { %v22764_v8 = vpop.permute.xlu1 %2662  ;;  %16894 = vmatprep.mubr.msk.f32.mxu1 %vm976_vm1, %v22762_v45 }
 0x74c   :  { %18835 = vmatpush3.bf16.msra.mxu0 %v18832_v26  ;;  %16895 = vmatmul.mubr.msk.f32.gmra.mrb[64].mxu1 %vm976_vm1, %v22764_v8 }
 0x74d   :  { %18837 = vmatprep.subr.bf16.mxu0 %v18836_v30 }
 0x74e   :  { %v22770_v43 = vpop.permute.xlu0 %2664 }
 0x74f   :  { %v22772_v46 = vpop.permute.xlu1 %2666  ;;  %16897 = vmatprep.mubr.msk.f32.mxu1 %vm976_vm1, %v22770_v43 }
 0x750   :  { %18839 = vmatpush3.bf16.msra.mxu0 %v18836_v30  ;;  %16898 = vmatmul.mubr.msk.f32.gmra.mrb[66].mxu1 %vm976_vm1, %v22772_v46 }
 0x752   :  { %v22779_v52 = vpop.permute.xlu0 %2620 }
 0x753   :  { %27134 = vst [vmem:[#allocation84_spill] sm:$0xff] %v22779_v52  ;;  %v22782_v35 = vpop.permute.xlu1 %2622  ;;  %16829 = vmatmul.mubr.msk.f32.vlgmr.msra.gmra.mrb[44].mxu0 %vm1138_vm4, %v2202_v38  ;;  %v2644_v53 = vadd.f32 %v22779_v52, %v22076_v4 }
 0x754   :  { %27135 = vst [vmem:[#allocation85_spill] sm:$0xff] %v22782_v35  ;;  %16831 = vmatprep.mubr.msk.f32.mxu0 %vm1138_vm4, %v2203_v33  ;;  %v2645_v10 = vadd.f32 %v22782_v35, %v22071_v59  ;;  %v20890_v33 = vpop.eup %20889 }
 0x755   :  { %v2208_v47 = vmul.f32 %v20890_v33, %v22683_v44  ;;  %v961_v44 = vld [vmem:[%s26817_s6 + $0x10] sm:$0xff] }
 0x756   :  { %v22791_v26 = vpop.permute.xlu0 %2624  ;;  %v20327_v30 = vpack.i.bf16 %v2645_v10, %v2644_v53 }
 0x757   :  { %27136 = vst [vmem:[#allocation86_spill] sm:$0xff] %v22791_v26  ;;  %v22794_v42 = vpop.permute.xlu1 %2626  ;;  %16832 = vmatmul.mubr.msk.f32.gmra.mrb[46].mxu0 %vm1138_vm4, %v2204_v25  ;;  %v2646_v38 = vadd.f32 %v22791_v26, %v22119_v63 }
 0x758   :  { %27137 = vst [vmem:[#allocation87_spill] sm:$0xff] %v22794_v42  ;;  %20328 = vrot.lane.b32.xlu0 %v20327_v30, %s21404_s11  ;;  %16834 = vmatprep.mubr.msk.f32.mxu0 %vm1138_vm4, %v2205_v16  ;;  %v2647_v19 = vadd.f32 %v22794_v42, %v22116_v60 }
 0x75a   :  { %v22804_v53 = vpop.permute.xlu0 %2628  ;;  %v20332_v10 = vpack.i.bf16 %v2647_v19, %v2646_v38 }
 0x75b   :  { %27138 = vst [vmem:[#allocation88_spill] sm:$0xff] %v22804_v53  ;;  %v22807_v41 = vpop.permute.xlu1 %2630  ;;  %16835 = vmatmul.mubr.msk.f32.gmra.mrb[48].mxu0 %vm1138_vm4, %v2206_v37  ;;  %v2648_v25 = vadd.f32 %v22804_v53, %v22153_v28  ;;  %v962_v37 = vld [vmem:[%s26817_s6 + $0x18] sm:$0xff] }
 0x75c   :  { %27139 = vst [vmem:[#allocation89_spill] sm:$0xff] %v22807_v41  ;;  %16837 = vmatprep.mubr.msk.f32.mxu0 %vm1138_vm4, %v2207_v55  ;;  %20333 = vrot.lane.b32.xlu1 %v20332_v10, %s21404_s11  ;;  %v2649_v51 = vadd.f32 %v22807_v41, %v22150_v49  ;;  %v22834_v33 = vpack.c.bf16 %v962_v37, %v961_v44  ;;  %v959_v55 = vld [vmem:[%s26817_s6] sm:$0xff]  ;;  %v960_v10 = vld [vmem:[%s26817_s6 + $0x8] sm:$0xff] }
 0x75e   :  { %v22817_v30 = vpop.permute.xlu0 %2632  ;;  %v20337_v16 = vpack.i.bf16 %v2649_v51, %v2648_v25  ;;  %27142 = vst [vmem:[#allocation92_spill] sm:$0xff] %v22834_v33  ;;  %18841 = vmatprep.subr.bf16.mxu0 %v22834_v33  ;;  %v22844_v25 = vpack.c.bf16 %v960_v10, %v959_v55  ;;  %v27144_v10 = vmov 1.0|1.0  }
 0x75f   :  { %27140 = vst [vmem:[#allocation90_spill] sm:$0xff] %v22817_v30  ;;  %v22819_v15 = vpop.permute.xlu1 %2634  ;;  %16838 = vmatmul.mubr.msk.f32.gmra.mrb[50].mxu0 %vm1138_vm4, %v2208_v47  ;;  %v2650_v50 = vadd.f32 %v22817_v30, %v22201_v48 }
 0x760   :  { %27141 = vst [vmem:[#allocation91_spill] sm:$0xff] %v22819_v15  ;;  %20338 = vrot.lane.b32.xlu0 %v20337_v16, %s21404_s11  ;;  %v2651_v38 = vadd.f32 %v22819_v15, %v22198_v7  ;;  %18843 = vmatpush3.bf16.msra.mxu0 %v22834_v33  ;;  %27143 = vst [vmem:[#allocation93_spill] sm:$0xff] %v22844_v25 }
 0x761   :  { %18845 = vmatprep.subr.bf16.mxu0 %v22844_v25 }
 0x762   :  { %v20342_v19 = vpack.i.bf16 %v2651_v38, %v2650_v50 }
 0x764   :  { %20343 = vrot.lane.b32.xlu1 %v20342_v19, %s21404_s11 }
 0x817   :  { %v16890_v51 = vpop.f32.mrb[60].mxu1 }
 0x818   :  { %v2750_v47 = vpop.f32.mrb[61].mxu1 }
 0x81b   :  { %v16893_v16 = vpop.f32.mrb[62].mxu1 }
 0x81c   :  { %v2760_v50 = vpop.f32.mrb[63].mxu1 }
 0x81f   :  { %v16896_v38 = vpop.f32.mrb[64].mxu1 }
 0x820   :  { %v2770_v19 = vpop.f32.mrb[65].mxu1 }
 0x823   :  { %v22847_v44 = vpop.f32.mrb[66].mxu1 }
 0x824   :  { %v2780_v37 = vpop.f32.mrb[67].mxu1 }
 0x826   :  { %v16830_v33 = vpop.f32.mrb[44].mxu0 }
 0x827   :  { %v2323_v41 = vpop.f32.mrb[45].mxu0 }
 0x828   :  { %16844 = vmatprep.mubr.msk.f32.mxu0 %vm976_vm1, %v2323_v41 }
 0x829   :  { %16845 = vmatmul.mubr.msk.f32.vlgmr.msra.gmra.mrb[52].mxu0 %vm976_vm1, %v16830_v33 }
 0x82a   :  { %18847 = vmatpush3.bf16.msra.mxu0 %v22844_v25  ;;  %v16833_v55 = vpop.f32.mrb[46].mxu0 }
 0x82b   :  { %18873 = vmatprep.subr.msk.bf16.mxu0 %vm21872_vm5, %v27144_v10  ;;  %v2333_v15 = vpop.f32.mrb[47].mxu0 }
 0x82c   :  { %16847 = vmatprep.mubr.msk.f32.mxu0 %vm976_vm1, %v2333_v15 }
 0x82d   :  { %16848 = vmatmul.mubr.msk.f32.gmra.mrb[54].mxu0 %vm976_vm1, %v16833_v55  ;;  %v2790_v55 = vmul.f32 %v16890_v51, %v22141_v62 }
 0x82e   :  { %v16836_v30 = vpop.f32.mrb[48].mxu0 }
 0x82f   :  { %v2343_v35 = vpop.f32.mrb[49].mxu0 }
 0x830   :  { %16850 = vmatprep.mubr.msk.f32.mxu0 %vm976_vm1, %v2343_v35 }
 0x831   :  { %16851 = vmatmul.mubr.msk.f32.gmra.mrb[56].mxu0 %vm976_vm1, %v16836_v30  ;;  %v20329_v30 = vpop.permute.xlu0 %20328 }
 0x832   :  { %v16839_v41 = vpop.f32.mrb[50].mxu0 }
 0x833   :  { %v2353_v33 = vpop.f32.mrb[51].mxu0 }
 0x834   :  { %16853 = vmatprep.mubr.msk.f32.mxu0 %vm976_vm1, %v2353_v33 }
 0x835   :  { %16854 = vmatmul.mubr.msk.f32.gmra.mrb[58].mxu0 %vm976_vm1, %v16839_v41  ;;  %v20339_v51 = vpop.permute.xlu0 %20338 }
 0x836   :  { %16860 = vmatprep.mubr.msk.f32.mxu0 %vm976_vm1, %v22549_v9  ;;  %v20331_v9 = vunpack.i.h.bf16 %v20329_v30 }
 0x839   :  { %16861 = vmatmul.mubr.msk.f32.vlgmr.msra.gmra.mrb[52].mxu0 %vm976_vm1, %v22547_v12 }
 0x83a   :  { %18875 = vmatpush3.bf16.msk.msra.mxu0 %vm21872_vm5, %v27144_v10  ;;  %16863 = vmatprep.mubr.msk.f32.mxu0 %vm976_vm1, %v22553_v36  ;;  %v20330_v36 = vunpack.i.l.bf16 %v20329_v30 }
 0x83b   :  { %18877 = vmatprep.subr.msk.bf16.mxu0 %vm21957_vm8, %v27144_v10 }
 0x83c   :  { %v18888_v15 = vpack.c.bf16 %v20331_v9, %v20330_v36  ;;  %v2793_v9 = vmul.f32 %v22186_v1, %v2770_v19  ;;  %v20340_v19 = vunpack.i.l.bf16 %v20339_v51 }
 0x83d   :  { %16864 = vmatmul.mubr.msk.f32.gmra.mrb[54].mxu0 %vm976_vm1, %v22551_v54 }
 0x83e   :  { %18879 = vmatpush3.bf16.msk.msra.mxu0 %vm21957_vm8, %v27144_v10  ;;  %16866 = vmatprep.mubr.msk.f32.mxu0 %vm976_vm1, %v22557_v34  ;;  %v2789_v34 = vmul.f32 %v22139_v56, %v2750_v47 }
 0x83f   :  { %18881 = vmatprep.subr.msk.bf16.mxu0 %vm21985_vm11, %v27144_v10 }
 0x841   :  { %16867 = vmatmul.mubr.msk.f32.gmra.mrb[56].mxu0 %vm976_vm1, %v22555_v39  ;;  %v20334_v39 = vpop.permute.xlu1 %20333 }
 0x842   :  { %18883 = vmatpush3.bf16.msk.msra.mxu0 %vm21985_vm11, %v27144_v10  ;;  %16869 = vmatprep.mubr.msk.f32.mxu0 %vm976_vm1, %v22561_v18  ;;  %v27149_v18 = vld [vmem:[#allocation62_spill] sm:$0xff]  ;;  %v20336_v47 = vunpack.i.h.bf16 %v20334_v39  ;;  %v20335_v33 = vunpack.i.l.bf16 %v20334_v39  ;;  %v2796_v39 = vmul.f32 %v22847_v44, %v22207_v31 }
 0x843   :  { %18885 = vmatprep.subr.msk.bf16.mxu0 %vm22009_vm14, %v27144_v10  ;;  %v2791_v41 = vmul.f32 %v27149_v18, %v2760_v50  ;;  %v2795_v50 = vmul.f32 %v22204_v24, %v2780_v37  ;;  %v964_v44 = vld [vmem:[%s26817_s6 + $0x28] sm:$0xff] }
 0x844   :  { %v18894_v36 = vpack.c.bf16 %v20336_v47, %v20335_v33 }
 0x845   :  { %16870 = vmatmul.mubr.msk.f32.gmra.mrb[58].mxu0 %vm976_vm1, %v22559_v27  ;;  %v27150_v27 = vld [vmem:[#allocation63_spill] sm:$0xff] }
 0x846   :  { %18887 = vmatpush3.bf16.msk.msra.mxu0 %vm22009_vm14, %v27144_v10  ;;  %16916 = vmatprep.mubr.msk.f32.mxu0 %vm1138_vm4, %v2789_v34  ;;  %v2792_v30 = vmul.f32 %v16893_v16, %v27150_v27  ;;  %v2794_v34 = vmul.f32 %v16896_v38, %v22191_v22  ;;  %v20341_v16 = vunpack.i.h.bf16 %v20339_v51 }
 0x847   :  { %18890 = vmatprep.subr.msk.bf16.mxu0 %vm21544_vm2, %v18888_v15 }
 0x848   :  { %v18900_v38 = vpack.c.bf16 %v20341_v16, %v20340_v19 }
 0x849   :  { %16917 = vmatmul.mubr.msk.f32.vlgmr.msra.gmra.mrb[60].mxu0 %vm1138_vm4, %v2790_v55 }
 0x84a   :  { %16919 = vmatprep.mubr.msk.f32.mxu0 %vm1138_vm4, %v2791_v41 }
 0x84d   :  { %16920 = vmatmul.mubr.msk.f32.gmra.mrb[62].mxu0 %vm1138_vm4, %v2792_v30 }
 0x84e   :  { %16922 = vmatprep.mubr.msk.f32.mxu0 %vm1138_vm4, %v2793_v9 }
 0x84f   :  { %18893 = vmatpush3.bf16.xpose.msk.msra.mxu0 %vm21544_vm2, %v18888_v15  ;;  %v20344_v15 = vpop.permute.xlu1 %20343 }
 0x850   :  { %18896 = vmatprep.subr.msk.bf16.mxu0 %vm21544_vm2, %v18894_v36  ;;  %v20346_v37 = vunpack.i.h.bf16 %v20344_v15  ;;  %v20345_v55 = vunpack.i.l.bf16 %v20344_v15 }
 0x851   :  { %16923 = vmatmul.mubr.msk.f32.gmra.mrb[64].mxu0 %vm1138_vm4, %v2794_v34 }
 0x852   :  { %16925 = vmatprep.mubr.msk.f32.mxu0 %vm1138_vm4, %v2795_v50  ;;  %v18906_v41 = vpack.c.bf16 %v20346_v37, %v20345_v55 }
 0x855   :  { %16926 = vmatmul.mubr.msk.f32.gmra.mrb[66].mxu0 %vm1138_vm4, %v2796_v39 }
 0x856   :  { %16944 = vmatprep.mubr.msk.f32.mxu0 %vm976_vm1, %v22746_v2  ;;  %v963_v2 = vld [vmem:[%s26817_s6 + $0x20] sm:$0xff] }
 0x857   :  { %18899 = vmatpush3.bf16.xpose.msk.msra.mxu0 %vm21544_vm2, %v18894_v36  ;;  %v22937_v47 = vpack.c.bf16 %v964_v44, %v963_v2 }
 0x858   :  { %18902 = vmatprep.subr.msk.bf16.mxu0 %vm21544_vm2, %v18900_v38 }
 0x859   :  { %27151 = vst [vmem:[#allocation94_spill] sm:$0xff] %v22937_v47 }
 0x85f   :  { %18905 = vmatpush3.bf16.xpose.msk.msra.mxu0 %vm21544_vm2, %v18900_v38 }
 0x860   :  { %18908 = vmatprep.subr.msk.bf16.mxu0 %vm21544_vm2, %v18906_v41 }
 0x867   :  { %18911 = vmatpush3.bf16.xpose.msk.msra.mxu0 %vm21544_vm2, %v18906_v41 }
 0x868   :  { %18929 = vmatprep.subr.bf16.mxu0 %v22937_v47 }
 0x86e   :  { %16945 = vmatmul.mubr.msk.f32.vlgmr.msra.gmra.mrb[60].mxu0 %vm976_vm1, %v22750_v13 }
 0x86f   :  { %16947 = vmatprep.mubr.msk.f32.mxu0 %vm976_vm1, %v22754_v20  ;;  %18931 = vmatpush3.bf16.msra.mxu0 %v22937_v47 }
 0x870   :  { %18957 = vmatprep.subr.msk.bf16.mxu0 %vm21872_vm5, %v27144_v10 }
 0x872   :  { %16948 = vmatmul.mubr.msk.f32.gmra.mrb[62].mxu0 %vm976_vm1, %v22756_v11 }
 0x873   :  { %16950 = vmatprep.mubr.msk.f32.mxu0 %vm976_vm1, %v22762_v45 }
 0x876   :  { %16951 = vmatmul.mubr.msk.f32.gmra.mrb[64].mxu0 %vm976_vm1, %v22764_v8 }
 0x877   :  { %16953 = vmatprep.mubr.msk.f32.mxu0 %vm976_vm1, %v22770_v43 }
 0x87a   :  { %16954 = vmatmul.mubr.msk.f32.gmra.mrb[66].mxu0 %vm976_vm1, %v22772_v46 }
 0x941   :  { %v16946_v13 = vpop.f32.mrb[60].mxu0 }
 0x942   :  { %v3072_v20 = vsel %vm22278_vm15, %v16946_v13, -1e+09  ;;  %v3032_v33 = vpop.f32.mrb[61].mxu0 }
 0x943   :  { %v3071_v11 = vsel %vm22283_vm3, %v3032_v33, -1e+09  ;;  %v3082_v30 = vsel %vm1138_vm4, %v3072_v20, -inf }
 0x944   :  { %3083 = vmax.xlane.f32.xlu1 %v3082_v30  ;;  %v3079_v45 = vsel %vm1138_vm4, %v3071_v11, -inf  ;;  %v27156_v30 = vld [vmem:[#allocation70_spill] sm:$0xff] }
 0x945   :  { %3080 = vmax.xlane.f32.xlu0 %v3079_v45  ;;  %v16949_v8 = vpop.f32.mrb[62].mxu0 }
 0x946   :  { %v3042_v9 = vpop.f32.mrb[63].mxu0  ;;  %v3074_v51 = vsel %vm22303_vm7, %v16949_v8, -1e+09 }
 0x947   :  { %v3073_v43 = vsel %vm22294_vm6, %v3042_v9, -1e+09  ;;  %v3088_v39 = vsel %vm1138_vm4, %v3074_v51, -inf }
 0x948   :  { %v3085_v46 = vsel %vm1138_vm4, %v3073_v43, -inf }
 0x949   :  { %3086 = vmax.xlane.f32.xlu0 %v3085_v46  ;;  %v16952_v34 = vpop.f32.mrb[64].mxu0 }
 0x94a   :  { %v3052_v50 = vpop.f32.mrb[65].mxu0  ;;  %v3076_v37 = vsel %vm22321_vm10, %v16952_v34, -1e+09 }
 0x94b   :  { %v3075_v19 = vsel %vm22314_vm9, %v3052_v50, -1e+09  ;;  %v3094_v2 = vsel %vm1138_vm4, %v3076_v37, -inf }
 0x94c   :  { %v3091_v38 = vsel %vm1138_vm4, %v3075_v19, -inf }
 0x94d   :  { %3089 = vmax.xlane.f32.xlu0 %v3088_v39  ;;  %3092 = vmax.xlane.f32.xlu1 %v3091_v38  ;;  %v16955_v55 = vpop.f32.mrb[66].mxu0 }
 0x94e   :  { %v3062_v41 = vpop.f32.mrb[67].mxu0  ;;  %v3078_v13 = vsel %vm22331_vm12, %v16955_v55, -1e+09 }
 0x94f   :  { %v3100_v33 = vsel %vm1138_vm4, %v3078_v13, -inf  ;;  %v3077_v8 = vsel %vm22346_vm13, %v3062_v41, -1e+09 }
 0x950   :  { %v3097_v9 = vsel %vm1138_vm4, %v3077_v8, -inf }
 0x951   :  { %3095 = vmax.xlane.f32.xlu0 %v3094_v2 }
 0x955   :  { %3101 = vmax.xlane.f32.xlu0 %v3100_v33 }
 0x95e   :  { %20348 = vrot.lane.b32.xlu1 %v27156_v30, %s21405_s18 }
 0x982   :  { %3098 = vmax.xlane.f32.xlu1 %v3097_v9 }
 0x993   :  { %20358 = vrot.lane.b32.xlu1 %v27128_v29, %s21405_s18 }
 0x9d1   :  { %v3084_v46 = vpop.xlane.xlu1 %3083 }
 0x9d2   :  { %v3104_v34 = vsub.f32 %v3072_v20, %v3084_v46  ;;  %v3081_v50 = vpop.xlane.xlu0 %3080 }
 0x9d3   :  { %v3103_v39 = vsub.f32 %v3071_v11, %v3081_v50 }
 0x9d4   :  { %v3113_v38 = vmul.f32 1.442695, %v3104_v34 }
 0x9d5   :  { %v3111_v55 = vmul.f32 1.442695, %v3103_v39 }
 0x9d6   :  { %20891 = vpow2.f32 %v3113_v38  ;;  %v3087_v11 = vpop.xlane.xlu0 %3086 }
 0x9d7   :  { %20893 = vpow2.f32 %v3111_v55  ;;  %v3105_v34 = vsub.f32 %v3073_v43, %v3087_v11  ;;  %v23070_v11 = vld [vmem:[%s26820_s9 + $0x30] sm:$0xff] }
 0x9d9   :  { %v3115_v38 = vmul.f32 1.442695, %v3105_v34 }
 0x9da   :  { %v3093_v2 = vpop.xlane.xlu1 %3092  ;;  %v3090_v46 = vpop.xlane.xlu0 %3089 }
 0x9db   :  { %v3106_v50 = vsub.f32 %v3074_v51, %v3090_v46  ;;  %20895 = vpow2.f32 %v3115_v38  ;;  %v23077_v46 = vld [vmem:[%s26820_s9 + $0x38] sm:$0xff] }
 0x9de   :  { %v20349_v33 = vpop.permute.xlu1 %20348  ;;  %v3096_v39 = vpop.xlane.xlu0 %3095 }
 0x9df   :  { %v20351_v47 = vunpack.i.h.bf16 %v20349_v33  ;;  %v20350_v25 = vunpack.i.l.bf16 %v20349_v33  ;;  %v3108_v33 = vsub.f32 %v3076_v37, %v3096_v39 }
 0x9e0   :  { %v22988_v52 = vpop.eup %20891 }
 0x9e1   :  { %v22990_v41 = vpop.eup %20893  ;;  %v3130_v9 = vsel %vm1138_vm4, %v22988_v52, 0.0  ;;  %v18912_v42 = vpack.c.bf16 %v20351_v47, %v20350_v25  ;;  %v3107_v25 = vsub.f32 %v3075_v19, %v3093_v2  ;;  %v3117_v47 = vmul.f32 1.442695, %v3106_v50 }
 0x9e2   :  { %3131 = vadd.xlane.f32.xlu0 %v3130_v9  ;;  %v3127_v20 = vsel %vm1138_vm4, %v22990_v41, 0.0  ;;  %v3102_v9 = vpop.xlane.xlu0 %3101 }
 0x9e3   :  { %18913 = vmatprep.subr.bf16.mxu1 %v18912_v42  ;;  %3128 = vadd.xlane.f32.xlu1 %v3127_v20  ;;  %v3119_v55 = vmul.f32 1.442695, %v3107_v25  ;;  %20897 = vpow2.f32 %v3117_v47  ;;  %v3110_v20 = vsub.f32 %v3078_v13, %v3102_v9 }
 0x9e4   :  { %18915 = vmatpush3.bf16.msra.mxu1 %v18912_v42  ;;  %v3121_v42 = vmul.f32 1.442695, %v3108_v33 }
 0x9e5   :  { %20899 = vpow2.f32 %v3119_v55  ;;  %v3125_v29 = vmul.f32 1.442695, %v3110_v20  ;;  %v23000_v45 = vpop.eup %20895 }
 0x9e6   :  { %20901 = vpow2.f32 %v3121_v42  ;;  %v3133_v51 = vsel %vm1138_vm4, %v23000_v45, 0.0 }
 0x9ed   :  { %v23002_v43 = vpop.eup %20897 }
 0x9ee   :  { %v3136_v37 = vsel %vm1138_vm4, %v23002_v43, 0.0 }
 0x9ef   :  { %v23006_v19 = vpop.eup %20899 }
 0x9f4   :  { %20363 = vrot.lane.b32.xlu1 %v27129_v21, %s21405_s18 }
 0x9f8   :  { %20353 = vrot.lane.b32.xlu0 %v27130_v32, %s21405_s18 }
 0xa0f   :  { %v3099_v26 = vpop.xlane.xlu1 %3098 }
 0xa10   :  { %v3109_v21 = vsub.f32 %v3077_v8, %v3099_v26  ;;  %v3139_v26 = vsel %vm1138_vm4, %v23006_v19, 0.0 }
 0xa12   :  { %v3123_v32 = vmul.f32 1.442695, %v3109_v21  ;;  %v23012_v21 = vpop.eup %20901 }
 0xa13   :  { %v20359_v34 = vpop.permute.xlu1 %20358 }
 0xa14   :  { %20903 = vpow2.f32 %v3123_v32  ;;  %v20361_v25 = vunpack.i.h.bf16 %v20359_v34  ;;  %v20360_v47 = vunpack.i.l.bf16 %v20359_v34 }
 0xa15   :  { %20905 = vpow2.f32 %v3125_v29  ;;  %v3142_v29 = vsel %vm1138_vm4, %v23012_v21, 0.0 }
 0xa17   :  { %3134 = vadd.xlane.f32.xlu0 %v3133_v51 }
 0xa18   :  { %3137 = vadd.xlane.f32.xlu1 %v3136_v37  ;;  %v18920_v37 = vpack.c.bf16 %v20361_v25, %v20360_v47 }
 0xa1b   :  { %3140 = vadd.xlane.f32.xlu0 %v3139_v26 }
 0xa1e   :  { %v23014_v13 = vpop.eup %20903 }
 0xa1f   :  { %v23018_v32 = vpop.eup %20905  ;;  %3143 = vadd.xlane.f32.xlu0 %v3142_v29  ;;  %v3145_v8 = vsel %vm1138_vm4, %v23014_v13, 0.0 }
 0xa20   :  { %3146 = vadd.xlane.f32.xlu1 %v3145_v8  ;;  %v3148_v2 = vsel %vm1138_vm4, %v23018_v32, 0.0 }
 0xa23   :  { %3149 = vadd.xlane.f32.xlu0 %v3148_v2 }
 0xa31   :  { %3489 = vrot.lane.b32.xlu1 %v21905_v57, %s21406_s28  ;;  %v27158_v57 = vld [vmem:[#allocation17_spill] sm:$0xff] }
 0xa35   :  { %3493 = vrot.lane.b32.xlu1 %v21919_v0, %s21406_s28  ;;  %v27159_v0 = vld [vmem:[#allocation65_spill] sm:$0xff] }
 0xa39   :  { %3491 = vrot.lane.b32.xlu0 %v21907_v58, %s21406_s28  ;;  %3495 = vrot.lane.b32.xlu1 %v21913_v61, %s21406_s28  ;;  %v27160_v58 = vld [vmem:[#allocation64_spill] sm:$0xff]  ;;  %v27161_v61 = vld [vmem:[#allocation83_spill] sm:$0xff] }
 0xa3d   :  { %3497 = vrot.lane.b32.xlu0 %v21931_v6, %s21406_s28  ;;  %3499 = vrot.lane.b32.xlu1 %v21925_v3, %s21406_s28  ;;  %v23049_v6 = vld [vmem:[%s26820_s9 + $0x18] sm:$0xff]  ;;  %v23056_v3 = vld [vmem:[%s26820_s9 + $0x20] sm:$0xff] }
 0xa41   :  { %3501 = vrot.lane.b32.xlu0 %v21949_v14, %s21406_s28  ;;  %3503 = vrot.lane.b32.xlu1 %v27158_v57, %s21406_s28  ;;  %v23063_v14 = vld [vmem:[%s26820_s9 + $0x28] sm:$0xff] }
 0xa45   :  { %3457 = vrot.lane.b32.xlu0 %v27159_v0, %s21403_s16  ;;  %3459 = vrot.lane.b32.xlu1 %v27160_v58, %s21403_s16  ;;  %v27162_v0 = vld [vmem:[#allocation5_spill] sm:$0xff]  ;;  %v27163_v58 = vld [vmem:[#allocation6_spill] sm:$0xff] }
 0xa49   :  { %3461 = vrot.lane.b32.xlu0 %v27161_v61, %s21403_s16  ;;  %3463 = vrot.lane.b32.xlu1 %v23049_v6, %s21403_s16 }
 0xa4d   :  { %3465 = vrot.lane.b32.xlu0 %v23056_v3, %s21403_s16  ;;  %3467 = vrot.lane.b32.xlu1 %v23063_v14, %s21403_s16 }
 0xa51   :  { %3469 = vrot.lane.b32.xlu0 %v23070_v11, %s21403_s16  ;;  %3471 = vrot.lane.b32.xlu1 %v23077_v46, %s21403_s16 }
 0xa6f   :  { %v3132_v50 = vpop.xlane.xlu0 %3131 }
 0xa70   :  { %v3129_v39 = vpop.xlane.xlu1 %3128 }
 0xa71   :  { %20907 = vrcp.f32 %v3129_v39 }
 0xa72   :  { %20909 = vrcp.f32 %v3132_v50 }
 0xa73   :  { %v20354_v38 = vpop.permute.xlu0 %20353 }
 0xa74   :  { %v20356_v55 = vunpack.i.h.bf16 %v20354_v38  ;;  %v20355_v33 = vunpack.i.l.bf16 %v20354_v38  ;;  %v20364_v9 = vpop.permute.xlu1 %20363 }
 0xa75   :  { %v20366_v20 = vunpack.i.h.bf16 %v20364_v9  ;;  %v20365_v51 = vunpack.i.l.bf16 %v20364_v9 }
 0xa76   :  { %v18916_v42 = vpack.c.bf16 %v20356_v55, %v20355_v33 }
 0xa77   :  { %v18924_v29 = vpack.c.bf16 %v20366_v20, %v20365_v51 }
 0xa78   :  { %18917 = vmatprep.subr.bf16.mxu1 %v18916_v42 }
 0xa79   :  { %18919 = vmatpush3.bf16.msra.mxu1 %v18916_v42 }
 0xa7a   :  { %18921 = vmatprep.subr.bf16.mxu1 %v18920_v37 }
 0xa7b   :  { %v20908_v26 = vpop.eup %20907 }
 0xa7c   :  { %v3159_v8 = vmul.f32 %v20908_v26, %v22990_v41  ;;  %v20910_v2 = vpop.eup %20909  ;;  %v27164_v41 = vld [vmem:[#allocation7_spill] sm:$0xff] }
 0xa7d   :  { %18923 = vmatpush3.bf16.msra.mxu1 %v18920_v37  ;;  %v3160_v57 = vmul.f32 %v20910_v2, %v22988_v52  ;;  %v27165_v52 = vld [vmem:[#allocation8_spill] sm:$0xff] }
 0xa7e   :  { %18925 = vmatprep.subr.bf16.mxu1 %v18924_v29  ;;  %16972 = vmatprep.mubr.msk.f32.mxu1 %vm1138_vm4, %v3159_v8 }
 0xa81   :  { %18927 = vmatpush3.bf16.msra.mxu1 %v18924_v29 }
 0xa82   :  { %18934 = vmatprep.subr.msk.bf16.mxu1 %vm21544_vm2, %v27162_v0 }
 0xa84   :  { %16973 = vmatmul.mubr.msk.f32.vlgmr.msra.gmra.mrb[68].mxu1 %vm1138_vm4, %v3160_v57 }
 0xa8a   :  { %18937 = vmatpush3.bf16.xpose.msk.msra.mxu1 %vm21544_vm2, %v27162_v0 }
 0xa8b   :  { %18940 = vmatprep.subr.msk.bf16.mxu1 %vm21544_vm2, %v27163_v58 }
 0xa92   :  { %18943 = vmatpush3.bf16.xpose.msk.msra.mxu1 %vm21544_vm2, %v27163_v58 }
 0xa93   :  { %18946 = vmatprep.subr.msk.bf16.mxu1 %vm21544_vm2, %v27164_v41 }
 0xa9a   :  { %18949 = vmatpush3.bf16.xpose.msk.msra.mxu1 %vm21544_vm2, %v27164_v41 }
 0xa9b   :  { %18952 = vmatprep.subr.msk.bf16.mxu1 %vm21544_vm2, %v27165_v52 }
 0xaa2   :  { %18955 = vmatpush3.bf16.xpose.msk.msra.mxu1 %vm21544_vm2, %v27165_v52 }
 0xaa4   :  { %v3135_v61 = vpop.xlane.xlu0 %3134 }
 0xaa5   :  { %20911 = vrcp.f32 %v3135_v61  ;;  %v3138_v34 = vpop.xlane.xlu1 %3137 }
 0xaa6   :  { %20913 = vrcp.f32 %v3138_v34 }
 0xaa8   :  { %v3141_v50 = vpop.xlane.xlu0 %3140 }
 0xaa9   :  { %20915 = vrcp.f32 %v3141_v50 }
 0xaac   :  { %v3144_v39 = vpop.xlane.xlu0 %3143 }
 0xaad   :  { %20917 = vrcp.f32 %v3144_v39  ;;  %v3147_v38 = vpop.xlane.xlu1 %3146 }
 0xaae   :  { %20919 = vrcp.f32 %v3147_v38 }
 0xaaf   :  { %v20912_v25 = vpop.eup %20911 }
 0xab0   :  { %v20914_v47 = vpop.eup %20913  ;;  %v3150_v55 = vpop.xlane.xlu0 %3149  ;;  %v3161_v33 = vmul.f32 %v20912_v25, %v23000_v45 }
 0xab1   :  { %20921 = vrcp.f32 %v3150_v55  ;;  %v23110_v9 = vpop.permute.xlu1 %3489  ;;  %v3162_v42 = vmul.f32 %v20914_v47, %v23002_v43 }
 0xab2   :  { %16975 = vmatprep.mubr.msk.f32.mxu1 %vm1138_vm4, %v3161_v33 }
 0xab3   :  { %v20916_v20 = vpop.eup %20915  ;;  %16976 = vmatmul.mubr.msk.f32.gmra.mrb[70].mxu1 %vm1138_vm4, %v3162_v42 }
 0xab4   :  { %v23115_v51 = vpop.permute.xlu0 %3491  ;;  %v3163_v37 = vmul.f32 %v20916_v20, %v23006_v19 }
 0xab5   :  { %v23118_v26 = vpop.permute.xlu1 %3493 }
 0xab6   :  { %16978 = vmatprep.mubr.msk.f32.mxu1 %vm1138_vm4, %v3163_v37 }
 0xab7   :  { %v20918_v29 = vpop.eup %20917 }
 0xab8   :  { %v20920_v45 = vpop.eup %20919  ;;  %v23121_v8 = vpop.permute.xlu0 %3497  ;;  %v3164_v2 = vmul.f32 %v20918_v29, %v23012_v21 }
 0xab9   :  { %v23124_v43 = vpop.permute.xlu1 %3495  ;;  %v3165_v57 = vmul.f32 %v20920_v45, %v23014_v13 }
 0xaba   :  { %16979 = vmatmul.mubr.msk.f32.gmra.mrb[72].mxu1 %vm1138_vm4, %v3164_v2 }
 0xabb   :  { %v20922_v61 = vpop.eup %20921  ;;  %16981 = vmatprep.mubr.msk.f32.mxu1 %vm1138_vm4, %v3165_v57 }
 0xabc   :  { %v23129_v19 = vpop.permute.xlu0 %3501  ;;  %v3166_v34 = vmul.f32 %v20922_v61, %v23018_v32 }
 0xabd   :  { %v23132_v50 = vpop.permute.xlu1 %3499 }
 0xabe   :  { %16982 = vmatmul.mubr.msk.f32.gmra.mrb[74].mxu1 %vm1138_vm4, %v3166_v34 }
 0xabf   :  { %17016 = vmatprep.mubr.msk.f32.mxu1 %vm976_vm1, %v23110_v9 }
 0xac0   :  { %v23137_v21 = vpop.permute.xlu0 %3457 }
 0xac1   :  { %27166 = vst [vmem:[#allocation66_spill] sm:$0xff] %v23137_v21  ;;  %v23139_v39 = vpop.permute.xlu1 %3503  ;;  %v3481_v38 = vadd.f32 %v23137_v21, %v22076_v4 }
 0xac2   :  { %17017 = vmatmul.mubr.msk.f32.vlgmr.msra.gmra.mrb[76].mxu1 %vm976_vm1, %v23115_v51 }
 0xac3   :  { %17019 = vmatprep.mubr.msk.f32.mxu1 %vm976_vm1, %v23118_v26 }
 0xac4   :  { %v23145_v13 = vpop.permute.xlu0 %3461 }
 0xac5   :  { %27167 = vst [vmem:[#allocation67_spill] sm:$0xff] %v23145_v13  ;;  %v23147_v32 = vpop.permute.xlu1 %3459  ;;  %v3483_v42 = vadd.f32 %v23145_v13, %v22119_v63 }
 0xac6   :  { %27168 = vst [vmem:[#allocation68_spill] sm:$0xff] %v23147_v32  ;;  %v3482_v25 = vadd.f32 %v23147_v32, %v22071_v59  ;;  %17020 = vmatmul.mubr.msk.f32.gmra.mrb[78].mxu1 %vm976_vm1, %v23124_v43 }
 0xac7   :  { %17022 = vmatprep.mubr.msk.f32.mxu1 %vm976_vm1, %v23121_v8 }
 0xac8   :  { %v20367_v47 = vpack.i.bf16 %v3482_v25, %v3481_v38  ;;  %v23157_v55 = vpop.permute.xlu0 %3465 }
 0xac9   :  { %27169 = vst [vmem:[#allocation69_spill] sm:$0xff] %v23157_v55  ;;  %v23159_v33 = vpop.permute.xlu1 %3463  ;;  %v3485_v37 = vadd.f32 %v23157_v55, %v22153_v28 }
 0xaca   :  { %27170 = vst [vmem:[#allocation70_spill] sm:$0xff] %v23159_v33  ;;  %v3484_v4 = vadd.f32 %v23159_v33, %v22116_v60  ;;  %20368 = vrot.lane.b32.xlu0 %v20367_v47, %s21406_s28  ;;  %17023 = vmatmul.mubr.msk.f32.gmra.mrb[80].mxu1 %vm976_vm1, %v23132_v50 }
 0xacb   :  { %17025 = vmatprep.mubr.msk.f32.mxu1 %vm976_vm1, %v23129_v19 }
 0xacc   :  { %v20372_v59 = vpack.i.bf16 %v3484_v4, %v3483_v42  ;;  %v23177_v60 = vpop.permute.xlu0 %3469 }
 0xacd   :  { %v23170_v20 = vpop.permute.xlu1 %3467  ;;  %27172 = vst [vmem:[#allocation65_spill] sm:$0xff] %v23177_v60  ;;  %v3487_v2 = vadd.f32 %v23177_v60, %v22201_v48 }
 0xace   :  { %27171 = vst [vmem:[#allocation17_spill] sm:$0xff] %v23170_v20  ;;  %v3486_v63 = vadd.f32 %v23170_v20, %v22150_v49  ;;  %20373 = vrot.lane.b32.xlu1 %v20372_v59, %s21406_s28  ;;  %17026 = vmatmul.mubr.msk.f32.gmra.mrb[82].mxu1 %vm976_vm1, %v23139_v39 }
 0xad0   :  { %v20377_v29 = vpack.i.bf16 %v3486_v63, %v3485_v37 }
 0xad1   :  { %v23181_v45 = vpop.permute.xlu1 %3471 }
 0xad2   :  { %27173 = vst [vmem:[#allocation64_spill] sm:$0xff] %v23181_v45  ;;  %v3488_v57 = vadd.f32 %v23181_v45, %v22198_v7  ;;  %20378 = vrot.lane.b32.xlu0 %v20377_v29, %s21406_s28 }
 0xad4   :  { %v20382_v28 = vpack.i.bf16 %v3488_v57, %v3487_v2 }
 0xad6   :  { %20383 = vrot.lane.b32.xlu1 %v20382_v28, %s21406_s28 }
 0xb3c   :  { %v20369_v48 = vpop.permute.xlu0 %20368 }
 0xb3d   :  { %v20371_v7 = vunpack.i.h.bf16 %v20369_v48  ;;  %v20370_v34 = vunpack.i.l.bf16 %v20369_v48 }
 0xb3f   :  { %v18972_v38 = vpack.c.bf16 %v20371_v7, %v20370_v34 }
 0xb40   :  { %v20374_v63 = vpop.permute.xlu1 %20373 }
 0xb41   :  { %v20376_v2 = vunpack.i.h.bf16 %v20374_v63  ;;  %v20375_v57 = vunpack.i.l.bf16 %v20374_v63 }
 0xb43   :  { %v18978_v7 = vpack.c.bf16 %v20376_v2, %v20375_v57 }
 0xb57   :  { %v16974_v49 = vpop.f32.mrb[68].mxu1 }
 0xb58   :  { %v3281_v61 = vpop.f32.mrb[69].mxu1 }
 0xb59   :  { %16988 = vmatprep.mubr.msk.f32.mxu0 %vm976_vm1, %v3281_v61 }
 0xb5a   :  { %16989 = vmatmul.mubr.msk.f32.vlgmr.msra.gmra.mrb[52].mxu0 %vm976_vm1, %v16974_v49 }
 0xb5b   :  { %18959 = vmatpush3.bf16.msk.msra.mxu0 %vm21872_vm5, %v27144_v10 }
 0xb5c   :  { %18961 = vmatprep.subr.msk.bf16.mxu0 %vm21957_vm8, %v27144_v10 }
 0xb5f   :  { %18963 = vmatpush3.bf16.msk.msra.mxu0 %vm21957_vm8, %v27144_v10 }
 0xb60   :  { %18965 = vmatprep.subr.msk.bf16.mxu0 %vm21985_vm11, %v27144_v10 }
 0xb63   :  { %18967 = vmatpush3.bf16.msk.msra.mxu0 %vm21985_vm11, %v27144_v10 }
 0xb64   :  { %18969 = vmatprep.subr.msk.bf16.mxu0 %vm22009_vm14, %v27144_v10 }
 0xb67   :  { %18971 = vmatpush3.bf16.msk.msra.mxu0 %vm22009_vm14, %v27144_v10 }
 0xb68   :  { %18974 = vmatprep.subr.msk.bf16.mxu0 %vm21544_vm2, %v18972_v38 }
 0xb86   :  { %v16977_v25 = vpop.f32.mrb[70].mxu1 }
 0xb87   :  { %v3291_v47 = vpop.f32.mrb[71].mxu1 }
 0xb88   :  { %16991 = vmatprep.mubr.msk.f32.mxu0 %vm976_vm1, %v3291_v47  ;;  %v20379_v47 = vpop.permute.xlu0 %20378 }
 0xb89   :  { %16992 = vmatmul.mubr.msk.f32.gmra.mrb[54].mxu0 %vm976_vm1, %v16977_v25 }
 0xb8d   :  { %v16980_v42 = vpop.f32.mrb[72].mxu1 }
 0xb8e   :  { %v3301_v4 = vpop.f32.mrb[73].mxu1 }
 0xb8f   :  { %16994 = vmatprep.mubr.msk.f32.mxu0 %vm976_vm1, %v3301_v4 }
 0xb90   :  { %16995 = vmatmul.mubr.msk.f32.gmra.mrb[56].mxu0 %vm976_vm1, %v16980_v42 }
 0xb91   :  { %v16983_v59 = vpop.f32.mrb[74].mxu1 }
 0xb92   :  { %v3311_v37 = vpop.f32.mrb[75].mxu1 }
 0xb93   :  { %16997 = vmatprep.mubr.msk.f32.mxu0 %vm976_vm1, %v3311_v37  ;;  %v20380_v37 = vunpack.i.l.bf16 %v20379_v47 }
 0xb94   :  { %16998 = vmatmul.mubr.msk.f32.gmra.mrb[58].mxu0 %vm976_vm1, %v16983_v59  ;;  %v20381_v59 = vunpack.i.h.bf16 %v20379_v47 }
 0xb95   :  { %v17018_v29 = vpop.f32.mrb[76].mxu1 }
 0xb96   :  { %v3587_v28 = vpop.f32.mrb[77].mxu1  ;;  %v3627_v61 = vmul.f32 %v17018_v29, %v22141_v62 }
 0xb97   :  { %v3626_v49 = vmul.f32 %v22139_v56, %v3587_v28 }
 0xb99   :  { %v17021_v48 = vpop.f32.mrb[78].mxu1  ;;  %17044 = vmatprep.mubr.msk.f32.mxu0 %vm1138_vm4, %v3626_v49  ;;  %v20384_v49 = vpop.permute.xlu1 %20383 }
 0xb9a   :  { %v3597_v34 = vpop.f32.mrb[79].mxu1  ;;  %17045 = vmatmul.mubr.msk.f32.vlgmr.msra.gmra.mrb[68].mxu0 %vm1138_vm4, %v3627_v61  ;;  %v3629_v42 = vmul.f32 %v17021_v48, %v27150_v27 }
 0xb9b   :  { %v3628_v25 = vmul.f32 %v27149_v18, %v3597_v34  ;;  %18977 = vmatpush3.bf16.xpose.msk.msra.mxu0 %vm21544_vm2, %v18972_v38  ;;  %v18984_v38 = vpack.c.bf16 %v20381_v59, %v20380_v37  ;;  %v20386_v34 = vunpack.i.h.bf16 %v20384_v49 }
 0xb9c   :  { %18980 = vmatprep.subr.msk.bf16.mxu0 %vm21544_vm2, %v18978_v7 }
 0xb9d   :  { %17047 = vmatprep.mubr.msk.f32.mxu0 %vm1138_vm4, %v3628_v25  ;;  %v17024_v4 = vpop.f32.mrb[80].mxu1  ;;  %v20385_v25 = vunpack.i.l.bf16 %v20384_v49 }
 0xb9e   :  { %17048 = vmatmul.mubr.msk.f32.gmra.mrb[70].mxu0 %vm1138_vm4, %v3629_v42  ;;  %v3607_v63 = vpop.f32.mrb[81].mxu1  ;;  %v3631_v2 = vmul.f32 %v17024_v4, %v22191_v22 }
 0xb9f   :  { %v3630_v29 = vmul.f32 %v22186_v1, %v3607_v63  ;;  %v18990_v47 = vpack.c.bf16 %v20386_v34, %v20385_v25 }
 0xba1   :  { %v17027_v57 = vpop.f32.mrb[82].mxu1  ;;  %17050 = vmatprep.mubr.msk.f32.mxu0 %vm1138_vm4, %v3630_v29 }
 0xba2   :  { %v3617_v28 = vpop.f32.mrb[83].mxu1  ;;  %17051 = vmatmul.mubr.msk.f32.gmra.mrb[72].mxu0 %vm1138_vm4, %v3631_v2  ;;  %v3633_v48 = vmul.f32 %v17027_v57, %v22207_v31 }
 0xba3   :  { %v3632_v61 = vmul.f32 %v22204_v24, %v3617_v28  ;;  %18983 = vmatpush3.bf16.xpose.msk.msra.mxu0 %vm21544_vm2, %v18978_v7 }
 0xba4   :  { %18986 = vmatprep.subr.msk.bf16.mxu0 %vm21544_vm2, %v18984_v38 }
 0xba5   :  { %17053 = vmatprep.mubr.msk.f32.mxu0 %vm1138_vm4, %v3632_v61 }
 0xba6   :  { %17054 = vmatmul.mubr.msk.f32.gmra.mrb[74].mxu0 %vm1138_vm4, %v3633_v48 }
 0xba7   :  { %17072 = vmatprep.mubr.msk.f32.mxu0 %vm976_vm1, %v23110_v9 }
 0xbab   :  { %18989 = vmatpush3.bf16.xpose.msk.msra.mxu0 %vm21544_vm2, %v18984_v38 }
 0xbac   :  { %18992 = vmatprep.subr.msk.bf16.mxu0 %vm21544_vm2, %v18990_v47 }
 0xbb3   :  { %18995 = vmatpush3.bf16.xpose.msk.msra.mxu0 %vm21544_vm2, %v18990_v47 }
 0xbba   :  { %17073 = vmatmul.mubr.msk.f32.vlgmr.msra.gmra.mrb[68].mxu0 %vm976_vm1, %v23115_v51 }
 0xbbb   :  { %17075 = vmatprep.mubr.msk.f32.mxu0 %vm976_vm1, %v23118_v26 }
 0xbbe   :  { %17076 = vmatmul.mubr.msk.f32.gmra.mrb[70].mxu0 %vm976_vm1, %v23124_v43 }
 0xbbf   :  { %17078 = vmatprep.mubr.msk.f32.mxu0 %vm976_vm1, %v23121_v8 }
 0xbc2   :  { %17079 = vmatmul.mubr.msk.f32.gmra.mrb[72].mxu0 %vm976_vm1, %v23132_v50 }
 0xbc3   :  { %17081 = vmatprep.mubr.msk.f32.mxu0 %vm976_vm1, %v23129_v19 }
 0xbc6   :  { %17082 = vmatmul.mubr.msk.f32.gmra.mrb[74].mxu0 %vm976_vm1, %v23139_v39 }
 0xc8d   :  { %v17074_v9 = vpop.f32.mrb[68].mxu0 }
 0xc8e   :  { %v3909_v51 = vsel %vm22278_vm15, %v17074_v9, -1e+09  ;;  %v3869_v26 = vpop.f32.mrb[69].mxu0  ;;  %v27175_v9 = vld [vmem:[#allocation72_spill] sm:$0xff] }
 0xc8f   :  { %v3919_v7 = vsel %vm1138_vm4, %v3909_v51, -inf  ;;  %v3908_v43 = vsel %vm22283_vm3, %v3869_v26, -1e+09 }
 0xc90   :  { %v3916_v8 = vsel %vm1138_vm4, %v3908_v43, -inf  ;;  %3920 = vmax.xlane.f32.xlu1 %v3919_v7 }
 0xc91   :  { %3917 = vmax.xlane.f32.xlu0 %v3916_v8  ;;  %v17077_v50 = vpop.f32.mrb[70].mxu0 }
 0xc92   :  { %v3879_v42 = vpop.f32.mrb[71].mxu0  ;;  %v3911_v4 = vsel %vm22303_vm7, %v17077_v50, -1e+09 }
 0xc93   :  { %v3910_v19 = vsel %vm22294_vm6, %v3879_v42, -1e+09  ;;  %v3925_v29 = vsel %vm1138_vm4, %v3911_v4, -inf }
 0xc94   :  { %v3922_v39 = vsel %vm1138_vm4, %v3910_v19, -inf }
 0xc95   :  { %3923 = vmax.xlane.f32.xlu0 %v3922_v39  ;;  %v17080_v59 = vpop.f32.mrb[72].mxu0 }
 0xc96   :  { %v3889_v37 = vpop.f32.mrb[73].mxu0  ;;  %v3913_v57 = vsel %vm22321_vm10, %v17080_v59, -1e+09 }
 0xc97   :  { %v3912_v63 = vsel %vm22314_vm9, %v3889_v37, -1e+09  ;;  %v3931_v49 = vsel %vm1138_vm4, %v3913_v57, -inf }
 0xc98   :  { %v3928_v2 = vsel %vm1138_vm4, %v3912_v63, -inf }
 0xc99   :  { %3926 = vmax.xlane.f32.xlu0 %v3925_v29  ;;  %3929 = vmax.xlane.f32.xlu1 %v3928_v2  ;;  %v17083_v38 = vpop.f32.mrb[74].mxu0 }
 0xc9a   :  { %v3899_v28 = vpop.f32.mrb[75].mxu0  ;;  %v3915_v61 = vsel %vm22331_vm12, %v17083_v38, -1e+09 }
 0xc9b   :  { %v3937_v48 = vsel %vm1138_vm4, %v3915_v61, -inf  ;;  %v3914_v25 = vsel %vm22346_vm13, %v3899_v28, -1e+09 }
 0xc9c   :  { %v3934_v47 = vsel %vm1138_vm4, %v3914_v25, -inf }
 0xc9d   :  { %3932 = vmax.xlane.f32.xlu0 %v3931_v49 }
 0xca1   :  { %3938 = vmax.xlane.f32.xlu0 %v3937_v48 }
 0xcaa   :  { %20388 = vrot.lane.b32.xlu1 %v27156_v30, %s21402_s15 }
 0xcce   :  { %3935 = vmax.xlane.f32.xlu1 %v3934_v47  ;;  %v27177_v47 = vld [vmem:[#allocation74_spill] sm:$0xff] }
 0xcdf   :  { %20398 = vrot.lane.b32.xlu1 %v27175_v9, %s21402_s15 }
 0xd1d   :  { %v3921_v26 = vpop.xlane.xlu1 %3920 }
 0xd1e   :  { %v3941_v7 = vsub.f32 %v3909_v51, %v3921_v26  ;;  %v3918_v8 = vpop.xlane.xlu0 %3917 }
 0xd1f   :  { %v3940_v50 = vsub.f32 %v3908_v43, %v3918_v8  ;;  %v27176_v43 = vld [vmem:[#allocation73_spill] sm:$0xff] }
 0xd20   :  { %v3950_v42 = vmul.f32 1.442695, %v3941_v7 }
 0xd21   :  { %v3948_v39 = vmul.f32 1.442695, %v3940_v50 }
 0xd22   :  { %20923 = vpow2.f32 %v3950_v42  ;;  %v3924_v48 = vpop.xlane.xlu0 %3923 }
 0xd23   :  { %20925 = vpow2.f32 %v3948_v39  ;;  %v3942_v26 = vsub.f32 %v3910_v19, %v3924_v48 }
 0xd25   :  { %v3952_v50 = vmul.f32 1.442695, %v3942_v26 }
 0xd26   :  { %v3930_v59 = vpop.xlane.xlu1 %3929  ;;  %v3927_v9 = vpop.xlane.xlu0 %3926 }
 0xd27   :  { %v3943_v7 = vsub.f32 %v3911_v4, %v3927_v9  ;;  %v3944_v42 = vsub.f32 %v3912_v63, %v3930_v59  ;;  %20927 = vpow2.f32 %v3952_v50 }
 0xd29   :  { %v3954_v39 = vmul.f32 1.442695, %v3943_v7  ;;  %v965_v7 = vld [vmem:[%s26817_s6 + $0x30] sm:$0xff] }
 0xd2a   :  { %v20389_v37 = vpop.permute.xlu1 %20388  ;;  %v3933_v8 = vpop.xlane.xlu0 %3932 }
 0xd2b   :  { %v20391_v30 = vunpack.i.h.bf16 %v20389_v37  ;;  %v20390_v29 = vunpack.i.l.bf16 %v20389_v37  ;;  %v3956_v37 = vmul.f32 1.442695, %v3944_v42  ;;  %20929 = vpow2.f32 %v3954_v39 }
 0xd2c   :  { %v23294_v2 = vpop.eup %20923 }
 0xd2d   :  { %v23296_v38 = vpop.eup %20925  ;;  %v3967_v28 = vsel %vm1138_vm4, %v23294_v2, 0.0  ;;  %v18996_v49 = vpack.c.bf16 %v20391_v30, %v20390_v29  ;;  %v3945_v30 = vsub.f32 %v3913_v57, %v3933_v8  ;;  %20931 = vpow2.f32 %v3956_v37  ;;  %v966_v8 = vld [vmem:[%s26817_s6 + $0x38] sm:$0xff] }
 0xd2e   :  { %3968 = vadd.xlane.f32.xlu0 %v3967_v28  ;;  %v3964_v51 = vsel %vm1138_vm4, %v23296_v38, 0.0  ;;  %v3939_v29 = vpop.xlane.xlu0 %3938  ;;  %v23336_v50 = vpack.c.bf16 %v966_v8, %v965_v7 }
 0xd2f   :  { %18997 = vmatprep.subr.bf16.mxu1 %v18996_v49  ;;  %3965 = vadd.xlane.f32.xlu1 %v3964_v51  ;;  %v3958_v28 = vmul.f32 1.442695, %v3945_v30 }
 0xd30   :  { %18999 = vmatpush3.bf16.msra.mxu1 %v18996_v49  ;;  %v3947_v49 = vsub.f32 %v3915_v61, %v3939_v29  ;;  %27178 = vst [vmem:[#allocation83_spill] sm:$0xff] %v23336_v50  ;;  %19013 = vmatprep.subr.bf16.mxu0 %v23336_v50 }
 0xd31   :  { %20933 = vpow2.f32 %v3958_v28  ;;  %v23306_v55 = vpop.eup %20927  ;;  %19015 = vmatpush3.bf16.msra.mxu0 %v23336_v50 }
 0xd32   :  { %v3962_v60 = vmul.f32 1.442695, %v3947_v49  ;;  %v3970_v4 = vsel %vm1138_vm4, %v23306_v55, 0.0 }
 0xd35   :  { %v23308_v19 = vpop.eup %20929 }
 0xd36   :  { %v3973_v57 = vsel %vm1138_vm4, %v23308_v19, 0.0 }
 0xd37   :  { %v23312_v63 = vpop.eup %20931 }
 0xd38   :  { %v3976_v61 = vsel %vm1138_vm4, %v23312_v63, 0.0 }
 0xd40   :  { %20403 = vrot.lane.b32.xlu1 %v27176_v43, %s21402_s15 }
 0xd44   :  { %20393 = vrot.lane.b32.xlu0 %v27177_v47, %s21402_s15 }
 0xd5b   :  { %v3936_v51 = vpop.xlane.xlu1 %3935 }
 0xd5c   :  { %v3946_v43 = vsub.f32 %v3914_v25, %v3936_v51  ;;  %v23318_v25 = vpop.eup %20933 }
 0xd5e   :  { %v3960_v47 = vmul.f32 1.442695, %v3946_v43 }
 0xd5f   :  { %v20399_v42 = vpop.permute.xlu1 %20398 }
 0xd60   :  { %20935 = vpow2.f32 %v3960_v47  ;;  %v20401_v29 = vunpack.i.h.bf16 %v20399_v42  ;;  %v20400_v28 = vunpack.i.l.bf16 %v20399_v42 }
 0xd61   :  { %20937 = vpow2.f32 %v3962_v60  ;;  %v3979_v60 = vsel %vm1138_vm4, %v23318_v25, 0.0 }
 0xd63   :  { %3971 = vadd.xlane.f32.xlu0 %v3970_v4 }
 0xd64   :  { %3974 = vadd.xlane.f32.xlu1 %v3973_v57 }
 0xd67   :  { %3977 = vadd.xlane.f32.xlu0 %v3976_v61  ;;  %v19004_v61 = vpack.c.bf16 %v20401_v29, %v20400_v28 }
 0xd6a   :  { %v23320_v59 = vpop.eup %20935 }
 0xd6b   :  { %v23324_v48 = vpop.eup %20937  ;;  %3980 = vadd.xlane.f32.xlu0 %v3979_v60  ;;  %v3982_v9 = vsel %vm1138_vm4, %v23320_v59, 0.0 }
 0xd6c   :  { %3983 = vadd.xlane.f32.xlu1 %v3982_v9  ;;  %v3985_v26 = vsel %vm1138_vm4, %v23324_v48, 0.0 }
 0xd6f   :  { %3986 = vadd.xlane.f32.xlu0 %v3985_v26 }
 0xdbb   :  { %v3969_v39 = vpop.xlane.xlu0 %3968 }
 0xdbc   :  { %v3966_v37 = vpop.xlane.xlu1 %3965 }
 0xdbd   :  { %20939 = vrcp.f32 %v3966_v37 }
 0xdbe   :  { %20941 = vrcp.f32 %v3969_v39 }
 0xdbf   :  { %v20394_v30 = vpop.permute.xlu0 %20393 }
 0xdc0   :  { %v20396_v49 = vunpack.i.h.bf16 %v20394_v30  ;;  %v20395_v51 = vunpack.i.l.bf16 %v20394_v30  ;;  %v20404_v43 = vpop.permute.xlu1 %20403 }
 0xdc1   :  { %v20406_v4 = vunpack.i.h.bf16 %v20404_v43  ;;  %v20405_v57 = vunpack.i.l.bf16 %v20404_v43 }
 0xdc2   :  { %v19000_v47 = vpack.c.bf16 %v20396_v49, %v20395_v51 }
 0xdc3   :  { %v19008_v9 = vpack.c.bf16 %v20406_v4, %v20405_v57 }
 0xdc4   :  { %19001 = vmatprep.subr.bf16.mxu1 %v19000_v47 }
 0xdc5   :  { %19003 = vmatpush3.bf16.msra.mxu1 %v19000_v47 }
 0xdc6   :  { %19005 = vmatprep.subr.bf16.mxu1 %v19004_v61 }
 0xdc7   :  { %v20940_v60 = vpop.eup %20939 }
 0xdc8   :  { %v3996_v26 = vmul.f32 %v20940_v60, %v23296_v38  ;;  %v20942_v7 = vpop.eup %20941 }
 0xdc9   :  { %19007 = vmatpush3.bf16.msra.mxu1 %v19004_v61  ;;  %v3997_v8 = vmul.f32 %v20942_v7, %v23294_v2  ;;  %v27181_v7 = vld [vmem:[#allocation28_spill] sm:$0xff] }
 0xdca   :  { %19009 = vmatprep.subr.bf16.mxu1 %v19008_v9  ;;  %17100 = vmatprep.mubr.msk.f32.mxu1 %vm1138_vm4, %v3996_v26 }
 0xdcd   :  { %19011 = vmatpush3.bf16.msra.mxu1 %v19008_v9  ;;  %v21347_v9 = vld [vmem:[%s26814_s3] ss:$0 sm:$0xff] }
 0xdce   :  { %19018 = vmatprep.subr.msk.bf16.mxu1 %vm21544_vm2, %v27162_v0 }
 0xdd0   :  { %17101 = vmatmul.mubr.msk.f32.vlgmr.msra.gmra.mrb[84].mxu1 %vm1138_vm4, %v3997_v8  ;;  %v23395_v8 = vadd.f32 %v21347_v9, %v27181_v7 }
 0xdd6   :  { %19021 = vmatpush3.bf16.xpose.msk.msra.mxu1 %vm21544_vm2, %v27162_v0 }
 0xdd7   :  { %19024 = vmatprep.subr.msk.bf16.mxu1 %vm21544_vm2, %v27163_v58 }
 0xdde   :  { %19027 = vmatpush3.bf16.xpose.msk.msra.mxu1 %vm21544_vm2, %v27163_v58 }
 0xddf   :  { %19030 = vmatprep.subr.msk.bf16.mxu1 %vm21544_vm2, %v27164_v41 }
 0xde6   :  { %19033 = vmatpush3.bf16.xpose.msk.msra.mxu1 %vm21544_vm2, %v27164_v41 }
 0xde7   :  { %19036 = vmatprep.subr.msk.bf16.mxu1 %vm21544_vm2, %v27165_v52 }
 0xdee   :  { %19039 = vmatpush3.bf16.xpose.msk.msra.mxu1 %vm21544_vm2, %v27165_v52 }
 0xdef   :  { %19041 = vmatprep.subr.msk.bf16.mxu1 %vm21872_vm5, %v27144_v10 }
 0xdf0   :  { %v3972_v2 = vpop.xlane.xlu0 %3971 }
 0xdf1   :  { %20943 = vrcp.f32 %v3972_v2  ;;  %v3975_v38 = vpop.xlane.xlu1 %3974 }
 0xdf2   :  { %20945 = vrcp.f32 %v3975_v38  ;;  %v27183_v38 = vld [vmem:[#allocation33_spill] sm:$0xff] }
 0xdf4   :  { %v3978_v42 = vpop.xlane.xlu0 %3977 }
 0xdf5   :  { %20947 = vrcp.f32 %v3978_v42  ;;  %v23411_v42 = vadd.f32 %v21347_v9, %v27183_v38 }
 0xdf8   :  { %v3981_v39 = vpop.xlane.xlu0 %3980 }
 0xdf9   :  { %20949 = vrcp.f32 %v3981_v39  ;;  %v3984_v37 = vpop.xlane.xlu1 %3983  ;;  %v23416_v39 = vld [vmem:[%s26816_s5] ss:$0 sm:$0xff] }
 0xdfa   :  { %20951 = vrcp.f32 %v3984_v37  ;;  %v27184_v37 = vld [vmem:[#allocation54_spill] sm:$0xff] }
 0xdfb   :  { %v20944_v30 = vpop.eup %20943 }
 0xdfc   :  { %v20946_v29 = vpop.eup %20945  ;;  %v3987_v28 = vpop.xlane.xlu0 %3986  ;;  %v3998_v49 = vmul.f32 %v20944_v30, %v23306_v55  ;;  %v23420_v30 = vadd.f32 %v23416_v39, %v27184_v37 }
 0xdfd   :  { %20953 = vrcp.f32 %v3987_v28  ;;  %v3999_v51 = vmul.f32 %v20946_v29, %v23308_v19  ;;  %v27185_v29 = vld [vmem:[#allocation55_spill] sm:$0xff] }
 0xdfe   :  { %17103 = vmatprep.mubr.msk.f32.mxu1 %vm1138_vm4, %v3998_v49  ;;  %v23424_v28 = vadd.f32 %v23416_v39, %v27185_v29  ;;  %v27186_v49 = vld [vmem:[#allocation31_spill] sm:$0xff] }
 0xdff   :  { %v20948_v43 = vpop.eup %20947  ;;  %17104 = vmatmul.mubr.msk.f32.gmra.mrb[86].mxu1 %vm1138_vm4, %v3999_v51  ;;  %v23434_v51 = vadd.f32 %v21347_v9, %v27186_v49  ;;  %v27190_v49 = vld [vmem:[#allocation56_spill] sm:$0xff] }
 0xe00   :  { %v4000_v47 = vmul.f32 %v20948_v43, %v23312_v63  ;;  %v27179_v63 = vld [vmem:[#allocation23_spill] sm:$0xff]  ;;  %v27187_v43 = vld [vmem:[#allocation37_spill] sm:$0xff] }
 0xe01   :  { %v23386_v26 = vadd.f32 %v21347_v9, %v27179_v63 }
 0xe02   :  { %17106 = vmatprep.mubr.msk.f32.mxu1 %vm1138_vm4, %v4000_v47  ;;  %v23440_v47 = vadd.f32 %v21347_v9, %v27187_v43  ;;  %v23478_v43 = vadd.f32 %v23416_v39, %v27190_v49  ;;  %v27192_v49 = vld [vmem:[#allocation58_spill] sm:$0xff] }
 0xe03   :  { %v20950_v4 = vpop.eup %20949 }
 0xe04   :  { %v20952_v57 = vpop.eup %20951  ;;  %v4001_v61 = vmul.f32 %v20950_v4, %v23318_v25  ;;  %v27180_v25 = vld [vmem:[#allocation21_spill] sm:$0xff] }
 0xe05   :  { %v4002_v60 = vmul.f32 %v20952_v57, %v23320_v59  ;;  %v23392_v59 = vadd.f32 %v21347_v9, %v27180_v25  ;;  %v21349_v4 = vld [vmem:[%s26820_s9] sm:$0xff] }
 0xe06   :  { %17107 = vmatmul.mubr.msk.f32.gmra.mrb[88].mxu1 %vm1138_vm4, %v4001_v61  ;;  %v4316_v57 = vadd.f32 %v21349_v4, %v23424_v28  ;;  %v21350_v61 = vld [vmem:[%s26820_s9 + $0x8] sm:$0xff]  ;;  %v27191_v4 = vld [vmem:[#allocation57_spill] sm:$0xff] }
 0xe07   :  { %v20954_v55 = vpop.eup %20953  ;;  %17109 = vmatprep.mubr.msk.f32.mxu1 %vm1138_vm4, %v4002_v60  ;;  %v4317_v60 = vadd.f32 %v21350_v61, %v23420_v30 }
 0xe08   :  { %v4003_v19 = vmul.f32 %v20954_v55, %v23324_v48  ;;  %v27182_v48 = vld [vmem:[#allocation26_spill] sm:$0xff]  ;;  %v27188_v55 = vld [vmem:[#allocation35_spill] sm:$0xff] }
 0xe09   :  { %v23405_v2 = vadd.f32 %v21347_v9, %v27182_v48  ;;  %v19056_v63 = vpack.c.bf16 %v4317_v60, %v4316_v57  ;;  %v23482_v57 = vadd.f32 %v23416_v39, %v27191_v4  ;;  %v27194_v4 = vld [vmem:[#allocation59_spill] sm:$0xff] }
 0xe0a   :  { %17110 = vmatmul.mubr.msk.f32.gmra.mrb[90].mxu1 %vm1138_vm4, %v4003_v19  ;;  %v23458_v19 = vadd.f32 %v21347_v9, %v27188_v55 }
 0xe0b   :  { %17144 = vmatprep.mubr.msk.f32.mxu1 %vm976_vm1, %v23386_v26 }
 0xe0c   :  { %27189 = vst [vmem:[#allocation71_spill] sm:$0xff] %v23458_v19 }
 0xe0e   :  { %17145 = vmatmul.mubr.msk.f32.vlgmr.msra.gmra.mrb[92].mxu1 %vm976_vm1, %v23392_v59 }
 0xe0f   :  { %19043 = vmatpush3.bf16.msk.msra.mxu1 %vm21872_vm5, %v27144_v10  ;;  %17147 = vmatprep.mubr.msk.f32.mxu1 %vm976_vm1, %v23395_v8 }
 0xe10   :  { %19045 = vmatprep.subr.msk.bf16.mxu1 %vm21957_vm8, %v27144_v10 }
 0xe12   :  { %17148 = vmatmul.mubr.msk.f32.gmra.mrb[94].mxu1 %vm976_vm1, %v23405_v2 }
 0xe13   :  { %19047 = vmatpush3.bf16.msk.msra.mxu1 %vm21957_vm8, %v27144_v10  ;;  %17150 = vmatprep.mubr.msk.f32.mxu1 %vm976_vm1, %v23411_v42 }
 0xe14   :  { %19049 = vmatprep.subr.msk.bf16.mxu1 %vm21985_vm11, %v27144_v10 }
 0xe16   :  { %17151 = vmatmul.mubr.msk.f32.gmra.mrb[96].mxu1 %vm976_vm1, %v23434_v51 }
 0xe17   :  { %19051 = vmatpush3.bf16.msk.msra.mxu1 %vm21985_vm11, %v27144_v10  ;;  %17153 = vmatprep.mubr.msk.f32.mxu1 %vm976_vm1, %v23440_v47 }
 0xe18   :  { %19053 = vmatprep.subr.msk.bf16.mxu1 %vm22009_vm14, %v27144_v10 }
 0xe1a   :  { %17154 = vmatmul.mubr.msk.f32.gmra.mrb[98].mxu1 %vm976_vm1, %v23458_v19 }
 0xe1b   :  { %19055 = vmatpush3.bf16.msk.msra.mxu1 %vm22009_vm14, %v27144_v10 }
 0xe1c   :  { %19058 = vmatprep.subr.msk.bf16.mxu1 %vm21544_vm2, %v19056_v63 }
 0xea3   :  { %v17102_v25 = vpop.f32.mrb[84].mxu1 }
 0xea4   :  { %v4118_v7 = vpop.f32.mrb[85].mxu1 }
 0xea5   :  { %17116 = vmatprep.mubr.msk.f32.mxu0 %vm976_vm1, %v4118_v7 }
 0xea6   :  { %17117 = vmatmul.mubr.msk.f32.vlgmr.msra.gmra.mrb[52].mxu0 %vm976_vm1, %v17102_v25  ;;  %v21351_v25 = vld [vmem:[%s26820_s9 + $0x10] sm:$0xff] }
 0xea7   :  { %v4318_v7 = vadd.f32 %v21351_v25, %v23482_v57 }
 0xed2   :  { %v17105_v9 = vpop.f32.mrb[86].mxu1 }
 0xed3   :  { %v4128_v48 = vpop.f32.mrb[87].mxu1 }
 0xed4   :  { %17119 = vmatprep.mubr.msk.f32.mxu0 %vm976_vm1, %v4128_v48 }
 0xed5   :  { %17120 = vmatmul.mubr.msk.f32.gmra.mrb[54].mxu0 %vm976_vm1, %v17105_v9  ;;  %v4319_v9 = vadd.f32 %v23049_v6, %v23478_v43 }
 0xed7   :  { %v19062_v25 = vpack.c.bf16 %v4319_v9, %v4318_v7 }
 0xed9   :  { %v17108_v38 = vpop.f32.mrb[88].mxu1 }
 0xeda   :  { %v4138_v37 = vpop.f32.mrb[89].mxu1 }
 0xedb   :  { %17122 = vmatprep.mubr.msk.f32.mxu0 %vm976_vm1, %v4138_v37 }
 0xedc   :  { %17123 = vmatmul.mubr.msk.f32.gmra.mrb[56].mxu0 %vm976_vm1, %v17108_v38 }
 0xedd   :  { %v17111_v29 = vpop.f32.mrb[90].mxu1 }
 0xede   :  { %v4148_v61 = vpop.f32.mrb[91].mxu1 }
 0xedf   :  { %17125 = vmatprep.mubr.msk.f32.mxu0 %vm976_vm1, %v4148_v61  ;;  %v23501_v61 = vadd.f32 %v23416_v39, %v27194_v4  ;;  %v27198_v4 = vld [vmem:[#allocation61_spill] sm:$0xff] }
 0xee0   :  { %17126 = vmatmul.mubr.msk.f32.gmra.mrb[58].mxu0 %vm976_vm1, %v17111_v29  ;;  %v23497_v29 = vadd.f32 %v23416_v39, %v27192_v49 }
 0xee1   :  { %v17146_v60 = vpop.f32.mrb[92].mxu1  ;;  %27195 = vst [vmem:[#allocation73_spill] sm:$0xff] %v23501_v61 }
 0xee2   :  { %v4414_v55 = vpop.f32.mrb[93].mxu1  ;;  %v4454_v38 = vmul.f32 %v17146_v60, %v22141_v62  ;;  %27193 = vst [vmem:[#allocation72_spill] sm:$0xff] %v23497_v29 }
 0xee3   :  { %v4453_v48 = vmul.f32 %v22139_v56, %v4414_v55 }
 0xee5   :  { %v17149_v37 = vpop.f32.mrb[94].mxu1  ;;  %17172 = vmatprep.mubr.msk.f32.mxu1 %vm1138_vm4, %v4453_v48 }
 0xee6   :  { %v4424_v50 = vpop.f32.mrb[95].mxu1  ;;  %17173 = vmatmul.mubr.msk.f32.vlgmr.msra.gmra.mrb[100].mxu1 %vm1138_vm4, %v4454_v38  ;;  %v4456_v60 = vmul.f32 %v17149_v37, %v27150_v27  ;;  %v4320_v38 = vadd.f32 %v23056_v3, %v23501_v61  ;;  %v27196_v37 = vld [vmem:[#allocation60_spill] sm:$0xff] }
 0xee7   :  { %v4455_v6 = vmul.f32 %v27149_v18, %v4424_v50  ;;  %19061 = vmatpush3.bf16.xpose.msk.msra.mxu1 %vm21544_vm2, %v19056_v63  ;;  %v4321_v50 = vadd.f32 %v23063_v14, %v23497_v29  ;;  %v23521_v49 = vadd.f32 %v23416_v39, %v27196_v37 }
 0xee8   :  { %19064 = vmatprep.subr.msk.bf16.mxu1 %vm21544_vm2, %v19062_v25 }
 0xee9   :  { %v17152_v55 = vpop.f32.mrb[96].mxu1  ;;  %17175 = vmatprep.mubr.msk.f32.mxu1 %vm1138_vm4, %v4455_v6  ;;  %27197 = vst [vmem:[#allocation74_spill] sm:$0xff] %v23521_v49  ;;  %v23525_v6 = vadd.f32 %v23416_v39, %v27198_v4  ;;  %v19068_v3 = vpack.c.bf16 %v4321_v50, %v4320_v38 }
 0xeea   :  { %v4434_v48 = vpop.f32.mrb[97].mxu1  ;;  %17176 = vmatmul.mubr.msk.f32.gmra.mrb[102].mxu1 %vm1138_vm4, %v4456_v60  ;;  %v4458_v63 = vmul.f32 %v17152_v55, %v22191_v22 }
 0xeeb   :  { %v4457_v7 = vmul.f32 %v22186_v1, %v4434_v48  ;;  %27199 = vst [vmem:[#allocation23_spill] sm:$0xff] %v23525_v6  ;;  %v4322_v39 = vadd.f32 %v23070_v11, %v23525_v6  ;;  %v4323_v48 = vadd.f32 %v23077_v46, %v23521_v49  ;;  %v14479_v11 = vld [vmem:[%s26818_s7] ss:$0 sm:$0xff] }
 0xeed   :  { %v17155_v9 = vpop.f32.mrb[98].mxu1  ;;  %17178 = vmatprep.mubr.msk.f32.mxu1 %vm1138_vm4, %v4457_v7  ;;  %v19074_v38 = vpack.c.bf16 %v4323_v48, %v4322_v39 }
 0xeee   :  { %v4444_v60 = vpop.f32.mrb[99].mxu1  ;;  %17179 = vmatmul.mubr.msk.f32.gmra.mrb[104].mxu1 %vm1138_vm4, %v4458_v63  ;;  %v4460_v55 = vmul.f32 %v17155_v9, %v22207_v31 }
 0xeef   :  { %v4459_v14 = vmul.f32 %v22204_v24, %v4444_v60  ;;  %19067 = vmatpush3.bf16.xpose.msk.msra.mxu1 %vm21544_vm2, %v19062_v25 }
 0xef0   :  { %19070 = vmatprep.subr.msk.bf16.mxu1 %vm21544_vm2, %v19068_v3 }
 0xef1   :  { %17181 = vmatprep.mubr.msk.f32.mxu1 %vm1138_vm4, %v4459_v14 }
 0xef2   :  { %17182 = vmatmul.mubr.msk.f32.gmra.mrb[106].mxu1 %vm1138_vm4, %v4460_v55 }
 0xef3   :  { %17200 = vmatprep.mubr.msk.f32.mxu1 %vm976_vm1, %v23386_v26 }
 0xef7   :  { %19073 = vmatpush3.bf16.xpose.msk.msra.mxu1 %vm21544_vm2, %v19068_v3 }
 0xef8   :  { %19076 = vmatprep.subr.msk.bf16.mxu1 %vm21544_vm2, %v19074_v38 }
 0xeff   :  { %19079 = vmatpush3.bf16.xpose.msk.msra.mxu1 %vm21544_vm2, %v19074_v38 }
 0xf00   :  { %19121 = vmatprep.subr.msk.bf16.mxu1 %vm21872_vm5, %v27144_v10 }
 0xf06   :  { %17201 = vmatmul.mubr.msk.f32.vlgmr.msra.gmra.mrb[100].mxu1 %vm976_vm1, %v23392_v59 }
 0xf07   :  { %17203 = vmatprep.mubr.msk.f32.mxu1 %vm976_vm1, %v23395_v8  ;;  %19123 = vmatpush3.bf16.msk.msra.mxu1 %vm21872_vm5, %v27144_v10 }
 0xf08   :  { %19125 = vmatprep.subr.msk.bf16.mxu1 %vm21957_vm8, %v27144_v10 }
 0xf0a   :  { %17204 = vmatmul.mubr.msk.f32.gmra.mrb[102].mxu1 %vm976_vm1, %v23405_v2 }
 0xf0b   :  { %17206 = vmatprep.mubr.msk.f32.mxu1 %vm976_vm1, %v23411_v42  ;;  %19127 = vmatpush3.bf16.msk.msra.mxu1 %vm21957_vm8, %v27144_v10 }
 0xf0c   :  { %19129 = vmatprep.subr.msk.bf16.mxu1 %vm21985_vm11, %v27144_v10 }
 0xf0e   :  { %17207 = vmatmul.mubr.msk.f32.gmra.mrb[104].mxu1 %vm976_vm1, %v23434_v51 }
 0xf0f   :  { %17209 = vmatprep.mubr.msk.f32.mxu1 %vm976_vm1, %v23440_v47  ;;  %19131 = vmatpush3.bf16.msk.msra.mxu1 %vm21985_vm11, %v27144_v10 }
 0xf10   :  { %19133 = vmatprep.subr.msk.bf16.mxu1 %vm22009_vm14, %v27144_v10 }
 0xf12   :  { %17210 = vmatmul.mubr.msk.f32.gmra.mrb[106].mxu1 %vm976_vm1, %v23458_v19 }
 0xf13   :  { %19135 = vmatpush3.bf16.msk.msra.mxu1 %vm22009_vm14, %v27144_v10 }
 0xf79   :  { %v17118_v46 = vpop.f32.mrb[52].mxu0 }
 0xf7a   :  { %v4301_v25 = vadd.f32 %v17118_v46, %v14479_v11  ;;  %v4247_v50 = vpop.f32.mrb[53].mxu0 }
 0xf7b   :  { %v4300_v7 = vadd.f32 %v14479_v11, %v4247_v50 }
 0xf7c   :  { %4309 = vst.msk [vmem:[#allocation2 + $0x8] sm:$0xff] %vm91_vm0, %v4301_v25 }
 0xf7d   :  { %4308 = vst.msk [vmem:[#allocation2] sm:$0xff] %vm91_vm0, %v4300_v7 }
 0xfa8   :  { %v17121_v63 = vpop.f32.mrb[54].mxu0 }
 0xfa9   :  { %v4303_v9 = vadd.f32 %v17121_v63, %v14479_v11  ;;  %v4257_v37 = vpop.f32.mrb[55].mxu0 }
 0xfaa   :  { %v4302_v4 = vadd.f32 %v14479_v11, %v4257_v37 }
 0xfab   :  { %4311 = vst.msk [vmem:[#allocation2 + $0x18] sm:$0xff] %vm91_vm0, %v4303_v9 }
 0xfac   :  { %4310 = vst.msk [vmem:[#allocation2 + $0x10] sm:$0xff] %vm91_vm0, %v4302_v4 }
 0xfaf   :  { %v17124_v60 = vpop.f32.mrb[56].mxu0 }
 0xfb0   :  { %v4305_v3 = vadd.f32 %v17124_v60, %v14479_v11  ;;  %v4267_v14 = vpop.f32.mrb[57].mxu0 }
 0xfb1   :  { %v4304_v55 = vadd.f32 %v14479_v11, %v4267_v14 }
 0xfb2   :  { %4313 = vst.msk [vmem:[#allocation2 + $0x28] sm:$0xff] %vm91_vm0, %v4305_v3 }
 0xfb3   :  { %4312 = vst.msk [vmem:[#allocation2 + $0x20] sm:$0xff] %vm91_vm0, %v4304_v55  ;;  %v17127_v39 = vpop.f32.mrb[58].mxu0 }
 0xfb4   :  { %v4307_v48 = vadd.f32 %v17127_v39, %v14479_v11  ;;  %v4277_v38 = vpop.f32.mrb[59].mxu0 }
 0xfb5   :  { %v4306_v46 = vadd.f32 %v14479_v11, %v4277_v38 }
 0xfb6   :  { %4315 = vst.msk [vmem:[#allocation2 + $0x38] sm:$0xff] %vm91_vm0, %v4307_v48 }
 0xfb7   :  { %4314 = vst.msk [vmem:[#allocation2 + $0x30] sm:$0xff] %vm91_vm0, %v4306_v46  ;;  %vm7576_vm0 = vcmask 523520  }
 0xfd9   :  { %v17202_v25 = vpop.f32.mrb[100].mxu1 }
 0xfda   :  { %v4720_v50 = vsel %vm22278_vm15, %v17202_v25, -1e+09  ;;  %v4680_v7 = vpop.f32.mrb[101].mxu1 }
 0xfdb   :  { %v4730_v63 = vsel %vm1138_vm4, %v4720_v50, -inf  ;;  %v4719_v9 = vsel %vm22283_vm3, %v4680_v7, -1e+09 }
 0xfdc   :  { %v4727_v37 = vsel %vm1138_vm4, %v4719_v9, -inf  ;;  %4731 = vmax.xlane.f32.xlu0 %v4730_v63 }
 0xfdd   :  { %4728 = vmax.xlane.f32.xlu1 %v4727_v37  ;;  %v17205_v4 = vpop.f32.mrb[102].mxu1 }
 0xfde   :  { %v4722_v11 = vsel %vm22303_vm7, %v17205_v4, -1e+09  ;;  %v4690_v60 = vpop.f32.mrb[103].mxu1 }
 0xfdf   :  { %v4736_v3 = vsel %vm1138_vm4, %v4722_v11, -inf  ;;  %v4721_v14 = vsel %vm22294_vm6, %v4690_v60, -1e+09 }
 0xfe0   :  { %v4733_v55 = vsel %vm1138_vm4, %v4721_v14, -inf  ;;  %4737 = vmax.xlane.f32.xlu0 %v4736_v3  ;;  %v23620_v3 = vpack.i.bf16 %v23420_v30, %v23424_v28 }
 0xfe1   :  { %4734 = vmax.xlane.f32.xlu1 %v4733_v55  ;;  %v17208_v39 = vpop.f32.mrb[104].mxu1 }
 0xfe2   :  { %v4724_v48 = vsel %vm22321_vm10, %v17208_v39, -1e+09  ;;  %v4700_v38 = vpop.f32.mrb[105].mxu1  ;;  %27200 = vst [vmem:[#allocation21_spill] sm:$0xff] %v23620_v3 }
 0xfe3   :  { %v4742_v46 = vsel %vm1138_vm4, %v4724_v48, -inf  ;;  %v4723_v25 = vsel %vm22314_vm9, %v4700_v38, -1e+09  ;;  %v23629_v38 = vpack.i.bf16 %v23497_v29, %v23501_v61 }
 0xfe4   :  { %v4739_v7 = vsel %vm1138_vm4, %v4723_v25, -inf  ;;  %4743 = vmax.xlane.f32.xlu0 %v4742_v46 }
 0xfe5   :  { %4740 = vmax.xlane.f32.xlu1 %v4739_v7  ;;  %v17211_v63 = vpop.f32.mrb[106].mxu1  ;;  %27201 = vst [vmem:[#allocation28_spill] sm:$0xff] %v23629_v38 }
 0xfe6   :  { %v4726_v37 = vsel %vm22331_vm12, %v17211_v63, -1e+09  ;;  %v4710_v4 = vpop.f32.mrb[107].mxu1 }
 0xfe7   :  { %v4748_v60 = vsel %vm1138_vm4, %v4726_v37, -inf  ;;  %v4725_v55 = vsel %vm22346_vm13, %v4710_v4, -1e+09 }
 0xfe8   :  { %4749 = vmax.xlane.f32.xlu0 %v4748_v60  ;;  %v4745_v39 = vsel %vm1138_vm4, %v4725_v55, -inf }
 0xff6   :  { %20408 = vrot.lane.b32.xlu1 %v23620_v3, %s21400_s29 }
0x101a   :  { %4746 = vmax.xlane.f32.xlu1 %v4745_v39 }
0x102b   :  { %20418 = vrot.lane.b32.xlu1 %v23629_v38, %s21400_s29 }
0x1069   :  { %v4732_v46 = vpop.xlane.xlu0 %4731 }
0x106a   :  { %v4752_v7 = vsub.f32 %v4720_v50, %v4732_v46  ;;  %v4729_v63 = vpop.xlane.xlu1 %4728 }
0x106b   :  { %v4751_v60 = vsub.f32 %v4719_v9, %v4729_v63 }
0x106c   :  { %v4761_v45 = vmul.f32 1.442695, %v4752_v7 }
0x106d   :  { %v4759_v20 = vmul.f32 1.442695, %v4751_v60 }
0x106e   :  { %20955 = vpow2.f32 %v4761_v45  ;;  %v4735_v13 = vpop.xlane.xlu1 %4734 }
0x106f   :  { %20957 = vpow2.f32 %v4759_v20  ;;  %v23643_v20 = vpack.i.bf16 %v23521_v49, %v23525_v6 }
0x1071   :  { %27202 = vst [vmem:[#allocation26_spill] sm:$0xff] %v23643_v20 }
0x1072   :  { %v4741_v4 = vpop.xlane.xlu1 %4740 }
0x1076   :  { %v20409_v21 = vpop.permute.xlu1 %20408 }
0x1077   :  { %v20411_v33 = vunpack.i.h.bf16 %v20409_v21  ;;  %v20410_v39 = vunpack.i.l.bf16 %v20409_v21  ;;  %v23649_v21 = vpack.i.bf16 %v23478_v43, %v23482_v57 }
0x1078   :  { %v23633_v32 = vpop.eup %20955 }
0x1079   :  { %v23635_v54 = vpop.eup %20957  ;;  %v4778_v12 = vsel %vm1138_vm4, %v23633_v32, 0.0  ;;  %v19080_v35 = vpack.c.bf16 %v20411_v33, %v20410_v39  ;;  %27203 = vst [vmem:[#allocation33_spill] sm:$0xff] %v23649_v21  ;;  %v4753_v33 = vsub.f32 %v4721_v14, %v4735_v13 }
0x107a   :  { %4779 = vadd.xlane.f32.xlu0 %v4778_v12  ;;  %v4775_v50 = vsel %vm1138_vm4, %v23635_v54, 0.0  ;;  %v4738_v12 = vpop.xlane.xlu0 %4737 }
0x107b   :  { %19081 = vmatprep.subr.bf16.mxu0 %v19080_v35  ;;  %4776 = vadd.xlane.f32.xlu1 %v4775_v50  ;;  %v4754_v45 = vsub.f32 %v4722_v11, %v4738_v12  ;;  %v4763_v46 = vmul.f32 1.442695, %v4753_v33  ;;  %v27205_v12 = vld [vmem:[#allocation79_spill] sm:$0xff] }
0x107c   :  { %19083 = vmatpush3.bf16.msra.mxu0 %v19080_v35  ;;  %v4755_v35 = vsub.f32 %v4723_v25, %v4741_v4  ;;  %v4979_v33 = vadd.f32 %v27205_v12, %v23478_v43 }
0x107d   :  { %v4765_v7 = vmul.f32 1.442695, %v4754_v45  ;;  %20959 = vpow2.f32 %v4763_v46  ;;  %v27206_v45 = vld [vmem:[#allocation75_spill] sm:$0xff]  ;;  %v27207_v46 = vld [vmem:[#allocation76_spill] sm:$0xff] }
0x107e   :  { %v4744_v9 = vpop.xlane.xlu0 %4743  ;;  %v4767_v60 = vmul.f32 1.442695, %v4755_v35  ;;  %v4978_v35 = vadd.f32 %v27207_v46, %v23482_v57 }
0x107f   :  { %v4756_v63 = vsub.f32 %v4724_v48, %v4744_v9  ;;  %20961 = vpow2.f32 %v4765_v7  ;;  %v4976_v9 = vadd.f32 %v27206_v45, %v23424_v28  ;;  %v27208_v7 = vld [vmem:[#allocation80_spill] sm:$0xff] }
0x1080   :  { %20963 = vpow2.f32 %v4767_v60  ;;  %v27209_v60 = vld [vmem:[#allocation82_spill] sm:$0xff] }
0x1081   :  { %v4769_v50 = vmul.f32 1.442695, %v4756_v63  ;;  %v4981_v63 = vadd.f32 %v27208_v7, %v23497_v29 }
0x1082   :  { %v4750_v39 = vpop.xlane.xlu0 %4749 }
0x1083   :  { %v4758_v53 = vsub.f32 %v4726_v37, %v4750_v39  ;;  %20965 = vpow2.f32 %v4769_v50  ;;  %v4983_v39 = vadd.f32 %v27209_v60, %v23521_v49 }
0x1085   :  { %v4773_v38 = vmul.f32 1.442695, %v4758_v53 }
0x1087   :  { %v23653_v3 = vpop.eup %20959 }
0x1088   :  { %v4781_v11 = vsel %vm1138_vm4, %v23653_v3, 0.0 }
0x1089   :  { %v23655_v13 = vpop.eup %20961 }
0x108a   :  { %v23659_v14 = vpop.eup %20963  ;;  %v4784_v48 = vsel %vm1138_vm4, %v23655_v13, 0.0 }
0x108b   :  { %v4787_v53 = vsel %vm1138_vm4, %v23659_v14, 0.0 }
0x108c   :  { %20423 = vrot.lane.b32.xlu1 %v23643_v20, %s21400_s29 }
0x1090   :  { %20413 = vrot.lane.b32.xlu0 %v23649_v21, %s21400_s29 }
0x10a7   :  { %v4747_v10 = vpop.xlane.xlu1 %4746 }
0x10a8   :  { %v4757_v20 = vsub.f32 %v4725_v55, %v4747_v10  ;;  %v23665_v10 = vpop.eup %20965 }
0x10a9   :  { %v4790_v37 = vsel %vm1138_vm4, %v23665_v10, 0.0 }
0x10aa   :  { %v4771_v21 = vmul.f32 1.442695, %v4757_v20  ;;  %v27204_v20 = vld [vmem:[#allocation77_spill] sm:$0xff] }
0x10ab   :  { %v20419_v7 = vpop.permute.xlu1 %20418 }
0x10ac   :  { %20967 = vpow2.f32 %v4771_v21  ;;  %v4977_v21 = vadd.f32 %v27204_v20, %v23420_v30 }
0x10ad   :  { %20969 = vpow2.f32 %v4773_v38 }
0x10ae   :  { %v20427_v50 = vpack.i.bf16 %v4977_v21, %v4976_v9  ;;  %v20421_v9 = vunpack.i.h.bf16 %v20419_v7 }
0x10af   :  { %4782 = vadd.xlane.f32.xlu0 %v4781_v11  ;;  %v20432_v11 = vpack.i.bf16 %v4979_v33, %v4978_v35  ;;  %v20420_v35 = vunpack.i.l.bf16 %v20419_v7 }
0x10b0   :  { %4785 = vadd.xlane.f32.xlu1 %v4784_v48  ;;  %v27210_v48 = vld [vmem:[#allocation78_spill] sm:$0xff] }
0x10b3   :  { %4788 = vadd.xlane.f32.xlu0 %v4787_v53  ;;  %v4980_v53 = vadd.f32 %v27210_v48, %v23501_v61 }
0x10b6   :  { %v23667_v25 = vpop.eup %20967 }
0x10b7   :  { %v23671_v55 = vpop.eup %20969  ;;  %4791 = vadd.xlane.f32.xlu0 %v4790_v37  ;;  %v4793_v38 = vsel %vm1138_vm4, %v23667_v25, 0.0  ;;  %v27211_v37 = vld [vmem:[#allocation81_spill] sm:$0xff] }
0x10b8   :  { %4794 = vadd.xlane.f32.xlu1 %v4793_v38  ;;  %v4796_v4 = vsel %vm1138_vm4, %v23671_v55, 0.0  ;;  %v4982_v38 = vadd.f32 %v27211_v37, %v23525_v6 }
0x10ba   :  { %v20442_v46 = vpack.i.bf16 %v4983_v39, %v4982_v38 }
0x10bb   :  { %4797 = vadd.xlane.f32.xlu0 %v4796_v4  ;;  %v20437_v4 = vpack.i.bf16 %v4981_v63, %v4980_v53  ;;  %v19088_v63 = vpack.c.bf16 %v20421_v9, %v20420_v35 }
0x10c9   :  { %4984 = vrot.lane.b32.xlu1 %v23386_v26, %s21401_s30 }
0x10cd   :  { %4988 = vrot.lane.b32.xlu1 %v23395_v8, %s21401_s30 }
0x10d1   :  { %4986 = vrot.lane.b32.xlu0 %v23392_v59, %s21401_s30  ;;  %4990 = vrot.lane.b32.xlu1 %v23405_v2, %s21401_s30 }
0x10d5   :  { %4992 = vrot.lane.b32.xlu0 %v23411_v42, %s21401_s30  ;;  %4994 = vrot.lane.b32.xlu1 %v23434_v51, %s21401_s30 }
0x10d9   :  { %4996 = vrot.lane.b32.xlu0 %v23440_v47, %s21401_s30  ;;  %4998 = vrot.lane.b32.xlu1 %v23458_v19, %s21401_s30 }
0x10dd   :  { %20428 = vrot.lane.b32.xlu0 %v20427_v50, %s21401_s30  ;;  %20433 = vrot.lane.b32.xlu1 %v20432_v11, %s21401_s30 }
0x10e1   :  { %20438 = vrot.lane.b32.xlu0 %v20437_v4, %s21401_s30  ;;  %20443 = vrot.lane.b32.xlu1 %v20442_v46, %s21401_s30 }
0x1107   :  { %v4780_v60 = vpop.xlane.xlu0 %4779 }
0x1108   :  { %v4777_v21 = vpop.xlane.xlu1 %4776 }
0x1109   :  { %20971 = vrcp.f32 %v4777_v21 }
0x110a   :  { %20973 = vrcp.f32 %v4780_v60 }
0x110b   :  { %v20414_v33 = vpop.permute.xlu0 %20413 }
0x110c   :  { %v20416_v48 = vunpack.i.h.bf16 %v20414_v33  ;;  %v20415_v45 = vunpack.i.l.bf16 %v20414_v33  ;;  %v20424_v37 = vpop.permute.xlu1 %20423 }
0x110d   :  { %v20426_v12 = vunpack.i.h.bf16 %v20424_v37  ;;  %v20425_v11 = vunpack.i.l.bf16 %v20424_v37 }
0x110e   :  { %v19084_v50 = vpack.c.bf16 %v20416_v48, %v20415_v45 }
0x110f   :  { %v19092_v46 = vpack.c.bf16 %v20426_v12, %v20425_v11 }
0x1110   :  { %19085 = vmatprep.subr.bf16.mxu0 %v19084_v50 }
0x1111   :  { %19087 = vmatpush3.bf16.msra.mxu0 %v19084_v50 }
0x1112   :  { %19089 = vmatprep.subr.bf16.mxu0 %v19088_v63 }
0x1113   :  { %v20972_v39 = vpop.eup %20971 }
0x1114   :  { %v4807_v53 = vmul.f32 %v20972_v39, %v23635_v54  ;;  %v20974_v7 = vpop.eup %20973 }
0x1115   :  { %19091 = vmatpush3.bf16.msra.mxu0 %v19088_v63  ;;  %v4808_v60 = vmul.f32 %v20974_v7, %v23633_v32 }
0x1116   :  { %19093 = vmatprep.subr.bf16.mxu0 %v19092_v46  ;;  %17228 = vmatprep.mubr.msk.f32.mxu0 %vm1138_vm4, %v4807_v53 }
0x1119   :  { %19095 = vmatpush3.bf16.msra.mxu0 %v19092_v46 }
0x111a   :  { %19098 = vmatprep.subr.msk.bf16.mxu0 %vm21544_vm2, %v27162_v0 }
0x111c   :  { %17229 = vmatmul.mubr.msk.f32.vlgmr.msra.gmra.mrb[76].mxu0 %vm1138_vm4, %v4808_v60 }
0x1122   :  { %19101 = vmatpush3.bf16.xpose.msk.msra.mxu0 %vm21544_vm2, %v27162_v0 }
0x1123   :  { %19104 = vmatprep.subr.msk.bf16.mxu0 %vm21544_vm2, %v27163_v58 }
0x112a   :  { %19107 = vmatpush3.bf16.xpose.msk.msra.mxu0 %vm21544_vm2, %v27163_v58 }
0x112b   :  { %19110 = vmatprep.subr.msk.bf16.mxu0 %vm21544_vm2, %v27164_v41 }
0x1132   :  { %19113 = vmatpush3.bf16.xpose.msk.msra.mxu0 %vm21544_vm2, %v27164_v41 }
0x1133   :  { %19116 = vmatprep.subr.msk.bf16.mxu0 %vm21544_vm2, %v27165_v52 }
0x113a   :  { %19119 = vmatpush3.bf16.xpose.msk.msra.mxu0 %vm21544_vm2, %v27165_v52 }
0x113c   :  { %v4783_v54 = vpop.xlane.xlu0 %4782 }
0x113d   :  { %20975 = vrcp.f32 %v4783_v54  ;;  %v4786_v32 = vpop.xlane.xlu1 %4785 }
0x113e   :  { %20977 = vrcp.f32 %v4786_v32 }
0x1140   :  { %v4789_v12 = vpop.xlane.xlu0 %4788 }
0x1141   :  { %20979 = vrcp.f32 %v4789_v12 }
0x1144   :  { %v4792_v45 = vpop.xlane.xlu0 %4791 }
0x1145   :  { %20981 = vrcp.f32 %v4792_v45  ;;  %v4795_v48 = vpop.xlane.xlu1 %4794 }
0x1146   :  { %20983 = vrcp.f32 %v4795_v48 }
0x1147   :  { %v20976_v37 = vpop.eup %20975 }
0x1148   :  { %v20978_v38 = vpop.eup %20977  ;;  %v4798_v4 = vpop.xlane.xlu0 %4797  ;;  %v4809_v21 = vmul.f32 %v20976_v37, %v23653_v3 }
0x1149   :  { %20985 = vrcp.f32 %v4798_v4  ;;  %v4810_v33 = vmul.f32 %v20978_v38, %v23655_v13  ;;  %v23748_v11 = vpop.permute.xlu1 %4984 }
0x114a   :  { %17231 = vmatprep.mubr.msk.f32.mxu0 %vm1138_vm4, %v4809_v21 }
0x114b   :  { %v20980_v9 = vpop.eup %20979  ;;  %17232 = vmatmul.mubr.msk.f32.gmra.mrb[78].mxu0 %vm1138_vm4, %v4810_v33 }
0x114c   :  { %v23745_v35 = vpop.permute.xlu0 %4986  ;;  %v4811_v50 = vmul.f32 %v20980_v9, %v23659_v14 }
0x114d   :  { %v23756_v7 = vpop.permute.xlu1 %4988 }
0x114e   :  { %17234 = vmatprep.mubr.msk.f32.mxu0 %vm1138_vm4, %v4811_v50 }
0x114f   :  { %v20982_v63 = vpop.eup %20981 }
0x1150   :  { %v20984_v39 = vpop.eup %20983  ;;  %v23751_v46 = vpop.permute.xlu0 %4992  ;;  %v4812_v3 = vmul.f32 %v20982_v63, %v23665_v10 }
0x1151   :  { %v4813_v13 = vmul.f32 %v20984_v39, %v23667_v25  ;;  %v23765_v10 = vpop.permute.xlu1 %4990 }
0x1152   :  { %17235 = vmatmul.mubr.msk.f32.gmra.mrb[80].mxu0 %vm1138_vm4, %v4812_v3 }
0x1153   :  { %v20986_v53 = vpop.eup %20985  ;;  %17237 = vmatprep.mubr.msk.f32.mxu0 %vm1138_vm4, %v4813_v13 }
0x1154   :  { %v23759_v14 = vpop.permute.xlu0 %4996  ;;  %v4814_v60 = vmul.f32 %v20986_v53, %v23671_v55 }
0x1155   :  { %v23775_v55 = vpop.permute.xlu1 %4994 }
0x1156   :  { %17238 = vmatmul.mubr.msk.f32.gmra.mrb[82].mxu0 %vm1138_vm4, %v4814_v60 }
0x1157   :  { %17256 = vmatprep.mubr.msk.f32.mxu0 %vm976_vm1, %v23748_v11 }
0x1158   :  { %v20429_v54 = vpop.permute.xlu0 %20428 }
0x1159   :  { %v20431_v25 = vunpack.i.h.bf16 %v20429_v54  ;;  %v20430_v32 = vunpack.i.l.bf16 %v20429_v54  ;;  %v23783_v45 = vpop.permute.xlu1 %4998 }
0x115a   :  { %17257 = vmatmul.mubr.msk.f32.vlgmr.msra.gmra.mrb[84].mxu0 %vm976_vm1, %v23745_v35 }
0x115b   :  { %v19136_v12 = vpack.c.bf16 %v20431_v25, %v20430_v32  ;;  %17259 = vmatprep.mubr.msk.f32.mxu0 %vm976_vm1, %v23756_v7 }
0x115d   :  { %19138 = vmatprep.subr.msk.bf16.mxu1 %vm21544_vm2, %v19136_v12  ;;  %v20434_v63 = vpop.permute.xlu1 %20433 }
0x115e   :  { %17260 = vmatmul.mubr.msk.f32.gmra.mrb[86].mxu0 %vm976_vm1, %v23765_v10  ;;  %v20436_v3 = vunpack.i.h.bf16 %v20434_v63  ;;  %v20435_v13 = vunpack.i.l.bf16 %v20434_v63 }
0x115f   :  { %17262 = vmatprep.mubr.msk.f32.mxu0 %vm976_vm1, %v23751_v46 }
0x1160   :  { %v19142_v32 = vpack.c.bf16 %v20436_v3, %v20435_v13 }
0x1162   :  { %17263 = vmatmul.mubr.msk.f32.gmra.mrb[88].mxu0 %vm976_vm1, %v23775_v55 }
0x1163   :  { %17265 = vmatprep.mubr.msk.f32.mxu0 %vm976_vm1, %v23759_v14 }
0x1166   :  { %17266 = vmatmul.mubr.msk.f32.gmra.mrb[90].mxu0 %vm976_vm1, %v23783_v45 }
0x11ef   :  { %v23787_v48 = vpop.f32.mrb[76].mxu0 }
0x11f0   :  { %v23789_v37 = vpop.f32.mrb[77].mxu0 }
0x121e   :  { %v23791_v38 = vpop.f32.mrb[78].mxu0 }
0x121f   :  { %v23793_v4 = vpop.f32.mrb[79].mxu0 }
0x1225   :  { %v23795_v21 = vpop.f32.mrb[80].mxu0 }
0x1226   :  { %27212 = vst [vmem:[#allocation54_spill] sm:$0xff] %v23795_v21  ;;  %v23797_v33 = vpop.f32.mrb[81].mxu0  ;;  %v20439_v21 = vpop.permute.xlu0 %20438 }
0x1229   :  { %v23799_v9 = vpop.f32.mrb[82].mxu0 }
0x122a   :  { %27213 = vst [vmem:[#allocation55_spill] sm:$0xff] %v23799_v9  ;;  %v23801_v50 = vpop.f32.mrb[83].mxu0 }
0x122d   :  { %v17258_v39 = vpop.f32.mrb[84].mxu0 }
0x122e   :  { %v5082_v53 = vpop.f32.mrb[85].mxu0  ;;  %v5122_v54 = vmul.f32 %v17258_v39, %v22141_v62  ;;  %v20441_v39 = vunpack.i.h.bf16 %v20439_v21 }
0x122f   :  { %v5121_v60 = vmul.f32 %v22139_v56, %v5082_v53 }
0x1231   :  { %v17261_v25 = vpop.f32.mrb[86].mxu0  ;;  %17284 = vmatprep.mubr.msk.f32.mxu1 %vm1138_vm4, %v5121_v60  ;;  %v20440_v60 = vunpack.i.l.bf16 %v20439_v21 }
0x1232   :  { %v5092_v20 = vpop.f32.mrb[87].mxu0  ;;  %17285 = vmatmul.mubr.msk.f32.vlgmr.msra.gmra.mrb[108].mxu1 %vm1138_vm4, %v5122_v54  ;;  %v5124_v63 = vmul.f32 %v17261_v25, %v27150_v27  ;;  %v20444_v27 = vpop.permute.xlu1 %20443 }
0x1233   :  { %v5123_v9 = vmul.f32 %v27149_v18, %v5092_v20  ;;  %19141 = vmatpush3.bf16.xpose.msk.msra.mxu1 %vm21544_vm2, %v19136_v12  ;;  %v19148_v12 = vpack.c.bf16 %v20441_v39, %v20440_v60 }
0x1234   :  { %19144 = vmatprep.subr.msk.bf16.mxu1 %vm21544_vm2, %v19142_v32 }
0x1235   :  { %v17264_v53 = vpop.f32.mrb[88].mxu0  ;;  %17287 = vmatprep.mubr.msk.f32.mxu1 %vm1138_vm4, %v5123_v9  ;;  %v20446_v9 = vunpack.i.h.bf16 %v20444_v27 }
0x1236   :  { %v5102_v3 = vpop.f32.mrb[89].mxu0  ;;  %17288 = vmatmul.mubr.msk.f32.gmra.mrb[110].mxu1 %vm1138_vm4, %v5124_v63  ;;  %v5126_v20 = vmul.f32 %v17264_v53, %v22191_v22  ;;  %v20445_v63 = vunpack.i.l.bf16 %v20444_v27 }
0x1237   :  { %v5125_v13 = vmul.f32 %v22186_v1, %v5102_v3 }
0x1238   :  { %v19154_v53 = vpack.c.bf16 %v20446_v9, %v20445_v63 }
0x1239   :  { %v17267_v54 = vpop.f32.mrb[90].mxu0  ;;  %17290 = vmatprep.mubr.msk.f32.mxu1 %vm1138_vm4, %v5125_v13 }
0x123a   :  { %v5112_v25 = vpop.f32.mrb[91].mxu0  ;;  %17291 = vmatmul.mubr.msk.f32.gmra.mrb[112].mxu1 %vm1138_vm4, %v5126_v20  ;;  %v5128_v21 = vmul.f32 %v17267_v54, %v22207_v31 }
0x123b   :  { %v5127_v18 = vmul.f32 %v22204_v24, %v5112_v25  ;;  %19147 = vmatpush3.bf16.xpose.msk.msra.mxu1 %vm21544_vm2, %v19142_v32 }
0x123c   :  { %19150 = vmatprep.subr.msk.bf16.mxu1 %vm21544_vm2, %v19148_v12 }
0x123d   :  { %17293 = vmatprep.mubr.msk.f32.mxu1 %vm1138_vm4, %v5127_v18 }
0x123e   :  { %17294 = vmatmul.mubr.msk.f32.gmra.mrb[114].mxu1 %vm1138_vm4, %v5128_v21 }
0x123f   :  { %17312 = vmatprep.mubr.msk.f32.mxu1 %vm976_vm1, %v23748_v11 }
0x1243   :  { %19153 = vmatpush3.bf16.xpose.msk.msra.mxu1 %vm21544_vm2, %v19148_v12 }
0x1244   :  { %19156 = vmatprep.subr.msk.bf16.mxu1 %vm21544_vm2, %v19154_v53 }
0x124b   :  { %19159 = vmatpush3.bf16.xpose.msk.msra.mxu1 %vm21544_vm2, %v19154_v53 }
0x124c   :  { %19186 = vmatprep.subr.msk.bf16.mxu1 %vm21544_vm2, %v27162_v0 }
0x1252   :  { %17313 = vmatmul.mubr.msk.f32.vlgmr.msra.gmra.mrb[108].mxu1 %vm976_vm1, %v23745_v35 }
0x1253   :  { %17315 = vmatprep.mubr.msk.f32.mxu1 %vm976_vm1, %v23756_v7  ;;  %19189 = vmatpush3.bf16.xpose.msk.msra.mxu1 %vm21544_vm2, %v27162_v0 }
0x1254   :  { %19192 = vmatprep.subr.msk.bf16.mxu1 %vm21544_vm2, %v27163_v58 }
0x1256   :  { %17316 = vmatmul.mubr.msk.f32.gmra.mrb[110].mxu1 %vm976_vm1, %v23765_v10 }
0x1257   :  { %17318 = vmatprep.mubr.msk.f32.mxu1 %vm976_vm1, %v23751_v46 }
0x125a   :  { %17319 = vmatmul.mubr.msk.f32.gmra.mrb[112].mxu1 %vm976_vm1, %v23775_v55 }
0x125b   :  { %17321 = vmatprep.mubr.msk.f32.mxu1 %vm976_vm1, %v23759_v14  ;;  %19195 = vmatpush3.bf16.xpose.msk.msra.mxu1 %vm21544_vm2, %v27163_v58 }
0x125c   :  { %19198 = vmatprep.subr.msk.bf16.mxu1 %vm21544_vm2, %v27164_v41 }
0x125e   :  { %17322 = vmatmul.mubr.msk.f32.gmra.mrb[114].mxu1 %vm976_vm1, %v23783_v45 }
0x1263   :  { %19201 = vmatpush3.bf16.xpose.msk.msra.mxu1 %vm21544_vm2, %v27164_v41 }
0x1264   :  { %19204 = vmatprep.subr.msk.bf16.mxu1 %vm21544_vm2, %v27165_v52 }
0x126b   :  { %19207 = vmatpush3.bf16.xpose.msk.msra.mxu1 %vm21544_vm2, %v27165_v52 }
0x1325   :  { %v17314_v18 = vpop.f32.mrb[108].mxu1 }
0x1326   :  { %v5404_v27 = vsel %vm22278_vm15, %v17314_v18, -1e+09  ;;  %v5364_v35 = vpop.f32.mrb[109].mxu1 }
0x1327   :  { %v5414_v11 = vsel %vm1138_vm4, %v5404_v27, -inf  ;;  %v5403_v46 = vsel %vm22283_vm3, %v5364_v35, -1e+09  ;;  %v27214_v35 = vld [vmem:[#allocation21_spill] sm:$0xff] }
0x1328   :  { %v5411_v7 = vsel %vm1138_vm4, %v5403_v46, -inf  ;;  %5415 = vmax.xlane.f32.xlu1 %v5414_v11 }
0x1329   :  { %5412 = vmax.xlane.f32.xlu0 %v5411_v7  ;;  %v17317_v14 = vpop.f32.mrb[110].mxu1 }
0x132a   :  { %v5374_v10 = vpop.f32.mrb[111].mxu1  ;;  %v5406_v32 = vsel %vm22303_vm7, %v17317_v14, -1e+09 }
0x132b   :  { %v5405_v55 = vsel %vm22294_vm6, %v5374_v10, -1e+09  ;;  %v5420_v13 = vsel %vm1138_vm4, %v5406_v32, -inf }
0x132c   :  { %v5417_v45 = vsel %vm1138_vm4, %v5405_v55, -inf }
0x132d   :  { %5418 = vmax.xlane.f32.xlu0 %v5417_v45  ;;  %v17320_v39 = vpop.f32.mrb[112].mxu1 }
0x132e   :  { %v5384_v60 = vpop.f32.mrb[113].mxu1  ;;  %v5408_v54 = vsel %vm22321_vm10, %v17320_v39, -1e+09 }
0x132f   :  { %v5407_v3 = vsel %vm22314_vm9, %v5384_v60, -1e+09  ;;  %v5426_v9 = vsel %vm1138_vm4, %v5408_v54, -inf }
0x1330   :  { %v5423_v20 = vsel %vm1138_vm4, %v5407_v3, -inf }
0x1331   :  { %5421 = vmax.xlane.f32.xlu0 %v5420_v13  ;;  %5424 = vmax.xlane.f32.xlu1 %v5423_v20  ;;  %v17323_v12 = vpop.f32.mrb[114].mxu1 }
0x1332   :  { %v5394_v25 = vpop.f32.mrb[115].mxu1  ;;  %v5410_v53 = vsel %vm22331_vm12, %v17323_v12, -1e+09 }
0x1333   :  { %v5409_v21 = vsel %vm22346_vm13, %v5394_v25, -1e+09  ;;  %v5432_v18 = vsel %vm1138_vm4, %v5410_v53, -inf }
0x1334   :  { %v5429_v63 = vsel %vm1138_vm4, %v5409_v21, -inf }
0x1335   :  { %5427 = vmax.xlane.f32.xlu0 %v5426_v9  ;;  %5430 = vmax.xlane.f32.xlu1 %v5429_v63 }
0x1339   :  { %5433 = vmax.xlane.f32.xlu0 %v5432_v18 }
0x1346   :  { %20448 = vrot.lane.b32.xlu1 %v27214_v35, %s21403_s16 }
0x13b5   :  { %v5416_v11 = vpop.xlane.xlu1 %5415 }
0x13b6   :  { %v5436_v7 = vsub.f32 %v5404_v27, %v5416_v11  ;;  %v5413_v14 = vpop.xlane.xlu0 %5412 }
0x13b7   :  { %v5435_v10 = vsub.f32 %v5403_v46, %v5413_v14 }
0x13b8   :  { %v5445_v45 = vmul.f32 1.442695, %v5436_v7 }
0x13b9   :  { %v5443_v39 = vmul.f32 1.442695, %v5435_v10 }
0x13ba   :  { %20987 = vpow2.f32 %v5445_v45  ;;  %v5419_v60 = vpop.xlane.xlu0 %5418 }
0x13bb   :  { %20989 = vpow2.f32 %v5443_v39  ;;  %v5437_v13 = vsub.f32 %v5405_v55, %v5419_v60 }
0x13bd   :  { %v5447_v20 = vmul.f32 1.442695, %v5437_v13 }
0x13be   :  { %v5422_v12 = vpop.xlane.xlu0 %5421  ;;  %v5425_v25 = vpop.xlane.xlu1 %5424 }
0x13bf   :  { %20991 = vpow2.f32 %v5447_v20  ;;  %v5438_v9 = vsub.f32 %v5406_v32, %v5422_v12  ;;  %v5439_v63 = vsub.f32 %v5407_v3, %v5425_v25 }
0x13c1   :  { %v5449_v18 = vmul.f32 1.442695, %v5438_v9  ;;  %v5451_v52 = vmul.f32 1.442695, %v5439_v63 }
0x13c2   :  { %v5428_v41 = vpop.xlane.xlu0 %5427  ;;  %v5431_v58 = vpop.xlane.xlu1 %5430 }
0x13c3   :  { %20993 = vpow2.f32 %v5449_v18  ;;  %v5440_v27 = vsub.f32 %v5408_v54, %v5428_v41  ;;  %v5441_v14 = vsub.f32 %v5409_v21, %v5431_v58 }
0x13c4   :  { %v23899_v11 = vpop.eup %20987  ;;  %20995 = vpow2.f32 %v5451_v52 }
0x13c5   :  { %v23901_v46 = vpop.eup %20989  ;;  %v5453_v7 = vmul.f32 1.442695, %v5440_v27  ;;  %v5462_v55 = vsel %vm1138_vm4, %v23899_v11, 0.0  ;;  %v5455_v52 = vmul.f32 1.442695, %v5441_v14  ;;  %v27215_v14 = vld [vmem:[#allocation28_spill] sm:$0xff] }
0x13c6   :  { %5463 = vadd.xlane.f32.xlu0 %v5462_v55  ;;  %v5434_v10 = vpop.xlane.xlu0 %5433  ;;  %v20449_v32 = vpop.permute.xlu1 %20448  ;;  %v5459_v3 = vsel %vm1138_vm4, %v23901_v46, 0.0  ;;  %v27216_v55 = vld [vmem:[#allocation26_spill] sm:$0xff] }
0x13c7   :  { %20997 = vpow2.f32 %v5453_v7  ;;  %v5442_v45 = vsub.f32 %v5410_v53, %v5434_v10  ;;  %v20451_v39 = vunpack.i.h.bf16 %v20449_v32  ;;  %v20450_v41 = vunpack.i.l.bf16 %v20449_v32  ;;  %5460 = vadd.xlane.f32.xlu1 %v5459_v3  ;;  %v27217_v10 = vld [vmem:[#allocation33_spill] sm:$0xff]  ;;  %v27218_v32 = vld [vmem:[#allocation86_spill] sm:$0xff] }
0x13c8   :  { %v5912_v3 = vadd.f32 %v27218_v32, %v23482_v57 }
0x13c9   :  { %v23907_v54 = vpop.eup %20991  ;;  %v5457_v60 = vmul.f32 1.442695, %v5442_v45  ;;  %v19160_v13 = vpack.c.bf16 %v20451_v39, %v20450_v41  ;;  %v27219_v45 = vld [vmem:[#allocation87_spill] sm:$0xff]  ;;  %v27220_v41 = vld [vmem:[#allocation84_spill] sm:$0xff] }
0x13ca   :  { %v5465_v58 = vsel %vm1138_vm4, %v23907_v54, 0.0  ;;  %v5913_v39 = vadd.f32 %v27219_v45, %v23478_v43 }
0x13cb   :  { %20999 = vpow2.f32 %v5457_v60  ;;  %5466 = vadd.xlane.f32.xlu1 %v5465_v58  ;;  %19161 = vmatprep.subr.bf16.mxu0 %v19160_v13  ;;  %v27221_v60 = vld [vmem:[#allocation85_spill] sm:$0xff]  ;;  %v27222_v58 = vld [vmem:[#allocation90_spill] sm:$0xff] }
0x13cc   :  { %19163 = vmatpush3.bf16.msra.mxu0 %v19160_v13  ;;  %21001 = vpow2.f32 %v5455_v52  ;;  %v5910_v52 = vadd.f32 %v27220_v41, %v23424_v28  ;;  %v5911_v13 = vadd.f32 %v27221_v60, %v23420_v30  ;;  %v27225_v41 = vld [vmem:[#allocation89_spill] sm:$0xff] }
0x13cd   :  { %v23911_v21 = vpop.eup %20993  ;;  %v5915_v32 = vadd.f32 %v27225_v41, %v23497_v29 }
0x13ce   :  { %v23913_v20 = vpop.eup %20995  ;;  %v5468_v53 = vsel %vm1138_vm4, %v23911_v21, 0.0  ;;  %v20467_v60 = vpack.i.bf16 %v5911_v13, %v5910_v52 }
0x13cf   :  { %5469 = vadd.xlane.f32.xlu0 %v5468_v53  ;;  %v5471_v12 = vsel %vm1138_vm4, %v23913_v20, 0.0  ;;  %v5916_v53 = vadd.f32 %v27222_v58, %v23525_v6 }
0x13d0   :  { %5472 = vadd.xlane.f32.xlu1 %v5471_v12  ;;  %v27223_v12 = vld [vmem:[#allocation91_spill] sm:$0xff] }
0x13d1   :  { %v23919_v25 = vpop.eup %20997 }
0x13d2   :  { %v5474_v9 = vsel %vm1138_vm4, %v23919_v25, 0.0 }
0x13d3   :  { %5475 = vadd.xlane.f32.xlu0 %v5474_v9  ;;  %v5917_v9 = vadd.f32 %v27223_v12, %v23521_v49 }
0x13d5   :  { %v23923_v63 = vpop.eup %20999  ;;  %v20482_v0 = vpack.i.bf16 %v5917_v9, %v5916_v53 }
0x13d6   :  { %v5480_v18 = vsel %vm1138_vm4, %v23923_v63, 0.0  ;;  %v23927_v27 = vpop.eup %21001 }
0x13d7   :  { %5481 = vadd.xlane.f32.xlu0 %v5480_v18  ;;  %v5477_v7 = vsel %vm1138_vm4, %v23927_v27, 0.0  ;;  %v20472_v18 = vpack.i.bf16 %v5913_v39, %v5912_v3 }
0x13db   :  { %5478 = vadd.xlane.f32.xlu0 %v5477_v7  ;;  %v27224_v7 = vld [vmem:[#allocation88_spill] sm:$0xff] }
0x13dc   :  { %v5914_v45 = vadd.f32 %v27224_v7, %v23501_v61 }
0x13de   :  { %v20477_v58 = vpack.i.bf16 %v5915_v32, %v5914_v45 }
0x13e1   :  { %20458 = vrot.lane.b32.xlu1 %v27215_v14, %s21403_s16 }
0x13e5   :  { %20463 = vrot.lane.b32.xlu1 %v27216_v55, %s21403_s16 }
0x13e9   :  { %5918 = vrot.lane.b32.xlu1 %v23386_v26, %s21404_s11 }
0x13ed   :  { %5920 = vrot.lane.b32.xlu1 %v23392_v59, %s21404_s11 }
0x13f1   :  { %5924 = vrot.lane.b32.xlu1 %v23405_v2, %s21404_s11  ;;  %20453 = vrot.lane.b32.xlu0 %v27217_v10, %s21403_s16 }
0x13f5   :  { %5928 = vrot.lane.b32.xlu1 %v23434_v51, %s21404_s11  ;;  %5922 = vrot.lane.b32.xlu0 %v23395_v8, %s21404_s11 }
0x13f9   :  { %5932 = vrot.lane.b32.xlu1 %v23458_v19, %s21404_s11  ;;  %5926 = vrot.lane.b32.xlu0 %v23411_v42, %s21404_s11 }
0x13fd   :  { %20473 = vrot.lane.b32.xlu1 %v20472_v18, %s21404_s11  ;;  %5930 = vrot.lane.b32.xlu0 %v23440_v47, %s21404_s11 }
0x1401   :  { %20483 = vrot.lane.b32.xlu1 %v20482_v0, %s21404_s11  ;;  %20468 = vrot.lane.b32.xlu0 %v20467_v60, %s21404_s11 }
0x1405   :  { %20478 = vrot.lane.b32.xlu0 %v20477_v58, %s21404_s11 }
0x1453   :  { %v5464_v39 = vpop.xlane.xlu0 %5463 }
0x1454   :  { %v5461_v3 = vpop.xlane.xlu1 %5460 }
0x1455   :  { %21003 = vrcp.f32 %v5461_v3 }
0x1456   :  { %21005 = vrcp.f32 %v5464_v39 }
0x1458   :  { %v5467_v18 = vpop.xlane.xlu1 %5466 }
0x1459   :  { %21007 = vrcp.f32 %v5467_v18 }
0x145c   :  { %v5470_v12 = vpop.xlane.xlu0 %5469 }
0x145d   :  { %v5473_v6 = vpop.xlane.xlu1 %5472  ;;  %21009 = vrcp.f32 %v5470_v12 }
0x145e   :  { %21011 = vrcp.f32 %v5473_v6 }
0x145f   :  { %v21004_v49 = vpop.eup %21003 }
0x1460   :  { %v5476_v7 = vpop.xlane.xlu0 %5475  ;;  %v5491_v61 = vmul.f32 %v21004_v49, %v23901_v46  ;;  %v21006_v12 = vpop.eup %21005 }
0x1461   :  { %v20459_v41 = vpop.permute.xlu1 %20458  ;;  %21013 = vrcp.f32 %v5476_v7  ;;  %v27226_v7 = vld [vmem:[#allocation92_spill] sm:$0xff] }
0x1462   :  { %17340 = vmatprep.mubr.msk.f32.mxu0 %vm1138_vm4, %v5491_v61  ;;  %v20461_v45 = vunpack.i.h.bf16 %v20459_v41  ;;  %v20460_v58 = vunpack.i.l.bf16 %v20459_v41 }
0x1463   :  { %v21008_v6 = vpop.eup %21007 }
0x1464   :  { %v5482_v52 = vpop.xlane.xlu0 %5481  ;;  %v19168_v41 = vpack.c.bf16 %v20461_v45, %v20460_v58  ;;  %v5493_v58 = vmul.f32 %v21008_v6, %v23907_v54 }
0x1465   :  { %v20464_v0 = vpop.permute.xlu1 %20463 }
0x1466   :  { %v20466_v46 = vunpack.i.h.bf16 %v20464_v0  ;;  %v20465_v29 = vunpack.i.l.bf16 %v20464_v0 }
0x1468   :  { %v5479_v13 = vpop.xlane.xlu0 %5478  ;;  %v19172_v0 = vpack.c.bf16 %v20466_v46, %v20465_v29  ;;  %v5492_v29 = vmul.f32 %v21006_v12, %v23899_v11 }
0x1469   :  { %v23975_v60 = vpop.permute.xlu1 %5918  ;;  %21015 = vrcp.f32 %v5479_v13  ;;  %v21010_v13 = vpop.eup %21009 }
0x146a   :  { %17400 = vmatprep.mubr.msk.f32.mxu1 %vm976_vm1, %v23975_v60  ;;  %21017 = vrcp.f32 %v5482_v52  ;;  %v5494_v52 = vmul.f32 %v21010_v13, %v23911_v21 }
0x146c   :  { %v20454_v32 = vpop.permute.xlu0 %20453 }
0x146d   :  { %v20456_v53 = vunpack.i.h.bf16 %v20454_v32  ;;  %v20455_v9 = vunpack.i.l.bf16 %v20454_v32  ;;  %v23979_v3 = vpop.permute.xlu1 %5920 }
0x146e   :  { %17401 = vmatmul.mubr.msk.f32.vlgmr.msra.gmra.mrb[116].mxu1 %vm976_vm1, %v23979_v3 }
0x146f   :  { %v19164_v61 = vpack.c.bf16 %v20456_v53, %v20455_v9  ;;  %v21012_v53 = vpop.eup %21011  ;;  %v27227_v9 = vld [vmem:[#allocation93_spill] sm:$0xff] }
0x1470   :  { %v23983_v49 = vpop.permute.xlu0 %5922  ;;  %v5495_v46 = vmul.f32 %v21012_v53, %v23913_v20 }
0x1471   :  { %v23985_v19 = vpop.permute.xlu1 %5924  ;;  %19165 = vmatprep.subr.bf16.mxu0 %v19164_v61  ;;  %17403 = vmatprep.mubr.msk.f32.mxu1 %vm976_vm1, %v23983_v49 }
0x1472   :  { %19167 = vmatpush3.bf16.msra.mxu0 %v19164_v61  ;;  %17404 = vmatmul.mubr.msk.f32.gmra.mrb[118].mxu1 %vm976_vm1, %v23985_v19  ;;  %v21014_v61 = vpop.eup %21013 }
0x1473   :  { %19169 = vmatprep.subr.bf16.mxu0 %v19168_v41  ;;  %v21016_v11 = vpop.eup %21015  ;;  %v5496_v54 = vmul.f32 %v21014_v61, %v23919_v25 }
0x1474   :  { %v23991_v39 = vpop.permute.xlu0 %5926 }
0x1475   :  { %v23993_v18 = vpop.permute.xlu1 %5928  ;;  %17406 = vmatprep.mubr.msk.f32.mxu1 %vm976_vm1, %v23991_v39 }
0x1476   :  { %19171 = vmatpush3.bf16.msra.mxu0 %v19168_v41  ;;  %17407 = vmatmul.mubr.msk.f32.gmra.mrb[120].mxu1 %vm976_vm1, %v23993_v18  ;;  %v21018_v41 = vpop.eup %21017 }
0x1477   :  { %19173 = vmatprep.subr.bf16.mxu0 %v19172_v0  ;;  %v5498_v21 = vmul.f32 %v21018_v41, %v23923_v63 }
0x1478   :  { %v23999_v32 = vpop.permute.xlu0 %5930 }
0x1479   :  { %v24001_v45 = vpop.permute.xlu1 %5932  ;;  %17409 = vmatprep.mubr.msk.f32.mxu1 %vm976_vm1, %v23999_v32 }
0x147a   :  { %19175 = vmatpush3.bf16.msra.mxu0 %v19172_v0  ;;  %17410 = vmatmul.mubr.msk.f32.gmra.mrb[122].mxu1 %vm976_vm1, %v24001_v45  ;;  %v5497_v0 = vmul.f32 %v21016_v11, %v23927_v27  ;;  %v27228_v27 = vmov 1.0|1.0  }
0x147b   :  { %19177 = vmatprep.subr.bf16.mxu0 %v27226_v7 }
0x147d   :  { %17341 = vmatmul.mubr.msk.f32.vlgmr.msra.gmra.mrb[92].mxu0 %vm1138_vm4, %v5492_v29 }
0x147e   :  { %17343 = vmatprep.mubr.msk.f32.mxu0 %vm1138_vm4, %v5493_v58  ;;  %19179 = vmatpush3.bf16.msra.mxu0 %v27226_v7 }
0x147f   :  { %19181 = vmatprep.subr.bf16.mxu0 %v27227_v9 }
0x1481   :  { %17344 = vmatmul.mubr.msk.f32.gmra.mrb[94].mxu0 %vm1138_vm4, %v5494_v52 }
0x1482   :  { %17346 = vmatprep.mubr.msk.f32.mxu0 %vm1138_vm4, %v5495_v46 }
0x1485   :  { %17347 = vmatmul.mubr.msk.f32.gmra.mrb[96].mxu0 %vm1138_vm4, %v5496_v54 }
0x1486   :  { %17349 = vmatprep.mubr.msk.f32.mxu0 %vm1138_vm4, %v5497_v0 }
0x1489   :  { %17350 = vmatmul.mubr.msk.f32.gmra.mrb[98].mxu0 %vm1138_vm4, %v5498_v21 }
0x1541   :  { %v17402_v12 = vpop.f32.mrb[116].mxu1 }
0x1542   :  { %v6016_v20 = vpop.f32.mrb[117].mxu1 }
0x1545   :  { %v17405_v6 = vpop.f32.mrb[118].mxu1 }
0x1546   :  { %v6026_v29 = vpop.f32.mrb[119].mxu1 }
0x1549   :  { %v17408_v13 = vpop.f32.mrb[120].mxu1 }
0x154a   :  { %v6036_v58 = vpop.f32.mrb[121].mxu1 }
0x154d   :  { %v24024_v53 = vpop.f32.mrb[122].mxu1 }
0x154e   :  { %v6046_v25 = vpop.f32.mrb[123].mxu1 }
0x1550   :  { %v17342_v52 = vpop.f32.mrb[92].mxu0 }
0x1551   :  { %v5613_v61 = vpop.f32.mrb[93].mxu0 }
0x1552   :  { %17356 = vmatprep.mubr.msk.f32.mxu0 %vm976_vm1, %v5613_v61  ;;  %v20469_v61 = vpop.permute.xlu0 %20468 }
0x1553   :  { %17357 = vmatmul.mubr.msk.f32.vlgmr.msra.gmra.mrb[100].mxu0 %vm976_vm1, %v17342_v52 }
0x1554   :  { %19183 = vmatpush3.bf16.msra.mxu0 %v27227_v9  ;;  %v17345_v63 = vpop.f32.mrb[94].mxu0 }
0x1555   :  { %19209 = vmatprep.subr.msk.bf16.mxu0 %vm21872_vm5, %v27228_v27  ;;  %v5623_v11 = vpop.f32.mrb[95].mxu0 }
0x1556   :  { %17359 = vmatprep.mubr.msk.f32.mxu0 %vm976_vm1, %v5623_v11 }
0x1557   :  { %17360 = vmatmul.mubr.msk.f32.gmra.mrb[102].mxu0 %vm976_vm1, %v17345_v63  ;;  %v27232_v63 = vld [vmem:[#allocation54_spill] sm:$0xff] }
0x1558   :  { %v17348_v54 = vpop.f32.mrb[96].mxu0 }
0x1559   :  { %v5633_v41 = vpop.f32.mrb[97].mxu0 }
0x155a   :  { %17362 = vmatprep.mubr.msk.f32.mxu0 %vm976_vm1, %v5633_v41  ;;  %v20474_v41 = vpop.permute.xlu1 %20473 }
0x155b   :  { %17363 = vmatmul.mubr.msk.f32.gmra.mrb[104].mxu0 %vm976_vm1, %v17348_v54  ;;  %v27234_v54 = vld [vmem:[#allocation55_spill] sm:$0xff] }
0x155c   :  { %v17351_v0 = vpop.f32.mrb[98].mxu0 }
0x155d   :  { %v5643_v21 = vpop.f32.mrb[99].mxu0 }
0x155e   :  { %17365 = vmatprep.mubr.msk.f32.mxu0 %vm976_vm1, %v5643_v21 }
0x155f   :  { %17366 = vmatmul.mubr.msk.f32.gmra.mrb[106].mxu0 %vm976_vm1, %v17351_v0  ;;  %v6056_v0 = vmul.f32 %v17402_v12, %v22141_v62  ;;  %v20479_v12 = vpop.permute.xlu0 %20478 }
0x1560   :  { %17372 = vmatprep.mubr.msk.f32.mxu0 %vm976_vm1, %v23789_v37  ;;  %v20471_v37 = vunpack.i.h.bf16 %v20469_v61 }
0x1563   :  { %17373 = vmatmul.mubr.msk.f32.vlgmr.msra.gmra.mrb[100].mxu0 %vm976_vm1, %v23787_v48 }
0x1564   :  { %19211 = vmatpush3.bf16.msk.msra.mxu0 %vm21872_vm5, %v27228_v27  ;;  %17375 = vmatprep.mubr.msk.f32.mxu0 %vm976_vm1, %v23793_v4  ;;  %v20470_v4 = vunpack.i.l.bf16 %v20469_v61  ;;  %v20475_v61 = vunpack.i.l.bf16 %v20474_v41 }
0x1565   :  { %19213 = vmatprep.subr.msk.bf16.mxu0 %vm21957_vm8, %v27228_v27 }
0x1566   :  { %v19224_v11 = vpack.c.bf16 %v20471_v37, %v20470_v4  ;;  %v27236_v37 = vld [vmem:[#allocation63_spill] sm:$0xff] }
0x1567   :  { %17376 = vmatmul.mubr.msk.f32.gmra.mrb[102].mxu0 %vm976_vm1, %v23791_v38  ;;  %v6058_v4 = vmul.f32 %v17405_v6, %v27236_v37  ;;  %v20481_v6 = vunpack.i.h.bf16 %v20479_v12 }
0x1568   :  { %19215 = vmatpush3.bf16.msk.msra.mxu0 %vm21957_vm8, %v27228_v27  ;;  %17378 = vmatprep.mubr.msk.f32.mxu0 %vm976_vm1, %v23797_v33  ;;  %v6055_v33 = vmul.f32 %v22139_v56, %v6016_v20  ;;  %v20476_v20 = vunpack.i.h.bf16 %v20474_v41  ;;  %v6062_v41 = vmul.f32 %v24024_v53, %v22207_v31 }
0x1569   :  { %19217 = vmatprep.subr.msk.bf16.mxu0 %vm21985_vm11, %v27228_v27 }
0x156b   :  { %17379 = vmatmul.mubr.msk.f32.gmra.mrb[104].mxu0 %vm976_vm1, %v27232_v63  ;;  %v6059_v63 = vmul.f32 %v22186_v1, %v6036_v58  ;;  %v20480_v58 = vunpack.i.l.bf16 %v20479_v12 }
0x156c   :  { %19219 = vmatpush3.bf16.msk.msra.mxu0 %vm21985_vm11, %v27228_v27  ;;  %17381 = vmatprep.mubr.msk.f32.mxu0 %vm976_vm1, %v23801_v50  ;;  %v27235_v50 = vld [vmem:[#allocation62_spill] sm:$0xff] }
0x156d   :  { %19221 = vmatprep.subr.msk.bf16.mxu0 %vm22009_vm14, %v27228_v27  ;;  %v6057_v21 = vmul.f32 %v27235_v50, %v6026_v29  ;;  %v6061_v29 = vmul.f32 %v22204_v24, %v6046_v25 }
0x156f   :  { %17382 = vmatmul.mubr.msk.f32.gmra.mrb[106].mxu0 %vm976_vm1, %v27234_v54  ;;  %v6060_v54 = vmul.f32 %v17408_v13, %v22191_v22  ;;  %v19236_v13 = vpack.c.bf16 %v20481_v6, %v20480_v58 }
0x1570   :  { %19223 = vmatpush3.bf16.msk.msra.mxu0 %vm22009_vm14, %v27228_v27  ;;  %17428 = vmatprep.mubr.msk.f32.mxu0 %vm1138_vm4, %v6055_v33  ;;  %v19230_v33 = vpack.c.bf16 %v20476_v20, %v20475_v61 }
0x1571   :  { %19226 = vmatprep.subr.msk.bf16.mxu0 %vm21544_vm2, %v19224_v11 }
0x1573   :  { %17429 = vmatmul.mubr.msk.f32.vlgmr.msra.gmra.mrb[108].mxu0 %vm1138_vm4, %v6056_v0 }
0x1574   :  { %17431 = vmatprep.mubr.msk.f32.mxu0 %vm1138_vm4, %v6057_v21 }
0x1577   :  { %17432 = vmatmul.mubr.msk.f32.gmra.mrb[110].mxu0 %vm1138_vm4, %v6058_v4 }
0x1578   :  { %17434 = vmatprep.mubr.msk.f32.mxu0 %vm1138_vm4, %v6059_v63 }
0x1579   :  { %19229 = vmatpush3.bf16.xpose.msk.msra.mxu0 %vm21544_vm2, %v19224_v11  ;;  %v20484_v11 = vpop.permute.xlu1 %20483 }
0x157a   :  { %19232 = vmatprep.subr.msk.bf16.mxu0 %vm21544_vm2, %v19230_v33  ;;  %v20486_v25 = vunpack.i.h.bf16 %v20484_v11  ;;  %v20485_v0 = vunpack.i.l.bf16 %v20484_v11 }
0x157b   :  { %17435 = vmatmul.mubr.msk.f32.gmra.mrb[112].mxu0 %vm1138_vm4, %v6060_v54 }
0x157c   :  { %17437 = vmatprep.mubr.msk.f32.mxu0 %vm1138_vm4, %v6061_v29  ;;  %v19242_v21 = vpack.c.bf16 %v20486_v25, %v20485_v0 }
0x157f   :  { %17438 = vmatmul.mubr.msk.f32.gmra.mrb[114].mxu0 %vm1138_vm4, %v6062_v41 }
0x1580   :  { %17456 = vmatprep.mubr.msk.f32.mxu0 %vm976_vm1, %v23975_v60  ;;  %v27237_v60 = vld [vmem:[#allocation94_spill] sm:$0xff] }
0x1581   :  { %19235 = vmatpush3.bf16.xpose.msk.msra.mxu0 %vm21544_vm2, %v19230_v33 }
0x1582   :  { %19238 = vmatprep.subr.msk.bf16.mxu0 %vm21544_vm2, %v19236_v13 }
0x1589   :  { %19241 = vmatpush3.bf16.xpose.msk.msra.mxu0 %vm21544_vm2, %v19236_v13 }
0x158a   :  { %19244 = vmatprep.subr.msk.bf16.mxu0 %vm21544_vm2, %v19242_v21 }
0x1591   :  { %19247 = vmatpush3.bf16.xpose.msk.msra.mxu0 %vm21544_vm2, %v19242_v21 }
0x1592   :  { %19265 = vmatprep.subr.bf16.mxu0 %v27237_v60 }
0x1598   :  { %17457 = vmatmul.mubr.msk.f32.vlgmr.msra.gmra.mrb[108].mxu0 %vm976_vm1, %v23979_v3 }
0x1599   :  { %17459 = vmatprep.mubr.msk.f32.mxu0 %vm976_vm1, %v23983_v49  ;;  %19267 = vmatpush3.bf16.msra.mxu0 %v27237_v60 }
0x159a   :  { %19293 = vmatprep.subr.msk.bf16.mxu0 %vm21872_vm5, %v27228_v27 }
0x159c   :  { %17460 = vmatmul.mubr.msk.f32.gmra.mrb[110].mxu0 %vm976_vm1, %v23985_v19 }
0x159d   :  { %17462 = vmatprep.mubr.msk.f32.mxu0 %vm976_vm1, %v23991_v39 }
0x15a0   :  { %17463 = vmatmul.mubr.msk.f32.gmra.mrb[112].mxu0 %vm976_vm1, %v23993_v18 }
0x15a1   :  { %17465 = vmatprep.mubr.msk.f32.mxu0 %vm976_vm1, %v23999_v32 }
0x15a4   :  { %17466 = vmatmul.mubr.msk.f32.gmra.mrb[114].mxu0 %vm976_vm1, %v24001_v45 }
0x166b   :  { %v17458_v3 = vpop.f32.mrb[108].mxu0 }
0x166c   :  { %v6338_v49 = vsel %vm22278_vm15, %v17458_v3, -1e+09  ;;  %v6298_v53 = vpop.f32.mrb[109].mxu0 }
0x166d   :  { %v6348_v20 = vsel %vm1138_vm4, %v6338_v49, -inf  ;;  %v6337_v19 = vsel %vm22283_vm3, %v6298_v53, -1e+09 }
0x166e   :  { %v6345_v39 = vsel %vm1138_vm4, %v6337_v19, -inf  ;;  %6349 = vmax.xlane.f32.xlu1 %v6348_v20 }
0x166f   :  { %6346 = vmax.xlane.f32.xlu0 %v6345_v39  ;;  %v17461_v18 = vpop.f32.mrb[110].mxu0 }
0x1670   :  { %v6308_v61 = vpop.f32.mrb[111].mxu0  ;;  %v6340_v4 = vsel %vm22303_vm7, %v17461_v18, -1e+09 }
0x1671   :  { %v6339_v32 = vsel %vm22294_vm6, %v6308_v61, -1e+09  ;;  %v6354_v54 = vsel %vm1138_vm4, %v6340_v4, -inf }
0x1672   :  { %v6351_v45 = vsel %vm1138_vm4, %v6339_v32, -inf }
0x1673   :  { %6352 = vmax.xlane.f32.xlu0 %v6351_v45  ;;  %v17464_v63 = vpop.f32.mrb[112].mxu0 }
0x1674   :  { %v6318_v33 = vpop.f32.mrb[113].mxu0  ;;  %v6342_v6 = vsel %vm22321_vm10, %v17464_v63, -1e+09 }
0x1675   :  { %v6341_v12 = vsel %vm22314_vm9, %v6318_v33, -1e+09  ;;  %v6360_v13 = vsel %vm1138_vm4, %v6342_v6, -inf }
0x1676   :  { %v6357_v29 = vsel %vm1138_vm4, %v6341_v12, -inf }
0x1677   :  { %6355 = vmax.xlane.f32.xlu0 %v6354_v54  ;;  %6358 = vmax.xlane.f32.xlu1 %v6357_v29  ;;  %v17467_v58 = vpop.f32.mrb[114].mxu0 }
0x1678   :  { %v6328_v41 = vpop.f32.mrb[115].mxu0  ;;  %v6344_v11 = vsel %vm22331_vm12, %v17467_v58, -1e+09 }
0x1679   :  { %v6366_v25 = vsel %vm1138_vm4, %v6344_v11, -inf  ;;  %v6343_v0 = vsel %vm22346_vm13, %v6328_v41, -1e+09 }
0x167a   :  { %v6363_v21 = vsel %vm1138_vm4, %v6343_v0, -inf }
0x167b   :  { %6361 = vmax.xlane.f32.xlu0 %v6360_v13 }
0x167f   :  { %6367 = vmax.xlane.f32.xlu0 %v6366_v25 }
0x1688   :  { %20488 = vrot.lane.b32.xlu1 %v27214_v35, %s21405_s18 }
0x16ac   :  { %6364 = vmax.xlane.f32.xlu1 %v6363_v21 }
0x16bd   :  { %20498 = vrot.lane.b32.xlu1 %v27215_v14, %s21405_s18 }
0x16fb   :  { %v6350_v3 = vpop.xlane.xlu1 %6349 }
0x16fc   :  { %v6370_v53 = vsub.f32 %v6338_v49, %v6350_v3  ;;  %v6347_v20 = vpop.xlane.xlu0 %6346 }
0x16fd   :  { %v6369_v39 = vsub.f32 %v6337_v19, %v6347_v20 }
0x16fe   :  { %v6379_v18 = vmul.f32 1.442695, %v6370_v53 }
0x16ff   :  { %v6377_v61 = vmul.f32 1.442695, %v6369_v39 }
0x1700   :  { %21019 = vpow2.f32 %v6379_v18  ;;  %v6353_v19 = vpop.xlane.xlu0 %6352 }
0x1701   :  { %21021 = vpow2.f32 %v6377_v61  ;;  %v6371_v21 = vsub.f32 %v6339_v32, %v6353_v19 }
0x1703   :  { %v6381_v20 = vmul.f32 1.442695, %v6371_v21  ;;  %v27238_v21 = vld [vmem:[#allocation68_spill] sm:$0xff] }
0x1704   :  { %v6359_v45 = vpop.xlane.xlu1 %6358  ;;  %v6356_v25 = vpop.xlane.xlu0 %6355 }
0x1705   :  { %v6372_v3 = vsub.f32 %v6340_v4, %v6356_v25  ;;  %v6373_v39 = vsub.f32 %v6341_v12, %v6359_v45  ;;  %21023 = vpow2.f32 %v6381_v20 }
0x1707   :  { %v6383_v18 = vmul.f32 1.442695, %v6372_v3  ;;  %v6385_v61 = vmul.f32 1.442695, %v6373_v39  ;;  %v6724_v3 = vadd.f32 %v27238_v21, %v23420_v30  ;;  %v27246_v30 = vld [vmem:[#allocation64_spill] sm:$0xff] }
0x1708   :  { %v20489_v63 = vpop.permute.xlu1 %20488  ;;  %v6362_v53 = vpop.xlane.xlu0 %6361 }
0x1709   :  { %v20491_v33 = vunpack.i.h.bf16 %v20489_v63  ;;  %v20490_v54 = vunpack.i.l.bf16 %v20489_v63  ;;  %v6374_v63 = vsub.f32 %v6342_v6, %v6362_v53  ;;  %21025 = vpow2.f32 %v6383_v18 }
0x170a   :  { %v24157_v29 = vpop.eup %21019  ;;  %21027 = vpow2.f32 %v6385_v61  ;;  %v27245_v61 = vld [vmem:[#allocation74_spill] sm:$0xff] }
0x170b   :  { %v24159_v58 = vpop.eup %21021  ;;  %v6396_v41 = vsel %vm1138_vm4, %v24157_v29, 0.0  ;;  %v19248_v13 = vpack.c.bf16 %v20491_v33, %v20490_v54  ;;  %v6387_v54 = vmul.f32 1.442695, %v6374_v63  ;;  %v6730_v63 = vadd.f32 %v27246_v30, %v27245_v61 }
0x170c   :  { %6397 = vadd.xlane.f32.xlu0 %v6396_v41  ;;  %v6393_v49 = vsel %vm1138_vm4, %v24159_v58, 0.0  ;;  %v6368_v33 = vpop.xlane.xlu0 %6367 }
0x170d   :  { %19249 = vmatprep.subr.bf16.mxu1 %v19248_v13  ;;  %6394 = vadd.xlane.f32.xlu1 %v6393_v49  ;;  %v6376_v41 = vsub.f32 %v6344_v11, %v6368_v33  ;;  %21029 = vpow2.f32 %v6387_v54  ;;  %v27247_v54 = vld [vmem:[#allocation73_spill] sm:$0xff] }
0x170e   :  { %19251 = vmatpush3.bf16.msra.mxu1 %v19248_v13 }
0x170f   :  { %v6391_v60 = vmul.f32 1.442695, %v6376_v41  ;;  %v24169_v7 = vpop.eup %21023  ;;  %v27248_v41 = vld [vmem:[#allocation69_spill] sm:$0xff] }
0x1710   :  { %v6399_v4 = vsel %vm1138_vm4, %v24169_v7, 0.0 }
0x1713   :  { %v24171_v32 = vpop.eup %21025 }
0x1714   :  { %v24175_v12 = vpop.eup %21027  ;;  %v6402_v6 = vsel %vm1138_vm4, %v24171_v32, 0.0 }
0x1715   :  { %v6405_v11 = vsel %vm1138_vm4, %v24175_v12, 0.0 }
0x171e   :  { %20503 = vrot.lane.b32.xlu1 %v27216_v55, %s21405_s18 }
0x1722   :  { %20493 = vrot.lane.b32.xlu0 %v27217_v10, %s21405_s18 }
0x1739   :  { %v6365_v13 = vpop.xlane.xlu1 %6364 }
0x173a   :  { %v6375_v49 = vsub.f32 %v6343_v0, %v6365_v13  ;;  %v24181_v0 = vpop.eup %21029  ;;  %v27249_v13 = vld [vmem:[#allocation23_spill] sm:$0xff] }
0x173c   :  { %v6389_v9 = vmul.f32 1.442695, %v6375_v49  ;;  %v27250_v49 = vld [vmem:[#allocation65_spill] sm:$0xff] }
0x173e   :  { %21031 = vpow2.f32 %v6389_v9  ;;  %v6408_v9 = vsel %vm1138_vm4, %v24181_v0, 0.0 }
0x173f   :  { %21033 = vpow2.f32 %v6391_v60 }
0x1741   :  { %6400 = vadd.xlane.f32.xlu0 %v6399_v4 }
0x1742   :  { %6403 = vadd.xlane.f32.xlu1 %v6402_v6  ;;  %v20499_v6 = vpop.permute.xlu1 %20498 }
0x1745   :  { %6406 = vadd.xlane.f32.xlu0 %v6405_v11 }
0x1748   :  { %v24183_v45 = vpop.eup %21031 }
0x1749   :  { %v24187_v60 = vpop.eup %21033  ;;  %6409 = vadd.xlane.f32.xlu0 %v6408_v9  ;;  %v6411_v19 = vsel %vm1138_vm4, %v24183_v45, 0.0 }
0x174a   :  { %6412 = vadd.xlane.f32.xlu1 %v6411_v19  ;;  %v6414_v25 = vsel %vm1138_vm4, %v24187_v60, 0.0 }
0x174d   :  { %6415 = vadd.xlane.f32.xlu0 %v6414_v25  ;;  %v20501_v25 = vunpack.i.h.bf16 %v20499_v6 }
0x175b   :  { %6731 = vrot.lane.b32.xlu1 %v23386_v26, %s21406_s28  ;;  %v27239_v26 = vld [vmem:[#allocation70_spill] sm:$0xff] }
0x175c   :  { %v6726_v53 = vadd.f32 %v27239_v26, %v23478_v43 }
0x175f   :  { %6735 = vrot.lane.b32.xlu1 %v23395_v8, %s21406_s28  ;;  %v27240_v8 = vld [vmem:[#allocation66_spill] sm:$0xff] }
0x1760   :  { %v6723_v20 = vadd.f32 %v27240_v8, %v23424_v28  ;;  %v6727_v28 = vadd.f32 %v27248_v41, %v27247_v54 }
0x1762   :  { %v20507_v33 = vpack.i.bf16 %v6724_v3, %v6723_v20  ;;  %v20500_v3 = vunpack.i.l.bf16 %v20499_v6 }
0x1763   :  { %6733 = vrot.lane.b32.xlu0 %v23392_v59, %s21406_s28  ;;  %6737 = vrot.lane.b32.xlu1 %v23405_v2, %s21406_s28  ;;  %v27241_v59 = vld [vmem:[#allocation67_spill] sm:$0xff] }
0x1764   :  { %v6725_v39 = vadd.f32 %v27241_v59, %v23482_v57  ;;  %v27242_v2 = vld [vmem:[#allocation71_spill] sm:$0xff]  ;;  %v6729_v57 = vadd.f32 %v27250_v49, %v27249_v13  ;;  %v27251_v13 = vld [vmem:[#allocation5_spill] sm:$0xff] }
0x1766   :  { %v20512_v43 = vpack.i.bf16 %v6726_v53, %v6725_v39  ;;  %v20522_v4 = vpack.i.bf16 %v6730_v63, %v6729_v57  ;;  %v27252_v57 = vld [vmem:[#allocation6_spill] sm:$0xff] }
0x1767   :  { %6739 = vrot.lane.b32.xlu0 %v23411_v42, %s21406_s28  ;;  %6741 = vrot.lane.b32.xlu1 %v23434_v51, %s21406_s28  ;;  %v27243_v42 = vld [vmem:[#allocation72_spill] sm:$0xff]  ;;  %v27244_v51 = vld [vmem:[#allocation17_spill] sm:$0xff] }
0x1768   :  { %v6728_v18 = vadd.f32 %v27244_v51, %v27243_v42 }
0x176b   :  { %6743 = vrot.lane.b32.xlu0 %v23440_v47, %s21406_s28  ;;  %6745 = vrot.lane.b32.xlu1 %v27242_v2, %s21406_s28  ;;  %v20517_v47 = vpack.i.bf16 %v6728_v18, %v6727_v28  ;;  %v19256_v18 = vpack.c.bf16 %v20501_v25, %v20500_v3 }
0x176f   :  { %20508 = vrot.lane.b32.xlu0 %v20507_v33, %s21406_s28  ;;  %20513 = vrot.lane.b32.xlu1 %v20512_v43, %s21406_s28 }
0x1773   :  { %20518 = vrot.lane.b32.xlu0 %v20517_v47, %s21406_s28  ;;  %20523 = vrot.lane.b32.xlu1 %v20522_v4, %s21406_s28 }
0x1799   :  { %v6398_v11 = vpop.xlane.xlu0 %6397 }
0x179a   :  { %v6395_v9 = vpop.xlane.xlu1 %6394 }
0x179b   :  { %21035 = vrcp.f32 %v6395_v9 }
0x179c   :  { %21037 = vrcp.f32 %v6398_v11 }
0x179d   :  { %v20494_v19 = vpop.permute.xlu0 %20493 }
0x179e   :  { %v20496_v53 = vunpack.i.h.bf16 %v20494_v19  ;;  %v20495_v20 = vunpack.i.l.bf16 %v20494_v19  ;;  %v20504_v39 = vpop.permute.xlu1 %20503 }
0x179f   :  { %v20506_v42 = vunpack.i.h.bf16 %v20504_v39  ;;  %v20505_v61 = vunpack.i.l.bf16 %v20504_v39 }
0x17a0   :  { %v19252_v2 = vpack.c.bf16 %v20496_v53, %v20495_v20 }
0x17a1   :  { %v19260_v33 = vpack.c.bf16 %v20506_v42, %v20505_v61 }
0x17a2   :  { %19253 = vmatprep.subr.bf16.mxu1 %v19252_v2 }
0x17a3   :  { %19255 = vmatpush3.bf16.msra.mxu1 %v19252_v2 }
0x17a4   :  { %19257 = vmatprep.subr.bf16.mxu1 %v19256_v18 }
0x17a5   :  { %v21036_v63 = vpop.eup %21035 }
0x17a6   :  { %v6425_v43 = vmul.f32 %v21036_v63, %v24159_v58  ;;  %v21038_v54 = vpop.eup %21037  ;;  %v27253_v58 = vld [vmem:[#allocation7_spill] sm:$0xff] }
0x17a7   :  { %19259 = vmatpush3.bf16.msra.mxu1 %v19256_v18  ;;  %v6426_v28 = vmul.f32 %v21038_v54, %v24157_v29  ;;  %v27254_v29 = vld [vmem:[#allocation8_spill] sm:$0xff] }
0x17a8   :  { %19261 = vmatprep.subr.bf16.mxu1 %v19260_v33  ;;  %17484 = vmatprep.mubr.msk.f32.mxu1 %vm1138_vm4, %v6425_v43 }
0x17ab   :  { %19263 = vmatpush3.bf16.msra.mxu1 %v19260_v33 }
0x17ac   :  { %19270 = vmatprep.subr.msk.bf16.mxu1 %vm21544_vm2, %v27251_v13 }
0x17ae   :  { %17485 = vmatmul.mubr.msk.f32.vlgmr.msra.gmra.mrb[124].mxu1 %vm1138_vm4, %v6426_v28 }
0x17b4   :  { %19273 = vmatpush3.bf16.xpose.msk.msra.mxu1 %vm21544_vm2, %v27251_v13 }
0x17b5   :  { %19276 = vmatprep.subr.msk.bf16.mxu1 %vm21544_vm2, %v27252_v57 }
0x17bc   :  { %19279 = vmatpush3.bf16.xpose.msk.msra.mxu1 %vm21544_vm2, %v27252_v57 }
0x17bd   :  { %19282 = vmatprep.subr.msk.bf16.mxu1 %vm21544_vm2, %v27253_v58 }
0x17c4   :  { %19285 = vmatpush3.bf16.xpose.msk.msra.mxu1 %vm21544_vm2, %v27253_v58 }
0x17c5   :  { %19288 = vmatprep.subr.msk.bf16.mxu1 %vm21544_vm2, %v27254_v29 }
0x17cc   :  { %19291 = vmatpush3.bf16.xpose.msk.msra.mxu1 %vm21544_vm2, %v27254_v29 }
0x17ce   :  { %v6401_v47 = vpop.xlane.xlu0 %6400 }
0x17cf   :  { %21039 = vrcp.f32 %v6401_v47  ;;  %v6404_v4 = vpop.xlane.xlu1 %6403 }
0x17d0   :  { %21041 = vrcp.f32 %v6404_v4 }
0x17d2   :  { %v6407_v6 = vpop.xlane.xlu0 %6406 }
0x17d3   :  { %21043 = vrcp.f32 %v6407_v6 }
0x17d6   :  { %v6410_v11 = vpop.xlane.xlu0 %6409 }
0x17d7   :  { %21045 = vrcp.f32 %v6410_v11  ;;  %v6413_v9 = vpop.xlane.xlu1 %6412 }
0x17d8   :  { %21047 = vrcp.f32 %v6413_v9 }
0x17d9   :  { %v21040_v19 = vpop.eup %21039 }
0x17da   :  { %v21042_v25 = vpop.eup %21041  ;;  %v6416_v3 = vpop.xlane.xlu0 %6415  ;;  %v6427_v53 = vmul.f32 %v21040_v19, %v24169_v7 }
0x17db   :  { %21049 = vrcp.f32 %v6416_v3  ;;  %v6428_v20 = vmul.f32 %v21042_v25, %v24171_v32  ;;  %v24262_v42 = vpop.permute.xlu1 %6731 }
0x17dc   :  { %17487 = vmatprep.mubr.msk.f32.mxu1 %vm1138_vm4, %v6427_v53 }
0x17dd   :  { %v21044_v39 = vpop.eup %21043  ;;  %17488 = vmatmul.mubr.msk.f32.gmra.mrb[126].mxu1 %vm1138_vm4, %v6428_v20 }
0x17de   :  { %v6429_v2 = vmul.f32 %v21044_v39, %v24175_v12  ;;  %v24272_v12 = vpop.permute.xlu0 %6733 }
0x17df   :  { %v24268_v33 = vpop.permute.xlu1 %6735 }
0x17e0   :  { %17490 = vmatprep.mubr.msk.f32.mxu1 %vm1138_vm4, %v6429_v2 }
0x17e1   :  { %v21046_v61 = vpop.eup %21045 }
0x17e2   :  { %v21048_v18 = vpop.eup %21047  ;;  %v6430_v63 = vmul.f32 %v21046_v61, %v24181_v0  ;;  %v24283_v0 = vpop.permute.xlu0 %6739 }
0x17e3   :  { %v6431_v7 = vmul.f32 %v21048_v18, %v24183_v45  ;;  %v24277_v54 = vpop.permute.xlu1 %6737 }
0x17e4   :  { %17491 = vmatmul.mubr.msk.f32.gmra.mrb[128].mxu1 %vm1138_vm4, %v6430_v63 }
0x17e5   :  { %v21050_v32 = vpop.eup %21049  ;;  %17493 = vmatprep.mubr.msk.f32.mxu1 %vm1138_vm4, %v6431_v7 }
0x17e6   :  { %v6432_v43 = vmul.f32 %v21050_v32, %v24187_v60  ;;  %v24291_v60 = vpop.permute.xlu0 %6743 }
0x17e7   :  { %v24287_v45 = vpop.permute.xlu1 %6741 }
0x17e8   :  { %17494 = vmatmul.mubr.msk.f32.gmra.mrb[130].mxu1 %vm1138_vm4, %v6432_v43 }
0x17e9   :  { %17528 = vmatprep.mubr.msk.f32.mxu1 %vm976_vm1, %v24262_v42 }
0x17ea   :  { %v20509_v6 = vpop.permute.xlu0 %20508 }
0x17eb   :  { %v24297_v28 = vpop.permute.xlu1 %6745  ;;  %v20511_v11 = vunpack.i.h.bf16 %v20509_v6  ;;  %v20510_v9 = vunpack.i.l.bf16 %v20509_v6 }
0x17ec   :  { %17529 = vmatmul.mubr.msk.f32.vlgmr.msra.gmra.mrb[132].mxu1 %vm976_vm1, %v24272_v12 }
0x17ed   :  { %17531 = vmatprep.mubr.msk.f32.mxu1 %vm976_vm1, %v24268_v33  ;;  %v19308_v19 = vpack.c.bf16 %v20511_v11, %v20510_v9 }
0x17ee   :  { %v20519_v9 = vpop.permute.xlu0 %20518 }
0x17ef   :  { %v20514_v61 = vpop.permute.xlu1 %20513 }
0x17f0   :  { %17532 = vmatmul.mubr.msk.f32.gmra.mrb[134].mxu1 %vm976_vm1, %v24277_v54  ;;  %v20516_v63 = vunpack.i.h.bf16 %v20514_v61  ;;  %v20515_v7 = vunpack.i.l.bf16 %v20514_v61 }
0x17f1   :  { %17534 = vmatprep.mubr.msk.f32.mxu1 %vm976_vm1, %v24283_v0 }
0x17f2   :  { %v19314_v6 = vpack.c.bf16 %v20516_v63, %v20515_v7 }
0x17f4   :  { %17535 = vmatmul.mubr.msk.f32.gmra.mrb[136].mxu1 %vm976_vm1, %v24287_v45 }
0x17f5   :  { %17537 = vmatprep.mubr.msk.f32.mxu1 %vm976_vm1, %v24291_v60 }
0x17f8   :  { %17538 = vmatmul.mubr.msk.f32.gmra.mrb[138].mxu1 %vm976_vm1, %v24297_v28 }
0x1881   :  { %v17486_v47 = vpop.f32.mrb[124].mxu1 }
0x1882   :  { %v6547_v4 = vpop.f32.mrb[125].mxu1 }
0x1883   :  { %17500 = vmatprep.mubr.msk.f32.mxu0 %vm976_vm1, %v6547_v4 }
0x1884   :  { %17501 = vmatmul.mubr.msk.f32.vlgmr.msra.gmra.mrb[100].mxu0 %vm976_vm1, %v17486_v47 }
0x1885   :  { %19295 = vmatpush3.bf16.msk.msra.mxu0 %vm21872_vm5, %v27228_v27 }
0x1886   :  { %19297 = vmatprep.subr.msk.bf16.mxu0 %vm21957_vm8, %v27228_v27 }
0x1889   :  { %19299 = vmatpush3.bf16.msk.msra.mxu0 %vm21957_vm8, %v27228_v27 }
0x188a   :  { %19301 = vmatprep.subr.msk.bf16.mxu0 %vm21985_vm11, %v27228_v27 }
0x188d   :  { %19303 = vmatpush3.bf16.msk.msra.mxu0 %vm21985_vm11, %v27228_v27 }
0x188e   :  { %19305 = vmatprep.subr.msk.bf16.mxu0 %vm22009_vm14, %v27228_v27 }
0x1891   :  { %19307 = vmatpush3.bf16.msk.msra.mxu0 %vm22009_vm14, %v27228_v27 }
0x1892   :  { %19310 = vmatprep.subr.msk.bf16.mxu0 %vm21544_vm2, %v19308_v19 }
0x18b0   :  { %v17489_v25 = vpop.f32.mrb[126].mxu1 }
0x18b1   :  { %v6557_v3 = vpop.f32.mrb[127].mxu1 }
0x18b2   :  { %17503 = vmatprep.mubr.msk.f32.mxu0 %vm976_vm1, %v6557_v3 }
0x18b3   :  { %17504 = vmatmul.mubr.msk.f32.gmra.mrb[102].mxu0 %vm976_vm1, %v17489_v25 }
0x18b7   :  { %v17492_v53 = vpop.f32.mrb[128].mxu1 }
0x18b8   :  { %v6567_v20 = vpop.f32.mrb[129].mxu1 }
0x18b9   :  { %17506 = vmatprep.mubr.msk.f32.mxu0 %vm976_vm1, %v6567_v20  ;;  %v20521_v20 = vunpack.i.h.bf16 %v20519_v9 }
0x18ba   :  { %17507 = vmatmul.mubr.msk.f32.gmra.mrb[104].mxu0 %vm976_vm1, %v17492_v53 }
0x18bb   :  { %v17495_v39 = vpop.f32.mrb[130].mxu1 }
0x18bc   :  { %v6577_v2 = vpop.f32.mrb[131].mxu1 }
0x18bd   :  { %17509 = vmatprep.mubr.msk.f32.mxu0 %vm976_vm1, %v6577_v2 }
0x18be   :  { %17510 = vmatmul.mubr.msk.f32.gmra.mrb[106].mxu0 %vm976_vm1, %v17495_v39  ;;  %v20520_v39 = vunpack.i.l.bf16 %v20519_v9 }
0x18bf   :  { %v17530_v18 = vpop.f32.mrb[132].mxu1 }
0x18c0   :  { %v6829_v32 = vpop.f32.mrb[133].mxu1  ;;  %v6869_v47 = vmul.f32 %v17530_v18, %v22141_v62 }
0x18c1   :  { %v6868_v43 = vmul.f32 %v22139_v56, %v6829_v32  ;;  %v20524_v32 = vpop.permute.xlu1 %20523 }
0x18c3   :  { %v17533_v4 = vpop.f32.mrb[134].mxu1  ;;  %17556 = vmatprep.mubr.msk.f32.mxu0 %vm1138_vm4, %v6868_v43 }
0x18c4   :  { %v6839_v11 = vpop.f32.mrb[135].mxu1  ;;  %17557 = vmatmul.mubr.msk.f32.vlgmr.msra.gmra.mrb[116].mxu0 %vm1138_vm4, %v6869_v47  ;;  %v6871_v3 = vmul.f32 %v17533_v4, %v27236_v37  ;;  %v20526_v4 = vunpack.i.h.bf16 %v20524_v32 }
0x18c5   :  { %v6870_v25 = vmul.f32 %v27235_v50, %v6839_v11  ;;  %19313 = vmatpush3.bf16.xpose.msk.msra.mxu0 %vm21544_vm2, %v19308_v19  ;;  %v19320_v19 = vpack.c.bf16 %v20521_v20, %v20520_v39  ;;  %v20525_v11 = vunpack.i.l.bf16 %v20524_v32 }
0x18c6   :  { %19316 = vmatprep.subr.msk.bf16.mxu0 %vm21544_vm2, %v19314_v6 }
0x18c7   :  { %v17536_v53 = vpop.f32.mrb[136].mxu1  ;;  %17559 = vmatprep.mubr.msk.f32.mxu0 %vm1138_vm4, %v6870_v25  ;;  %v19326_v9 = vpack.c.bf16 %v20526_v4, %v20525_v11 }
0x18c8   :  { %v6849_v2 = vpop.f32.mrb[137].mxu1  ;;  %17560 = vmatmul.mubr.msk.f32.gmra.mrb[118].mxu0 %vm1138_vm4, %v6871_v3  ;;  %v6873_v18 = vmul.f32 %v17536_v53, %v22191_v22 }
0x18c9   :  { %v6872_v61 = vmul.f32 %v22186_v1, %v6849_v2 }
0x18cb   :  { %v17539_v63 = vpop.f32.mrb[138].mxu1  ;;  %17562 = vmatprep.mubr.msk.f32.mxu0 %vm1138_vm4, %v6872_v61 }
0x18cc   :  { %v6859_v7 = vpop.f32.mrb[139].mxu1  ;;  %17563 = vmatmul.mubr.msk.f32.gmra.mrb[120].mxu0 %vm1138_vm4, %v6873_v18  ;;  %v6875_v47 = vmul.f32 %v17539_v63, %v22207_v31 }
0x18cd   :  { %v6874_v43 = vmul.f32 %v22204_v24, %v6859_v7  ;;  %19319 = vmatpush3.bf16.xpose.msk.msra.mxu0 %vm21544_vm2, %v19314_v6  ;;  %v27255_v6 = vld [vmem:[#allocation83_spill] sm:$0xff] }
0x18ce   :  { %19322 = vmatprep.subr.msk.bf16.mxu0 %vm21544_vm2, %v19320_v19 }
0x18cf   :  { %17565 = vmatprep.mubr.msk.f32.mxu0 %vm1138_vm4, %v6874_v43 }
0x18d0   :  { %17566 = vmatmul.mubr.msk.f32.gmra.mrb[122].mxu0 %vm1138_vm4, %v6875_v47 }
0x18d1   :  { %17584 = vmatprep.mubr.msk.f32.mxu0 %vm976_vm1, %v24262_v42 }
0x18d5   :  { %19325 = vmatpush3.bf16.xpose.msk.msra.mxu0 %vm21544_vm2, %v19320_v19 }
0x18d6   :  { %19328 = vmatprep.subr.msk.bf16.mxu0 %vm21544_vm2, %v19326_v9 }
0x18dd   :  { %19331 = vmatpush3.bf16.xpose.msk.msra.mxu0 %vm21544_vm2, %v19326_v9 }
0x18de   :  { %19349 = vmatprep.subr.bf16.mxu0 %v27255_v6 }
0x18e4   :  { %17585 = vmatmul.mubr.msk.f32.vlgmr.msra.gmra.mrb[116].mxu0 %vm976_vm1, %v24272_v12 }
0x18e5   :  { %17587 = vmatprep.mubr.msk.f32.mxu0 %vm976_vm1, %v24268_v33  ;;  %19351 = vmatpush3.bf16.msra.mxu0 %v27255_v6 }
0x18e8   :  { %17588 = vmatmul.mubr.msk.f32.gmra.mrb[118].mxu0 %vm976_vm1, %v24277_v54 }
0x18e9   :  { %17590 = vmatprep.mubr.msk.f32.mxu0 %vm976_vm1, %v24283_v0 }
0x18ec   :  { %17591 = vmatmul.mubr.msk.f32.gmra.mrb[120].mxu0 %vm976_vm1, %v24287_v45 }
0x18ed   :  { %17593 = vmatprep.mubr.msk.f32.mxu0 %vm976_vm1, %v24291_v60 }
0x18f0   :  { %17594 = vmatmul.mubr.msk.f32.gmra.mrb[122].mxu0 %vm976_vm1, %v24297_v28 }
0x19b7   :  { %v17586_v42 = vpop.f32.mrb[116].mxu0 }
0x19b8   :  { %v7151_v33 = vsel %vm22278_vm15, %v17586_v42, -1e+09  ;;  %v7111_v12 = vpop.f32.mrb[117].mxu0 }
0x19b9   :  { %v7161_v25 = vsel %vm1138_vm4, %v7151_v33, -inf  ;;  %v7150_v54 = vsel %vm22283_vm3, %v7111_v12, -1e+09 }
0x19ba   :  { %v7158_v0 = vsel %vm1138_vm4, %v7150_v54, -inf  ;;  %7162 = vmax.xlane.f32.xlu1 %v7161_v25 }
0x19bb   :  { %7159 = vmax.xlane.f32.xlu0 %v7158_v0  ;;  %v17589_v45 = vpop.f32.mrb[118].mxu0 }
0x19bc   :  { %v7121_v3 = vpop.f32.mrb[119].mxu0  ;;  %v7153_v53 = vsel %vm22303_vm7, %v17589_v45, -1e+09 }
0x19bd   :  { %v7152_v60 = vsel %vm22294_vm6, %v7121_v3, -1e+09  ;;  %v7167_v61 = vsel %vm1138_vm4, %v7153_v53, -inf }
0x19be   :  { %v7164_v28 = vsel %vm1138_vm4, %v7152_v60, -inf }
0x19bf   :  { %7165 = vmax.xlane.f32.xlu0 %v7164_v28  ;;  %v17592_v20 = vpop.f32.mrb[120].mxu0 }
0x19c0   :  { %v7131_v39 = vpop.f32.mrb[121].mxu0  ;;  %v7155_v63 = vsel %vm22321_vm10, %v17592_v20, -1e+09 }
0x19c1   :  { %v7154_v2 = vsel %vm22314_vm9, %v7131_v39, -1e+09  ;;  %v7173_v32 = vsel %vm1138_vm4, %v7155_v63, -inf }
0x19c2   :  { %v7170_v18 = vsel %vm1138_vm4, %v7154_v2, -inf }
0x19c3   :  { %7168 = vmax.xlane.f32.xlu0 %v7167_v61  ;;  %7171 = vmax.xlane.f32.xlu1 %v7170_v18  ;;  %v17595_v19 = vpop.f32.mrb[122].mxu0 }
0x19c4   :  { %v7141_v7 = vpop.f32.mrb[123].mxu0  ;;  %v7157_v43 = vsel %vm22331_vm12, %v17595_v19, -1e+09 }
0x19c5   :  { %v7179_v47 = vsel %vm1138_vm4, %v7157_v43, -inf  ;;  %v7156_v4 = vsel %vm22346_vm13, %v7141_v7, -1e+09 }
0x19c6   :  { %v7176_v11 = vsel %vm1138_vm4, %v7156_v4, -inf }
0x19c7   :  { %7174 = vmax.xlane.f32.xlu0 %v7173_v32 }
0x19cb   :  { %7180 = vmax.xlane.f32.xlu0 %v7179_v47 }
0x19d4   :  { %20528 = vrot.lane.b32.xlu1 %v27214_v35, %s21402_s15 }
0x19f8   :  { %7177 = vmax.xlane.f32.xlu1 %v7176_v11 }
0x1a09   :  { %20538 = vrot.lane.b32.xlu1 %v27215_v14, %s21402_s15 }
0x1a47   :  { %v7163_v9 = vpop.xlane.xlu1 %7162 }
0x1a48   :  { %v7183_v42 = vsub.f32 %v7151_v33, %v7163_v9  ;;  %v7160_v12 = vpop.xlane.xlu0 %7159 }
0x1a49   :  { %v7182_v25 = vsub.f32 %v7150_v54, %v7160_v12 }
0x1a4a   :  { %v7192_v0 = vmul.f32 1.442695, %v7183_v42 }
0x1a4b   :  { %v7190_v45 = vmul.f32 1.442695, %v7182_v25 }
0x1a4c   :  { %21051 = vpow2.f32 %v7192_v0  ;;  %v7166_v54 = vpop.xlane.xlu0 %7165 }
0x1a4d   :  { %21053 = vpow2.f32 %v7190_v45  ;;  %v7184_v7 = vsub.f32 %v7152_v60, %v7166_v54 }
0x1a4f   :  { %v7194_v11 = vmul.f32 1.442695, %v7184_v7 }
0x1a50   :  { %v7172_v3 = vpop.xlane.xlu1 %7171  ;;  %v7169_v19 = vpop.xlane.xlu0 %7168 }
0x1a51   :  { %v7185_v32 = vsub.f32 %v7153_v53, %v7169_v19  ;;  %v7186_v9 = vsub.f32 %v7154_v2, %v7172_v3  ;;  %21055 = vpow2.f32 %v7194_v11 }
0x1a53   :  { %v7196_v42 = vmul.f32 1.442695, %v7185_v32  ;;  %v7198_v12 = vmul.f32 1.442695, %v7186_v9 }
0x1a54   :  { %v20529_v28 = vpop.permute.xlu1 %20528  ;;  %v7175_v47 = vpop.xlane.xlu0 %7174 }
0x1a55   :  { %v20531_v35 = vunpack.i.h.bf16 %v20529_v28  ;;  %v20530_v20 = vunpack.i.l.bf16 %v20529_v28  ;;  %v7187_v25 = vsub.f32 %v7155_v63, %v7175_v47  ;;  %21057 = vpow2.f32 %v7196_v42 }
0x1a56   :  { %v24408_v39 = vpop.eup %21051  ;;  %21059 = vpow2.f32 %v7198_v12 }
0x1a57   :  { %v24410_v61 = vpop.eup %21053  ;;  %v7209_v18 = vsel %vm1138_vm4, %v24408_v39, 0.0  ;;  %v19332_v14 = vpack.c.bf16 %v20531_v35, %v20530_v20  ;;  %v7200_v45 = vmul.f32 1.442695, %v7187_v25 }
0x1a58   :  { %7210 = vadd.xlane.f32.xlu0 %v7209_v18  ;;  %v7206_v33 = vsel %vm1138_vm4, %v24410_v61, 0.0  ;;  %v7181_v0 = vpop.xlane.xlu0 %7180 }
0x1a59   :  { %19333 = vmatprep.subr.bf16.mxu1 %v19332_v14  ;;  %7207 = vadd.xlane.f32.xlu1 %v7206_v33  ;;  %v7189_v28 = vsub.f32 %v7157_v43, %v7181_v0  ;;  %21061 = vpow2.f32 %v7200_v45 }
0x1a5a   :  { %19335 = vmatpush3.bf16.msra.mxu1 %v19332_v14 }
0x1a5b   :  { %v7204_v20 = vmul.f32 1.442695, %v7189_v28  ;;  %v24420_v18 = vpop.eup %21055 }
0x1a5c   :  { %v7212_v53 = vsel %vm1138_vm4, %v24420_v18, 0.0 }
0x1a5f   :  { %v24422_v60 = vpop.eup %21057 }
0x1a60   :  { %v24426_v2 = vpop.eup %21059  ;;  %v7215_v63 = vsel %vm1138_vm4, %v24422_v60, 0.0 }
0x1a61   :  { %v7218_v43 = vsel %vm1138_vm4, %v24426_v2, 0.0 }
0x1a6a   :  { %20543 = vrot.lane.b32.xlu1 %v27216_v55, %s21402_s15 }
0x1a6e   :  { %20533 = vrot.lane.b32.xlu0 %v27217_v10, %s21402_s15 }
0x1a85   :  { %v7178_v55 = vpop.xlane.xlu1 %7177 }
0x1a86   :  { %v7188_v35 = vsub.f32 %v7156_v4, %v7178_v55  ;;  %v24432_v4 = vpop.eup %21061 }
0x1a87   :  { %v7221_v14 = vsel %vm1138_vm4, %v24432_v4, 0.0 }
0x1a88   :  { %v7202_v10 = vmul.f32 1.442695, %v7188_v35 }
0x1a89   :  { %v20539_v7 = vpop.permute.xlu1 %20538 }
0x1a8a   :  { %21063 = vpow2.f32 %v7202_v10  ;;  %v20541_v9 = vunpack.i.h.bf16 %v20539_v7  ;;  %v20540_v42 = vunpack.i.l.bf16 %v20539_v7 }
0x1a8b   :  { %21065 = vpow2.f32 %v7204_v20 }
0x1a8c   :  { %v19340_v35 = vpack.c.bf16 %v20541_v9, %v20540_v42 }
0x1a8d   :  { %7213 = vadd.xlane.f32.xlu0 %v7212_v53 }
0x1a8e   :  { %7216 = vadd.xlane.f32.xlu1 %v7215_v63 }
0x1a91   :  { %7219 = vadd.xlane.f32.xlu0 %v7218_v43 }
0x1a94   :  { %v24434_v3 = vpop.eup %21063 }
0x1a95   :  { %v24438_v33 = vpop.eup %21065  ;;  %7222 = vadd.xlane.f32.xlu0 %v7221_v14  ;;  %v7224_v54 = vsel %vm1138_vm4, %v24434_v3, 0.0 }
0x1a96   :  { %7225 = vadd.xlane.f32.xlu1 %v7224_v54  ;;  %v7227_v19 = vsel %vm1138_vm4, %v24438_v33, 0.0 }
0x1a99   :  { %7228 = vadd.xlane.f32.xlu0 %v7227_v19 }
0x1ae5   :  { %v7211_v32 = vpop.xlane.xlu0 %7210 }
0x1ae6   :  { %v7208_v47 = vpop.xlane.xlu1 %7207 }
0x1ae7   :  { %21067 = vrcp.f32 %v7208_v47 }
0x1ae8   :  { %21069 = vrcp.f32 %v7211_v32 }
0x1ae9   :  { %v20534_v11 = vpop.permute.xlu0 %20533 }
0x1aea   :  { %v20536_v12 = vunpack.i.h.bf16 %v20534_v11  ;;  %v20535_v25 = vunpack.i.l.bf16 %v20534_v11  ;;  %v20544_v0 = vpop.permute.xlu1 %20543 }
0x1aeb   :  { %v20546_v28 = vunpack.i.h.bf16 %v20544_v0  ;;  %v20545_v55 = vunpack.i.l.bf16 %v20544_v0 }
0x1aec   :  { %v19336_v45 = vpack.c.bf16 %v20536_v12, %v20535_v25 }
0x1aed   :  { %v19344_v10 = vpack.c.bf16 %v20546_v28, %v20545_v55  ;;  %v21352_v55 = vld [vmem:[%s26814_s3] ss:$0 sm:$0xff] }
0x1aee   :  { %19337 = vmatprep.subr.bf16.mxu1 %v19336_v45 }
0x1aef   :  { %19339 = vmatpush3.bf16.msra.mxu1 %v19336_v45 }
0x1af0   :  { %19341 = vmatprep.subr.bf16.mxu1 %v19340_v35 }
0x1af1   :  { %v21068_v20 = vpop.eup %21067 }
0x1af2   :  { %v7238_v53 = vmul.f32 %v21068_v20, %v24410_v61  ;;  %v21070_v63 = vpop.eup %21069  ;;  %v27258_v20 = vld [vmem:[#allocation53_spill] sm:$0xff] }
0x1af3   :  { %19343 = vmatpush3.bf16.msra.mxu1 %v19340_v35  ;;  %v7239_v43 = vmul.f32 %v21070_v63, %v24408_v39  ;;  %v27260_v63 = vld [vmem:[#allocation11_spill] sm:$0xff] }
0x1af4   :  { %19345 = vmatprep.subr.bf16.mxu1 %v19344_v10  ;;  %17612 = vmatprep.mubr.msk.f32.mxu1 %vm1138_vm4, %v7238_v53 }
0x1af7   :  { %19347 = vmatpush3.bf16.msra.mxu1 %v19344_v10  ;;  %v24499_v10 = vadd.f32 %v21352_v55, %v27258_v20 }
0x1af8   :  { %19354 = vmatprep.subr.msk.bf16.mxu1 %vm21544_vm2, %v27251_v13 }
0x1afa   :  { %17613 = vmatmul.mubr.msk.f32.vlgmr.msra.gmra.mrb[140].mxu1 %vm1138_vm4, %v7239_v43  ;;  %v24515_v43 = vadd.f32 %v21352_v55, %v27260_v63  ;;  %v27267_v63 = vld [vmem:[#allocation34_spill] sm:$0xff] }
0x1b00   :  { %19357 = vmatpush3.bf16.xpose.msk.msra.mxu1 %vm21544_vm2, %v27251_v13 }
0x1b01   :  { %19360 = vmatprep.subr.msk.bf16.mxu1 %vm21544_vm2, %v27252_v57 }
0x1b08   :  { %19363 = vmatpush3.bf16.xpose.msk.msra.mxu1 %vm21544_vm2, %v27252_v57 }
0x1b09   :  { %19366 = vmatprep.subr.msk.bf16.mxu1 %vm21544_vm2, %v27253_v58 }
0x1b10   :  { %19369 = vmatpush3.bf16.xpose.msk.msra.mxu1 %vm21544_vm2, %v27253_v58 }
0x1b11   :  { %19372 = vmatprep.subr.msk.bf16.mxu1 %vm21544_vm2, %v27254_v29 }
0x1b18   :  { %19375 = vmatpush3.bf16.xpose.msk.msra.mxu1 %vm21544_vm2, %v27254_v29 }
0x1b19   :  { %19377 = vmatprep.subr.msk.bf16.mxu1 %vm21872_vm5, %v27228_v27 }
0x1b1a   :  { %v7214_v39 = vpop.xlane.xlu0 %7213 }
0x1b1b   :  { %21071 = vrcp.f32 %v7214_v39  ;;  %v7217_v61 = vpop.xlane.xlu1 %7216  ;;  %v24520_v39 = vld [vmem:[%s26816_s5] ss:$0 sm:$0xff] }
0x1b1c   :  { %21073 = vrcp.f32 %v7217_v61  ;;  %v27261_v61 = vld [vmem:[#allocation30_spill] sm:$0xff] }
0x1b1e   :  { %v7220_v14 = vpop.xlane.xlu0 %7219 }
0x1b1f   :  { %21075 = vrcp.f32 %v7220_v14  ;;  %v24524_v14 = vadd.f32 %v24520_v39, %v27261_v61  ;;  %v24582_v61 = vadd.f32 %v24520_v39, %v27267_v63 }
0x1b22   :  { %v7223_v54 = vpop.xlane.xlu0 %7222 }
0x1b23   :  { %21077 = vrcp.f32 %v7223_v54  ;;  %v7226_v19 = vpop.xlane.xlu1 %7225  ;;  %v27262_v54 = vld [vmem:[#allocation32_spill] sm:$0xff] }
0x1b24   :  { %21079 = vrcp.f32 %v7226_v19  ;;  %v24528_v19 = vadd.f32 %v24520_v39, %v27262_v54  ;;  %v27268_v54 = vld [vmem:[#allocation36_spill] sm:$0xff] }
0x1b25   :  { %v21072_v7 = vpop.eup %21071 }
0x1b26   :  { %v21074_v32 = vpop.eup %21073  ;;  %v7229_v47 = vpop.xlane.xlu0 %7228  ;;  %v7240_v11 = vmul.f32 %v21072_v7, %v24420_v18  ;;  %v27263_v7 = vld [vmem:[#allocation10_spill] sm:$0xff] }
0x1b27   :  { %21081 = vrcp.f32 %v7229_v47  ;;  %v7241_v9 = vmul.f32 %v21074_v32, %v24422_v60  ;;  %v24538_v32 = vadd.f32 %v21352_v55, %v27263_v7  ;;  %v27264_v47 = vld [vmem:[#allocation13_spill] sm:$0xff]  ;;  %v24586_v7 = vadd.f32 %v24520_v39, %v27268_v54 }
0x1b28   :  { %17615 = vmatprep.mubr.msk.f32.mxu1 %vm1138_vm4, %v7240_v11  ;;  %v24544_v11 = vadd.f32 %v21352_v55, %v27264_v47 }
0x1b29   :  { %v21076_v42 = vpop.eup %21075  ;;  %17616 = vmatmul.mubr.msk.f32.gmra.mrb[142].mxu1 %vm1138_vm4, %v7241_v9  ;;  %v21354_v9 = vld [vmem:[%s26820_s9] sm:$0xff] }
0x1b2a   :  { %v7242_v12 = vmul.f32 %v21076_v42, %v24426_v2  ;;  %v27256_v2 = vld [vmem:[#allocation41_spill] sm:$0xff]  ;;  %v7585_v42 = vadd.f32 %v21354_v9, %v24528_v19 }
0x1b2b   :  { %v24490_v35 = vadd.f32 %v21352_v55, %v27256_v2 }
0x1b2c   :  { %17618 = vmatprep.mubr.msk.f32.mxu1 %vm1138_vm4, %v7242_v12  ;;  %v21355_v12 = vld [vmem:[%s26820_s9 + $0x8] sm:$0xff] }
0x1b2d   :  { %v21078_v25 = vpop.eup %21077 }
0x1b2e   :  { %v21080_v0 = vpop.eup %21079  ;;  %v7243_v45 = vmul.f32 %v21078_v25, %v24432_v4  ;;  %v27257_v4 = vld [vmem:[#allocation39_spill] sm:$0xff]  ;;  %v7586_v25 = vadd.f32 %v21355_v12, %v24524_v14 }
0x1b2f   :  { %v7244_v28 = vmul.f32 %v21080_v0, %v24434_v3  ;;  %v24496_v3 = vadd.f32 %v21352_v55, %v27257_v4  ;;  %v27265_v0 = vld [vmem:[#allocation12_spill] sm:$0xff]  ;;  %v21356_v12 = vld [vmem:[%s26820_s9 + $0x10] sm:$0xff] }
0x1b30   :  { %17619 = vmatmul.mubr.msk.f32.gmra.mrb[144].mxu1 %vm1138_vm4, %v7243_v45  ;;  %v24562_v45 = vadd.f32 %v21352_v55, %v27265_v0  ;;  %v21357_v0 = vld [vmem:[%s26820_s9 + $0x18] sm:$0xff] }
0x1b31   :  { %v21082_v18 = vpop.eup %21081  ;;  %17621 = vmatprep.mubr.msk.f32.mxu1 %vm1138_vm4, %v7244_v28  ;;  %v19392_v28 = vpack.c.bf16 %v7586_v25, %v7585_v42  ;;  %v7587_v25 = vadd.f32 %v21356_v12, %v24586_v7 }
0x1b32   :  { %v7245_v60 = vmul.f32 %v21082_v18, %v24438_v33  ;;  %v27259_v33 = vld [vmem:[#allocation52_spill] sm:$0xff]  ;;  %27266 = vst [vmem:[#allocation31_spill] sm:$0xff] %v24562_v45 }
0x1b33   :  { %v24509_v53 = vadd.f32 %v21352_v55, %v27259_v33 }
0x1b34   :  { %17622 = vmatmul.mubr.msk.f32.gmra.mrb[146].mxu1 %vm1138_vm4, %v7245_v60 }
0x1b35   :  { %17656 = vmatprep.mubr.msk.f32.mxu1 %vm976_vm1, %v24490_v35 }
0x1b38   :  { %17657 = vmatmul.mubr.msk.f32.vlgmr.msra.gmra.mrb[148].mxu1 %vm976_vm1, %v24496_v3 }
0x1b39   :  { %19379 = vmatpush3.bf16.msk.msra.mxu1 %vm21872_vm5, %v27228_v27  ;;  %17659 = vmatprep.mubr.msk.f32.mxu1 %vm976_vm1, %v24499_v10 }
0x1b3a   :  { %19381 = vmatprep.subr.msk.bf16.mxu1 %vm21957_vm8, %v27228_v27 }
0x1b3c   :  { %17660 = vmatmul.mubr.msk.f32.gmra.mrb[150].mxu1 %vm976_vm1, %v24509_v53 }
0x1b3d   :  { %19383 = vmatpush3.bf16.msk.msra.mxu1 %vm21957_vm8, %v27228_v27  ;;  %17662 = vmatprep.mubr.msk.f32.mxu1 %vm976_vm1, %v24515_v43 }
0x1b3e   :  { %19385 = vmatprep.subr.msk.bf16.mxu1 %vm21985_vm11, %v27228_v27 }
0x1b40   :  { %17663 = vmatmul.mubr.msk.f32.gmra.mrb[152].mxu1 %vm976_vm1, %v24538_v32 }
0x1b41   :  { %19387 = vmatpush3.bf16.msk.msra.mxu1 %vm21985_vm11, %v27228_v27  ;;  %17665 = vmatprep.mubr.msk.f32.mxu1 %vm976_vm1, %v24544_v11 }
0x1b42   :  { %19389 = vmatprep.subr.msk.bf16.mxu1 %vm22009_vm14, %v27228_v27 }
0x1b44   :  { %17666 = vmatmul.mubr.msk.f32.gmra.mrb[154].mxu1 %vm976_vm1, %v24562_v45 }
0x1b45   :  { %19391 = vmatpush3.bf16.msk.msra.mxu1 %vm22009_vm14, %v27228_v27 }
0x1b46   :  { %19394 = vmatprep.subr.msk.bf16.mxu1 %vm21544_vm2, %v19392_v28 }
0x1bcd   :  { %v17614_v18 = vpop.f32.mrb[140].mxu1 }
0x1bce   :  { %v7360_v60 = vpop.f32.mrb[141].mxu1 }
0x1bcf   :  { %17628 = vmatprep.mubr.msk.f32.mxu0 %vm976_vm1, %v7360_v60 }
0x1bd0   :  { %17629 = vmatmul.mubr.msk.f32.vlgmr.msra.gmra.mrb[100].mxu0 %vm976_vm1, %v17614_v18  ;;  %v7588_v18 = vadd.f32 %v21357_v0, %v24582_v61 }
0x1bfc   :  { %v17617_v55 = vpop.f32.mrb[142].mxu1 }
0x1bfd   :  { %v7370_v2 = vpop.f32.mrb[143].mxu1 }
0x1bfe   :  { %17631 = vmatprep.mubr.msk.f32.mxu0 %vm976_vm1, %v7370_v2 }
0x1bff   :  { %17632 = vmatmul.mubr.msk.f32.gmra.mrb[102].mxu0 %vm976_vm1, %v17617_v55 }
0x1c03   :  { %v17620_v4 = vpop.f32.mrb[144].mxu1 }
0x1c04   :  { %v7380_v20 = vpop.f32.mrb[145].mxu1 }
0x1c05   :  { %17634 = vmatprep.mubr.msk.f32.mxu0 %vm976_vm1, %v7380_v20 }
0x1c06   :  { %17635 = vmatmul.mubr.msk.f32.gmra.mrb[104].mxu0 %vm976_vm1, %v17620_v4  ;;  %v27269_v4 = vld [vmem:[#allocation38_spill] sm:$0xff] }
0x1c07   :  { %v17623_v33 = vpop.f32.mrb[146].mxu1  ;;  %v24603_v20 = vadd.f32 %v24520_v39, %v27269_v4 }
0x1c08   :  { %v7390_v47 = vpop.f32.mrb[147].mxu1 }
0x1c09   :  { %17637 = vmatprep.mubr.msk.f32.mxu0 %vm976_vm1, %v7390_v47  ;;  %27270 = vst [vmem:[#allocation37_spill] sm:$0xff] %v24603_v20  ;;  %v19398_v47 = vpack.c.bf16 %v7588_v18, %v7587_v25  ;;  %v21358_v25 = vld [vmem:[%s26820_s9 + $0x20] sm:$0xff] }
0x1c0a   :  { %17638 = vmatmul.mubr.msk.f32.gmra.mrb[106].mxu0 %vm976_vm1, %v17623_v33  ;;  %v27271_v33 = vld [vmem:[#allocation40_spill] sm:$0xff] }
0x1c0b   :  { %v17658_v9 = vpop.f32.mrb[148].mxu1  ;;  %v24607_v63 = vadd.f32 %v24520_v39, %v27271_v33  ;;  %v27273_v33 = vld [vmem:[#allocation42_spill] sm:$0xff] }
0x1c0c   :  { %v7683_v42 = vpop.f32.mrb[149].mxu1  ;;  %v7723_v55 = vmul.f32 %v17658_v9, %v22141_v62 }
0x1c0d   :  { %v7722_v60 = vmul.f32 %v22139_v56, %v7683_v42  ;;  %27272 = vst [vmem:[#allocation35_spill] sm:$0xff] %v24607_v63  ;;  %v7589_v18 = vadd.f32 %v21358_v25, %v24607_v63 }
0x1c0f   :  { %v17661_v2 = vpop.f32.mrb[150].mxu1  ;;  %17684 = vmatprep.mubr.msk.f32.mxu1 %vm1138_vm4, %v7722_v60 }
0x1c10   :  { %v7693_v54 = vpop.f32.mrb[151].mxu1  ;;  %17685 = vmatmul.mubr.msk.f32.vlgmr.msra.gmra.mrb[156].mxu1 %vm1138_vm4, %v7723_v55  ;;  %v7725_v9 = vmul.f32 %v17661_v2, %v27236_v37 }
0x1c11   :  { %v7724_v12 = vmul.f32 %v27235_v50, %v7693_v54  ;;  %19397 = vmatpush3.bf16.xpose.msk.msra.mxu1 %vm21544_vm2, %v19392_v28  ;;  %v21359_v28 = vld [vmem:[%s26820_s9 + $0x28] sm:$0xff]  ;;  %v24631_v54 = vadd.f32 %v24520_v39, %v27273_v33 }
0x1c12   :  { %19400 = vmatprep.subr.msk.bf16.mxu1 %vm21544_vm2, %v19398_v47  ;;  %v7590_v60 = vadd.f32 %v21359_v28, %v24603_v20 }
0x1c13   :  { %v17664_v42 = vpop.f32.mrb[152].mxu1  ;;  %17687 = vmatprep.mubr.msk.f32.mxu1 %vm1138_vm4, %v7724_v12  ;;  %27274 = vst [vmem:[#allocation56_spill] sm:$0xff] %v24631_v54  ;;  %v27275_v12 = vld [vmem:[#allocation43_spill] sm:$0xff] }
0x1c14   :  { %v7703_v0 = vpop.f32.mrb[153].mxu1  ;;  %17688 = vmatmul.mubr.msk.f32.gmra.mrb[158].mxu1 %vm1138_vm4, %v7725_v9  ;;  %v7727_v2 = vmul.f32 %v17664_v42, %v22191_v22  ;;  %v24635_v9 = vadd.f32 %v24520_v39, %v27275_v12  ;;  %v19404_v6 = vpack.c.bf16 %v7590_v60, %v7589_v18  ;;  %v21360_v39 = vld [vmem:[%s26820_s9 + $0x30] sm:$0xff]  ;;  %v21361_v18 = vld [vmem:[%s26820_s9 + $0x38] sm:$0xff] }
0x1c15   :  { %v7726_v55 = vmul.f32 %v22186_v1, %v7703_v0 }
0x1c16   :  { %27276 = vst [vmem:[#allocation57_spill] sm:$0xff] %v24635_v9  ;;  %v7591_v0 = vadd.f32 %v21360_v39, %v24635_v9 }
0x1c17   :  { %v17667_v4 = vpop.f32.mrb[154].mxu1  ;;  %17690 = vmatprep.mubr.msk.f32.mxu1 %vm1138_vm4, %v7726_v55 }
0x1c18   :  { %v7713_v25 = vpop.f32.mrb[155].mxu1  ;;  %17691 = vmatmul.mubr.msk.f32.gmra.mrb[160].mxu1 %vm1138_vm4, %v7727_v2  ;;  %v7729_v42 = vmul.f32 %v17667_v4, %v22207_v31 }
0x1c19   :  { %v7728_v28 = vmul.f32 %v22204_v24, %v7713_v25  ;;  %19403 = vmatpush3.bf16.xpose.msk.msra.mxu1 %vm21544_vm2, %v19398_v47  ;;  %v7592_v47 = vadd.f32 %v21361_v18, %v24631_v54 }
0x1c1a   :  { %19406 = vmatprep.subr.msk.bf16.mxu1 %vm21544_vm2, %v19404_v6 }
0x1c1b   :  { %17693 = vmatprep.mubr.msk.f32.mxu1 %vm1138_vm4, %v7728_v28  ;;  %v19410_v60 = vpack.c.bf16 %v7592_v47, %v7591_v0 }
0x1c1c   :  { %17694 = vmatmul.mubr.msk.f32.gmra.mrb[162].mxu1 %vm1138_vm4, %v7729_v42 }
0x1c1d   :  { %17712 = vmatprep.mubr.msk.f32.mxu1 %vm976_vm1, %v24490_v35 }
0x1c21   :  { %19409 = vmatpush3.bf16.xpose.msk.msra.mxu1 %vm21544_vm2, %v19404_v6 }
0x1c22   :  { %19412 = vmatprep.subr.msk.bf16.mxu1 %vm21544_vm2, %v19410_v60 }
0x1c29   :  { %19415 = vmatpush3.bf16.xpose.msk.msra.mxu1 %vm21544_vm2, %v19410_v60 }
0x1c2a   :  { %19457 = vmatprep.subr.msk.bf16.mxu1 %vm21872_vm5, %v27228_v27 }
0x1c30   :  { %17713 = vmatmul.mubr.msk.f32.vlgmr.msra.gmra.mrb[156].mxu1 %vm976_vm1, %v24496_v3 }
0x1c31   :  { %17715 = vmatprep.mubr.msk.f32.mxu1 %vm976_vm1, %v24499_v10  ;;  %19459 = vmatpush3.bf16.msk.msra.mxu1 %vm21872_vm5, %v27228_v27 }
0x1c32   :  { %19461 = vmatprep.subr.msk.bf16.mxu1 %vm21957_vm8, %v27228_v27 }
0x1c34   :  { %17716 = vmatmul.mubr.msk.f32.gmra.mrb[158].mxu1 %vm976_vm1, %v24509_v53 }
0x1c35   :  { %17718 = vmatprep.mubr.msk.f32.mxu1 %vm976_vm1, %v24515_v43  ;;  %19463 = vmatpush3.bf16.msk.msra.mxu1 %vm21957_vm8, %v27228_v27 }
0x1c36   :  { %19465 = vmatprep.subr.msk.bf16.mxu1 %vm21985_vm11, %v27228_v27 }
0x1c38   :  { %17719 = vmatmul.mubr.msk.f32.gmra.mrb[160].mxu1 %vm976_vm1, %v24538_v32 }
0x1c39   :  { %17721 = vmatprep.mubr.msk.f32.mxu1 %vm976_vm1, %v24544_v11  ;;  %19467 = vmatpush3.bf16.msk.msra.mxu1 %vm21985_vm11, %v27228_v27 }
0x1c3a   :  { %19469 = vmatprep.subr.msk.bf16.mxu1 %vm22009_vm14, %v27228_v27 }
0x1c3c   :  { %17722 = vmatmul.mubr.msk.f32.gmra.mrb[162].mxu1 %vm976_vm1, %v24562_v45 }
0x1c3d   :  { %19471 = vmatpush3.bf16.msk.msra.mxu1 %vm22009_vm14, %v27228_v27 }
0x1ca3   :  { %v24700_v6 = vpop.f32.mrb[100].mxu0 }
0x1ca4   :  { %27277 = vst [vmem:[#allocation58_spill] sm:$0xff] %v24700_v6  ;;  %v24702_v55 = vpop.f32.mrb[101].mxu0 }
0x1ca5   :  { %27278 = vst [vmem:[#allocation59_spill] sm:$0xff] %v24702_v55 }
0x1cd2   :  { %v24704_v2 = vpop.f32.mrb[102].mxu0 }
0x1cd3   :  { %27279 = vst [vmem:[#allocation60_spill] sm:$0xff] %v24704_v2  ;;  %v24706_v4 = vpop.f32.mrb[103].mxu0 }
0x1cd4   :  { %27280 = vst [vmem:[#allocation61_spill] sm:$0xff] %v24706_v4 }
0x1cd9   :  { %v24708_v33 = vpop.f32.mrb[104].mxu0 }
0x1cda   :  { %27281 = vst [vmem:[#allocation21_spill] sm:$0xff] %v24708_v33  ;;  %v24710_v12 = vpop.f32.mrb[105].mxu0 }
0x1cdb   :  { %27282 = vst [vmem:[#allocation28_spill] sm:$0xff] %v24710_v12 }
0x1cdd   :  { %v24712_v25 = vpop.f32.mrb[106].mxu0 }
0x1cde   :  { %27283 = vst [vmem:[#allocation26_spill] sm:$0xff] %v24712_v25  ;;  %v24714_v28 = vpop.f32.mrb[107].mxu0 }
0x1cdf   :  { %27284 = vst [vmem:[#allocation33_spill] sm:$0xff] %v24714_v28 }
0x1d03   :  { %v17714_v42 = vpop.f32.mrb[156].mxu1 }
0x1d04   :  { %v7989_v39 = vsel %vm22278_vm15, %v17714_v42, -1e+09  ;;  %v7949_v0 = vpop.f32.mrb[157].mxu1 }
0x1d05   :  { %v7999_v18 = vsel %vm1138_vm4, %v7989_v39, -inf  ;;  %v7988_v47 = vsel %vm22283_vm3, %v7949_v0, -1e+09 }
0x1d06   :  { %v7996_v60 = vsel %vm1138_vm4, %v7988_v47, -inf  ;;  %8000 = vmax.xlane.f32.xlu0 %v7999_v18 }
0x1d07   :  { %7997 = vmax.xlane.f32.xlu1 %v7996_v60  ;;  %v17717_v33 = vpop.f32.mrb[158].mxu1 }
0x1d08   :  { %v7991_v25 = vsel %vm22303_vm7, %v17717_v33, -1e+09  ;;  %v7959_v12 = vpop.f32.mrb[159].mxu1 }
0x1d09   :  { %v8005_v28 = vsel %vm1138_vm4, %v7991_v25, -inf  ;;  %v7990_v42 = vsel %vm22294_vm6, %v7959_v12, -1e+09 }
0x1d0a   :  { %v8002_v4 = vsel %vm1138_vm4, %v7990_v42, -inf  ;;  %8006 = vmax.xlane.f32.xlu0 %v8005_v28 }
0x1d0b   :  { %8003 = vmax.xlane.f32.xlu1 %v8002_v4  ;;  %v17720_v2 = vpop.f32.mrb[160].mxu1 }
0x1d0c   :  { %v7993_v0 = vsel %vm22321_vm10, %v17720_v2, -1e+09  ;;  %v7969_v18 = vpop.f32.mrb[161].mxu1  ;;  %v24739_v2 = vpack.i.bf16 %v24524_v14, %v24528_v19 }
0x1d0d   :  { %v8011_v60 = vsel %vm1138_vm4, %v7993_v0, -inf  ;;  %v7992_v33 = vsel %vm22314_vm9, %v7969_v18, -1e+09 }
0x1d0e   :  { %v8008_v6 = vsel %vm1138_vm4, %v7992_v33, -inf  ;;  %8012 = vmax.xlane.f32.xlu0 %v8011_v60  ;;  %27285 = vst [vmem:[#allocation54_spill] sm:$0xff] %v24739_v2 }
0x1d0f   :  { %8009 = vmax.xlane.f32.xlu1 %v8008_v6  ;;  %v17723_v55 = vpop.f32.mrb[162].mxu1 }
0x1d10   :  { %v7995_v12 = vsel %vm22331_vm12, %v17723_v55, -1e+09  ;;  %v7979_v28 = vpop.f32.mrb[163].mxu1  ;;  %v24748_v55 = vpack.i.bf16 %v24603_v20, %v24607_v63 }
0x1d11   :  { %v8017_v4 = vsel %vm1138_vm4, %v7995_v12, -inf  ;;  %v7994_v18 = vsel %vm22346_vm13, %v7979_v28, -1e+09 }
0x1d12   :  { %8018 = vmax.xlane.f32.xlu0 %v8017_v4  ;;  %v8014_v6 = vsel %vm1138_vm4, %v7994_v18, -inf  ;;  %27286 = vst [vmem:[#allocation55_spill] sm:$0xff] %v24748_v55 }
0x1d20   :  { %20548 = vrot.lane.b32.xlu1 %v24739_v2, %s21400_s29 }
0x1d44   :  { %8015 = vmax.xlane.f32.xlu1 %v8014_v6 }
0x1d55   :  { %20558 = vrot.lane.b32.xlu1 %v24748_v55, %s21400_s29 }
0x1d93   :  { %v8001_v60 = vpop.xlane.xlu0 %8000 }
0x1d94   :  { %v8021_v4 = vsub.f32 %v7989_v39, %v8001_v60  ;;  %v7998_v49 = vpop.xlane.xlu1 %7997 }
0x1d95   :  { %v8020_v41 = vsub.f32 %v7988_v47, %v7998_v49 }
0x1d96   :  { %v8030_v30 = vmul.f32 1.442695, %v8021_v4 }
0x1d97   :  { %v8028_v51 = vmul.f32 1.442695, %v8020_v41 }
0x1d98   :  { %21083 = vpow2.f32 %v8030_v30  ;;  %v8004_v59 = vpop.xlane.xlu1 %8003 }
0x1d99   :  { %21085 = vpow2.f32 %v8028_v51  ;;  %v24762_v51 = vpack.i.bf16 %v24631_v54, %v24635_v9 }
0x1d9b   :  { %27287 = vst [vmem:[#allocation71_spill] sm:$0xff] %v24762_v51 }
0x1d9c   :  { %v8010_v28 = vpop.xlane.xlu1 %8009 }
0x1da0   :  { %v20549_v8 = vpop.permute.xlu1 %20548 }
0x1da1   :  { %v20551_v26 = vunpack.i.h.bf16 %v20549_v8  ;;  %v20550_v6 = vunpack.i.l.bf16 %v20549_v8  ;;  %v24768_v8 = vpack.i.bf16 %v24582_v61, %v24586_v7 }
0x1da2   :  { %v24752_v21 = vpop.eup %21083 }
0x1da3   :  { %v24754_v38 = vpop.eup %21085  ;;  %v8047_v48 = vsel %vm1138_vm4, %v24752_v21, 0.0  ;;  %v19416_v52 = vpack.c.bf16 %v20551_v26, %v20550_v6  ;;  %27288 = vst [vmem:[#allocation72_spill] sm:$0xff] %v24768_v8  ;;  %v8022_v26 = vsub.f32 %v7990_v42, %v8004_v59 }
0x1da4   :  { %8048 = vadd.xlane.f32.xlu0 %v8047_v48  ;;  %v8044_v49 = vsel %vm1138_vm4, %v24754_v38, 0.0  ;;  %v8007_v48 = vpop.xlane.xlu0 %8006 }
0x1da5   :  { %19417 = vmatprep.subr.bf16.mxu0 %v19416_v52  ;;  %8045 = vadd.xlane.f32.xlu1 %v8044_v49  ;;  %v8023_v30 = vsub.f32 %v7991_v25, %v8007_v48  ;;  %v8032_v39 = vmul.f32 1.442695, %v8022_v26  ;;  %v27290_v48 = vld [vmem:[#allocation79_spill] sm:$0xff] }
0x1da6   :  { %19419 = vmatpush3.bf16.msra.mxu0 %v19416_v52  ;;  %v8024_v52 = vsub.f32 %v7992_v33, %v8010_v28  ;;  %v8248_v26 = vadd.f32 %v27290_v48, %v24582_v61 }
0x1da7   :  { %v8034_v47 = vmul.f32 1.442695, %v8023_v30  ;;  %21087 = vpow2.f32 %v8032_v39  ;;  %v27291_v30 = vld [vmem:[#allocation75_spill] sm:$0xff]  ;;  %v27292_v39 = vld [vmem:[#allocation76_spill] sm:$0xff] }
0x1da8   :  { %v8013_v41 = vpop.xlane.xlu0 %8012  ;;  %v8036_v4 = vmul.f32 1.442695, %v8024_v52  ;;  %v8247_v52 = vadd.f32 %v27292_v39, %v24586_v7 }
0x1da9   :  { %v8025_v60 = vsub.f32 %v7993_v0, %v8013_v41  ;;  %21089 = vpow2.f32 %v8034_v47  ;;  %v8245_v41 = vadd.f32 %v27291_v30, %v24528_v19  ;;  %v27293_v47 = vld [vmem:[#allocation80_spill] sm:$0xff] }
0x1daa   :  { %21091 = vpow2.f32 %v8036_v4  ;;  %v27294_v4 = vld [vmem:[#allocation82_spill] sm:$0xff] }
0x1dab   :  { %v8038_v49 = vmul.f32 1.442695, %v8025_v60  ;;  %v8250_v60 = vadd.f32 %v27293_v47, %v24603_v20 }
0x1dac   :  { %v8019_v6 = vpop.xlane.xlu0 %8018 }
0x1dad   :  { %v8027_v46 = vsub.f32 %v7995_v12, %v8019_v6  ;;  %21093 = vpow2.f32 %v8038_v49  ;;  %v8252_v6 = vadd.f32 %v27294_v4, %v24631_v54 }
0x1daf   :  { %v8042_v55 = vmul.f32 1.442695, %v8027_v46 }
0x1db1   :  { %v24772_v2 = vpop.eup %21087 }
0x1db2   :  { %v8050_v25 = vsel %vm1138_vm4, %v24772_v2, 0.0 }
0x1db3   :  { %v24774_v59 = vpop.eup %21089 }
0x1db4   :  { %v24778_v42 = vpop.eup %21091  ;;  %v8053_v0 = vsel %vm1138_vm4, %v24774_v59, 0.0 }
0x1db6   :  { %20563 = vrot.lane.b32.xlu1 %v24762_v51, %s21400_s29 }
0x1db7   :  { %v24784_v46 = vpop.eup %21093 }
0x1db8   :  { %v8059_v12 = vsel %vm1138_vm4, %v24784_v46, 0.0 }
0x1dba   :  { %20553 = vrot.lane.b32.xlu0 %v24768_v8, %s21400_s29 }
0x1dd1   :  { %v8016_v27 = vpop.xlane.xlu1 %8015 }
0x1dd2   :  { %v8026_v51 = vsub.f32 %v7994_v18, %v8016_v27  ;;  %v8056_v27 = vsel %vm1138_vm4, %v24778_v42, 0.0 }
0x1dd4   :  { %v8040_v8 = vmul.f32 1.442695, %v8026_v51  ;;  %v27289_v51 = vld [vmem:[#allocation77_spill] sm:$0xff] }
0x1dd5   :  { %v20559_v47 = vpop.permute.xlu1 %20558 }
0x1dd6   :  { %21095 = vpow2.f32 %v8040_v8  ;;  %v8246_v8 = vadd.f32 %v27289_v51, %v24524_v14 }
0x1dd7   :  { %21097 = vpow2.f32 %v8042_v55 }
0x1dd8   :  { %v20567_v49 = vpack.i.bf16 %v8246_v8, %v8245_v41  ;;  %v20561_v41 = vunpack.i.h.bf16 %v20559_v47 }
0x1dd9   :  { %8051 = vadd.xlane.f32.xlu0 %v8050_v25  ;;  %v20572_v25 = vpack.i.bf16 %v8248_v26, %v8247_v52  ;;  %v20560_v52 = vunpack.i.l.bf16 %v20559_v47 }
0x1dda   :  { %8054 = vadd.xlane.f32.xlu1 %v8053_v0  ;;  %v27295_v0 = vld [vmem:[#allocation78_spill] sm:$0xff] }
0x1ddd   :  { %8057 = vadd.xlane.f32.xlu0 %v8056_v27  ;;  %v8249_v27 = vadd.f32 %v27295_v0, %v24607_v63 }
0x1de0   :  { %v24786_v33 = vpop.eup %21095 }
0x1de1   :  { %v24790_v18 = vpop.eup %21097  ;;  %8060 = vadd.xlane.f32.xlu0 %v8059_v12  ;;  %v8062_v55 = vsel %vm1138_vm4, %v24786_v33, 0.0  ;;  %v27296_v12 = vld [vmem:[#allocation81_spill] sm:$0xff] }
0x1de2   :  { %8063 = vadd.xlane.f32.xlu1 %v8062_v55  ;;  %v8065_v28 = vsel %vm1138_vm4, %v24790_v18, 0.0  ;;  %v8251_v55 = vadd.f32 %v27296_v12, %v24635_v9 }
0x1de4   :  { %v20582_v39 = vpack.i.bf16 %v8252_v6, %v8251_v55 }
0x1de5   :  { %8066 = vadd.xlane.f32.xlu0 %v8065_v28  ;;  %v20577_v28 = vpack.i.bf16 %v8250_v60, %v8249_v27  ;;  %v19424_v60 = vpack.c.bf16 %v20561_v41, %v20560_v52 }
0x1df3   :  { %8253 = vrot.lane.b32.xlu1 %v24490_v35, %s21401_s30 }
0x1df7   :  { %8257 = vrot.lane.b32.xlu1 %v24499_v10, %s21401_s30 }
0x1dfb   :  { %8255 = vrot.lane.b32.xlu0 %v24496_v3, %s21401_s30  ;;  %8259 = vrot.lane.b32.xlu1 %v24509_v53, %s21401_s30 }
0x1dff   :  { %8261 = vrot.lane.b32.xlu0 %v24515_v43, %s21401_s30  ;;  %8263 = vrot.lane.b32.xlu1 %v24538_v32, %s21401_s30 }
0x1e03   :  { %8265 = vrot.lane.b32.xlu0 %v24544_v11, %s21401_s30  ;;  %8267 = vrot.lane.b32.xlu1 %v24562_v45, %s21401_s30 }
0x1e07   :  { %20568 = vrot.lane.b32.xlu0 %v20567_v49, %s21401_s30  ;;  %20573 = vrot.lane.b32.xlu1 %v20572_v25, %s21401_s30 }
0x1e0b   :  { %20578 = vrot.lane.b32.xlu0 %v20577_v28, %s21401_s30  ;;  %20583 = vrot.lane.b32.xlu1 %v20582_v39, %s21401_s30 }
0x1e31   :  { %v8049_v4 = vpop.xlane.xlu0 %8048 }
0x1e32   :  { %v8046_v8 = vpop.xlane.xlu1 %8045 }
0x1e33   :  { %21099 = vrcp.f32 %v8046_v8 }
0x1e34   :  { %21101 = vrcp.f32 %v8049_v4 }
0x1e35   :  { %v20554_v26 = vpop.permute.xlu0 %20553 }
0x1e36   :  { %v20556_v0 = vunpack.i.h.bf16 %v20554_v26  ;;  %v20555_v30 = vunpack.i.l.bf16 %v20554_v26  ;;  %v20564_v12 = vpop.permute.xlu1 %20563 }
0x1e37   :  { %v20566_v48 = vunpack.i.h.bf16 %v20564_v12  ;;  %v20565_v25 = vunpack.i.l.bf16 %v20564_v12 }
0x1e38   :  { %v19420_v49 = vpack.c.bf16 %v20556_v0, %v20555_v30 }
0x1e39   :  { %v19428_v39 = vpack.c.bf16 %v20566_v48, %v20565_v25 }
0x1e3a   :  { %19421 = vmatprep.subr.bf16.mxu0 %v19420_v49 }
0x1e3b   :  { %19423 = vmatpush3.bf16.msra.mxu0 %v19420_v49 }
0x1e3c   :  { %19425 = vmatprep.subr.bf16.mxu0 %v19424_v60 }
0x1e3d   :  { %v21100_v6 = vpop.eup %21099 }
0x1e3e   :  { %v8076_v27 = vmul.f32 %v21100_v6, %v24754_v38  ;;  %v21102_v47 = vpop.eup %21101 }
0x1e3f   :  { %19427 = vmatpush3.bf16.msra.mxu0 %v19424_v60  ;;  %v8077_v4 = vmul.f32 %v21102_v47, %v24752_v21 }
0x1e40   :  { %19429 = vmatprep.subr.bf16.mxu0 %v19428_v39  ;;  %17740 = vmatprep.mubr.msk.f32.mxu0 %vm1138_vm4, %v8076_v27 }
0x1e43   :  { %19431 = vmatpush3.bf16.msra.mxu0 %v19428_v39 }
0x1e44   :  { %19434 = vmatprep.subr.msk.bf16.mxu0 %vm21544_vm2, %v27251_v13 }
0x1e46   :  { %17741 = vmatmul.mubr.msk.f32.vlgmr.msra.gmra.mrb[124].mxu0 %vm1138_vm4, %v8077_v4 }
0x1e4c   :  { %19437 = vmatpush3.bf16.xpose.msk.msra.mxu0 %vm21544_vm2, %v27251_v13 }
0x1e4d   :  { %19440 = vmatprep.subr.msk.bf16.mxu0 %vm21544_vm2, %v27252_v57 }
0x1e54   :  { %19443 = vmatpush3.bf16.xpose.msk.msra.mxu0 %vm21544_vm2, %v27252_v57 }
0x1e55   :  { %19446 = vmatprep.subr.msk.bf16.mxu0 %vm21544_vm2, %v27253_v58 }
0x1e5c   :  { %19449 = vmatpush3.bf16.xpose.msk.msra.mxu0 %vm21544_vm2, %v27253_v58 }
0x1e5d   :  { %19452 = vmatprep.subr.msk.bf16.mxu0 %vm21544_vm2, %v27254_v29 }
0x1e64   :  { %19455 = vmatpush3.bf16.xpose.msk.msra.mxu0 %vm21544_vm2, %v27254_v29 }
0x1e66   :  { %v8052_v38 = vpop.xlane.xlu0 %8051 }
0x1e67   :  { %21103 = vrcp.f32 %v8052_v38  ;;  %v8055_v21 = vpop.xlane.xlu1 %8054 }
0x1e68   :  { %21105 = vrcp.f32 %v8055_v21 }
0x1e6a   :  { %v8058_v48 = vpop.xlane.xlu0 %8057 }
0x1e6b   :  { %21107 = vrcp.f32 %v8058_v48 }
0x1e6e   :  { %v8061_v30 = vpop.xlane.xlu0 %8060 }
0x1e6f   :  { %21109 = vrcp.f32 %v8061_v30  ;;  %v8064_v0 = vpop.xlane.xlu1 %8063 }
0x1e70   :  { %21111 = vrcp.f32 %v8064_v0 }
0x1e71   :  { %v21104_v12 = vpop.eup %21103 }
0x1e72   :  { %v21106_v55 = vpop.eup %21105  ;;  %v8067_v28 = vpop.xlane.xlu0 %8066  ;;  %v8078_v8 = vmul.f32 %v21104_v12, %v24772_v2 }
0x1e73   :  { %21113 = vrcp.f32 %v8067_v28  ;;  %v8079_v26 = vmul.f32 %v21106_v55, %v24774_v59  ;;  %v24867_v25 = vpop.permute.xlu1 %8253 }
0x1e74   :  { %17743 = vmatprep.mubr.msk.f32.mxu0 %vm1138_vm4, %v8078_v8 }
0x1e75   :  { %v21108_v41 = vpop.eup %21107  ;;  %17744 = vmatmul.mubr.msk.f32.gmra.mrb[126].mxu0 %vm1138_vm4, %v8079_v26 }
0x1e76   :  { %v24864_v52 = vpop.permute.xlu0 %8255  ;;  %v8080_v49 = vmul.f32 %v21108_v41, %v24778_v42 }
0x1e77   :  { %v24875_v47 = vpop.permute.xlu1 %8257 }
0x1e78   :  { %17746 = vmatprep.mubr.msk.f32.mxu0 %vm1138_vm4, %v8080_v49 }
0x1e79   :  { %v21110_v60 = vpop.eup %21109 }
0x1e7a   :  { %v21112_v6 = vpop.eup %21111  ;;  %v24870_v39 = vpop.permute.xlu0 %8261  ;;  %v8081_v2 = vmul.f32 %v21110_v60, %v24784_v46 }
0x1e7b   :  { %v8082_v59 = vmul.f32 %v21112_v6, %v24786_v33  ;;  %v24884_v46 = vpop.permute.xlu1 %8259 }
0x1e7c   :  { %17747 = vmatmul.mubr.msk.f32.gmra.mrb[128].mxu0 %vm1138_vm4, %v8081_v2 }
0x1e7d   :  { %v21114_v27 = vpop.eup %21113  ;;  %17749 = vmatprep.mubr.msk.f32.mxu0 %vm1138_vm4, %v8082_v59 }
0x1e7e   :  { %v24878_v42 = vpop.permute.xlu0 %8265  ;;  %v8083_v4 = vmul.f32 %v21114_v27, %v24790_v18 }
0x1e7f   :  { %v24894_v18 = vpop.permute.xlu1 %8263 }
0x1e80   :  { %17750 = vmatmul.mubr.msk.f32.gmra.mrb[130].mxu0 %vm1138_vm4, %v8083_v4 }
0x1e81   :  { %17768 = vmatprep.mubr.msk.f32.mxu0 %vm976_vm1, %v24867_v25 }
0x1e82   :  { %v20569_v38 = vpop.permute.xlu0 %20568 }
0x1e83   :  { %v20571_v33 = vunpack.i.h.bf16 %v20569_v38  ;;  %v20570_v21 = vunpack.i.l.bf16 %v20569_v38  ;;  %v24902_v30 = vpop.permute.xlu1 %8267 }
0x1e84   :  { %17769 = vmatmul.mubr.msk.f32.vlgmr.msra.gmra.mrb[132].mxu0 %vm976_vm1, %v24864_v52 }
0x1e85   :  { %v19472_v48 = vpack.c.bf16 %v20571_v33, %v20570_v21  ;;  %17771 = vmatprep.mubr.msk.f32.mxu0 %vm976_vm1, %v24875_v47 }
0x1e87   :  { %19474 = vmatprep.subr.msk.bf16.mxu1 %vm21544_vm2, %v19472_v48  ;;  %v20574_v60 = vpop.permute.xlu1 %20573 }
0x1e88   :  { %17772 = vmatmul.mubr.msk.f32.gmra.mrb[134].mxu0 %vm976_vm1, %v24884_v46  ;;  %v20576_v2 = vunpack.i.h.bf16 %v20574_v60  ;;  %v20575_v59 = vunpack.i.l.bf16 %v20574_v60 }
0x1e89   :  { %17774 = vmatprep.mubr.msk.f32.mxu0 %vm976_vm1, %v24870_v39 }
0x1e8a   :  { %v19478_v21 = vpack.c.bf16 %v20576_v2, %v20575_v59 }
0x1e8c   :  { %17775 = vmatmul.mubr.msk.f32.gmra.mrb[136].mxu0 %vm976_vm1, %v24894_v18 }
0x1e8d   :  { %17777 = vmatprep.mubr.msk.f32.mxu0 %vm976_vm1, %v24878_v42 }
0x1e90   :  { %17778 = vmatmul.mubr.msk.f32.gmra.mrb[138].mxu0 %vm976_vm1, %v24902_v30 }
0x1f19   :  { %v24906_v0 = vpop.f32.mrb[124].mxu0 }
0x1f1a   :  { %v24908_v12 = vpop.f32.mrb[125].mxu0 }
0x1f48   :  { %v24910_v55 = vpop.f32.mrb[126].mxu0 }
0x1f49   :  { %v24912_v28 = vpop.f32.mrb[127].mxu0 }
0x1f4f   :  { %v24914_v8 = vpop.f32.mrb[128].mxu0 }
0x1f50   :  { %27297 = vst [vmem:[#allocation74_spill] sm:$0xff] %v24914_v8  ;;  %v24916_v26 = vpop.f32.mrb[129].mxu0  ;;  %v20579_v8 = vpop.permute.xlu0 %20578 }
0x1f53   :  { %v24918_v41 = vpop.f32.mrb[130].mxu0 }
0x1f54   :  { %27298 = vst [vmem:[#allocation73_spill] sm:$0xff] %v24918_v41  ;;  %v24920_v49 = vpop.f32.mrb[131].mxu0 }
0x1f57   :  { %v17770_v6 = vpop.f32.mrb[132].mxu0 }
0x1f58   :  { %v8351_v27 = vpop.f32.mrb[133].mxu0  ;;  %v8391_v38 = vmul.f32 %v17770_v6, %v22141_v62  ;;  %v20581_v6 = vunpack.i.h.bf16 %v20579_v8 }
0x1f59   :  { %v8390_v4 = vmul.f32 %v22139_v56, %v8351_v27 }
0x1f5b   :  { %v17773_v33 = vpop.f32.mrb[134].mxu0  ;;  %17796 = vmatprep.mubr.msk.f32.mxu1 %vm1138_vm4, %v8390_v4  ;;  %v20580_v4 = vunpack.i.l.bf16 %v20579_v8 }
0x1f5c   :  { %v8361_v51 = vpop.f32.mrb[135].mxu0  ;;  %17797 = vmatmul.mubr.msk.f32.vlgmr.msra.gmra.mrb[164].mxu1 %vm1138_vm4, %v8391_v38  ;;  %v8393_v60 = vmul.f32 %v17773_v33, %v27236_v37  ;;  %v20584_v37 = vpop.permute.xlu1 %20583 }
0x1f5d   :  { %v8392_v41 = vmul.f32 %v27235_v50, %v8361_v51  ;;  %19477 = vmatpush3.bf16.xpose.msk.msra.mxu1 %vm21544_vm2, %v19472_v48  ;;  %v19484_v48 = vpack.c.bf16 %v20581_v6, %v20580_v4 }
0x1f5e   :  { %19480 = vmatprep.subr.msk.bf16.mxu1 %vm21544_vm2, %v19478_v21 }
0x1f5f   :  { %v17776_v27 = vpop.f32.mrb[136].mxu0  ;;  %17799 = vmatprep.mubr.msk.f32.mxu1 %vm1138_vm4, %v8392_v41  ;;  %v20586_v41 = vunpack.i.h.bf16 %v20584_v37 }
0x1f60   :  { %v8371_v2 = vpop.f32.mrb[137].mxu0  ;;  %17800 = vmatmul.mubr.msk.f32.gmra.mrb[166].mxu1 %vm1138_vm4, %v8393_v60  ;;  %v8395_v51 = vmul.f32 %v17776_v27, %v22191_v22  ;;  %v20585_v60 = vunpack.i.l.bf16 %v20584_v37 }
0x1f61   :  { %v8394_v59 = vmul.f32 %v22186_v1, %v8371_v2 }
0x1f62   :  { %v19490_v27 = vpack.c.bf16 %v20586_v41, %v20585_v60 }
0x1f63   :  { %v17779_v38 = vpop.f32.mrb[138].mxu0  ;;  %17802 = vmatprep.mubr.msk.f32.mxu1 %vm1138_vm4, %v8394_v59 }
0x1f64   :  { %v8381_v33 = vpop.f32.mrb[139].mxu0  ;;  %17803 = vmatmul.mubr.msk.f32.gmra.mrb[168].mxu1 %vm1138_vm4, %v8395_v51  ;;  %v8397_v8 = vmul.f32 %v17779_v38, %v22207_v31 }
0x1f65   :  { %v8396_v50 = vmul.f32 %v22204_v24, %v8381_v33  ;;  %19483 = vmatpush3.bf16.xpose.msk.msra.mxu1 %vm21544_vm2, %v19478_v21 }
0x1f66   :  { %19486 = vmatprep.subr.msk.bf16.mxu1 %vm21544_vm2, %v19484_v48 }
0x1f67   :  { %17805 = vmatprep.mubr.msk.f32.mxu1 %vm1138_vm4, %v8396_v50 }
0x1f68   :  { %17806 = vmatmul.mubr.msk.f32.gmra.mrb[170].mxu1 %vm1138_vm4, %v8397_v8 }
0x1f69   :  { %17824 = vmatprep.mubr.msk.f32.mxu1 %vm976_vm1, %v24867_v25 }
0x1f6d   :  { %19489 = vmatpush3.bf16.xpose.msk.msra.mxu1 %vm21544_vm2, %v19484_v48 }
0x1f6e   :  { %19492 = vmatprep.subr.msk.bf16.mxu1 %vm21544_vm2, %v19490_v27 }
0x1f75   :  { %19495 = vmatpush3.bf16.xpose.msk.msra.mxu1 %vm21544_vm2, %v19490_v27 }
0x1f76   :  { %19522 = vmatprep.subr.msk.bf16.mxu1 %vm21544_vm2, %v27251_v13 }
0x1f7c   :  { %17825 = vmatmul.mubr.msk.f32.vlgmr.msra.gmra.mrb[164].mxu1 %vm976_vm1, %v24864_v52 }
0x1f7d   :  { %17827 = vmatprep.mubr.msk.f32.mxu1 %vm976_vm1, %v24875_v47  ;;  %19525 = vmatpush3.bf16.xpose.msk.msra.mxu1 %vm21544_vm2, %v27251_v13 }
0x1f7e   :  { %19528 = vmatprep.subr.msk.bf16.mxu1 %vm21544_vm2, %v27252_v57 }
0x1f80   :  { %17828 = vmatmul.mubr.msk.f32.gmra.mrb[166].mxu1 %vm976_vm1, %v24884_v46 }
0x1f81   :  { %17830 = vmatprep.mubr.msk.f32.mxu1 %vm976_vm1, %v24870_v39 }
0x1f84   :  { %17831 = vmatmul.mubr.msk.f32.gmra.mrb[168].mxu1 %vm976_vm1, %v24894_v18 }
0x1f85   :  { %17833 = vmatprep.mubr.msk.f32.mxu1 %vm976_vm1, %v24878_v42  ;;  %19531 = vmatpush3.bf16.xpose.msk.msra.mxu1 %vm21544_vm2, %v27252_v57 }
0x1f86   :  { %19534 = vmatprep.subr.msk.bf16.mxu1 %vm21544_vm2, %v27253_v58 }
0x1f88   :  { %17834 = vmatmul.mubr.msk.f32.gmra.mrb[170].mxu1 %vm976_vm1, %v24902_v30 }
0x1f8d   :  { %19537 = vmatpush3.bf16.xpose.msk.msra.mxu1 %vm21544_vm2, %v27253_v58 }
0x1f8e   :  { %19540 = vmatprep.subr.msk.bf16.mxu1 %vm21544_vm2, %v27254_v29 }
0x1f95   :  { %19543 = vmatpush3.bf16.xpose.msk.msra.mxu1 %vm21544_vm2, %v27254_v29 }
0x204f   :  { %v17826_v50 = vpop.f32.mrb[164].mxu1 }
0x2050   :  { %v8673_v37 = vsel %vm22278_vm15, %v17826_v50, -1e+09  ;;  %v8633_v52 = vpop.f32.mrb[165].mxu1 }
0x2051   :  { %v8683_v25 = vsel %vm1138_vm4, %v8673_v37, -inf  ;;  %v8672_v39 = vsel %vm22283_vm3, %v8633_v52, -1e+09  ;;  %v27299_v52 = vld [vmem:[#allocation54_spill] sm:$0xff] }
0x2052   :  { %v8680_v47 = vsel %vm1138_vm4, %v8672_v39, -inf  ;;  %8684 = vmax.xlane.f32.xlu1 %v8683_v25 }
0x2053   :  { %8681 = vmax.xlane.f32.xlu0 %v8680_v47  ;;  %v17829_v42 = vpop.f32.mrb[166].mxu1 }
0x2054   :  { %v8643_v46 = vpop.f32.mrb[167].mxu1  ;;  %v8675_v21 = vsel %vm22303_vm7, %v17829_v42, -1e+09 }
0x2055   :  { %v8674_v18 = vsel %vm22294_vm6, %v8643_v46, -1e+09  ;;  %v8689_v59 = vsel %vm1138_vm4, %v8675_v21, -inf }
0x2056   :  { %v8686_v30 = vsel %vm1138_vm4, %v8674_v18, -inf }
0x2057   :  { %8687 = vmax.xlane.f32.xlu0 %v8686_v30  ;;  %v17832_v6 = vpop.f32.mrb[168].mxu1 }
0x2058   :  { %v8653_v4 = vpop.f32.mrb[169].mxu1  ;;  %v8677_v38 = vsel %vm22321_vm10, %v17832_v6, -1e+09 }
0x2059   :  { %v8676_v2 = vsel %vm22314_vm9, %v8653_v4, -1e+09  ;;  %v8695_v41 = vsel %vm1138_vm4, %v8677_v38, -inf }
0x205a   :  { %v8692_v51 = vsel %vm1138_vm4, %v8676_v2, -inf }
0x205b   :  { %8690 = vmax.xlane.f32.xlu0 %v8689_v59  ;;  %8693 = vmax.xlane.f32.xlu1 %v8692_v51  ;;  %v17835_v48 = vpop.f32.mrb[170].mxu1 }
0x205c   :  { %v8663_v33 = vpop.f32.mrb[171].mxu1  ;;  %v8679_v27 = vsel %vm22331_vm12, %v17835_v48, -1e+09 }
0x205d   :  { %v8678_v8 = vsel %vm22346_vm13, %v8663_v33, -1e+09  ;;  %v8701_v50 = vsel %vm1138_vm4, %v8679_v27, -inf }
0x205e   :  { %v8698_v60 = vsel %vm1138_vm4, %v8678_v8, -inf }
0x205f   :  { %8696 = vmax.xlane.f32.xlu0 %v8695_v41  ;;  %8699 = vmax.xlane.f32.xlu1 %v8698_v60 }
0x2063   :  { %8702 = vmax.xlane.f32.xlu0 %v8701_v50 }
0x2070   :  { %20588 = vrot.lane.b32.xlu1 %v27299_v52, %s21403_s16 }
0x20df   :  { %v8685_v25 = vpop.xlane.xlu1 %8684 }
0x20e0   :  { %v8705_v47 = vsub.f32 %v8673_v37, %v8685_v25  ;;  %v8682_v42 = vpop.xlane.xlu0 %8681 }
0x20e1   :  { %v8704_v46 = vsub.f32 %v8672_v39, %v8682_v42 }
0x20e2   :  { %v8714_v30 = vmul.f32 1.442695, %v8705_v47 }
0x20e3   :  { %v8712_v6 = vmul.f32 1.442695, %v8704_v46 }
0x20e4   :  { %21115 = vpow2.f32 %v8714_v30  ;;  %v8688_v4 = vpop.xlane.xlu0 %8687 }
0x20e5   :  { %21117 = vpow2.f32 %v8712_v6  ;;  %v8706_v59 = vsub.f32 %v8674_v18, %v8688_v4 }
0x20e7   :  { %v8716_v51 = vmul.f32 1.442695, %v8706_v59 }
0x20e8   :  { %v8691_v48 = vpop.xlane.xlu0 %8690  ;;  %v8694_v33 = vpop.xlane.xlu1 %8693 }
0x20e9   :  { %21119 = vpow2.f32 %v8716_v51  ;;  %v8707_v41 = vsub.f32 %v8675_v21, %v8691_v48  ;;  %v8708_v60 = vsub.f32 %v8676_v2, %v8694_v33 }
0x20eb   :  { %v8718_v50 = vmul.f32 1.442695, %v8707_v41  ;;  %v8720_v29 = vmul.f32 1.442695, %v8708_v60 }
0x20ec   :  { %v8697_v58 = vpop.xlane.xlu0 %8696  ;;  %v8700_v57 = vpop.xlane.xlu1 %8699 }
0x20ed   :  { %21121 = vpow2.f32 %v8718_v50  ;;  %v8709_v37 = vsub.f32 %v8677_v38, %v8697_v58  ;;  %v8710_v42 = vsub.f32 %v8678_v8, %v8700_v57 }
0x20ee   :  { %v25018_v25 = vpop.eup %21115  ;;  %21123 = vpow2.f32 %v8720_v29 }
0x20ef   :  { %v25020_v39 = vpop.eup %21117  ;;  %v8722_v47 = vmul.f32 1.442695, %v8709_v37  ;;  %v8731_v18 = vsel %vm1138_vm4, %v25018_v25, 0.0  ;;  %v8724_v29 = vmul.f32 1.442695, %v8710_v42  ;;  %v27300_v42 = vld [vmem:[#allocation55_spill] sm:$0xff] }
0x20f0   :  { %8732 = vadd.xlane.f32.xlu0 %v8731_v18  ;;  %v8703_v46 = vpop.xlane.xlu0 %8702  ;;  %v20589_v21 = vpop.permute.xlu1 %20588  ;;  %v8728_v2 = vsel %vm1138_vm4, %v25020_v39, 0.0  ;;  %v27301_v18 = vld [vmem:[#allocation71_spill] sm:$0xff] }
0x20f1   :  { %21125 = vpow2.f32 %v8722_v47  ;;  %v8711_v30 = vsub.f32 %v8679_v27, %v8703_v46  ;;  %v20591_v6 = vunpack.i.h.bf16 %v20589_v21  ;;  %v20590_v58 = vunpack.i.l.bf16 %v20589_v21  ;;  %8729 = vadd.xlane.f32.xlu1 %v8728_v2  ;;  %v27302_v46 = vld [vmem:[#allocation72_spill] sm:$0xff]  ;;  %v27303_v21 = vld [vmem:[#allocation86_spill] sm:$0xff] }
0x20f2   :  { %v9181_v2 = vadd.f32 %v27303_v21, %v24586_v7 }
0x20f3   :  { %v25026_v38 = vpop.eup %21119  ;;  %v8726_v4 = vmul.f32 1.442695, %v8711_v30  ;;  %v19496_v59 = vpack.c.bf16 %v20591_v6, %v20590_v58  ;;  %v27304_v30 = vld [vmem:[#allocation87_spill] sm:$0xff]  ;;  %v27305_v58 = vld [vmem:[#allocation84_spill] sm:$0xff] }
0x20f4   :  { %v8734_v57 = vsel %vm1138_vm4, %v25026_v38, 0.0  ;;  %v9182_v6 = vadd.f32 %v27304_v30, %v24582_v61 }
0x20f5   :  { %21127 = vpow2.f32 %v8726_v4  ;;  %8735 = vadd.xlane.f32.xlu1 %v8734_v57  ;;  %19497 = vmatprep.subr.bf16.mxu0 %v19496_v59  ;;  %v27306_v4 = vld [vmem:[#allocation85_spill] sm:$0xff]  ;;  %v27307_v57 = vld [vmem:[#allocation90_spill] sm:$0xff] }
0x20f6   :  { %19499 = vmatpush3.bf16.msra.mxu0 %v19496_v59  ;;  %21129 = vpow2.f32 %v8724_v29  ;;  %v9179_v29 = vadd.f32 %v27305_v58, %v24528_v19  ;;  %v9180_v59 = vadd.f32 %v27306_v4, %v24524_v14  ;;  %v27310_v58 = vld [vmem:[#allocation89_spill] sm:$0xff] }
0x20f7   :  { %v25030_v8 = vpop.eup %21121  ;;  %v9184_v21 = vadd.f32 %v27310_v58, %v24603_v20 }
0x20f8   :  { %v25032_v51 = vpop.eup %21123  ;;  %v8737_v27 = vsel %vm1138_vm4, %v25030_v8, 0.0  ;;  %v20607_v4 = vpack.i.bf16 %v9180_v59, %v9179_v29 }
0x20f9   :  { %8738 = vadd.xlane.f32.xlu0 %v8737_v27  ;;  %v8740_v48 = vsel %vm1138_vm4, %v25032_v51, 0.0  ;;  %v9185_v27 = vadd.f32 %v27307_v57, %v24635_v9 }
0x20fa   :  { %8741 = vadd.xlane.f32.xlu1 %v8740_v48  ;;  %v27308_v48 = vld [vmem:[#allocation91_spill] sm:$0xff] }
0x20fb   :  { %v25038_v33 = vpop.eup %21125 }
0x20fc   :  { %v8743_v41 = vsel %vm1138_vm4, %v25038_v33, 0.0 }
0x20fd   :  { %8744 = vadd.xlane.f32.xlu0 %v8743_v41  ;;  %v9186_v41 = vadd.f32 %v27308_v48, %v24631_v54 }
0x20ff   :  { %v25042_v60 = vpop.eup %21127  ;;  %v20622_v13 = vpack.i.bf16 %v9186_v41, %v9185_v27 }
0x2100   :  { %v8749_v50 = vsel %vm1138_vm4, %v25042_v60, 0.0  ;;  %v25046_v37 = vpop.eup %21129 }
0x2101   :  { %8750 = vadd.xlane.f32.xlu0 %v8749_v50  ;;  %v8746_v47 = vsel %vm1138_vm4, %v25046_v37, 0.0  ;;  %v20612_v50 = vpack.i.bf16 %v9182_v6, %v9181_v2 }
0x2105   :  { %8747 = vadd.xlane.f32.xlu0 %v8746_v47  ;;  %v27309_v47 = vld [vmem:[#allocation88_spill] sm:$0xff] }
0x2106   :  { %v9183_v30 = vadd.f32 %v27309_v47, %v24607_v63 }
0x2108   :  { %v20617_v57 = vpack.i.bf16 %v9184_v21, %v9183_v30 }
0x210b   :  { %20598 = vrot.lane.b32.xlu1 %v27300_v42, %s21403_s16 }
0x210f   :  { %20603 = vrot.lane.b32.xlu1 %v27301_v18, %s21403_s16 }
0x2113   :  { %9187 = vrot.lane.b32.xlu1 %v24490_v35, %s21404_s11 }
0x2117   :  { %9189 = vrot.lane.b32.xlu1 %v24496_v3, %s21404_s11 }
0x211b   :  { %9193 = vrot.lane.b32.xlu1 %v24509_v53, %s21404_s11  ;;  %20593 = vrot.lane.b32.xlu0 %v27302_v46, %s21403_s16 }
0x211f   :  { %9197 = vrot.lane.b32.xlu1 %v24538_v32, %s21404_s11  ;;  %9191 = vrot.lane.b32.xlu0 %v24499_v10, %s21404_s11 }
0x2123   :  { %9201 = vrot.lane.b32.xlu1 %v24562_v45, %s21404_s11  ;;  %9195 = vrot.lane.b32.xlu0 %v24515_v43, %s21404_s11 }
0x2127   :  { %20613 = vrot.lane.b32.xlu1 %v20612_v50, %s21404_s11  ;;  %9199 = vrot.lane.b32.xlu0 %v24544_v11, %s21404_s11 }
0x212b   :  { %20623 = vrot.lane.b32.xlu1 %v20622_v13, %s21404_s11  ;;  %20608 = vrot.lane.b32.xlu0 %v20607_v4, %s21404_s11 }
0x212f   :  { %20618 = vrot.lane.b32.xlu0 %v20617_v57, %s21404_s11 }
0x217d   :  { %v8733_v6 = vpop.xlane.xlu0 %8732 }
0x217e   :  { %v8730_v2 = vpop.xlane.xlu1 %8729 }
0x217f   :  { %21131 = vrcp.f32 %v8730_v2 }
0x2180   :  { %21133 = vrcp.f32 %v8733_v6 }
0x2182   :  { %v8736_v50 = vpop.xlane.xlu1 %8735 }
0x2183   :  { %21135 = vrcp.f32 %v8736_v50 }
0x2186   :  { %v8739_v48 = vpop.xlane.xlu0 %8738 }
0x2187   :  { %v8742_v9 = vpop.xlane.xlu1 %8741  ;;  %21137 = vrcp.f32 %v8739_v48 }
0x2188   :  { %21139 = vrcp.f32 %v8742_v9 }
0x2189   :  { %v21132_v54 = vpop.eup %21131 }
0x218a   :  { %v8745_v47 = vpop.xlane.xlu0 %8744  ;;  %v8760_v63 = vmul.f32 %v21132_v54, %v25020_v39  ;;  %v21134_v48 = vpop.eup %21133 }
0x218b   :  { %v20599_v58 = vpop.permute.xlu1 %20598  ;;  %21141 = vrcp.f32 %v8745_v47  ;;  %v27311_v47 = vld [vmem:[#allocation92_spill] sm:$0xff] }
0x218c   :  { %17852 = vmatprep.mubr.msk.f32.mxu0 %vm1138_vm4, %v8760_v63  ;;  %v20601_v30 = vunpack.i.h.bf16 %v20599_v58  ;;  %v20600_v57 = vunpack.i.l.bf16 %v20599_v58 }
0x218d   :  { %v21136_v9 = vpop.eup %21135 }
0x218e   :  { %v8751_v29 = vpop.xlane.xlu0 %8750  ;;  %v19504_v58 = vpack.c.bf16 %v20601_v30, %v20600_v57  ;;  %v8762_v57 = vmul.f32 %v21136_v9, %v25026_v38 }
0x218f   :  { %v20604_v13 = vpop.permute.xlu1 %20603 }
0x2190   :  { %v20606_v39 = vunpack.i.h.bf16 %v20604_v13  ;;  %v20605_v20 = vunpack.i.l.bf16 %v20604_v13 }
0x2192   :  { %v8748_v59 = vpop.xlane.xlu0 %8747  ;;  %v19508_v13 = vpack.c.bf16 %v20606_v39, %v20605_v20  ;;  %v8761_v20 = vmul.f32 %v21134_v48, %v25018_v25 }
0x2193   :  { %v25094_v4 = vpop.permute.xlu1 %9187  ;;  %21143 = vrcp.f32 %v8748_v59  ;;  %v21138_v59 = vpop.eup %21137 }
0x2194   :  { %17912 = vmatprep.mubr.msk.f32.mxu1 %vm976_vm1, %v25094_v4  ;;  %21145 = vrcp.f32 %v8751_v29  ;;  %v8763_v29 = vmul.f32 %v21138_v59, %v25030_v8 }
0x2196   :  { %v20594_v21 = vpop.permute.xlu0 %20593 }
0x2197   :  { %v20596_v27 = vunpack.i.h.bf16 %v20594_v21  ;;  %v20595_v41 = vunpack.i.l.bf16 %v20594_v21  ;;  %v25098_v2 = vpop.permute.xlu1 %9189 }
0x2198   :  { %17913 = vmatmul.mubr.msk.f32.vlgmr.msra.gmra.mrb[172].mxu1 %vm976_vm1, %v25098_v2 }
0x2199   :  { %v19500_v63 = vpack.c.bf16 %v20596_v27, %v20595_v41  ;;  %v21140_v27 = vpop.eup %21139  ;;  %v27312_v41 = vld [vmem:[#allocation93_spill] sm:$0xff] }
0x219a   :  { %v25102_v54 = vpop.permute.xlu0 %9191  ;;  %v8764_v39 = vmul.f32 %v21140_v27, %v25032_v51 }
0x219b   :  { %v25104_v45 = vpop.permute.xlu1 %9193  ;;  %19501 = vmatprep.subr.bf16.mxu0 %v19500_v63  ;;  %17915 = vmatprep.mubr.msk.f32.mxu1 %vm976_vm1, %v25102_v54 }
0x219c   :  { %19503 = vmatpush3.bf16.msra.mxu0 %v19500_v63  ;;  %17916 = vmatmul.mubr.msk.f32.gmra.mrb[174].mxu1 %vm976_vm1, %v25104_v45  ;;  %v21142_v63 = vpop.eup %21141 }
0x219d   :  { %19505 = vmatprep.subr.bf16.mxu0 %v19504_v58  ;;  %v21144_v25 = vpop.eup %21143  ;;  %v8765_v38 = vmul.f32 %v21142_v63, %v25038_v33 }
0x219e   :  { %v25110_v6 = vpop.permute.xlu0 %9195 }
0x219f   :  { %v25112_v50 = vpop.permute.xlu1 %9197  ;;  %17918 = vmatprep.mubr.msk.f32.mxu1 %vm976_vm1, %v25110_v6 }
0x21a0   :  { %19507 = vmatpush3.bf16.msra.mxu0 %v19504_v58  ;;  %17919 = vmatmul.mubr.msk.f32.gmra.mrb[176].mxu1 %vm976_vm1, %v25112_v50  ;;  %v21146_v58 = vpop.eup %21145 }
0x21a1   :  { %19509 = vmatprep.subr.bf16.mxu0 %v19508_v13  ;;  %v8767_v8 = vmul.f32 %v21146_v58, %v25042_v60 }
0x21a2   :  { %v25118_v21 = vpop.permute.xlu0 %9199 }
0x21a3   :  { %v25120_v30 = vpop.permute.xlu1 %9201  ;;  %17921 = vmatprep.mubr.msk.f32.mxu1 %vm976_vm1, %v25118_v21 }
0x21a4   :  { %19511 = vmatpush3.bf16.msra.mxu0 %v19508_v13  ;;  %17922 = vmatmul.mubr.msk.f32.gmra.mrb[178].mxu1 %vm976_vm1, %v25120_v30  ;;  %v8766_v13 = vmul.f32 %v21144_v25, %v25046_v37  ;;  %v27313_v37 = vmov 1.0|1.0  }
0x21a5   :  { %19513 = vmatprep.subr.bf16.mxu0 %v27311_v47 }
0x21a7   :  { %17853 = vmatmul.mubr.msk.f32.vlgmr.msra.gmra.mrb[140].mxu0 %vm1138_vm4, %v8761_v20 }
0x21a8   :  { %17855 = vmatprep.mubr.msk.f32.mxu0 %vm1138_vm4, %v8762_v57  ;;  %19515 = vmatpush3.bf16.msra.mxu0 %v27311_v47 }
0x21a9   :  { %19517 = vmatprep.subr.bf16.mxu0 %v27312_v41 }
0x21ab   :  { %17856 = vmatmul.mubr.msk.f32.gmra.mrb[142].mxu0 %vm1138_vm4, %v8763_v29 }
0x21ac   :  { %17858 = vmatprep.mubr.msk.f32.mxu0 %vm1138_vm4, %v8764_v39 }
0x21af   :  { %17859 = vmatmul.mubr.msk.f32.gmra.mrb[144].mxu0 %vm1138_vm4, %v8765_v38 }
0x21b0   :  { %17861 = vmatprep.mubr.msk.f32.mxu0 %vm1138_vm4, %v8766_v13 }
0x21b3   :  { %17862 = vmatmul.mubr.msk.f32.gmra.mrb[146].mxu0 %vm1138_vm4, %v8767_v8 }
0x226b   :  { %v17914_v48 = vpop.f32.mrb[172].mxu1 }
0x226c   :  { %v9285_v51 = vpop.f32.mrb[173].mxu1 }
0x226f   :  { %v17917_v9 = vpop.f32.mrb[174].mxu1 }
0x2270   :  { %v9295_v20 = vpop.f32.mrb[175].mxu1 }
0x2273   :  { %v17920_v59 = vpop.f32.mrb[176].mxu1 }
0x2274   :  { %v9305_v57 = vpop.f32.mrb[177].mxu1 }
0x2277   :  { %v25143_v27 = vpop.f32.mrb[178].mxu1 }
0x2278   :  { %v9315_v33 = vpop.f32.mrb[179].mxu1 }
0x227a   :  { %v17854_v29 = vpop.f32.mrb[140].mxu0 }
0x227b   :  { %v8882_v63 = vpop.f32.mrb[141].mxu0 }
0x227c   :  { %17868 = vmatprep.mubr.msk.f32.mxu0 %vm976_vm1, %v8882_v63  ;;  %v20609_v63 = vpop.permute.xlu0 %20608 }
0x227d   :  { %17869 = vmatmul.mubr.msk.f32.vlgmr.msra.gmra.mrb[148].mxu0 %vm976_vm1, %v17854_v29 }
0x227e   :  { %19519 = vmatpush3.bf16.msra.mxu0 %v27312_v41  ;;  %v17857_v60 = vpop.f32.mrb[142].mxu0 }
0x227f   :  { %19545 = vmatprep.subr.msk.bf16.mxu0 %vm21872_vm5, %v27313_v37  ;;  %v8892_v25 = vpop.f32.mrb[143].mxu0 }
0x2280   :  { %17871 = vmatprep.mubr.msk.f32.mxu0 %vm976_vm1, %v8892_v25 }
0x2281   :  { %17872 = vmatmul.mubr.msk.f32.gmra.mrb[150].mxu0 %vm976_vm1, %v17857_v60  ;;  %v27317_v60 = vld [vmem:[#allocation74_spill] sm:$0xff] }
0x2282   :  { %v17860_v38 = vpop.f32.mrb[144].mxu0 }
0x2283   :  { %v8902_v58 = vpop.f32.mrb[145].mxu0 }
0x2284   :  { %17874 = vmatprep.mubr.msk.f32.mxu0 %vm976_vm1, %v8902_v58  ;;  %v20614_v58 = vpop.permute.xlu1 %20613 }
0x2285   :  { %17875 = vmatmul.mubr.msk.f32.gmra.mrb[152].mxu0 %vm976_vm1, %v17860_v38  ;;  %v27319_v38 = vld [vmem:[#allocation73_spill] sm:$0xff] }
0x2286   :  { %v17863_v13 = vpop.f32.mrb[146].mxu0 }
0x2287   :  { %v8912_v8 = vpop.f32.mrb[147].mxu0 }
0x2288   :  { %17877 = vmatprep.mubr.msk.f32.mxu0 %vm976_vm1, %v8912_v8 }
0x2289   :  { %17878 = vmatmul.mubr.msk.f32.gmra.mrb[154].mxu0 %vm976_vm1, %v17863_v13  ;;  %v9325_v13 = vmul.f32 %v17914_v48, %v22141_v62  ;;  %v20619_v48 = vpop.permute.xlu0 %20618 }
0x228a   :  { %17884 = vmatprep.mubr.msk.f32.mxu0 %vm976_vm1, %v24908_v12  ;;  %v20611_v12 = vunpack.i.h.bf16 %v20609_v63 }
0x228d   :  { %17885 = vmatmul.mubr.msk.f32.vlgmr.msra.gmra.mrb[148].mxu0 %vm976_vm1, %v24906_v0 }
0x228e   :  { %19547 = vmatpush3.bf16.msk.msra.mxu0 %vm21872_vm5, %v27313_v37  ;;  %17887 = vmatprep.mubr.msk.f32.mxu0 %vm976_vm1, %v24912_v28  ;;  %v20610_v28 = vunpack.i.l.bf16 %v20609_v63  ;;  %v20615_v63 = vunpack.i.l.bf16 %v20614_v58 }
0x228f   :  { %19549 = vmatprep.subr.msk.bf16.mxu0 %vm21957_vm8, %v27313_v37 }
0x2290   :  { %v19560_v25 = vpack.c.bf16 %v20611_v12, %v20610_v28  ;;  %v27321_v12 = vld [vmem:[#allocation63_spill] sm:$0xff] }
0x2291   :  { %17888 = vmatmul.mubr.msk.f32.gmra.mrb[150].mxu0 %vm976_vm1, %v24910_v55  ;;  %v9327_v28 = vmul.f32 %v17917_v9, %v27321_v12  ;;  %v20621_v9 = vunpack.i.h.bf16 %v20619_v48 }
0x2292   :  { %19551 = vmatpush3.bf16.msk.msra.mxu0 %vm21957_vm8, %v27313_v37  ;;  %17890 = vmatprep.mubr.msk.f32.mxu0 %vm976_vm1, %v24916_v26  ;;  %v9324_v26 = vmul.f32 %v22139_v56, %v9285_v51  ;;  %v20616_v51 = vunpack.i.h.bf16 %v20614_v58  ;;  %v9331_v58 = vmul.f32 %v25143_v27, %v22207_v31 }
0x2293   :  { %19553 = vmatprep.subr.msk.bf16.mxu0 %vm21985_vm11, %v27313_v37 }
0x2295   :  { %17891 = vmatmul.mubr.msk.f32.gmra.mrb[152].mxu0 %vm976_vm1, %v27317_v60  ;;  %v9328_v60 = vmul.f32 %v22186_v1, %v9305_v57  ;;  %v20620_v57 = vunpack.i.l.bf16 %v20619_v48 }
0x2296   :  { %19555 = vmatpush3.bf16.msk.msra.mxu0 %vm21985_vm11, %v27313_v37  ;;  %17893 = vmatprep.mubr.msk.f32.mxu0 %vm976_vm1, %v24920_v49  ;;  %v27320_v49 = vld [vmem:[#allocation62_spill] sm:$0xff] }
0x2297   :  { %19557 = vmatprep.subr.msk.bf16.mxu0 %vm22009_vm14, %v27313_v37  ;;  %v9326_v8 = vmul.f32 %v27320_v49, %v9295_v20  ;;  %v9330_v20 = vmul.f32 %v22204_v24, %v9315_v33 }
0x2299   :  { %17894 = vmatmul.mubr.msk.f32.gmra.mrb[154].mxu0 %vm976_vm1, %v27319_v38  ;;  %v9329_v38 = vmul.f32 %v17920_v59, %v22191_v22  ;;  %v19572_v59 = vpack.c.bf16 %v20621_v9, %v20620_v57 }
0x229a   :  { %19559 = vmatpush3.bf16.msk.msra.mxu0 %vm22009_vm14, %v27313_v37  ;;  %17940 = vmatprep.mubr.msk.f32.mxu0 %vm1138_vm4, %v9324_v26  ;;  %v19566_v26 = vpack.c.bf16 %v20616_v51, %v20615_v63 }
0x229b   :  { %19562 = vmatprep.subr.msk.bf16.mxu0 %vm21544_vm2, %v19560_v25 }
0x229d   :  { %17941 = vmatmul.mubr.msk.f32.vlgmr.msra.gmra.mrb[156].mxu0 %vm1138_vm4, %v9325_v13 }
0x229e   :  { %17943 = vmatprep.mubr.msk.f32.mxu0 %vm1138_vm4, %v9326_v8 }
0x22a1   :  { %17944 = vmatmul.mubr.msk.f32.gmra.mrb[158].mxu0 %vm1138_vm4, %v9327_v28 }
0x22a2   :  { %17946 = vmatprep.mubr.msk.f32.mxu0 %vm1138_vm4, %v9328_v60 }
0x22a3   :  { %19565 = vmatpush3.bf16.xpose.msk.msra.mxu0 %vm21544_vm2, %v19560_v25  ;;  %v20624_v25 = vpop.permute.xlu1 %20623 }
0x22a4   :  { %19568 = vmatprep.subr.msk.bf16.mxu0 %vm21544_vm2, %v19566_v26  ;;  %v20626_v33 = vunpack.i.h.bf16 %v20624_v25  ;;  %v20625_v13 = vunpack.i.l.bf16 %v20624_v25 }
0x22a5   :  { %17947 = vmatmul.mubr.msk.f32.gmra.mrb[160].mxu0 %vm1138_vm4, %v9329_v38 }
0x22a6   :  { %17949 = vmatprep.mubr.msk.f32.mxu0 %vm1138_vm4, %v9330_v20  ;;  %v19578_v8 = vpack.c.bf16 %v20626_v33, %v20625_v13 }
0x22a9   :  { %17950 = vmatmul.mubr.msk.f32.gmra.mrb[162].mxu0 %vm1138_vm4, %v9331_v58 }
0x22aa   :  { %17968 = vmatprep.mubr.msk.f32.mxu0 %vm976_vm1, %v25094_v4  ;;  %v27322_v4 = vld [vmem:[#allocation94_spill] sm:$0xff] }
0x22ab   :  { %19571 = vmatpush3.bf16.xpose.msk.msra.mxu0 %vm21544_vm2, %v19566_v26 }
0x22ac   :  { %19574 = vmatprep.subr.msk.bf16.mxu0 %vm21544_vm2, %v19572_v59 }
0x22b3   :  { %19577 = vmatpush3.bf16.xpose.msk.msra.mxu0 %vm21544_vm2, %v19572_v59 }
0x22b4   :  { %19580 = vmatprep.subr.msk.bf16.mxu0 %vm21544_vm2, %v19578_v8 }
0x22bb   :  { %19583 = vmatpush3.bf16.xpose.msk.msra.mxu0 %vm21544_vm2, %v19578_v8 }
0x22bc   :  { %19601 = vmatprep.subr.bf16.mxu0 %v27322_v4 }
0x22c2   :  { %17969 = vmatmul.mubr.msk.f32.vlgmr.msra.gmra.mrb[156].mxu0 %vm976_vm1, %v25098_v2 }
0x22c3   :  { %17971 = vmatprep.mubr.msk.f32.mxu0 %vm976_vm1, %v25102_v54  ;;  %19603 = vmatpush3.bf16.msra.mxu0 %v27322_v4 }
0x22c4   :  { %19629 = vmatprep.subr.msk.bf16.mxu0 %vm21872_vm5, %v27313_v37 }
0x22c6   :  { %17972 = vmatmul.mubr.msk.f32.gmra.mrb[158].mxu0 %vm976_vm1, %v25104_v45 }
0x22c7   :  { %17974 = vmatprep.mubr.msk.f32.mxu0 %vm976_vm1, %v25110_v6 }
0x22ca   :  { %17975 = vmatmul.mubr.msk.f32.gmra.mrb[160].mxu0 %vm976_vm1, %v25112_v50 }
0x22cb   :  { %17977 = vmatprep.mubr.msk.f32.mxu0 %vm976_vm1, %v25118_v21 }
0x22ce   :  { %17978 = vmatmul.mubr.msk.f32.gmra.mrb[162].mxu0 %vm976_vm1, %v25120_v30 }
0x2395   :  { %v17970_v2 = vpop.f32.mrb[156].mxu0 }
0x2396   :  { %v9607_v54 = vsel %vm22278_vm15, %v17970_v2, -1e+09  ;;  %v9567_v27 = vpop.f32.mrb[157].mxu0 }
0x2397   :  { %v9617_v51 = vsel %vm1138_vm4, %v9607_v54, -inf  ;;  %v9606_v45 = vsel %vm22283_vm3, %v9567_v27, -1e+09 }
0x2398   :  { %v9614_v6 = vsel %vm1138_vm4, %v9606_v45, -inf  ;;  %9618 = vmax.xlane.f32.xlu1 %v9617_v51 }
0x2399   :  { %9615 = vmax.xlane.f32.xlu0 %v9614_v6  ;;  %v17973_v50 = vpop.f32.mrb[158].mxu0 }
0x239a   :  { %v9577_v63 = vpop.f32.mrb[159].mxu0  ;;  %v9609_v28 = vsel %vm22303_vm7, %v17973_v50, -1e+09 }
0x239b   :  { %v9608_v21 = vsel %vm22294_vm6, %v9577_v63, -1e+09  ;;  %v9623_v38 = vsel %vm1138_vm4, %v9609_v28, -inf }
0x239c   :  { %v9620_v30 = vsel %vm1138_vm4, %v9608_v21, -inf }
0x239d   :  { %9621 = vmax.xlane.f32.xlu0 %v9620_v30  ;;  %v17976_v60 = vpop.f32.mrb[160].mxu0 }
0x239e   :  { %v9587_v26 = vpop.f32.mrb[161].mxu0  ;;  %v9611_v9 = vsel %vm22321_vm10, %v17976_v60, -1e+09 }
0x239f   :  { %v9610_v48 = vsel %vm22314_vm9, %v9587_v26, -1e+09  ;;  %v9629_v59 = vsel %vm1138_vm4, %v9611_v9, -inf }
0x23a0   :  { %v9626_v20 = vsel %vm1138_vm4, %v9610_v48, -inf }
0x23a1   :  { %9624 = vmax.xlane.f32.xlu0 %v9623_v38  ;;  %9627 = vmax.xlane.f32.xlu1 %v9626_v20  ;;  %v17979_v57 = vpop.f32.mrb[162].mxu0 }
0x23a2   :  { %v9597_v58 = vpop.f32.mrb[163].mxu0  ;;  %v9613_v25 = vsel %vm22331_vm12, %v17979_v57, -1e+09 }
0x23a3   :  { %v9635_v33 = vsel %vm1138_vm4, %v9613_v25, -inf  ;;  %v9612_v13 = vsel %vm22346_vm13, %v9597_v58, -1e+09 }
0x23a4   :  { %v9632_v8 = vsel %vm1138_vm4, %v9612_v13, -inf }
0x23a5   :  { %9630 = vmax.xlane.f32.xlu0 %v9629_v59 }
0x23a9   :  { %9636 = vmax.xlane.f32.xlu0 %v9635_v33 }
0x23b2   :  { %20628 = vrot.lane.b32.xlu1 %v27299_v52, %s21405_s18 }
0x23d6   :  { %9633 = vmax.xlane.f32.xlu1 %v9632_v8 }
0x23e7   :  { %20638 = vrot.lane.b32.xlu1 %v27300_v42, %s21405_s18 }
0x2425   :  { %v9619_v2 = vpop.xlane.xlu1 %9618 }
0x2426   :  { %v9639_v27 = vsub.f32 %v9607_v54, %v9619_v2  ;;  %v9616_v51 = vpop.xlane.xlu0 %9615 }
0x2427   :  { %v9638_v6 = vsub.f32 %v9606_v45, %v9616_v51 }
0x2428   :  { %v9648_v50 = vmul.f32 1.442695, %v9639_v27 }
0x2429   :  { %v9646_v63 = vmul.f32 1.442695, %v9638_v6 }
0x242a   :  { %21147 = vpow2.f32 %v9648_v50  ;;  %v9622_v45 = vpop.xlane.xlu0 %9621 }
0x242b   :  { %21149 = vpow2.f32 %v9646_v63  ;;  %v9640_v8 = vsub.f32 %v9608_v21, %v9622_v45 }
0x242d   :  { %v9650_v51 = vmul.f32 1.442695, %v9640_v8  ;;  %v27323_v8 = vld [vmem:[#allocation68_spill] sm:$0xff] }
0x242e   :  { %v9628_v30 = vpop.xlane.xlu1 %9627  ;;  %v9625_v33 = vpop.xlane.xlu0 %9624 }
0x242f   :  { %v9641_v2 = vsub.f32 %v9609_v28, %v9625_v33  ;;  %v9642_v6 = vsub.f32 %v9610_v48, %v9628_v30  ;;  %21151 = vpow2.f32 %v9650_v51 }
0x2431   :  { %v9652_v50 = vmul.f32 1.442695, %v9641_v2  ;;  %v9654_v63 = vmul.f32 1.442695, %v9642_v6  ;;  %v9993_v2 = vadd.f32 %v27323_v8, %v24524_v14  ;;  %v27331_v14 = vld [vmem:[#allocation64_spill] sm:$0xff] }
0x2432   :  { %v20629_v60 = vpop.permute.xlu1 %20628  ;;  %v9631_v27 = vpop.xlane.xlu0 %9630 }
0x2433   :  { %v20631_v26 = vunpack.i.h.bf16 %v20629_v60  ;;  %v20630_v38 = vunpack.i.l.bf16 %v20629_v60  ;;  %v9643_v60 = vsub.f32 %v9611_v9, %v9631_v27  ;;  %21153 = vpow2.f32 %v9652_v50 }
0x2434   :  { %v25276_v20 = vpop.eup %21147  ;;  %21155 = vpow2.f32 %v9654_v63  ;;  %v27330_v63 = vld [vmem:[#allocation56_spill] sm:$0xff] }
0x2435   :  { %v25278_v57 = vpop.eup %21149  ;;  %v9665_v58 = vsel %vm1138_vm4, %v25276_v20, 0.0  ;;  %v19584_v59 = vpack.c.bf16 %v20631_v26, %v20630_v38  ;;  %v9656_v38 = vmul.f32 1.442695, %v9643_v60  ;;  %v9999_v60 = vadd.f32 %v27331_v14, %v27330_v63 }
0x2436   :  { %9666 = vadd.xlane.f32.xlu0 %v9665_v58  ;;  %v9662_v54 = vsel %vm1138_vm4, %v25278_v57, 0.0  ;;  %v9637_v26 = vpop.xlane.xlu0 %9636 }
0x2437   :  { %19585 = vmatprep.subr.bf16.mxu1 %v19584_v59  ;;  %9663 = vadd.xlane.f32.xlu1 %v9662_v54  ;;  %v9645_v58 = vsub.f32 %v9613_v25, %v9637_v26  ;;  %21157 = vpow2.f32 %v9656_v38  ;;  %v27332_v38 = vld [vmem:[#allocation35_spill] sm:$0xff] }
0x2438   :  { %19587 = vmatpush3.bf16.msra.mxu1 %v19584_v59 }
0x2439   :  { %v9660_v4 = vmul.f32 1.442695, %v9645_v58  ;;  %v25288_v47 = vpop.eup %21151  ;;  %v27333_v58 = vld [vmem:[#allocation69_spill] sm:$0xff] }
0x243a   :  { %v9668_v28 = vsel %vm1138_vm4, %v25288_v47, 0.0 }
0x243d   :  { %v25290_v21 = vpop.eup %21153 }
0x243e   :  { %v25294_v48 = vpop.eup %21155  ;;  %v9671_v9 = vsel %vm1138_vm4, %v25290_v21, 0.0 }
0x243f   :  { %v9674_v25 = vsel %vm1138_vm4, %v25294_v48, 0.0 }
0x2448   :  { %20643 = vrot.lane.b32.xlu1 %v27301_v18, %s21405_s18 }
0x244c   :  { %20633 = vrot.lane.b32.xlu0 %v27302_v46, %s21405_s18 }
0x2463   :  { %v9634_v59 = vpop.xlane.xlu1 %9633 }
0x2464   :  { %v9644_v54 = vsub.f32 %v9612_v13, %v9634_v59  ;;  %v25300_v13 = vpop.eup %21157  ;;  %v27334_v59 = vld [vmem:[#allocation57_spill] sm:$0xff] }
0x2466   :  { %v9658_v41 = vmul.f32 1.442695, %v9644_v54  ;;  %v27335_v54 = vld [vmem:[#allocation65_spill] sm:$0xff] }
0x2468   :  { %21159 = vpow2.f32 %v9658_v41  ;;  %v9677_v41 = vsel %vm1138_vm4, %v25300_v13, 0.0 }
0x2469   :  { %21161 = vpow2.f32 %v9660_v4 }
0x246b   :  { %9669 = vadd.xlane.f32.xlu0 %v9668_v28 }
0x246c   :  { %9672 = vadd.xlane.f32.xlu1 %v9671_v9  ;;  %v20639_v9 = vpop.permute.xlu1 %20638 }
0x246f   :  { %9675 = vadd.xlane.f32.xlu0 %v9674_v25 }
0x2472   :  { %v25302_v30 = vpop.eup %21159 }
0x2473   :  { %v25306_v4 = vpop.eup %21161  ;;  %9678 = vadd.xlane.f32.xlu0 %v9677_v41  ;;  %v9680_v45 = vsel %vm1138_vm4, %v25302_v30, 0.0 }
0x2474   :  { %9681 = vadd.xlane.f32.xlu1 %v9680_v45  ;;  %v9683_v33 = vsel %vm1138_vm4, %v25306_v4, 0.0 }
0x2477   :  { %9684 = vadd.xlane.f32.xlu0 %v9683_v33  ;;  %v20641_v33 = vunpack.i.h.bf16 %v20639_v9 }
0x2485   :  { %10000 = vrot.lane.b32.xlu1 %v24490_v35, %s21406_s28  ;;  %v27324_v35 = vld [vmem:[#allocation70_spill] sm:$0xff] }
0x2486   :  { %v9995_v27 = vadd.f32 %v27324_v35, %v24582_v61 }
0x2489   :  { %10004 = vrot.lane.b32.xlu1 %v24499_v10, %s21406_s28  ;;  %v27325_v10 = vld [vmem:[#allocation66_spill] sm:$0xff] }
0x248a   :  { %v9992_v51 = vadd.f32 %v27325_v10, %v24528_v19  ;;  %v9996_v19 = vadd.f32 %v27333_v58, %v27332_v38 }
0x248c   :  { %v20647_v26 = vpack.i.bf16 %v9993_v2, %v9992_v51  ;;  %v20640_v2 = vunpack.i.l.bf16 %v20639_v9 }
0x248d   :  { %10002 = vrot.lane.b32.xlu0 %v24496_v3, %s21406_s28  ;;  %10006 = vrot.lane.b32.xlu1 %v24509_v53, %s21406_s28  ;;  %v27326_v3 = vld [vmem:[#allocation67_spill] sm:$0xff] }
0x248e   :  { %v9994_v6 = vadd.f32 %v27326_v3, %v24586_v7  ;;  %v27327_v53 = vld [vmem:[#allocation31_spill] sm:$0xff]  ;;  %v9998_v7 = vadd.f32 %v27335_v54, %v27334_v59  ;;  %v27336_v59 = vld [vmem:[#allocation5_spill] sm:$0xff] }
0x2490   :  { %v20652_v61 = vpack.i.bf16 %v9995_v27, %v9994_v6  ;;  %v20662_v28 = vpack.i.bf16 %v9999_v60, %v9998_v7  ;;  %v27337_v7 = vld [vmem:[#allocation6_spill] sm:$0xff] }
0x2491   :  { %10008 = vrot.lane.b32.xlu0 %v24515_v43, %s21406_s28  ;;  %10010 = vrot.lane.b32.xlu1 %v24538_v32, %s21406_s28  ;;  %v27328_v43 = vld [vmem:[#allocation37_spill] sm:$0xff] }
0x2492   :  { %v27329_v32 = vld [vmem:[#allocation17_spill] sm:$0xff] }
0x2493   :  { %v9997_v50 = vadd.f32 %v27329_v32, %v27328_v43 }
0x2495   :  { %10012 = vrot.lane.b32.xlu0 %v24544_v11, %s21406_s28  ;;  %10014 = vrot.lane.b32.xlu1 %v27327_v53, %s21406_s28  ;;  %v20657_v11 = vpack.i.bf16 %v9997_v50, %v9996_v19  ;;  %v19592_v50 = vpack.c.bf16 %v20641_v33, %v20640_v2 }
0x2499   :  { %20648 = vrot.lane.b32.xlu0 %v20647_v26, %s21406_s28  ;;  %20653 = vrot.lane.b32.xlu1 %v20652_v61, %s21406_s28 }
0x249d   :  { %20658 = vrot.lane.b32.xlu0 %v20657_v11, %s21406_s28  ;;  %20663 = vrot.lane.b32.xlu1 %v20662_v28, %s21406_s28 }
0x24c3   :  { %v9667_v25 = vpop.xlane.xlu0 %9666 }
0x24c4   :  { %v9664_v41 = vpop.xlane.xlu1 %9663 }
0x24c5   :  { %21163 = vrcp.f32 %v9664_v41 }
0x24c6   :  { %21165 = vrcp.f32 %v9667_v25 }
0x24c7   :  { %v20634_v45 = vpop.permute.xlu0 %20633 }
0x24c8   :  { %v20636_v27 = vunpack.i.h.bf16 %v20634_v45  ;;  %v20635_v51 = vunpack.i.l.bf16 %v20634_v45  ;;  %v20644_v6 = vpop.permute.xlu1 %20643 }
0x24c9   :  { %v20646_v43 = vunpack.i.h.bf16 %v20644_v6  ;;  %v20645_v63 = vunpack.i.l.bf16 %v20644_v6 }
0x24ca   :  { %v19588_v53 = vpack.c.bf16 %v20636_v27, %v20635_v51 }
0x24cb   :  { %v19596_v26 = vpack.c.bf16 %v20646_v43, %v20645_v63 }
0x24cc   :  { %19589 = vmatprep.subr.bf16.mxu1 %v19588_v53 }
0x24cd   :  { %19591 = vmatpush3.bf16.msra.mxu1 %v19588_v53 }
0x24ce   :  { %19593 = vmatprep.subr.bf16.mxu1 %v19592_v50 }
0x24cf   :  { %v21164_v60 = vpop.eup %21163 }
0x24d0   :  { %v9694_v61 = vmul.f32 %v21164_v60, %v25278_v57  ;;  %v21166_v38 = vpop.eup %21165  ;;  %v27338_v57 = vld [vmem:[#allocation7_spill] sm:$0xff] }
0x24d1   :  { %19595 = vmatpush3.bf16.msra.mxu1 %v19592_v50  ;;  %v9695_v19 = vmul.f32 %v21166_v38, %v25276_v20  ;;  %v27339_v20 = vld [vmem:[#allocation8_spill] sm:$0xff] }
0x24d2   :  { %19597 = vmatprep.subr.bf16.mxu1 %v19596_v26  ;;  %17996 = vmatprep.mubr.msk.f32.mxu1 %vm1138_vm4, %v9694_v61 }
0x24d5   :  { %19599 = vmatpush3.bf16.msra.mxu1 %v19596_v26 }
0x24d6   :  { %19606 = vmatprep.subr.msk.bf16.mxu1 %vm21544_vm2, %v27336_v59 }
0x24d8   :  { %17997 = vmatmul.mubr.msk.f32.vlgmr.msra.gmra.mrb[180].mxu1 %vm1138_vm4, %v9695_v19 }
0x24de   :  { %19609 = vmatpush3.bf16.xpose.msk.msra.mxu1 %vm21544_vm2, %v27336_v59 }
0x24df   :  { %19612 = vmatprep.subr.msk.bf16.mxu1 %vm21544_vm2, %v27337_v7 }
0x24e6   :  { %19615 = vmatpush3.bf16.xpose.msk.msra.mxu1 %vm21544_vm2, %v27337_v7 }
0x24e7   :  { %19618 = vmatprep.subr.msk.bf16.mxu1 %vm21544_vm2, %v27338_v57 }
0x24ee   :  { %19621 = vmatpush3.bf16.xpose.msk.msra.mxu1 %vm21544_vm2, %v27338_v57 }
0x24ef   :  { %19624 = vmatprep.subr.msk.bf16.mxu1 %vm21544_vm2, %v27339_v20 }
0x24f6   :  { %19627 = vmatpush3.bf16.xpose.msk.msra.mxu1 %vm21544_vm2, %v27339_v20 }
0x24f8   :  { %v9670_v11 = vpop.xlane.xlu0 %9669 }
0x24f9   :  { %21167 = vrcp.f32 %v9670_v11  ;;  %v9673_v28 = vpop.xlane.xlu1 %9672 }
0x24fa   :  { %21169 = vrcp.f32 %v9673_v28 }
0x24fc   :  { %v9676_v9 = vpop.xlane.xlu0 %9675 }
0x24fd   :  { %21171 = vrcp.f32 %v9676_v9 }
0x2500   :  { %v9679_v25 = vpop.xlane.xlu0 %9678 }
0x2501   :  { %21173 = vrcp.f32 %v9679_v25  ;;  %v9682_v41 = vpop.xlane.xlu1 %9681 }
0x2502   :  { %21175 = vrcp.f32 %v9682_v41 }
0x2503   :  { %v21168_v45 = vpop.eup %21167 }
0x2504   :  { %v21170_v33 = vpop.eup %21169  ;;  %v9685_v2 = vpop.xlane.xlu0 %9684  ;;  %v9696_v27 = vmul.f32 %v21168_v45, %v25288_v47 }
0x2505   :  { %21177 = vrcp.f32 %v9685_v2  ;;  %v9697_v51 = vmul.f32 %v21170_v33, %v25290_v21  ;;  %v25381_v43 = vpop.permute.xlu1 %10000 }
0x2506   :  { %17999 = vmatprep.mubr.msk.f32.mxu1 %vm1138_vm4, %v9696_v27 }
0x2507   :  { %v21172_v6 = vpop.eup %21171  ;;  %18000 = vmatmul.mubr.msk.f32.gmra.mrb[182].mxu1 %vm1138_vm4, %v9697_v51 }
0x2508   :  { %v9698_v53 = vmul.f32 %v21172_v6, %v25294_v48  ;;  %v25391_v48 = vpop.permute.xlu0 %10002 }
0x2509   :  { %v25387_v26 = vpop.permute.xlu1 %10004 }
0x250a   :  { %18002 = vmatprep.mubr.msk.f32.mxu1 %vm1138_vm4, %v9698_v53 }
0x250b   :  { %v21174_v63 = vpop.eup %21173 }
0x250c   :  { %v21176_v50 = vpop.eup %21175  ;;  %v9699_v60 = vmul.f32 %v21174_v63, %v25300_v13  ;;  %v25402_v13 = vpop.permute.xlu0 %10008 }
0x250d   :  { %v9700_v47 = vmul.f32 %v21176_v50, %v25302_v30  ;;  %v25396_v38 = vpop.permute.xlu1 %10006 }
0x250e   :  { %18003 = vmatmul.mubr.msk.f32.gmra.mrb[184].mxu1 %vm1138_vm4, %v9699_v60 }
0x250f   :  { %v21178_v21 = vpop.eup %21177  ;;  %18005 = vmatprep.mubr.msk.f32.mxu1 %vm1138_vm4, %v9700_v47 }
0x2510   :  { %v9701_v61 = vmul.f32 %v21178_v21, %v25306_v4  ;;  %v25410_v4 = vpop.permute.xlu0 %10012 }
0x2511   :  { %v25406_v30 = vpop.permute.xlu1 %10010 }
0x2512   :  { %18006 = vmatmul.mubr.msk.f32.gmra.mrb[186].mxu1 %vm1138_vm4, %v9701_v61 }
0x2513   :  { %18040 = vmatprep.mubr.msk.f32.mxu1 %vm976_vm1, %v25381_v43 }
0x2514   :  { %v20649_v9 = vpop.permute.xlu0 %20648 }
0x2515   :  { %v25416_v19 = vpop.permute.xlu1 %10014  ;;  %v20651_v25 = vunpack.i.h.bf16 %v20649_v9  ;;  %v20650_v41 = vunpack.i.l.bf16 %v20649_v9 }
0x2516   :  { %18041 = vmatmul.mubr.msk.f32.vlgmr.msra.gmra.mrb[188].mxu1 %vm976_vm1, %v25391_v48 }
0x2517   :  { %18043 = vmatprep.mubr.msk.f32.mxu1 %vm976_vm1, %v25387_v26  ;;  %v19644_v45 = vpack.c.bf16 %v20651_v25, %v20650_v41 }
0x2518   :  { %v20659_v41 = vpop.permute.xlu0 %20658 }
0x2519   :  { %v20654_v63 = vpop.permute.xlu1 %20653 }
0x251a   :  { %18044 = vmatmul.mubr.msk.f32.gmra.mrb[190].mxu1 %vm976_vm1, %v25396_v38  ;;  %v20656_v60 = vunpack.i.h.bf16 %v20654_v63  ;;  %v20655_v47 = vunpack.i.l.bf16 %v20654_v63 }
0x251b   :  { %18046 = vmatprep.mubr.msk.f32.mxu1 %vm976_vm1, %v25402_v13 }
0x251c   :  { %v19650_v9 = vpack.c.bf16 %v20656_v60, %v20655_v47 }
0x251e   :  { %18047 = vmatmul.mubr.msk.f32.gmra.mrb[192].mxu1 %vm976_vm1, %v25406_v30 }
0x251f   :  { %18049 = vmatprep.mubr.msk.f32.mxu1 %vm976_vm1, %v25410_v4 }
0x2522   :  { %18050 = vmatmul.mubr.msk.f32.gmra.mrb[194].mxu1 %vm976_vm1, %v25416_v19 }
0x25ab   :  { %v17998_v11 = vpop.f32.mrb[180].mxu1 }
0x25ac   :  { %v9816_v28 = vpop.f32.mrb[181].mxu1 }
0x25ad   :  { %18012 = vmatprep.mubr.msk.f32.mxu0 %vm976_vm1, %v9816_v28 }
0x25ae   :  { %18013 = vmatmul.mubr.msk.f32.vlgmr.msra.gmra.mrb[148].mxu0 %vm976_vm1, %v17998_v11 }
0x25af   :  { %19631 = vmatpush3.bf16.msk.msra.mxu0 %vm21872_vm5, %v27313_v37 }
0x25b0   :  { %19633 = vmatprep.subr.msk.bf16.mxu0 %vm21957_vm8, %v27313_v37 }
0x25b3   :  { %19635 = vmatpush3.bf16.msk.msra.mxu0 %vm21957_vm8, %v27313_v37 }
0x25b4   :  { %19637 = vmatprep.subr.msk.bf16.mxu0 %vm21985_vm11, %v27313_v37 }
0x25b7   :  { %19639 = vmatpush3.bf16.msk.msra.mxu0 %vm21985_vm11, %v27313_v37 }
0x25b8   :  { %19641 = vmatprep.subr.msk.bf16.mxu0 %vm22009_vm14, %v27313_v37 }
0x25bb   :  { %19643 = vmatpush3.bf16.msk.msra.mxu0 %vm22009_vm14, %v27313_v37 }
0x25bc   :  { %19646 = vmatprep.subr.msk.bf16.mxu0 %vm21544_vm2, %v19644_v45 }
0x25da   :  { %v18001_v33 = vpop.f32.mrb[182].mxu1 }
0x25db   :  { %v9826_v2 = vpop.f32.mrb[183].mxu1 }
0x25dc   :  { %18015 = vmatprep.mubr.msk.f32.mxu0 %vm976_vm1, %v9826_v2 }
0x25dd   :  { %18016 = vmatmul.mubr.msk.f32.gmra.mrb[150].mxu0 %vm976_vm1, %v18001_v33 }
0x25e1   :  { %v18004_v27 = vpop.f32.mrb[184].mxu1 }
0x25e2   :  { %v9836_v51 = vpop.f32.mrb[185].mxu1 }
0x25e3   :  { %18018 = vmatprep.mubr.msk.f32.mxu0 %vm976_vm1, %v9836_v51  ;;  %v20661_v51 = vunpack.i.h.bf16 %v20659_v41 }
0x25e4   :  { %18019 = vmatmul.mubr.msk.f32.gmra.mrb[152].mxu0 %vm976_vm1, %v18004_v27 }
0x25e5   :  { %v18007_v6 = vpop.f32.mrb[186].mxu1 }
0x25e6   :  { %v9846_v53 = vpop.f32.mrb[187].mxu1 }
0x25e7   :  { %18021 = vmatprep.mubr.msk.f32.mxu0 %vm976_vm1, %v9846_v53 }
0x25e8   :  { %18022 = vmatmul.mubr.msk.f32.gmra.mrb[154].mxu0 %vm976_vm1, %v18007_v6  ;;  %v20660_v6 = vunpack.i.l.bf16 %v20659_v41 }
0x25e9   :  { %v18042_v50 = vpop.f32.mrb[188].mxu1 }
0x25ea   :  { %v10098_v21 = vpop.f32.mrb[189].mxu1  ;;  %v10138_v11 = vmul.f32 %v18042_v50, %v22141_v62 }
0x25eb   :  { %v10137_v61 = vmul.f32 %v22139_v56, %v10098_v21  ;;  %v20664_v21 = vpop.permute.xlu1 %20663 }
0x25ed   :  { %v18045_v28 = vpop.f32.mrb[190].mxu1  ;;  %18068 = vmatprep.mubr.msk.f32.mxu0 %vm1138_vm4, %v10137_v61 }
0x25ee   :  { %v10108_v25 = vpop.f32.mrb[191].mxu1  ;;  %18069 = vmatmul.mubr.msk.f32.vlgmr.msra.gmra.mrb[164].mxu0 %vm1138_vm4, %v10138_v11  ;;  %v10140_v2 = vmul.f32 %v18045_v28, %v27321_v12  ;;  %v20666_v28 = vunpack.i.h.bf16 %v20664_v21 }
0x25ef   :  { %v10139_v33 = vmul.f32 %v27320_v49, %v10108_v25  ;;  %19649 = vmatpush3.bf16.xpose.msk.msra.mxu0 %vm21544_vm2, %v19644_v45  ;;  %v19656_v45 = vpack.c.bf16 %v20661_v51, %v20660_v6  ;;  %v20665_v25 = vunpack.i.l.bf16 %v20664_v21 }
0x25f0   :  { %19652 = vmatprep.subr.msk.bf16.mxu0 %vm21544_vm2, %v19650_v9 }
0x25f1   :  { %v18048_v27 = vpop.f32.mrb[192].mxu1  ;;  %18071 = vmatprep.mubr.msk.f32.mxu0 %vm1138_vm4, %v10139_v33  ;;  %v19662_v41 = vpack.c.bf16 %v20666_v28, %v20665_v25 }
0x25f2   :  { %v10118_v53 = vpop.f32.mrb[193].mxu1  ;;  %18072 = vmatmul.mubr.msk.f32.gmra.mrb[166].mxu0 %vm1138_vm4, %v10140_v2  ;;  %v10142_v50 = vmul.f32 %v18048_v27, %v22191_v22 }
0x25f3   :  { %v10141_v63 = vmul.f32 %v22186_v1, %v10118_v53 }
0x25f5   :  { %v18051_v60 = vpop.f32.mrb[194].mxu1  ;;  %18074 = vmatprep.mubr.msk.f32.mxu0 %vm1138_vm4, %v10141_v63 }
0x25f6   :  { %v10128_v47 = vpop.f32.mrb[195].mxu1  ;;  %18075 = vmatmul.mubr.msk.f32.gmra.mrb[168].mxu0 %vm1138_vm4, %v10142_v50  ;;  %v10144_v11 = vmul.f32 %v18051_v60, %v22207_v31 }
0x25f7   :  { %v10143_v61 = vmul.f32 %v22204_v24, %v10128_v47  ;;  %19655 = vmatpush3.bf16.xpose.msk.msra.mxu0 %vm21544_vm2, %v19650_v9  ;;  %v27340_v9 = vld [vmem:[#allocation83_spill] sm:$0xff] }
0x25f8   :  { %19658 = vmatprep.subr.msk.bf16.mxu0 %vm21544_vm2, %v19656_v45 }
0x25f9   :  { %18077 = vmatprep.mubr.msk.f32.mxu0 %vm1138_vm4, %v10143_v61 }
0x25fa   :  { %18078 = vmatmul.mubr.msk.f32.gmra.mrb[170].mxu0 %vm1138_vm4, %v10144_v11 }
0x25fb   :  { %18096 = vmatprep.mubr.msk.f32.mxu0 %vm976_vm1, %v25381_v43 }
0x25ff   :  { %19661 = vmatpush3.bf16.xpose.msk.msra.mxu0 %vm21544_vm2, %v19656_v45 }
0x2600   :  { %19664 = vmatprep.subr.msk.bf16.mxu0 %vm21544_vm2, %v19662_v41 }
0x2607   :  { %19667 = vmatpush3.bf16.xpose.msk.msra.mxu0 %vm21544_vm2, %v19662_v41 }
0x2608   :  { %19685 = vmatprep.subr.bf16.mxu0 %v27340_v9 }
0x260e   :  { %18097 = vmatmul.mubr.msk.f32.vlgmr.msra.gmra.mrb[164].mxu0 %vm976_vm1, %v25391_v48 }
0x260f   :  { %18099 = vmatprep.mubr.msk.f32.mxu0 %vm976_vm1, %v25387_v26  ;;  %19687 = vmatpush3.bf16.msra.mxu0 %v27340_v9 }
0x2612   :  { %18100 = vmatmul.mubr.msk.f32.gmra.mrb[166].mxu0 %vm976_vm1, %v25396_v38 }
0x2613   :  { %18102 = vmatprep.mubr.msk.f32.mxu0 %vm976_vm1, %v25402_v13 }
0x2616   :  { %18103 = vmatmul.mubr.msk.f32.gmra.mrb[168].mxu0 %vm976_vm1, %v25406_v30 }
0x2617   :  { %18105 = vmatprep.mubr.msk.f32.mxu0 %vm976_vm1, %v25410_v4 }
0x261a   :  { %18106 = vmatmul.mubr.msk.f32.gmra.mrb[170].mxu0 %vm976_vm1, %v25416_v19 }
0x26e1   :  { %v18098_v43 = vpop.f32.mrb[164].mxu0 }
0x26e2   :  { %v10420_v26 = vsel %vm22278_vm15, %v18098_v43, -1e+09  ;;  %v10380_v48 = vpop.f32.mrb[165].mxu0 }
0x26e3   :  { %v10430_v33 = vsel %vm1138_vm4, %v10420_v26, -inf  ;;  %v10419_v38 = vsel %vm22283_vm3, %v10380_v48, -1e+09 }
0x26e4   :  { %v10427_v13 = vsel %vm1138_vm4, %v10419_v38, -inf  ;;  %10431 = vmax.xlane.f32.xlu1 %v10430_v33 }
0x26e5   :  { %10428 = vmax.xlane.f32.xlu0 %v10427_v13  ;;  %v18101_v30 = vpop.f32.mrb[166].mxu0 }
0x26e6   :  { %v10390_v2 = vpop.f32.mrb[167].mxu0  ;;  %v10422_v27 = vsel %vm22303_vm7, %v18101_v30, -1e+09 }
0x26e7   :  { %v10421_v4 = vsel %vm22294_vm6, %v10390_v2, -1e+09  ;;  %v10436_v63 = vsel %vm1138_vm4, %v10422_v27, -inf }
0x26e8   :  { %v10433_v19 = vsel %vm1138_vm4, %v10421_v4, -inf }
0x26e9   :  { %10434 = vmax.xlane.f32.xlu0 %v10433_v19  ;;  %v18104_v51 = vpop.f32.mrb[168].mxu0 }
0x26ea   :  { %v10400_v6 = vpop.f32.mrb[169].mxu0  ;;  %v10424_v60 = vsel %vm22321_vm10, %v18104_v51, -1e+09 }
0x26eb   :  { %v10423_v53 = vsel %vm22314_vm9, %v10400_v6, -1e+09  ;;  %v10442_v21 = vsel %vm1138_vm4, %v10424_v60, -inf }
0x26ec   :  { %v10439_v50 = vsel %vm1138_vm4, %v10423_v53, -inf }
0x26ed   :  { %10437 = vmax.xlane.f32.xlu0 %v10436_v63  ;;  %10440 = vmax.xlane.f32.xlu1 %v10439_v50  ;;  %v18107_v45 = vpop.f32.mrb[170].mxu0 }
0x26ee   :  { %v10410_v47 = vpop.f32.mrb[171].mxu0  ;;  %v10426_v61 = vsel %vm22331_vm12, %v18107_v45, -1e+09 }
0x26ef   :  { %v10448_v11 = vsel %vm1138_vm4, %v10426_v61, -inf  ;;  %v10425_v28 = vsel %vm22346_vm13, %v10410_v47, -1e+09 }
0x26f0   :  { %v10445_v25 = vsel %vm1138_vm4, %v10425_v28, -inf }
0x26f1   :  { %10443 = vmax.xlane.f32.xlu0 %v10442_v21 }
0x26f5   :  { %10449 = vmax.xlane.f32.xlu0 %v10448_v11 }
0x26fe   :  { %20668 = vrot.lane.b32.xlu1 %v27299_v52, %s21402_s15 }
0x2722   :  { %10446 = vmax.xlane.f32.xlu1 %v10445_v25 }
0x2733   :  { %20678 = vrot.lane.b32.xlu1 %v27300_v42, %s21402_s15 }
0x2771   :  { %v10432_v41 = vpop.xlane.xlu1 %10431 }
0x2772   :  { %v10452_v43 = vsub.f32 %v10420_v26, %v10432_v41  ;;  %v10429_v48 = vpop.xlane.xlu0 %10428 }
0x2773   :  { %v10451_v33 = vsub.f32 %v10419_v38, %v10429_v48 }
0x2774   :  { %v10461_v13 = vmul.f32 1.442695, %v10452_v43 }
0x2775   :  { %v10459_v30 = vmul.f32 1.442695, %v10451_v33 }
0x2776   :  { %21179 = vpow2.f32 %v10461_v13  ;;  %v10435_v38 = vpop.xlane.xlu0 %10434 }
0x2777   :  { %21181 = vpow2.f32 %v10459_v30  ;;  %v10453_v47 = vsub.f32 %v10421_v4, %v10435_v38 }
0x2779   :  { %v10463_v25 = vmul.f32 1.442695, %v10453_v47 }
0x277a   :  { %v10441_v2 = vpop.xlane.xlu1 %10440  ;;  %v10438_v45 = vpop.xlane.xlu0 %10437 }
0x277b   :  { %v10454_v21 = vsub.f32 %v10422_v27, %v10438_v45  ;;  %v10455_v41 = vsub.f32 %v10423_v53, %v10441_v2  ;;  %21183 = vpow2.f32 %v10463_v25 }
0x277d   :  { %v10465_v43 = vmul.f32 1.442695, %v10454_v21  ;;  %v10467_v48 = vmul.f32 1.442695, %v10455_v41 }
0x277e   :  { %v20669_v19 = vpop.permute.xlu1 %20668  ;;  %v10444_v11 = vpop.xlane.xlu0 %10443 }
0x277f   :  { %v20671_v52 = vunpack.i.h.bf16 %v20669_v19  ;;  %v20670_v51 = vunpack.i.l.bf16 %v20669_v19  ;;  %v10456_v33 = vsub.f32 %v10424_v60, %v10444_v11  ;;  %21185 = vpow2.f32 %v10465_v43 }
0x2780   :  { %v25527_v6 = vpop.eup %21179  ;;  %21187 = vpow2.f32 %v10467_v48 }
0x2781   :  { %v25529_v63 = vpop.eup %21181  ;;  %v10478_v50 = vsel %vm1138_vm4, %v25527_v6, 0.0  ;;  %v19668_v42 = vpack.c.bf16 %v20671_v52, %v20670_v51  ;;  %v10469_v30 = vmul.f32 1.442695, %v10456_v33 }
0x2782   :  { %10479 = vadd.xlane.f32.xlu0 %v10478_v50  ;;  %v10475_v26 = vsel %vm1138_vm4, %v25529_v63, 0.0  ;;  %v10450_v13 = vpop.xlane.xlu0 %10449 }
0x2783   :  { %19669 = vmatprep.subr.bf16.mxu1 %v19668_v42  ;;  %10476 = vadd.xlane.f32.xlu1 %v10475_v26  ;;  %v10458_v19 = vsub.f32 %v10426_v61, %v10450_v13  ;;  %21189 = vpow2.f32 %v10469_v30 }
0x2784   :  { %19671 = vmatpush3.bf16.msra.mxu1 %v19668_v42 }
0x2785   :  { %v10473_v51 = vmul.f32 1.442695, %v10458_v19  ;;  %v25539_v50 = vpop.eup %21183 }
0x2786   :  { %v10481_v27 = vsel %vm1138_vm4, %v25539_v50, 0.0 }
0x2789   :  { %v25541_v4 = vpop.eup %21185 }
0x278a   :  { %v25545_v53 = vpop.eup %21187  ;;  %v10484_v60 = vsel %vm1138_vm4, %v25541_v4, 0.0 }
0x278b   :  { %v10487_v61 = vsel %vm1138_vm4, %v25545_v53, 0.0 }
0x2794   :  { %20683 = vrot.lane.b32.xlu1 %v27301_v18, %s21402_s15 }
0x2798   :  { %20673 = vrot.lane.b32.xlu0 %v27302_v46, %s21402_s15 }
0x27af   :  { %v10447_v18 = vpop.xlane.xlu1 %10446 }
0x27b0   :  { %v10457_v52 = vsub.f32 %v10425_v28, %v10447_v18  ;;  %v25551_v28 = vpop.eup %21189 }
0x27b1   :  { %v10490_v42 = vsel %vm1138_vm4, %v25551_v28, 0.0 }
0x27b2   :  { %v10471_v46 = vmul.f32 1.442695, %v10457_v52 }
0x27b3   :  { %v20679_v47 = vpop.permute.xlu1 %20678 }
0x27b4   :  { %21191 = vpow2.f32 %v10471_v46  ;;  %v20681_v41 = vunpack.i.h.bf16 %v20679_v47  ;;  %v20680_v43 = vunpack.i.l.bf16 %v20679_v47 }
0x27b5   :  { %21193 = vpow2.f32 %v10473_v51 }
0x27b6   :  { %v19676_v52 = vpack.c.bf16 %v20681_v41, %v20680_v43 }
0x27b7   :  { %10482 = vadd.xlane.f32.xlu0 %v10481_v27 }
0x27b8   :  { %10485 = vadd.xlane.f32.xlu1 %v10484_v60 }
0x27bb   :  { %10488 = vadd.xlane.f32.xlu0 %v10487_v61 }
0x27be   :  { %v25553_v2 = vpop.eup %21191 }
0x27bf   :  { %v25557_v26 = vpop.eup %21193  ;;  %10491 = vadd.xlane.f32.xlu0 %v10490_v42  ;;  %v10493_v38 = vsel %vm1138_vm4, %v25553_v2, 0.0 }
0x27c0   :  { %10494 = vadd.xlane.f32.xlu1 %v10493_v38  ;;  %v10496_v45 = vsel %vm1138_vm4, %v25557_v26, 0.0 }
0x27c3   :  { %10497 = vadd.xlane.f32.xlu0 %v10496_v45 }
0x280f   :  { %v10480_v21 = vpop.xlane.xlu0 %10479 }
0x2810   :  { %v10477_v11 = vpop.xlane.xlu1 %10476 }
0x2811   :  { %21195 = vrcp.f32 %v10477_v11 }
0x2812   :  { %21197 = vrcp.f32 %v10480_v21 }
0x2813   :  { %v20674_v25 = vpop.permute.xlu0 %20673 }
0x2814   :  { %v20676_v48 = vunpack.i.h.bf16 %v20674_v25  ;;  %v20675_v33 = vunpack.i.l.bf16 %v20674_v25  ;;  %v20684_v13 = vpop.permute.xlu1 %20683 }
0x2815   :  { %v20686_v19 = vunpack.i.h.bf16 %v20684_v13  ;;  %v20685_v18 = vunpack.i.l.bf16 %v20684_v13 }
0x2816   :  { %v19672_v30 = vpack.c.bf16 %v20676_v48, %v20675_v33 }
0x2817   :  { %v19680_v46 = vpack.c.bf16 %v20686_v19, %v20685_v18  ;;  %v21362_v18 = vld [vmem:[%s26814_s3] ss:$0 sm:$0xff] }
0x2818   :  { %19673 = vmatprep.subr.bf16.mxu1 %v19672_v30 }
0x2819   :  { %19675 = vmatpush3.bf16.msra.mxu1 %v19672_v30 }
0x281a   :  { %19677 = vmatprep.subr.bf16.mxu1 %v19676_v52 }
0x281b   :  { %v21196_v51 = vpop.eup %21195 }
0x281c   :  { %v10507_v27 = vmul.f32 %v21196_v51, %v25529_v63  ;;  %v21198_v60 = vpop.eup %21197  ;;  %v27343_v51 = vld [vmem:[#allocation18_spill] sm:$0xff] }
0x281d   :  { %19679 = vmatpush3.bf16.msra.mxu1 %v19676_v52  ;;  %v10508_v61 = vmul.f32 %v21198_v60, %v25527_v6  ;;  %v27345_v60 = vld [vmem:[#allocation22_spill] sm:$0xff] }
0x281e   :  { %19681 = vmatprep.subr.bf16.mxu1 %v19680_v46  ;;  %18124 = vmatprep.mubr.msk.f32.mxu1 %vm1138_vm4, %v10507_v27 }
0x2821   :  { %19683 = vmatpush3.bf16.msra.mxu1 %v19680_v46  ;;  %v25618_v46 = vadd.f32 %v21362_v18, %v27343_v51 }
0x2822   :  { %19690 = vmatprep.subr.msk.bf16.mxu1 %vm21544_vm2, %v27336_v59 }
0x2824   :  { %18125 = vmatmul.mubr.msk.f32.vlgmr.msra.gmra.mrb[196].mxu1 %vm1138_vm4, %v10508_v61  ;;  %v25634_v61 = vadd.f32 %v21362_v18, %v27345_v60  ;;  %v27353_v60 = vld [vmem:[#allocation46_spill] sm:$0xff] }
0x282a   :  { %19693 = vmatpush3.bf16.xpose.msk.msra.mxu1 %vm21544_vm2, %v27336_v59 }
0x282b   :  { %19696 = vmatprep.subr.msk.bf16.mxu1 %vm21544_vm2, %v27337_v7 }
0x2832   :  { %19699 = vmatpush3.bf16.xpose.msk.msra.mxu1 %vm21544_vm2, %v27337_v7 }
0x2833   :  { %19702 = vmatprep.subr.msk.bf16.mxu1 %vm21544_vm2, %v27338_v57 }
0x283a   :  { %19705 = vmatpush3.bf16.xpose.msk.msra.mxu1 %vm21544_vm2, %v27338_v57 }
0x283b   :  { %19708 = vmatprep.subr.msk.bf16.mxu1 %vm21544_vm2, %v27339_v20 }
0x2842   :  { %19711 = vmatpush3.bf16.xpose.msk.msra.mxu1 %vm21544_vm2, %v27339_v20 }
0x2843   :  { %19713 = vmatprep.subr.msk.bf16.mxu1 %vm21872_vm5, %v27313_v37 }
0x2844   :  { %v10483_v6 = vpop.xlane.xlu0 %10482 }
0x2845   :  { %21199 = vrcp.f32 %v10483_v6  ;;  %v10486_v63 = vpop.xlane.xlu1 %10485  ;;  %v25639_v6 = vld [vmem:[%s26816_s5] ss:$0 sm:$0xff] }
0x2846   :  { %21201 = vrcp.f32 %v10486_v63  ;;  %v27346_v63 = vld [vmem:[#allocation44_spill] sm:$0xff] }
0x2848   :  { %v10489_v42 = vpop.xlane.xlu0 %10488 }
0x2849   :  { %21203 = vrcp.f32 %v10489_v42  ;;  %v25643_v42 = vadd.f32 %v25639_v6, %v27346_v63  ;;  %v25701_v63 = vadd.f32 %v25639_v6, %v27353_v60 }
0x284c   :  { %v10492_v38 = vpop.xlane.xlu0 %10491 }
0x284d   :  { %21205 = vrcp.f32 %v10492_v38  ;;  %v10495_v45 = vpop.xlane.xlu1 %10494  ;;  %v27347_v38 = vld [vmem:[#allocation45_spill] sm:$0xff] }
0x284e   :  { %21207 = vrcp.f32 %v10495_v45  ;;  %v25647_v45 = vadd.f32 %v25639_v6, %v27347_v38  ;;  %v27354_v38 = vld [vmem:[#allocation47_spill] sm:$0xff] }
0x284f   :  { %v21200_v47 = vpop.eup %21199 }
0x2850   :  { %v21202_v21 = vpop.eup %21201  ;;  %v10498_v11 = vpop.xlane.xlu0 %10497  ;;  %v10509_v25 = vmul.f32 %v21200_v47, %v25539_v50  ;;  %v27348_v47 = vld [vmem:[#allocation20_spill] sm:$0xff] }
0x2851   :  { %21209 = vrcp.f32 %v10498_v11  ;;  %v10510_v41 = vmul.f32 %v21202_v21, %v25541_v4  ;;  %v25657_v21 = vadd.f32 %v21362_v18, %v27348_v47  ;;  %v27349_v11 = vld [vmem:[#allocation27_spill] sm:$0xff]  ;;  %v25705_v47 = vadd.f32 %v25639_v6, %v27354_v38 }
0x2852   :  { %18127 = vmatprep.mubr.msk.f32.mxu1 %vm1138_vm4, %v10509_v25  ;;  %v25663_v25 = vadd.f32 %v21362_v18, %v27349_v11 }
0x2853   :  { %v21204_v43 = vpop.eup %21203  ;;  %18128 = vmatmul.mubr.msk.f32.gmra.mrb[198].mxu1 %vm1138_vm4, %v10510_v41  ;;  %v21364_v41 = vld [vmem:[%s26820_s9] sm:$0xff] }
0x2854   :  { %v10511_v48 = vmul.f32 %v21204_v43, %v25545_v53  ;;  %v27341_v53 = vld [vmem:[#allocation15_spill] sm:$0xff]  ;;  %27350 = vst [vmem:[#allocation23_spill] sm:$0xff] %v25663_v25  ;;  %v10854_v43 = vadd.f32 %v21364_v41, %v25647_v45 }
0x2855   :  { %v25609_v52 = vadd.f32 %v21362_v18, %v27341_v53 }
0x2856   :  { %18130 = vmatprep.mubr.msk.f32.mxu1 %vm1138_vm4, %v10511_v48  ;;  %v21365_v48 = vld [vmem:[%s26820_s9 + $0x8] sm:$0xff] }
0x2857   :  { %v21206_v33 = vpop.eup %21205 }
0x2858   :  { %v21208_v13 = vpop.eup %21207  ;;  %v10512_v30 = vmul.f32 %v21206_v33, %v25551_v28  ;;  %v27342_v28 = vld [vmem:[#allocation14_spill] sm:$0xff]  ;;  %v10855_v33 = vadd.f32 %v21365_v48, %v25643_v42  ;;  %v21366_v48 = vld [vmem:[%s26820_s9 + $0x10] sm:$0xff] }
0x2859   :  { %v10513_v19 = vmul.f32 %v21208_v13, %v25553_v2  ;;  %v25615_v2 = vadd.f32 %v21362_v18, %v27342_v28  ;;  %v27351_v13 = vld [vmem:[#allocation25_spill] sm:$0xff] }
0x285a   :  { %18131 = vmatmul.mubr.msk.f32.gmra.mrb[200].mxu1 %vm1138_vm4, %v10512_v30  ;;  %v25681_v30 = vadd.f32 %v21362_v18, %v27351_v13  ;;  %v21367_v13 = vld [vmem:[%s26820_s9 + $0x18] sm:$0xff] }
0x285b   :  { %v21210_v50 = vpop.eup %21209  ;;  %18133 = vmatprep.mubr.msk.f32.mxu1 %vm1138_vm4, %v10513_v19  ;;  %v19728_v19 = vpack.c.bf16 %v10855_v33, %v10854_v43  ;;  %v10856_v33 = vadd.f32 %v21366_v48, %v25705_v47 }
0x285c   :  { %v10514_v4 = vmul.f32 %v21210_v50, %v25557_v26  ;;  %v27344_v26 = vld [vmem:[#allocation16_spill] sm:$0xff]  ;;  %27352 = vst [vmem:[#allocation41_spill] sm:$0xff] %v25681_v30 }
0x285d   :  { %v25628_v27 = vadd.f32 %v21362_v18, %v27344_v26 }
0x285e   :  { %18134 = vmatmul.mubr.msk.f32.gmra.mrb[202].mxu1 %vm1138_vm4, %v10514_v4 }
0x285f   :  { %18168 = vmatprep.mubr.msk.f32.mxu1 %vm976_vm1, %v25609_v52 }
0x2862   :  { %18169 = vmatmul.mubr.msk.f32.vlgmr.msra.gmra.mrb[204].mxu1 %vm976_vm1, %v25615_v2 }
0x2863   :  { %19715 = vmatpush3.bf16.msk.msra.mxu1 %vm21872_vm5, %v27313_v37  ;;  %18171 = vmatprep.mubr.msk.f32.mxu1 %vm976_vm1, %v25618_v46 }
0x2864   :  { %19717 = vmatprep.subr.msk.bf16.mxu1 %vm21957_vm8, %v27313_v37 }
0x2866   :  { %18172 = vmatmul.mubr.msk.f32.gmra.mrb[206].mxu1 %vm976_vm1, %v25628_v27 }
0x2867   :  { %19719 = vmatpush3.bf16.msk.msra.mxu1 %vm21957_vm8, %v27313_v37  ;;  %18174 = vmatprep.mubr.msk.f32.mxu1 %vm976_vm1, %v25634_v61 }
0x2868   :  { %19721 = vmatprep.subr.msk.bf16.mxu1 %vm21985_vm11, %v27313_v37 }
0x286a   :  { %18175 = vmatmul.mubr.msk.f32.gmra.mrb[208].mxu1 %vm976_vm1, %v25657_v21 }
0x286b   :  { %19723 = vmatpush3.bf16.msk.msra.mxu1 %vm21985_vm11, %v27313_v37  ;;  %18177 = vmatprep.mubr.msk.f32.mxu1 %vm976_vm1, %v25663_v25 }
0x286c   :  { %19725 = vmatprep.subr.msk.bf16.mxu1 %vm22009_vm14, %v27313_v37 }
0x286e   :  { %18178 = vmatmul.mubr.msk.f32.gmra.mrb[210].mxu1 %vm976_vm1, %v25681_v30 }
0x286f   :  { %19727 = vmatpush3.bf16.msk.msra.mxu1 %vm22009_vm14, %v27313_v37 }
0x2870   :  { %19730 = vmatprep.subr.msk.bf16.mxu1 %vm21544_vm2, %v19728_v19 }
0x28f7   :  { %v18126_v50 = vpop.f32.mrb[196].mxu1 }
0x28f8   :  { %v10629_v4 = vpop.f32.mrb[197].mxu1 }
0x28f9   :  { %18140 = vmatprep.mubr.msk.f32.mxu0 %vm976_vm1, %v10629_v4 }
0x28fa   :  { %18141 = vmatmul.mubr.msk.f32.vlgmr.msra.gmra.mrb[148].mxu0 %vm976_vm1, %v18126_v50  ;;  %v10857_v50 = vadd.f32 %v21367_v13, %v25701_v63 }
0x2926   :  { %v18129_v18 = vpop.f32.mrb[198].mxu1 }
0x2927   :  { %v10639_v53 = vpop.f32.mrb[199].mxu1 }
0x2928   :  { %18143 = vmatprep.mubr.msk.f32.mxu0 %vm976_vm1, %v10639_v53 }
0x2929   :  { %18144 = vmatmul.mubr.msk.f32.gmra.mrb[150].mxu0 %vm976_vm1, %v18129_v18 }
0x292d   :  { %v18132_v28 = vpop.f32.mrb[200].mxu1 }
0x292e   :  { %v10649_v51 = vpop.f32.mrb[201].mxu1 }
0x292f   :  { %18146 = vmatprep.mubr.msk.f32.mxu0 %vm976_vm1, %v10649_v51 }
0x2930   :  { %18147 = vmatmul.mubr.msk.f32.gmra.mrb[152].mxu0 %vm976_vm1, %v18132_v28  ;;  %v27355_v28 = vld [vmem:[#allocation48_spill] sm:$0xff] }
0x2931   :  { %v18135_v26 = vpop.f32.mrb[202].mxu1  ;;  %v25722_v51 = vadd.f32 %v25639_v6, %v27355_v28 }
0x2932   :  { %v10659_v11 = vpop.f32.mrb[203].mxu1 }
0x2933   :  { %18149 = vmatprep.mubr.msk.f32.mxu0 %vm976_vm1, %v10659_v11  ;;  %27356 = vst [vmem:[#allocation39_spill] sm:$0xff] %v25722_v51  ;;  %v19734_v11 = vpack.c.bf16 %v10857_v50, %v10856_v33  ;;  %v21368_v33 = vld [vmem:[%s26820_s9 + $0x20] sm:$0xff] }
0x2934   :  { %18150 = vmatmul.mubr.msk.f32.gmra.mrb[154].mxu0 %vm976_vm1, %v18135_v26  ;;  %v27357_v26 = vld [vmem:[#allocation49_spill] sm:$0xff] }
0x2935   :  { %v18170_v41 = vpop.f32.mrb[204].mxu1  ;;  %v25726_v60 = vadd.f32 %v25639_v6, %v27357_v26  ;;  %v27359_v26 = vld [vmem:[#allocation50_spill] sm:$0xff] }
0x2936   :  { %v10952_v43 = vpop.f32.mrb[205].mxu1  ;;  %v10992_v18 = vmul.f32 %v18170_v41, %v22141_v62 }
0x2937   :  { %v10991_v4 = vmul.f32 %v22139_v56, %v10952_v43  ;;  %27358 = vst [vmem:[#allocation53_spill] sm:$0xff] %v25726_v60  ;;  %v10858_v50 = vadd.f32 %v21368_v33, %v25726_v60 }
0x2939   :  { %v18173_v53 = vpop.f32.mrb[206].mxu1  ;;  %18196 = vmatprep.mubr.msk.f32.mxu1 %vm1138_vm4, %v10991_v4 }
0x293a   :  { %v10962_v38 = vpop.f32.mrb[207].mxu1  ;;  %18197 = vmatmul.mubr.msk.f32.vlgmr.msra.gmra.mrb[212].mxu1 %vm1138_vm4, %v10992_v18  ;;  %v10994_v41 = vmul.f32 %v18173_v53, %v27321_v12 }
0x293b   :  { %v10993_v48 = vmul.f32 %v27320_v49, %v10962_v38  ;;  %19733 = vmatpush3.bf16.xpose.msk.msra.mxu1 %vm21544_vm2, %v19728_v19  ;;  %v21369_v19 = vld [vmem:[%s26820_s9 + $0x28] sm:$0xff]  ;;  %v25750_v38 = vadd.f32 %v25639_v6, %v27359_v26 }
0x293c   :  { %19736 = vmatprep.subr.msk.bf16.mxu1 %vm21544_vm2, %v19734_v11  ;;  %v10859_v4 = vadd.f32 %v21369_v19, %v25722_v51 }
0x293d   :  { %v18176_v43 = vpop.f32.mrb[208].mxu1  ;;  %18199 = vmatprep.mubr.msk.f32.mxu1 %vm1138_vm4, %v10993_v48  ;;  %27360 = vst [vmem:[#allocation52_spill] sm:$0xff] %v25750_v38  ;;  %v27361_v48 = vld [vmem:[#allocation51_spill] sm:$0xff] }
0x293e   :  { %v10972_v13 = vpop.f32.mrb[209].mxu1  ;;  %18200 = vmatmul.mubr.msk.f32.gmra.mrb[214].mxu1 %vm1138_vm4, %v10994_v41  ;;  %v10996_v53 = vmul.f32 %v18176_v43, %v22191_v22  ;;  %v25754_v41 = vadd.f32 %v25639_v6, %v27361_v48  ;;  %v19740_v9 = vpack.c.bf16 %v10859_v4, %v10858_v50  ;;  %v21370_v6 = vld [vmem:[%s26820_s9 + $0x30] sm:$0xff]  ;;  %v21371_v50 = vld [vmem:[%s26820_s9 + $0x38] sm:$0xff] }
0x293f   :  { %v10995_v18 = vmul.f32 %v22186_v1, %v10972_v13 }
0x2940   :  { %27362 = vst [vmem:[#allocation11_spill] sm:$0xff] %v25754_v41  ;;  %v10860_v13 = vadd.f32 %v21370_v6, %v25754_v41 }
0x2941   :  { %v18179_v28 = vpop.f32.mrb[210].mxu1  ;;  %18202 = vmatprep.mubr.msk.f32.mxu1 %vm1138_vm4, %v10995_v18 }
0x2942   :  { %v10982_v33 = vpop.f32.mrb[211].mxu1  ;;  %18203 = vmatmul.mubr.msk.f32.gmra.mrb[216].mxu1 %vm1138_vm4, %v10996_v53  ;;  %v10998_v43 = vmul.f32 %v18179_v28, %v22207_v31 }
0x2943   :  { %v10997_v19 = vmul.f32 %v22204_v24, %v10982_v33  ;;  %19739 = vmatpush3.bf16.xpose.msk.msra.mxu1 %vm21544_vm2, %v19734_v11  ;;  %v10861_v11 = vadd.f32 %v21371_v50, %v25750_v38 }
0x2944   :  { %19742 = vmatprep.subr.msk.bf16.mxu1 %vm21544_vm2, %v19740_v9 }
0x2945   :  { %18205 = vmatprep.mubr.msk.f32.mxu1 %vm1138_vm4, %v10997_v19  ;;  %v19746_v4 = vpack.c.bf16 %v10861_v11, %v10860_v13 }
0x2946   :  { %18206 = vmatmul.mubr.msk.f32.gmra.mrb[218].mxu1 %vm1138_vm4, %v10998_v43 }
0x2947   :  { %18224 = vmatprep.mubr.msk.f32.mxu1 %vm976_vm1, %v25609_v52 }
0x294b   :  { %19745 = vmatpush3.bf16.xpose.msk.msra.mxu1 %vm21544_vm2, %v19740_v9 }
0x294c   :  { %19748 = vmatprep.subr.msk.bf16.mxu1 %vm21544_vm2, %v19746_v4 }
0x2953   :  { %19751 = vmatpush3.bf16.xpose.msk.msra.mxu1 %vm21544_vm2, %v19746_v4 }
0x2954   :  { %19793 = vmatprep.subr.msk.bf16.mxu1 %vm21872_vm5, %v27313_v37 }
0x295a   :  { %18225 = vmatmul.mubr.msk.f32.vlgmr.msra.gmra.mrb[212].mxu1 %vm976_vm1, %v25615_v2 }
0x295b   :  { %18227 = vmatprep.mubr.msk.f32.mxu1 %vm976_vm1, %v25618_v46  ;;  %19795 = vmatpush3.bf16.msk.msra.mxu1 %vm21872_vm5, %v27313_v37 }
0x295c   :  { %19797 = vmatprep.subr.msk.bf16.mxu1 %vm21957_vm8, %v27313_v37 }
0x295e   :  { %18228 = vmatmul.mubr.msk.f32.gmra.mrb[214].mxu1 %vm976_vm1, %v25628_v27 }
0x295f   :  { %18230 = vmatprep.mubr.msk.f32.mxu1 %vm976_vm1, %v25634_v61  ;;  %19799 = vmatpush3.bf16.msk.msra.mxu1 %vm21957_vm8, %v27313_v37 }
0x2960   :  { %19801 = vmatprep.subr.msk.bf16.mxu1 %vm21985_vm11, %v27313_v37 }
0x2962   :  { %18231 = vmatmul.mubr.msk.f32.gmra.mrb[216].mxu1 %vm976_vm1, %v25657_v21 }
0x2963   :  { %18233 = vmatprep.mubr.msk.f32.mxu1 %vm976_vm1, %v25663_v25  ;;  %19803 = vmatpush3.bf16.msk.msra.mxu1 %vm21985_vm11, %v27313_v37 }
0x2964   :  { %19805 = vmatprep.subr.msk.bf16.mxu1 %vm22009_vm14, %v27313_v37 }
0x2966   :  { %18234 = vmatmul.mubr.msk.f32.gmra.mrb[218].mxu1 %vm976_vm1, %v25681_v30 }
0x2967   :  { %19807 = vmatpush3.bf16.msk.msra.mxu1 %vm22009_vm14, %v27313_v37 }
0x29cd   :  { %v25819_v9 = vpop.f32.mrb[148].mxu0 }
0x29ce   :  { %27363 = vst [vmem:[#allocation30_spill] sm:$0xff] %v25819_v9  ;;  %v25821_v18 = vpop.f32.mrb[149].mxu0 }
0x29cf   :  { %27364 = vst [vmem:[#allocation32_spill] sm:$0xff] %v25821_v18 }
0x29fc   :  { %v25823_v53 = vpop.f32.mrb[150].mxu0 }
0x29fd   :  { %27365 = vst [vmem:[#allocation10_spill] sm:$0xff] %v25823_v53  ;;  %v25825_v28 = vpop.f32.mrb[151].mxu0 }
0x29fe   :  { %27366 = vst [vmem:[#allocation13_spill] sm:$0xff] %v25825_v28 }
0x2a03   :  { %v25827_v26 = vpop.f32.mrb[152].mxu0 }
0x2a04   :  { %27367 = vst [vmem:[#allocation12_spill] sm:$0xff] %v25827_v26  ;;  %v25829_v48 = vpop.f32.mrb[153].mxu0 }
0x2a05   :  { %27368 = vst [vmem:[#allocation34_spill] sm:$0xff] %v25829_v48 }
0x2a07   :  { %v25831_v33 = vpop.f32.mrb[154].mxu0 }
0x2a08   :  { %27369 = vst [vmem:[#allocation36_spill] sm:$0xff] %v25831_v33  ;;  %v25833_v19 = vpop.f32.mrb[155].mxu0 }
0x2a09   :  { %27370 = vst [vmem:[#allocation38_spill] sm:$0xff] %v25833_v19 }
0x2a2d   :  { %v18226_v43 = vpop.f32.mrb[212].mxu1 }
0x2a2e   :  { %v11258_v6 = vsel %vm22278_vm15, %v18226_v43, -1e+09  ;;  %v11218_v13 = vpop.f32.mrb[213].mxu1 }
0x2a2f   :  { %v11268_v50 = vsel %vm1138_vm4, %v11258_v6, -inf  ;;  %v11257_v11 = vsel %vm22283_vm3, %v11218_v13, -1e+09 }
0x2a30   :  { %v11265_v4 = vsel %vm1138_vm4, %v11257_v11, -inf  ;;  %11269 = vmax.xlane.f32.xlu0 %v11268_v50 }
0x2a31   :  { %11266 = vmax.xlane.f32.xlu1 %v11265_v4  ;;  %v18229_v26 = vpop.f32.mrb[214].mxu1 }
0x2a32   :  { %v11260_v33 = vsel %vm22303_vm7, %v18229_v26, -1e+09  ;;  %v11228_v48 = vpop.f32.mrb[215].mxu1 }
0x2a33   :  { %v11274_v19 = vsel %vm1138_vm4, %v11260_v33, -inf  ;;  %v11259_v43 = vsel %vm22294_vm6, %v11228_v48, -1e+09 }
0x2a34   :  { %v11271_v28 = vsel %vm1138_vm4, %v11259_v43, -inf  ;;  %11275 = vmax.xlane.f32.xlu0 %v11274_v19 }
0x2a35   :  { %11272 = vmax.xlane.f32.xlu1 %v11271_v28  ;;  %v18232_v53 = vpop.f32.mrb[216].mxu1 }
0x2a36   :  { %v11262_v13 = vsel %vm22321_vm10, %v18232_v53, -1e+09  ;;  %v11238_v50 = vpop.f32.mrb[217].mxu1  ;;  %v25858_v53 = vpack.i.bf16 %v25643_v42, %v25647_v45 }
0x2a37   :  { %v11280_v4 = vsel %vm1138_vm4, %v11262_v13, -inf  ;;  %v11261_v26 = vsel %vm22314_vm9, %v11238_v50, -1e+09 }
0x2a38   :  { %v11277_v18 = vsel %vm1138_vm4, %v11261_v26, -inf  ;;  %11281 = vmax.xlane.f32.xlu0 %v11280_v4  ;;  %27371 = vst [vmem:[#allocation40_spill] sm:$0xff] %v25858_v53 }
0x2a39   :  { %11278 = vmax.xlane.f32.xlu1 %v11277_v18  ;;  %v18235_v9 = vpop.f32.mrb[218].mxu1 }
0x2a3a   :  { %v11264_v48 = vsel %vm22331_vm12, %v18235_v9, -1e+09  ;;  %v11248_v19 = vpop.f32.mrb[219].mxu1  ;;  %v25867_v9 = vpack.i.bf16 %v25722_v51, %v25726_v60 }
0x2a3b   :  { %v11286_v28 = vsel %vm1138_vm4, %v11264_v48, -inf  ;;  %v11263_v50 = vsel %vm22346_vm13, %v11248_v19, -1e+09 }
0x2a3c   :  { %11287 = vmax.xlane.f32.xlu0 %v11286_v28  ;;  %v11283_v18 = vsel %vm1138_vm4, %v11263_v50, -inf  ;;  %27372 = vst [vmem:[#allocation42_spill] sm:$0xff] %v25867_v9 }
0x2a4a   :  { %20688 = vrot.lane.b32.xlu1 %v25858_v53, %s21400_s29 }
0x2a6e   :  { %11284 = vmax.xlane.f32.xlu1 %v11283_v18 }
0x2a7f   :  { %20698 = vrot.lane.b32.xlu1 %v25867_v9, %s21400_s29 }
0x2abd   :  { %v11270_v4 = vpop.xlane.xlu0 %11269 }
0x2abe   :  { %v11290_v28 = vsub.f32 %v11258_v6, %v11270_v4  ;;  %v11267_v54 = vpop.xlane.xlu1 %11266 }
0x2abf   :  { %v11289_v58 = vsub.f32 %v11257_v11, %v11267_v54 }
0x2ac0   :  { %v11299_v14 = vmul.f32 1.442695, %v11290_v28 }
0x2ac1   :  { %v11297_v32 = vmul.f32 1.442695, %v11289_v58 }
0x2ac2   :  { %21211 = vpow2.f32 %v11299_v14  ;;  %v11273_v3 = vpop.xlane.xlu1 %11272 }
0x2ac3   :  { %21213 = vpow2.f32 %v11297_v32  ;;  %v25881_v32 = vpack.i.bf16 %v25750_v38, %v25754_v41 }
0x2ac5   :  { %27373 = vst [vmem:[#allocation43_spill] sm:$0xff] %v25881_v32 }
0x2ac6   :  { %v11279_v19 = vpop.xlane.xlu1 %11278 }
0x2aca   :  { %v20689_v10 = vpop.permute.xlu1 %20688 }
0x2acb   :  { %v20691_v35 = vunpack.i.h.bf16 %v20689_v10  ;;  %v20690_v18 = vunpack.i.l.bf16 %v20689_v10  ;;  %v25887_v10 = vpack.i.bf16 %v25701_v63, %v25705_v47 }
0x2acc   :  { %v25871_v8 = vpop.eup %21211 }
0x2acd   :  { %v25873_v55 = vpop.eup %21213  ;;  %v11316_v0 = vsel %vm1138_vm4, %v25871_v8, 0.0  ;;  %v19752_v29 = vpack.c.bf16 %v20691_v35, %v20690_v18  ;;  %27374 = vst [vmem:[#allocation54_spill] sm:$0xff] %v25887_v10  ;;  %v11291_v35 = vsub.f32 %v11259_v43, %v11273_v3 }
0x2ace   :  { %11317 = vadd.xlane.f32.xlu0 %v11316_v0  ;;  %v11313_v54 = vsel %vm1138_vm4, %v25873_v55, 0.0  ;;  %v11276_v0 = vpop.xlane.xlu0 %11275 }
0x2acf   :  { %19753 = vmatprep.subr.bf16.mxu0 %v19752_v29  ;;  %11314 = vadd.xlane.f32.xlu1 %v11313_v54  ;;  %v11292_v14 = vsub.f32 %v11260_v33, %v11276_v0  ;;  %v11301_v6 = vmul.f32 1.442695, %v11291_v35  ;;  %v27376_v0 = vld [vmem:[#allocation79_spill] sm:$0xff] }
0x2ad0   :  { %19755 = vmatpush3.bf16.msra.mxu0 %v19752_v29  ;;  %v11293_v29 = vsub.f32 %v11261_v26, %v11279_v19  ;;  %v11517_v35 = vadd.f32 %v27376_v0, %v25701_v63 }
0x2ad1   :  { %v11303_v11 = vmul.f32 1.442695, %v11292_v14  ;;  %21215 = vpow2.f32 %v11301_v6  ;;  %v27377_v14 = vld [vmem:[#allocation75_spill] sm:$0xff]  ;;  %v27378_v6 = vld [vmem:[#allocation76_spill] sm:$0xff] }
0x2ad2   :  { %v11282_v58 = vpop.xlane.xlu0 %11281  ;;  %v11305_v28 = vmul.f32 1.442695, %v11293_v29  ;;  %v11516_v29 = vadd.f32 %v27378_v6, %v25705_v47 }
0x2ad3   :  { %v11294_v4 = vsub.f32 %v11262_v13, %v11282_v58  ;;  %21217 = vpow2.f32 %v11303_v11  ;;  %v11514_v58 = vadd.f32 %v27377_v14, %v25647_v45  ;;  %v27379_v11 = vld [vmem:[#allocation80_spill] sm:$0xff] }
0x2ad4   :  { %21219 = vpow2.f32 %v11305_v28  ;;  %v27380_v28 = vld [vmem:[#allocation82_spill] sm:$0xff] }
0x2ad5   :  { %v11307_v54 = vmul.f32 1.442695, %v11294_v4  ;;  %v11519_v4 = vadd.f32 %v27379_v11, %v25722_v51 }
0x2ad6   :  { %v11288_v18 = vpop.xlane.xlu0 %11287 }
0x2ad7   :  { %v11296_v39 = vsub.f32 %v11264_v48, %v11288_v18  ;;  %21221 = vpow2.f32 %v11307_v54  ;;  %v11521_v18 = vadd.f32 %v27380_v28, %v25750_v38 }
0x2ad9   :  { %v11311_v9 = vmul.f32 1.442695, %v11296_v39 }
0x2adb   :  { %v25891_v53 = vpop.eup %21215 }
0x2adc   :  { %v11319_v33 = vsel %vm1138_vm4, %v25891_v53, 0.0 }
0x2add   :  { %v25893_v3 = vpop.eup %21217 }
0x2ade   :  { %v25897_v43 = vpop.eup %21219  ;;  %v11322_v13 = vsel %vm1138_vm4, %v25893_v3, 0.0 }
0x2ae0   :  { %20703 = vrot.lane.b32.xlu1 %v25881_v32, %s21400_s29 }
0x2ae1   :  { %v25903_v39 = vpop.eup %21221 }
0x2ae2   :  { %v11328_v48 = vsel %vm1138_vm4, %v25903_v39, 0.0 }
0x2ae4   :  { %20693 = vrot.lane.b32.xlu0 %v25887_v10, %s21400_s29 }
0x2afb   :  { %v11285_v37 = vpop.xlane.xlu1 %11284 }
0x2afc   :  { %v11295_v32 = vsub.f32 %v11263_v50, %v11285_v37  ;;  %v11325_v37 = vsel %vm1138_vm4, %v25897_v43, 0.0 }
0x2afe   :  { %v11309_v10 = vmul.f32 1.442695, %v11295_v32  ;;  %v27375_v32 = vld [vmem:[#allocation77_spill] sm:$0xff] }
0x2aff   :  { %v20699_v0 = vpop.permute.xlu1 %20698 }
0x2b00   :  { %21223 = vpow2.f32 %v11309_v10  ;;  %v11515_v10 = vadd.f32 %v27375_v32, %v25643_v42  ;;  %v20700_v6 = vunpack.i.l.bf16 %v20699_v0 }
0x2b01   :  { %21225 = vpow2.f32 %v11311_v9 }
0x2b02   :  { %v20707_v54 = vpack.i.bf16 %v11515_v10, %v11514_v58  ;;  %v20701_v58 = vunpack.i.h.bf16 %v20699_v0 }
0x2b03   :  { %11320 = vadd.xlane.f32.xlu0 %v11319_v33  ;;  %v20712_v33 = vpack.i.bf16 %v11517_v35, %v11516_v29 }
0x2b04   :  { %11323 = vadd.xlane.f32.xlu1 %v11322_v13  ;;  %v27381_v13 = vld [vmem:[#allocation78_spill] sm:$0xff] }
0x2b07   :  { %11326 = vadd.xlane.f32.xlu0 %v11325_v37  ;;  %v11518_v37 = vadd.f32 %v27381_v13, %v25726_v60 }
0x2b0a   :  { %v25905_v26 = vpop.eup %21223 }
0x2b0b   :  { %v25909_v50 = vpop.eup %21225  ;;  %11329 = vadd.xlane.f32.xlu0 %v11328_v48  ;;  %v11331_v9 = vsel %vm1138_vm4, %v25905_v26, 0.0  ;;  %v27382_v48 = vld [vmem:[#allocation81_spill] sm:$0xff] }
0x2b0c   :  { %11332 = vadd.xlane.f32.xlu1 %v11331_v9  ;;  %v11334_v19 = vsel %vm1138_vm4, %v25909_v50, 0.0  ;;  %v11520_v9 = vadd.f32 %v27382_v48, %v25754_v41 }
0x2b0e   :  { %v20722_v32 = vpack.i.bf16 %v11521_v18, %v11520_v9 }
0x2b0f   :  { %11335 = vadd.xlane.f32.xlu0 %v11334_v19  ;;  %v20717_v19 = vpack.i.bf16 %v11519_v4, %v11518_v37  ;;  %v19760_v4 = vpack.c.bf16 %v20701_v58, %v20700_v6 }
0x2b1d   :  { %11522 = vrot.lane.b32.xlu1 %v25609_v52, %s21401_s30 }
0x2b21   :  { %11526 = vrot.lane.b32.xlu1 %v25618_v46, %s21401_s30 }
0x2b25   :  { %11524 = vrot.lane.b32.xlu0 %v25615_v2, %s21401_s30  ;;  %11528 = vrot.lane.b32.xlu1 %v25628_v27, %s21401_s30 }
0x2b29   :  { %11530 = vrot.lane.b32.xlu0 %v25634_v61, %s21401_s30  ;;  %11532 = vrot.lane.b32.xlu1 %v25657_v21, %s21401_s30 }
0x2b2d   :  { %11534 = vrot.lane.b32.xlu0 %v25663_v25, %s21401_s30  ;;  %11536 = vrot.lane.b32.xlu1 %v25681_v30, %s21401_s30 }
0x2b31   :  { %20708 = vrot.lane.b32.xlu0 %v20707_v54, %s21401_s30  ;;  %20713 = vrot.lane.b32.xlu1 %v20712_v33, %s21401_s30 }
0x2b35   :  { %20718 = vrot.lane.b32.xlu0 %v20717_v19, %s21401_s30  ;;  %20723 = vrot.lane.b32.xlu1 %v20722_v32, %s21401_s30 }
0x2b5b   :  { %v11318_v14 = vpop.xlane.xlu0 %11317 }
0x2b5c   :  { %v11315_v10 = vpop.xlane.xlu1 %11314 }
0x2b5d   :  { %21227 = vrcp.f32 %v11315_v10 }
0x2b5e   :  { %21229 = vrcp.f32 %v11318_v14 }
0x2b5f   :  { %v20694_v35 = vpop.permute.xlu0 %20693 }
0x2b60   :  { %v20696_v29 = vunpack.i.h.bf16 %v20694_v35  ;;  %v20695_v11 = vunpack.i.l.bf16 %v20694_v35  ;;  %v20704_v28 = vpop.permute.xlu1 %20703 }
0x2b61   :  { %v20706_v13 = vunpack.i.h.bf16 %v20704_v28  ;;  %v20705_v33 = vunpack.i.l.bf16 %v20704_v28 }
0x2b62   :  { %v19756_v54 = vpack.c.bf16 %v20696_v29, %v20695_v11 }
0x2b63   :  { %v19764_v37 = vpack.c.bf16 %v20706_v13, %v20705_v33 }
0x2b64   :  { %19757 = vmatprep.subr.bf16.mxu0 %v19756_v54 }
0x2b65   :  { %19759 = vmatpush3.bf16.msra.mxu0 %v19756_v54 }
0x2b66   :  { %19761 = vmatprep.subr.bf16.mxu0 %v19760_v4 }
0x2b67   :  { %v21228_v18 = vpop.eup %21227 }
0x2b68   :  { %v11345_v48 = vmul.f32 %v21228_v18, %v25873_v55  ;;  %v21230_v9 = vpop.eup %21229 }
0x2b69   :  { %19763 = vmatpush3.bf16.msra.mxu0 %v19760_v4  ;;  %v11346_v19 = vmul.f32 %v21230_v9, %v25871_v8 }
0x2b6a   :  { %19765 = vmatprep.subr.bf16.mxu0 %v19764_v37  ;;  %18252 = vmatprep.mubr.msk.f32.mxu0 %vm1138_vm4, %v11345_v48 }
0x2b6d   :  { %19767 = vmatpush3.bf16.msra.mxu0 %v19764_v37 }
0x2b6e   :  { %19770 = vmatprep.subr.msk.bf16.mxu0 %vm21544_vm2, %v27336_v59 }
0x2b70   :  { %18253 = vmatmul.mubr.msk.f32.vlgmr.msra.gmra.mrb[172].mxu0 %vm1138_vm4, %v11346_v19 }
0x2b76   :  { %19773 = vmatpush3.bf16.xpose.msk.msra.mxu0 %vm21544_vm2, %v27336_v59 }
0x2b77   :  { %19776 = vmatprep.subr.msk.bf16.mxu0 %vm21544_vm2, %v27337_v7 }
0x2b7e   :  { %19779 = vmatpush3.bf16.xpose.msk.msra.mxu0 %vm21544_vm2, %v27337_v7 }
0x2b7f   :  { %19782 = vmatprep.subr.msk.bf16.mxu0 %vm21544_vm2, %v27338_v57 }
0x2b86   :  { %19785 = vmatpush3.bf16.xpose.msk.msra.mxu0 %vm21544_vm2, %v27338_v57 }
0x2b87   :  { %19788 = vmatprep.subr.msk.bf16.mxu0 %vm21544_vm2, %v27339_v20 }
0x2b8e   :  { %19791 = vmatpush3.bf16.xpose.msk.msra.mxu0 %vm21544_vm2, %v27339_v20 }
0x2b90   :  { %v11321_v55 = vpop.xlane.xlu0 %11320 }
0x2b91   :  { %21231 = vrcp.f32 %v11321_v55  ;;  %v11324_v8 = vpop.xlane.xlu1 %11323 }
0x2b92   :  { %21233 = vrcp.f32 %v11324_v8 }
0x2b94   :  { %v11327_v32 = vpop.xlane.xlu0 %11326 }
0x2b95   :  { %21235 = vrcp.f32 %v11327_v32 }
0x2b98   :  { %v11330_v0 = vpop.xlane.xlu0 %11329 }
0x2b99   :  { %21237 = vrcp.f32 %v11330_v0  ;;  %v11333_v14 = vpop.xlane.xlu1 %11332 }
0x2b9a   :  { %21239 = vrcp.f32 %v11333_v14 }
0x2b9b   :  { %v21232_v10 = vpop.eup %21231 }
0x2b9c   :  { %v21234_v35 = vpop.eup %21233  ;;  %v11336_v58 = vpop.xlane.xlu0 %11335  ;;  %v11347_v6 = vmul.f32 %v21232_v10, %v25891_v53 }
0x2b9d   :  { %21241 = vrcp.f32 %v11336_v58  ;;  %v11348_v29 = vmul.f32 %v21234_v35, %v25893_v3  ;;  %v25986_v13 = vpop.permute.xlu1 %11522 }
0x2b9e   :  { %18255 = vmatprep.mubr.msk.f32.mxu0 %vm1138_vm4, %v11347_v6 }
0x2b9f   :  { %v21236_v11 = vpop.eup %21235  ;;  %18256 = vmatmul.mubr.msk.f32.gmra.mrb[174].mxu0 %vm1138_vm4, %v11348_v29 }
0x2ba0   :  { %v25983_v28 = vpop.permute.xlu0 %11524  ;;  %v11349_v54 = vmul.f32 %v21236_v11, %v25897_v43 }
0x2ba1   :  { %v25994_v48 = vpop.permute.xlu1 %11526 }
0x2ba2   :  { %18258 = vmatprep.mubr.msk.f32.mxu0 %vm1138_vm4, %v11349_v54 }
0x2ba3   :  { %v21238_v33 = vpop.eup %21237 }
0x2ba4   :  { %v21240_v4 = vpop.eup %21239  ;;  %v25989_v18 = vpop.permute.xlu0 %11530  ;;  %v11350_v53 = vmul.f32 %v21238_v33, %v25903_v39 }
0x2ba5   :  { %v11351_v3 = vmul.f32 %v21240_v4, %v25905_v26  ;;  %v26003_v39 = vpop.permute.xlu1 %11528 }
0x2ba6   :  { %18259 = vmatmul.mubr.msk.f32.gmra.mrb[176].mxu0 %vm1138_vm4, %v11350_v53 }
0x2ba7   :  { %v21242_v37 = vpop.eup %21241  ;;  %18261 = vmatprep.mubr.msk.f32.mxu0 %vm1138_vm4, %v11351_v3 }
0x2ba8   :  { %v25997_v43 = vpop.permute.xlu0 %11534  ;;  %v11352_v9 = vmul.f32 %v21242_v37, %v25909_v50 }
0x2ba9   :  { %v26013_v50 = vpop.permute.xlu1 %11532 }
0x2baa   :  { %18262 = vmatmul.mubr.msk.f32.gmra.mrb[178].mxu0 %vm1138_vm4, %v11352_v9 }
0x2bab   :  { %18280 = vmatprep.mubr.msk.f32.mxu0 %vm976_vm1, %v25986_v13 }
0x2bac   :  { %v20709_v19 = vpop.permute.xlu0 %20708 }
0x2bad   :  { %v20711_v26 = vunpack.i.h.bf16 %v20709_v19  ;;  %v20710_v55 = vunpack.i.l.bf16 %v20709_v19  ;;  %v26021_v32 = vpop.permute.xlu1 %11536 }
0x2bae   :  { %18281 = vmatmul.mubr.msk.f32.vlgmr.msra.gmra.mrb[180].mxu0 %vm976_vm1, %v25983_v28 }
0x2baf   :  { %v19808_v8 = vpack.c.bf16 %v20711_v26, %v20710_v55  ;;  %18283 = vmatprep.mubr.msk.f32.mxu0 %vm976_vm1, %v25994_v48 }
0x2bb1   :  { %19810 = vmatprep.subr.msk.bf16.mxu1 %vm21544_vm2, %v19808_v8  ;;  %v20714_v54 = vpop.permute.xlu1 %20713 }
0x2bb2   :  { %18284 = vmatmul.mubr.msk.f32.gmra.mrb[182].mxu0 %vm976_vm1, %v26003_v39  ;;  %v20716_v4 = vunpack.i.h.bf16 %v20714_v54  ;;  %v20715_v53 = vunpack.i.l.bf16 %v20714_v54 }
0x2bb3   :  { %18286 = vmatprep.mubr.msk.f32.mxu0 %vm976_vm1, %v25989_v18 }
0x2bb4   :  { %v19814_v26 = vpack.c.bf16 %v20716_v4, %v20715_v53 }
0x2bb6   :  { %18287 = vmatmul.mubr.msk.f32.gmra.mrb[184].mxu0 %vm976_vm1, %v26013_v50 }
0x2bb7   :  { %18289 = vmatprep.mubr.msk.f32.mxu0 %vm976_vm1, %v25997_v43 }
0x2bba   :  { %18290 = vmatmul.mubr.msk.f32.gmra.mrb[186].mxu0 %vm976_vm1, %v26021_v32 }
0x2c43   :  { %v26025_v0 = vpop.f32.mrb[172].mxu0 }
0x2c44   :  { %v26027_v14 = vpop.f32.mrb[173].mxu0 }
0x2c72   :  { %v26029_v10 = vpop.f32.mrb[174].mxu0 }
0x2c73   :  { %v26031_v35 = vpop.f32.mrb[175].mxu0 }
0x2c79   :  { %v26033_v58 = vpop.f32.mrb[176].mxu0 }
0x2c7a   :  { %27383 = vst [vmem:[#allocation55_spill] sm:$0xff] %v26033_v58  ;;  %v26035_v6 = vpop.f32.mrb[177].mxu0  ;;  %v20719_v58 = vpop.permute.xlu0 %20718 }
0x2c7d   :  { %v26037_v29 = vpop.f32.mrb[178].mxu0 }
0x2c7e   :  { %27384 = vst [vmem:[#allocation71_spill] sm:$0xff] %v26037_v29  ;;  %v26039_v11 = vpop.f32.mrb[179].mxu0 }
0x2c81   :  { %v18282_v33 = vpop.f32.mrb[180].mxu0 }
0x2c82   :  { %v11620_v3 = vpop.f32.mrb[181].mxu0  ;;  %v11660_v9 = vmul.f32 %v18282_v33, %v22141_v62  ;;  %v20721_v33 = vunpack.i.h.bf16 %v20719_v58 }
0x2c83   :  { %v11659_v37 = vmul.f32 %v22139_v56, %v11620_v3 }
0x2c85   :  { %v18285_v19 = vpop.f32.mrb[182].mxu0  ;;  %18308 = vmatprep.mubr.msk.f32.mxu1 %vm1138_vm4, %v11659_v37  ;;  %v20720_v37 = vunpack.i.l.bf16 %v20719_v58 }
0x2c86   :  { %v11630_v55 = vpop.f32.mrb[183].mxu0  ;;  %18309 = vmatmul.mubr.msk.f32.vlgmr.msra.gmra.mrb[220].mxu1 %vm1138_vm4, %v11660_v9  ;;  %v11662_v54 = vmul.f32 %v18285_v19, %v27321_v12  ;;  %v20724_v12 = vpop.permute.xlu1 %20723 }
0x2c87   :  { %v11661_v29 = vmul.f32 %v27320_v49, %v11630_v55  ;;  %19813 = vmatpush3.bf16.xpose.msk.msra.mxu1 %vm21544_vm2, %v19808_v8  ;;  %v19820_v8 = vpack.c.bf16 %v20721_v33, %v20720_v37 }
0x2c88   :  { %19816 = vmatprep.subr.msk.bf16.mxu1 %vm21544_vm2, %v19814_v26 }
0x2c89   :  { %v18288_v3 = vpop.f32.mrb[184].mxu0  ;;  %18311 = vmatprep.mubr.msk.f32.mxu1 %vm1138_vm4, %v11661_v29  ;;  %v20726_v29 = vunpack.i.h.bf16 %v20724_v12 }
0x2c8a   :  { %v11640_v4 = vpop.f32.mrb[185].mxu0  ;;  %18312 = vmatmul.mubr.msk.f32.gmra.mrb[222].mxu1 %vm1138_vm4, %v11662_v54  ;;  %v11664_v9 = vmul.f32 %v18288_v3, %v22191_v22  ;;  %v20725_v54 = vunpack.i.l.bf16 %v20724_v12 }
0x2c8b   :  { %v11663_v53 = vmul.f32 %v22186_v1, %v11640_v4 }
0x2c8c   :  { %v19826_v3 = vpack.c.bf16 %v20726_v29, %v20725_v54 }
0x2c8d   :  { %v18291_v55 = vpop.f32.mrb[186].mxu0  ;;  %18314 = vmatprep.mubr.msk.f32.mxu1 %vm1138_vm4, %v11663_v53 }
0x2c8e   :  { %v11650_v19 = vpop.f32.mrb[187].mxu0  ;;  %18315 = vmatmul.mubr.msk.f32.gmra.mrb[224].mxu1 %vm1138_vm4, %v11664_v9  ;;  %v11666_v58 = vmul.f32 %v18291_v55, %v22207_v31 }
0x2c8f   :  { %v11665_v49 = vmul.f32 %v22204_v24, %v11650_v19  ;;  %19819 = vmatpush3.bf16.xpose.msk.msra.mxu1 %vm21544_vm2, %v19814_v26 }
0x2c90   :  { %19822 = vmatprep.subr.msk.bf16.mxu1 %vm21544_vm2, %v19820_v8 }
0x2c91   :  { %18317 = vmatprep.mubr.msk.f32.mxu1 %vm1138_vm4, %v11665_v49 }
0x2c92   :  { %18318 = vmatmul.mubr.msk.f32.gmra.mrb[226].mxu1 %vm1138_vm4, %v11666_v58 }
0x2c93   :  { %18336 = vmatprep.mubr.msk.f32.mxu1 %vm976_vm1, %v25986_v13 }
0x2c97   :  { %19825 = vmatpush3.bf16.xpose.msk.msra.mxu1 %vm21544_vm2, %v19820_v8 }
0x2c98   :  { %19828 = vmatprep.subr.msk.bf16.mxu1 %vm21544_vm2, %v19826_v3 }
0x2c9f   :  { %19831 = vmatpush3.bf16.xpose.msk.msra.mxu1 %vm21544_vm2, %v19826_v3 }
0x2ca0   :  { %19858 = vmatprep.subr.msk.bf16.mxu1 %vm21544_vm2, %v27336_v59 }
0x2ca6   :  { %18337 = vmatmul.mubr.msk.f32.vlgmr.msra.gmra.mrb[220].mxu1 %vm976_vm1, %v25983_v28 }
0x2ca7   :  { %18339 = vmatprep.mubr.msk.f32.mxu1 %vm976_vm1, %v25994_v48  ;;  %19861 = vmatpush3.bf16.xpose.msk.msra.mxu1 %vm21544_vm2, %v27336_v59 }
0x2ca8   :  { %19864 = vmatprep.subr.msk.bf16.mxu1 %vm21544_vm2, %v27337_v7 }
0x2caa   :  { %18340 = vmatmul.mubr.msk.f32.gmra.mrb[222].mxu1 %vm976_vm1, %v26003_v39 }
0x2cab   :  { %18342 = vmatprep.mubr.msk.f32.mxu1 %vm976_vm1, %v25989_v18 }
0x2cae   :  { %18343 = vmatmul.mubr.msk.f32.gmra.mrb[224].mxu1 %vm976_vm1, %v26013_v50 }
0x2caf   :  { %18345 = vmatprep.mubr.msk.f32.mxu1 %vm976_vm1, %v25997_v43  ;;  %19867 = vmatpush3.bf16.xpose.msk.msra.mxu1 %vm21544_vm2, %v27337_v7 }
0x2cb0   :  { %19870 = vmatprep.subr.msk.bf16.mxu1 %vm21544_vm2, %v27338_v57 }
0x2cb2   :  { %18346 = vmatmul.mubr.msk.f32.gmra.mrb[226].mxu1 %vm976_vm1, %v26021_v32 }
0x2cb7   :  { %19873 = vmatpush3.bf16.xpose.msk.msra.mxu1 %vm21544_vm2, %v27338_v57 }
0x2cb8   :  { %19876 = vmatprep.subr.msk.bf16.mxu1 %vm21544_vm2, %v27339_v20 }
0x2cbf   :  { %19879 = vmatpush3.bf16.xpose.msk.msra.mxu1 %vm21544_vm2, %v27339_v20 }
0x2d79   :  { %v18338_v49 = vpop.f32.mrb[220].mxu1 }
0x2d7a   :  { %v11942_v12 = vsel %vm22278_vm15, %v18338_v49, -1e+09  ;;  %v11902_v28 = vpop.f32.mrb[221].mxu1 }
0x2d7b   :  { %v11952_v13 = vsel %vm1138_vm4, %v11942_v12, -inf  ;;  %v11941_v18 = vsel %vm22283_vm3, %v11902_v28, -1e+09  ;;  %v27385_v28 = vld [vmem:[#allocation40_spill] sm:$0xff] }
0x2d7c   :  { %v11949_v48 = vsel %vm1138_vm4, %v11941_v18, -inf  ;;  %11953 = vmax.xlane.f32.xlu1 %v11952_v13 }
0x2d7d   :  { %11950 = vmax.xlane.f32.xlu0 %v11949_v48  ;;  %v18341_v43 = vpop.f32.mrb[222].mxu1 }
0x2d7e   :  { %v11912_v39 = vpop.f32.mrb[223].mxu1  ;;  %v11944_v26 = vsel %vm22303_vm7, %v18341_v43, -1e+09 }
0x2d7f   :  { %v11943_v50 = vsel %vm22294_vm6, %v11912_v39, -1e+09  ;;  %v11958_v53 = vsel %vm1138_vm4, %v11944_v26, -inf }
0x2d80   :  { %v11955_v32 = vsel %vm1138_vm4, %v11943_v50, -inf }
0x2d81   :  { %11956 = vmax.xlane.f32.xlu0 %v11955_v32  ;;  %v18344_v33 = vpop.f32.mrb[224].mxu1 }
0x2d82   :  { %v11922_v37 = vpop.f32.mrb[225].mxu1  ;;  %v11946_v55 = vsel %vm22321_vm10, %v18344_v33, -1e+09 }
0x2d83   :  { %v11945_v4 = vsel %vm22314_vm9, %v11922_v37, -1e+09  ;;  %v11964_v29 = vsel %vm1138_vm4, %v11946_v55, -inf }
0x2d84   :  { %v11961_v9 = vsel %vm1138_vm4, %v11945_v4, -inf }
0x2d85   :  { %11959 = vmax.xlane.f32.xlu0 %v11958_v53  ;;  %11962 = vmax.xlane.f32.xlu1 %v11961_v9  ;;  %v18347_v8 = vpop.f32.mrb[226].mxu1 }
0x2d86   :  { %v11932_v19 = vpop.f32.mrb[227].mxu1  ;;  %v11948_v3 = vsel %vm22331_vm12, %v18347_v8, -1e+09 }
0x2d87   :  { %v11947_v58 = vsel %vm22346_vm13, %v11932_v19, -1e+09  ;;  %v11970_v49 = vsel %vm1138_vm4, %v11948_v3, -inf }
0x2d88   :  { %v11967_v54 = vsel %vm1138_vm4, %v11947_v58, -inf }
0x2d89   :  { %11965 = vmax.xlane.f32.xlu0 %v11964_v29  ;;  %11968 = vmax.xlane.f32.xlu1 %v11967_v54 }
0x2d8d   :  { %11971 = vmax.xlane.f32.xlu0 %v11970_v49 }
0x2d9a   :  { %20728 = vrot.lane.b32.xlu1 %v27385_v28, %s21403_s16 }
0x2e09   :  { %v11954_v13 = vpop.xlane.xlu1 %11953 }
0x2e0a   :  { %v11974_v48 = vsub.f32 %v11942_v12, %v11954_v13  ;;  %v11951_v43 = vpop.xlane.xlu0 %11950 }
0x2e0b   :  { %v11973_v39 = vsub.f32 %v11941_v18, %v11951_v43 }
0x2e0c   :  { %v11983_v32 = vmul.f32 1.442695, %v11974_v48 }
0x2e0d   :  { %v11981_v33 = vmul.f32 1.442695, %v11973_v39 }
0x2e0e   :  { %21243 = vpow2.f32 %v11983_v32  ;;  %v11957_v37 = vpop.xlane.xlu0 %11956 }
0x2e0f   :  { %21245 = vpow2.f32 %v11981_v33  ;;  %v11975_v53 = vsub.f32 %v11943_v50, %v11957_v37 }
0x2e11   :  { %v11985_v9 = vmul.f32 1.442695, %v11975_v53 }
0x2e12   :  { %v11960_v8 = vpop.xlane.xlu0 %11959  ;;  %v11963_v19 = vpop.xlane.xlu1 %11962 }
0x2e13   :  { %21247 = vpow2.f32 %v11985_v9  ;;  %v11976_v29 = vsub.f32 %v11944_v26, %v11960_v8  ;;  %v11977_v54 = vsub.f32 %v11945_v4, %v11963_v19 }
0x2e15   :  { %v11987_v49 = vmul.f32 1.442695, %v11976_v29  ;;  %v11989_v20 = vmul.f32 1.442695, %v11977_v54 }
0x2e16   :  { %v11966_v57 = vpop.xlane.xlu0 %11965  ;;  %v11969_v7 = vpop.xlane.xlu1 %11968 }
0x2e17   :  { %21249 = vpow2.f32 %v11987_v49  ;;  %v11978_v12 = vsub.f32 %v11946_v55, %v11966_v57  ;;  %v11979_v43 = vsub.f32 %v11947_v58, %v11969_v7 }
0x2e18   :  { %v26137_v13 = vpop.eup %21243  ;;  %21251 = vpow2.f32 %v11989_v20 }
0x2e19   :  { %v26139_v18 = vpop.eup %21245  ;;  %v11991_v48 = vmul.f32 1.442695, %v11978_v12  ;;  %v12000_v50 = vsel %vm1138_vm4, %v26137_v13, 0.0  ;;  %v11993_v20 = vmul.f32 1.442695, %v11979_v43  ;;  %v27386_v43 = vld [vmem:[#allocation42_spill] sm:$0xff] }
0x2e1a   :  { %12001 = vadd.xlane.f32.xlu0 %v12000_v50  ;;  %v11972_v39 = vpop.xlane.xlu0 %11971  ;;  %v20729_v26 = vpop.permute.xlu1 %20728  ;;  %v11997_v4 = vsel %vm1138_vm4, %v26139_v18, 0.0  ;;  %v27387_v50 = vld [vmem:[#allocation43_spill] sm:$0xff] }
0x2e1b   :  { %21253 = vpow2.f32 %v11991_v48  ;;  %v11980_v32 = vsub.f32 %v11948_v3, %v11972_v39  ;;  %v20731_v33 = vunpack.i.h.bf16 %v20729_v26  ;;  %v20730_v57 = vunpack.i.l.bf16 %v20729_v26  ;;  %11998 = vadd.xlane.f32.xlu1 %v11997_v4  ;;  %v27388_v39 = vld [vmem:[#allocation54_spill] sm:$0xff] }
0x2e1c   :  { %v27389_v26 = vld [vmem:[#allocation86_spill] sm:$0xff] }
0x2e1d   :  { %v26145_v55 = vpop.eup %21247  ;;  %v11995_v37 = vmul.f32 1.442695, %v11980_v32  ;;  %v19832_v53 = vpack.c.bf16 %v20731_v33, %v20730_v57  ;;  %v12450_v4 = vadd.f32 %v27389_v26, %v25705_v47  ;;  %v27390_v32 = vld [vmem:[#allocation87_spill] sm:$0xff]  ;;  %v27391_v57 = vld [vmem:[#allocation84_spill] sm:$0xff] }
0x2e1e   :  { %v12003_v7 = vsel %vm1138_vm4, %v26145_v55, 0.0  ;;  %v12451_v33 = vadd.f32 %v27390_v32, %v25701_v63  ;;  %v27396_v32 = vld [vmem:[#allocation89_spill] sm:$0xff] }
0x2e1f   :  { %21255 = vpow2.f32 %v11995_v37  ;;  %12004 = vadd.xlane.f32.xlu1 %v12003_v7  ;;  %19833 = vmatprep.subr.bf16.mxu0 %v19832_v53  ;;  %v27392_v37 = vld [vmem:[#allocation85_spill] sm:$0xff]  ;;  %v27393_v7 = vld [vmem:[#allocation90_spill] sm:$0xff] }
0x2e20   :  { %19835 = vmatpush3.bf16.msra.mxu0 %v19832_v53  ;;  %21257 = vpow2.f32 %v11993_v20  ;;  %v12448_v20 = vadd.f32 %v27391_v57, %v25647_v45  ;;  %v12449_v53 = vadd.f32 %v27392_v37, %v25643_v42  ;;  %v12453_v57 = vadd.f32 %v27396_v32, %v25722_v51 }
0x2e21   :  { %v26149_v58 = vpop.eup %21249 }
0x2e22   :  { %v26151_v9 = vpop.eup %21251  ;;  %v12006_v3 = vsel %vm1138_vm4, %v26149_v58, 0.0  ;;  %v20747_v37 = vpack.i.bf16 %v12449_v53, %v12448_v20 }
0x2e23   :  { %12007 = vadd.xlane.f32.xlu0 %v12006_v3  ;;  %v12009_v8 = vsel %vm1138_vm4, %v26151_v9, 0.0  ;;  %v12454_v3 = vadd.f32 %v27393_v7, %v25754_v41 }
0x2e24   :  { %12010 = vadd.xlane.f32.xlu1 %v12009_v8  ;;  %v27394_v8 = vld [vmem:[#allocation91_spill] sm:$0xff] }
0x2e25   :  { %v26157_v19 = vpop.eup %21253 }
0x2e26   :  { %v12012_v29 = vsel %vm1138_vm4, %v26157_v19, 0.0 }
0x2e27   :  { %12013 = vadd.xlane.f32.xlu0 %v12012_v29  ;;  %v12455_v29 = vadd.f32 %v27394_v8, %v25750_v38 }
0x2e29   :  { %v26161_v54 = vpop.eup %21255  ;;  %v20762_v59 = vpack.i.bf16 %v12455_v29, %v12454_v3 }
0x2e2a   :  { %v12018_v49 = vsel %vm1138_vm4, %v26161_v54, 0.0  ;;  %v26165_v12 = vpop.eup %21257 }
0x2e2b   :  { %12019 = vadd.xlane.f32.xlu0 %v12018_v49  ;;  %v12015_v48 = vsel %vm1138_vm4, %v26165_v12, 0.0  ;;  %v20752_v49 = vpack.i.bf16 %v12451_v33, %v12450_v4 }
0x2e2f   :  { %12016 = vadd.xlane.f32.xlu0 %v12015_v48  ;;  %v27395_v48 = vld [vmem:[#allocation88_spill] sm:$0xff] }
0x2e30   :  { %v12452_v26 = vadd.f32 %v27395_v48, %v25726_v60 }
0x2e32   :  { %v20757_v7 = vpack.i.bf16 %v12453_v57, %v12452_v26 }
0x2e35   :  { %20738 = vrot.lane.b32.xlu1 %v27386_v43, %s21403_s16 }
0x2e39   :  { %20743 = vrot.lane.b32.xlu1 %v27387_v50, %s21403_s16 }
0x2e3d   :  { %12456 = vrot.lane.b32.xlu1 %v25609_v52, %s21404_s11 }
0x2e41   :  { %12458 = vrot.lane.b32.xlu1 %v25615_v2, %s21404_s11 }
0x2e45   :  { %12462 = vrot.lane.b32.xlu1 %v25628_v27, %s21404_s11  ;;  %20733 = vrot.lane.b32.xlu0 %v27388_v39, %s21403_s16 }
0x2e49   :  { %12466 = vrot.lane.b32.xlu1 %v25657_v21, %s21404_s11  ;;  %12460 = vrot.lane.b32.xlu0 %v25618_v46, %s21404_s11 }
0x2e4d   :  { %12470 = vrot.lane.b32.xlu1 %v25681_v30, %s21404_s11  ;;  %12464 = vrot.lane.b32.xlu0 %v25634_v61, %s21404_s11 }
0x2e51   :  { %20753 = vrot.lane.b32.xlu1 %v20752_v49, %s21404_s11  ;;  %12468 = vrot.lane.b32.xlu0 %v25663_v25, %s21404_s11 }
0x2e55   :  { %20763 = vrot.lane.b32.xlu1 %v20762_v59, %s21404_s11  ;;  %20748 = vrot.lane.b32.xlu0 %v20747_v37, %s21404_s11 }
0x2e59   :  { %20758 = vrot.lane.b32.xlu0 %v20757_v7, %s21404_s11 }
0x2ea7   :  { %v12002_v33 = vpop.xlane.xlu0 %12001 }
0x2ea8   :  { %v11999_v4 = vpop.xlane.xlu1 %11998 }
0x2ea9   :  { %21259 = vrcp.f32 %v11999_v4 }
0x2eaa   :  { %21261 = vrcp.f32 %v12002_v33 }
0x2eac   :  { %v12005_v8 = vpop.xlane.xlu1 %12004 }
0x2ead   :  { %21263 = vrcp.f32 %v12005_v8 }
0x2eb0   :  { %v12008_v49 = vpop.xlane.xlu0 %12007 }
0x2eb1   :  { %v12011_v41 = vpop.xlane.xlu1 %12010  ;;  %21265 = vrcp.f32 %v12008_v49 }
0x2eb2   :  { %21267 = vrcp.f32 %v12011_v41 }
0x2eb3   :  { %v21260_v38 = vpop.eup %21259 }
0x2eb4   :  { %v12014_v48 = vpop.xlane.xlu0 %12013  ;;  %v12029_v60 = vmul.f32 %v21260_v38, %v26139_v18  ;;  %v21262_v49 = vpop.eup %21261 }
0x2eb5   :  { %v20739_v32 = vpop.permute.xlu1 %20738  ;;  %21269 = vrcp.f32 %v12014_v48 }
0x2eb6   :  { %18364 = vmatprep.mubr.msk.f32.mxu0 %vm1138_vm4, %v12029_v60  ;;  %v20741_v26 = vunpack.i.h.bf16 %v20739_v32  ;;  %v20740_v57 = vunpack.i.l.bf16 %v20739_v32 }
0x2eb7   :  { %v21264_v41 = vpop.eup %21263 }
0x2eb8   :  { %v12020_v20 = vpop.xlane.xlu0 %12019  ;;  %v19840_v18 = vpack.c.bf16 %v20741_v26, %v20740_v57  ;;  %v27398_v57 = vld [vmem:[#allocation93_spill] sm:$0xff] }
0x2eb9   :  { %v20744_v59 = vpop.permute.xlu1 %20743 }
0x2eba   :  { %v20746_v51 = vunpack.i.h.bf16 %v20744_v59  ;;  %v20745_v30 = vunpack.i.l.bf16 %v20744_v59 }
0x2ebb   :  { %v21266_v48 = vpop.eup %21265 }
0x2ebc   :  { %v12017_v53 = vpop.xlane.xlu0 %12016  ;;  %v19844_v8 = vpack.c.bf16 %v20746_v51, %v20745_v30  ;;  %v12030_v30 = vmul.f32 %v21262_v49, %v26137_v13  ;;  %v27397_v51 = vld [vmem:[#allocation92_spill] sm:$0xff]  ;;  %v21268_v26 = vpop.eup %21267 }
0x2ebd   :  { %v26213_v3 = vpop.permute.xlu1 %12456  ;;  %21271 = vrcp.f32 %v12017_v53  ;;  %v12031_v53 = vmul.f32 %v21264_v41, %v26145_v55 }
0x2ebe   :  { %18424 = vmatprep.mubr.msk.f32.mxu1 %vm976_vm1, %v26213_v3  ;;  %21273 = vrcp.f32 %v12020_v20  ;;  %v12032_v20 = vmul.f32 %v21266_v48, %v26149_v58 }
0x2ec0   :  { %v20734_v29 = vpop.permute.xlu0 %20733 }
0x2ec1   :  { %v20736_v37 = vunpack.i.h.bf16 %v20734_v29  ;;  %v20735_v7 = vunpack.i.l.bf16 %v20734_v29  ;;  %v26217_v4 = vpop.permute.xlu1 %12458 }
0x2ec2   :  { %18425 = vmatmul.mubr.msk.f32.vlgmr.msra.gmra.mrb[228].mxu1 %vm976_vm1, %v26217_v4 }
0x2ec3   :  { %v19836_v60 = vpack.c.bf16 %v20736_v37, %v20735_v7  ;;  %v21270_v37 = vpop.eup %21269  ;;  %v12033_v7 = vmul.f32 %v21268_v26, %v26151_v9 }
0x2ec4   :  { %v26221_v38 = vpop.permute.xlu0 %12460  ;;  %v12034_v55 = vmul.f32 %v21270_v37, %v26157_v19 }
0x2ec5   :  { %v26223_v25 = vpop.permute.xlu1 %12462  ;;  %19837 = vmatprep.subr.bf16.mxu0 %v19836_v60  ;;  %18427 = vmatprep.mubr.msk.f32.mxu1 %vm976_vm1, %v26221_v38 }
0x2ec6   :  { %19839 = vmatpush3.bf16.msra.mxu0 %v19836_v60  ;;  %18428 = vmatmul.mubr.msk.f32.gmra.mrb[230].mxu1 %vm976_vm1, %v26223_v25 }
0x2ec7   :  { %19841 = vmatprep.subr.bf16.mxu0 %v19840_v18  ;;  %v21272_v13 = vpop.eup %21271 }
0x2ec8   :  { %v26229_v33 = vpop.permute.xlu0 %12464  ;;  %v21274_v60 = vpop.eup %21273 }
0x2ec9   :  { %v26231_v32 = vpop.permute.xlu1 %12466  ;;  %18430 = vmatprep.mubr.msk.f32.mxu1 %vm976_vm1, %v26229_v33  ;;  %v12036_v58 = vmul.f32 %v21274_v60, %v26161_v54 }
0x2eca   :  { %19843 = vmatpush3.bf16.msra.mxu0 %v19840_v18  ;;  %18431 = vmatmul.mubr.msk.f32.gmra.mrb[232].mxu1 %vm976_vm1, %v26231_v32  ;;  %v12035_v18 = vmul.f32 %v21272_v13, %v26165_v12  ;;  %v27399_v12 = vmov 1.0|1.0  }
0x2ecb   :  { %19845 = vmatprep.subr.bf16.mxu0 %v19844_v8 }
0x2ecc   :  { %v26237_v59 = vpop.permute.xlu0 %12468 }
0x2ecd   :  { %v26239_v29 = vpop.permute.xlu1 %12470  ;;  %18433 = vmatprep.mubr.msk.f32.mxu1 %vm976_vm1, %v26237_v59 }
0x2ece   :  { %19847 = vmatpush3.bf16.msra.mxu0 %v19844_v8  ;;  %18434 = vmatmul.mubr.msk.f32.gmra.mrb[234].mxu1 %vm976_vm1, %v26239_v29 }
0x2ecf   :  { %19849 = vmatprep.subr.bf16.mxu0 %v27397_v51 }
0x2ed1   :  { %18365 = vmatmul.mubr.msk.f32.vlgmr.msra.gmra.mrb[188].mxu0 %vm1138_vm4, %v12030_v30 }
0x2ed2   :  { %18367 = vmatprep.mubr.msk.f32.mxu0 %vm1138_vm4, %v12031_v53  ;;  %19851 = vmatpush3.bf16.msra.mxu0 %v27397_v51 }
0x2ed3   :  { %19853 = vmatprep.subr.bf16.mxu0 %v27398_v57 }
0x2ed5   :  { %18368 = vmatmul.mubr.msk.f32.gmra.mrb[190].mxu0 %vm1138_vm4, %v12032_v20 }
0x2ed6   :  { %18370 = vmatprep.mubr.msk.f32.mxu0 %vm1138_vm4, %v12033_v7 }
0x2ed9   :  { %18371 = vmatmul.mubr.msk.f32.gmra.mrb[192].mxu0 %vm1138_vm4, %v12034_v55 }
0x2eda   :  { %18373 = vmatprep.mubr.msk.f32.mxu0 %vm1138_vm4, %v12035_v18  ;;  %v20749_v18 = vpop.permute.xlu0 %20748 }
0x2edd   :  { %18374 = vmatmul.mubr.msk.f32.gmra.mrb[194].mxu0 %vm1138_vm4, %v12036_v58  ;;  %v27403_v58 = vld [vmem:[#allocation55_spill] sm:$0xff] }
0x2f95   :  { %v18426_v8 = vpop.f32.mrb[228].mxu1 }
0x2f96   :  { %v12554_v9 = vpop.f32.mrb[229].mxu1 }
0x2f99   :  { %v18429_v49 = vpop.f32.mrb[230].mxu1 }
0x2f9a   :  { %v12564_v41 = vpop.f32.mrb[231].mxu1 }
0x2f9d   :  { %v18432_v30 = vpop.f32.mrb[232].mxu1 }
0x2f9e   :  { %v12574_v51 = vpop.f32.mrb[233].mxu1 }
0x2fa1   :  { %v26262_v48 = vpop.f32.mrb[234].mxu1 }
0x2fa2   :  { %v12584_v19 = vpop.f32.mrb[235].mxu1 }
0x2fa4   :  { %v18366_v53 = vpop.f32.mrb[188].mxu0 }
0x2fa5   :  { %v12151_v26 = vpop.f32.mrb[189].mxu0 }
0x2fa6   :  { %18380 = vmatprep.mubr.msk.f32.mxu0 %vm976_vm1, %v12151_v26  ;;  %v27405_v26 = vld [vmem:[#allocation71_spill] sm:$0xff] }
0x2fa7   :  { %18381 = vmatmul.mubr.msk.f32.vlgmr.msra.gmra.mrb[196].mxu0 %vm976_vm1, %v18366_v53 }
0x2fa8   :  { %19855 = vmatpush3.bf16.msra.mxu0 %v27398_v57  ;;  %v18369_v54 = vpop.f32.mrb[190].mxu0 }
0x2fa9   :  { %19881 = vmatprep.subr.msk.bf16.mxu0 %vm21872_vm5, %v27399_v12  ;;  %v12161_v37 = vpop.f32.mrb[191].mxu0 }
0x2faa   :  { %18383 = vmatprep.mubr.msk.f32.mxu0 %vm976_vm1, %v12161_v37  ;;  %v12594_v37 = vmul.f32 %v18426_v8, %v22141_v62  ;;  %v20759_v8 = vpop.permute.xlu0 %20758 }
0x2fab   :  { %18384 = vmatmul.mubr.msk.f32.gmra.mrb[198].mxu0 %vm976_vm1, %v18369_v54  ;;  %v20754_v54 = vpop.permute.xlu1 %20753 }
0x2fac   :  { %v18372_v7 = vpop.f32.mrb[192].mxu0 }
0x2fad   :  { %v12171_v13 = vpop.f32.mrb[193].mxu0 }
0x2fae   :  { %18386 = vmatprep.mubr.msk.f32.mxu0 %vm976_vm1, %v12171_v13  ;;  %v20755_v13 = vunpack.i.l.bf16 %v20754_v54 }
0x2faf   :  { %18387 = vmatmul.mubr.msk.f32.gmra.mrb[200].mxu0 %vm976_vm1, %v18372_v7 }
0x2fb0   :  { %v18375_v55 = vpop.f32.mrb[194].mxu0 }
0x2fb1   :  { %v12181_v60 = vpop.f32.mrb[195].mxu0 }
0x2fb2   :  { %18389 = vmatprep.mubr.msk.f32.mxu0 %vm976_vm1, %v12181_v60 }
0x2fb3   :  { %18390 = vmatmul.mubr.msk.f32.gmra.mrb[202].mxu0 %vm976_vm1, %v18375_v55  ;;  %v27407_v55 = vld [vmem:[#allocation63_spill] sm:$0xff] }
0x2fb4   :  { %18396 = vmatprep.mubr.msk.f32.mxu0 %vm976_vm1, %v26027_v14  ;;  %v20751_v14 = vunpack.i.h.bf16 %v20749_v18  ;;  %v12596_v60 = vmul.f32 %v18429_v49, %v27407_v55  ;;  %v20761_v49 = vunpack.i.h.bf16 %v20759_v8 }
0x2fb7   :  { %18397 = vmatmul.mubr.msk.f32.vlgmr.msra.gmra.mrb[196].mxu0 %vm976_vm1, %v26025_v0 }
0x2fb8   :  { %19883 = vmatpush3.bf16.msk.msra.mxu0 %vm21872_vm5, %v27399_v12  ;;  %18399 = vmatprep.mubr.msk.f32.mxu0 %vm976_vm1, %v26031_v35  ;;  %v20750_v35 = vunpack.i.l.bf16 %v20749_v18  ;;  %v12597_v18 = vmul.f32 %v22186_v1, %v12574_v51  ;;  %v20760_v51 = vunpack.i.l.bf16 %v20759_v8 }
0x2fb9   :  { %19885 = vmatprep.subr.msk.bf16.mxu0 %vm21957_vm8, %v27399_v12 }
0x2fba   :  { %v19896_v53 = vpack.c.bf16 %v20751_v14, %v20750_v35  ;;  %v12598_v35 = vmul.f32 %v18432_v30, %v22191_v22  ;;  %v19908_v30 = vpack.c.bf16 %v20761_v49, %v20760_v51 }
0x2fbb   :  { %18400 = vmatmul.mubr.msk.f32.gmra.mrb[198].mxu0 %vm976_vm1, %v26029_v10 }
0x2fbc   :  { %19887 = vmatpush3.bf16.msk.msra.mxu0 %vm21957_vm8, %v27399_v12  ;;  %18402 = vmatprep.mubr.msk.f32.mxu0 %vm976_vm1, %v26035_v6  ;;  %v12593_v6 = vmul.f32 %v22139_v56, %v12554_v9  ;;  %v20756_v9 = vunpack.i.h.bf16 %v20754_v54 }
0x2fbd   :  { %19889 = vmatprep.subr.msk.bf16.mxu0 %vm21985_vm11, %v27399_v12 }
0x2fbe   :  { %v19902_v14 = vpack.c.bf16 %v20756_v9, %v20755_v13 }
0x2fbf   :  { %18403 = vmatmul.mubr.msk.f32.gmra.mrb[200].mxu0 %vm976_vm1, %v27403_v58  ;;  %v12600_v58 = vmul.f32 %v26262_v48, %v22207_v31 }
0x2fc0   :  { %19891 = vmatpush3.bf16.msk.msra.mxu0 %vm21985_vm11, %v27399_v12  ;;  %18405 = vmatprep.mubr.msk.f32.mxu0 %vm976_vm1, %v26039_v11  ;;  %v27406_v11 = vld [vmem:[#allocation62_spill] sm:$0xff] }
0x2fc1   :  { %19893 = vmatprep.subr.msk.bf16.mxu0 %vm22009_vm14, %v27399_v12  ;;  %v12595_v7 = vmul.f32 %v27406_v11, %v12564_v41  ;;  %v12599_v41 = vmul.f32 %v22204_v24, %v12584_v19 }
0x2fc3   :  { %18406 = vmatmul.mubr.msk.f32.gmra.mrb[202].mxu0 %vm976_vm1, %v27405_v26 }
0x2fc4   :  { %19895 = vmatpush3.bf16.msk.msra.mxu0 %vm22009_vm14, %v27399_v12  ;;  %18452 = vmatprep.mubr.msk.f32.mxu0 %vm1138_vm4, %v12593_v6  ;;  %v20764_v6 = vpop.permute.xlu1 %20763 }
0x2fc5   :  { %19898 = vmatprep.subr.msk.bf16.mxu0 %vm21544_vm2, %v19896_v53  ;;  %v20766_v19 = vunpack.i.h.bf16 %v20764_v6 }
0x2fc7   :  { %18453 = vmatmul.mubr.msk.f32.vlgmr.msra.gmra.mrb[204].mxu0 %vm1138_vm4, %v12594_v37 }
0x2fc8   :  { %18455 = vmatprep.mubr.msk.f32.mxu0 %vm1138_vm4, %v12595_v7 }
0x2fcb   :  { %18456 = vmatmul.mubr.msk.f32.gmra.mrb[206].mxu0 %vm1138_vm4, %v12596_v60 }
0x2fcc   :  { %18458 = vmatprep.mubr.msk.f32.mxu0 %vm1138_vm4, %v12597_v18 }
0x2fcd   :  { %19901 = vmatpush3.bf16.xpose.msk.msra.mxu0 %vm21544_vm2, %v19896_v53  ;;  %v20765_v53 = vunpack.i.l.bf16 %v20764_v6 }
0x2fce   :  { %19904 = vmatprep.subr.msk.bf16.mxu0 %vm21544_vm2, %v19902_v14 }
0x2fcf   :  { %18459 = vmatmul.mubr.msk.f32.gmra.mrb[208].mxu0 %vm1138_vm4, %v12598_v35  ;;  %v19914_v26 = vpack.c.bf16 %v20766_v19, %v20765_v53 }
0x2fd0   :  { %18461 = vmatprep.mubr.msk.f32.mxu0 %vm1138_vm4, %v12599_v41 }
0x2fd3   :  { %18462 = vmatmul.mubr.msk.f32.gmra.mrb[210].mxu0 %vm1138_vm4, %v12600_v58 }
0x2fd4   :  { %18480 = vmatprep.mubr.msk.f32.mxu0 %vm976_vm1, %v26213_v3  ;;  %v27408_v3 = vld [vmem:[#allocation94_spill] sm:$0xff] }
0x2fd5   :  { %19907 = vmatpush3.bf16.xpose.msk.msra.mxu0 %vm21544_vm2, %v19902_v14 }
0x2fd6   :  { %19910 = vmatprep.subr.msk.bf16.mxu0 %vm21544_vm2, %v19908_v30 }
0x2fdd   :  { %19913 = vmatpush3.bf16.xpose.msk.msra.mxu0 %vm21544_vm2, %v19908_v30 }
0x2fde   :  { %19916 = vmatprep.subr.msk.bf16.mxu0 %vm21544_vm2, %v19914_v26 }
0x2fe5   :  { %19919 = vmatpush3.bf16.xpose.msk.msra.mxu0 %vm21544_vm2, %v19914_v26 }
0x2fe6   :  { %19937 = vmatprep.subr.bf16.mxu0 %v27408_v3 }
0x2fec   :  { %18481 = vmatmul.mubr.msk.f32.vlgmr.msra.gmra.mrb[204].mxu0 %vm976_vm1, %v26217_v4 }
0x2fed   :  { %18483 = vmatprep.mubr.msk.f32.mxu0 %vm976_vm1, %v26221_v38  ;;  %19939 = vmatpush3.bf16.msra.mxu0 %v27408_v3 }
0x2fee   :  { %19965 = vmatprep.subr.msk.bf16.mxu0 %vm21872_vm5, %v27399_v12 }
0x2ff0   :  { %18484 = vmatmul.mubr.msk.f32.gmra.mrb[206].mxu0 %vm976_vm1, %v26223_v25 }
0x2ff1   :  { %18486 = vmatprep.mubr.msk.f32.mxu0 %vm976_vm1, %v26229_v33 }
0x2ff4   :  { %18487 = vmatmul.mubr.msk.f32.gmra.mrb[208].mxu0 %vm976_vm1, %v26231_v32 }
0x2ff5   :  { %18489 = vmatprep.mubr.msk.f32.mxu0 %vm976_vm1, %v26237_v59 }
0x2ff8   :  { %18490 = vmatmul.mubr.msk.f32.gmra.mrb[210].mxu0 %vm976_vm1, %v26239_v29 }
0x30bf   :  { %v18482_v4 = vpop.f32.mrb[204].mxu0 }
0x30c0   :  { %v12876_v38 = vsel %vm22278_vm15, %v18482_v4, -1e+09  ;;  %v12836_v48 = vpop.f32.mrb[205].mxu0 }
0x30c1   :  { %v12886_v54 = vsel %vm1138_vm4, %v12876_v38, -inf  ;;  %v12875_v25 = vsel %vm22283_vm3, %v12836_v48, -1e+09 }
0x30c2   :  { %v12883_v33 = vsel %vm1138_vm4, %v12875_v25, -inf  ;;  %12887 = vmax.xlane.f32.xlu1 %v12886_v54 }
0x30c3   :  { %12884 = vmax.xlane.f32.xlu0 %v12883_v33  ;;  %v18485_v32 = vpop.f32.mrb[206].mxu0 }
0x30c4   :  { %v12846_v37 = vpop.f32.mrb[207].mxu0  ;;  %v12878_v7 = vsel %vm22303_vm7, %v18485_v32, -1e+09 }
0x30c5   :  { %v12877_v59 = vsel %vm22294_vm6, %v12846_v37, -1e+09  ;;  %v12892_v18 = vsel %vm1138_vm4, %v12878_v7, -inf }
0x30c6   :  { %v12889_v29 = vsel %vm1138_vm4, %v12877_v59, -inf }
0x30c7   :  { %12890 = vmax.xlane.f32.xlu0 %v12889_v29  ;;  %v18488_v9 = vpop.f32.mrb[208].mxu0 }
0x30c8   :  { %v12856_v13 = vpop.f32.mrb[209].mxu0  ;;  %v12880_v8 = vsel %vm22321_vm10, %v18488_v9, -1e+09 }
0x30c9   :  { %v12879_v60 = vsel %vm22314_vm9, %v12856_v13, -1e+09  ;;  %v12898_v49 = vsel %vm1138_vm4, %v12880_v8, -inf }
0x30ca   :  { %v12895_v14 = vsel %vm1138_vm4, %v12879_v60, -inf }
0x30cb   :  { %12893 = vmax.xlane.f32.xlu0 %v12892_v18  ;;  %12896 = vmax.xlane.f32.xlu1 %v12895_v14  ;;  %v18491_v35 = vpop.f32.mrb[210].mxu0 }
0x30cc   :  { %v12866_v41 = vpop.f32.mrb[211].mxu0  ;;  %v12882_v51 = vsel %vm22331_vm12, %v18491_v35, -1e+09 }
0x30cd   :  { %v12904_v58 = vsel %vm1138_vm4, %v12882_v51, -inf  ;;  %v12881_v30 = vsel %vm22346_vm13, %v12866_v41, -1e+09 }
0x30ce   :  { %v12901_v6 = vsel %vm1138_vm4, %v12881_v30, -inf }
0x30cf   :  { %12899 = vmax.xlane.f32.xlu0 %v12898_v49 }
0x30d3   :  { %12905 = vmax.xlane.f32.xlu0 %v12904_v58 }
0x30dc   :  { %20768 = vrot.lane.b32.xlu1 %v27385_v28, %s21405_s18 }
0x3100   :  { %12902 = vmax.xlane.f32.xlu1 %v12901_v6 }
0x3111   :  { %20778 = vrot.lane.b32.xlu1 %v27386_v43, %s21405_s18 }
0x314f   :  { %v12888_v19 = vpop.xlane.xlu1 %12887 }
0x3150   :  { %v12908_v53 = vsub.f32 %v12876_v38, %v12888_v19  ;;  %v12885_v26 = vpop.xlane.xlu0 %12884 }
0x3151   :  { %v12907_v3 = vsub.f32 %v12875_v25, %v12885_v26 }
0x3152   :  { %v12917_v4 = vmul.f32 1.442695, %v12908_v53 }
0x3153   :  { %v12915_v48 = vmul.f32 1.442695, %v12907_v3 }
0x3154   :  { %21275 = vpow2.f32 %v12917_v4  ;;  %v12891_v25 = vpop.xlane.xlu0 %12890 }
0x3155   :  { %21277 = vpow2.f32 %v12915_v48  ;;  %v12909_v35 = vsub.f32 %v12877_v59, %v12891_v25 }
0x3157   :  { %v12919_v58 = vmul.f32 1.442695, %v12909_v35 }
0x3158   :  { %v12897_v54 = vpop.xlane.xlu1 %12896  ;;  %v12894_v14 = vpop.xlane.xlu0 %12893 }
0x3159   :  { %v12910_v41 = vsub.f32 %v12878_v7, %v12894_v14  ;;  %v12911_v6 = vsub.f32 %v12879_v60, %v12897_v54  ;;  %21279 = vpow2.f32 %v12919_v58 }
0x315b   :  { %v12921_v19 = vmul.f32 1.442695, %v12910_v41  ;;  %v12923_v53 = vmul.f32 1.442695, %v12911_v6  ;;  %v27409_v41 = vld [vmem:[#allocation68_spill] sm:$0xff] }
0x315c   :  { %v20769_v33 = vpop.permute.xlu1 %20768  ;;  %v12900_v49 = vpop.xlane.xlu0 %12899 }
0x315d   :  { %v20771_v32 = vunpack.i.h.bf16 %v20769_v33  ;;  %v20770_v37 = vunpack.i.l.bf16 %v20769_v33  ;;  %v12912_v26 = vsub.f32 %v12880_v8, %v12900_v49  ;;  %21281 = vpow2.f32 %v12921_v19 }
0x315e   :  { %v26395_v29 = vpop.eup %21275  ;;  %21283 = vpow2.f32 %v12923_v53  ;;  %v13262_v49 = vadd.f32 %v27409_v41, %v25643_v42  ;;  %v27415_v53 = vld [vmem:[#allocation39_spill] sm:$0xff]  ;;  %v27418_v42 = vld [vmem:[#allocation64_spill] sm:$0xff] }
0x315f   :  { %v26397_v9 = vpop.eup %21277  ;;  %v19920_v13 = vpack.c.bf16 %v20771_v32, %v20770_v37  ;;  %v12934_v18 = vsel %vm1138_vm4, %v26395_v29, 0.0  ;;  %v12925_v4 = vmul.f32 1.442695, %v12912_v26 }
0x3160   :  { %12935 = vadd.xlane.f32.xlu0 %v12934_v18  ;;  %v12931_v38 = vsel %vm1138_vm4, %v26397_v9, 0.0  ;;  %v12906_v3 = vpop.xlane.xlu0 %12905 }
0x3161   :  { %19921 = vmatprep.subr.bf16.mxu1 %v19920_v13  ;;  %12932 = vadd.xlane.f32.xlu1 %v12931_v38  ;;  %v12914_v48 = vsub.f32 %v12882_v51, %v12906_v3  ;;  %21285 = vpow2.f32 %v12925_v4  ;;  %v27417_v3 = vld [vmem:[#allocation52_spill] sm:$0xff] }
0x3162   :  { %19923 = vmatpush3.bf16.msra.mxu1 %v19920_v13  ;;  %v13268_v4 = vadd.f32 %v27418_v42, %v27417_v3  ;;  %v27423_v42 = vld [vmem:[#allocation5_spill] sm:$0xff] }
0x3163   :  { %v12929_v37 = vmul.f32 1.442695, %v12914_v48  ;;  %v26407_v18 = vpop.eup %21279 }
0x3164   :  { %v12937_v7 = vsel %vm1138_vm4, %v26407_v18, 0.0 }
0x3167   :  { %v26409_v59 = vpop.eup %21281 }
0x3168   :  { %v26413_v60 = vpop.eup %21283  ;;  %v12940_v8 = vsel %vm1138_vm4, %v26409_v59, 0.0 }
0x3169   :  { %v12943_v51 = vsel %vm1138_vm4, %v26413_v60, 0.0 }
0x3172   :  { %20783 = vrot.lane.b32.xlu1 %v27387_v50, %s21405_s18 }
0x3176   :  { %20773 = vrot.lane.b32.xlu0 %v27388_v39, %s21405_s18 }
0x318d   :  { %v12903_v33 = vpop.xlane.xlu1 %12902 }
0x318e   :  { %v12913_v32 = vsub.f32 %v12881_v30, %v12903_v33  ;;  %v26419_v30 = vpop.eup %21285  ;;  %v27419_v33 = vld [vmem:[#allocation53_spill] sm:$0xff] }
0x318f   :  { %v12946_v38 = vsel %vm1138_vm4, %v26419_v30, 0.0 }
0x3190   :  { %v12927_v13 = vmul.f32 1.442695, %v12913_v32  ;;  %v27420_v32 = vld [vmem:[#allocation69_spill] sm:$0xff] }
0x3192   :  { %21287 = vpow2.f32 %v12927_v13  ;;  %v27422_v13 = vld [vmem:[#allocation65_spill] sm:$0xff] }
0x3193   :  { %21289 = vpow2.f32 %v12929_v37  ;;  %v27421_v37 = vld [vmem:[#allocation11_spill] sm:$0xff] }
0x3195   :  { %12938 = vadd.xlane.f32.xlu0 %v12937_v7 }
0x3196   :  { %12941 = vadd.xlane.f32.xlu1 %v12940_v8 }
0x3199   :  { %12944 = vadd.xlane.f32.xlu0 %v12943_v51  ;;  %v20779_v51 = vpop.permute.xlu1 %20778 }
0x319a   :  { %v20781_v41 = vunpack.i.h.bf16 %v20779_v51 }
0x319c   :  { %v26421_v54 = vpop.eup %21287 }
0x319d   :  { %v26425_v25 = vpop.eup %21289  ;;  %12947 = vadd.xlane.f32.xlu0 %v12946_v38  ;;  %v12949_v14 = vsel %vm1138_vm4, %v26421_v54, 0.0 }
0x319e   :  { %12950 = vadd.xlane.f32.xlu1 %v12949_v14  ;;  %v12952_v35 = vsel %vm1138_vm4, %v26425_v25, 0.0 }
0x31a1   :  { %12953 = vadd.xlane.f32.xlu0 %v12952_v35 }
0x31af   :  { %13269 = vrot.lane.b32.xlu1 %v25609_v52, %s21406_s28  ;;  %v27410_v52 = vld [vmem:[#allocation70_spill] sm:$0xff] }
0x31b0   :  { %v13264_v58 = vadd.f32 %v27410_v52, %v25701_v63 }
0x31b3   :  { %13273 = vrot.lane.b32.xlu1 %v25618_v46, %s21406_s28  ;;  %v27411_v46 = vld [vmem:[#allocation66_spill] sm:$0xff] }
0x31b4   :  { %v13261_v6 = vadd.f32 %v27411_v46, %v25647_v45  ;;  %v13265_v45 = vadd.f32 %v27420_v32, %v27419_v33 }
0x31b6   :  { %v20787_v48 = vpack.i.bf16 %v13262_v49, %v13261_v6  ;;  %v20780_v49 = vunpack.i.l.bf16 %v20779_v51 }
0x31b7   :  { %13271 = vrot.lane.b32.xlu0 %v25615_v2, %s21406_s28  ;;  %13275 = vrot.lane.b32.xlu1 %v25628_v27, %s21406_s28  ;;  %v27412_v2 = vld [vmem:[#allocation67_spill] sm:$0xff] }
0x31b8   :  { %v13263_v19 = vadd.f32 %v27412_v2, %v25705_v47  ;;  %v27413_v27 = vld [vmem:[#allocation23_spill] sm:$0xff]  ;;  %v13267_v47 = vadd.f32 %v27422_v13, %v27421_v37  ;;  %v19928_v2 = vpack.c.bf16 %v20781_v41, %v20780_v49 }
0x31ba   :  { %v20792_v63 = vpack.i.bf16 %v13264_v58, %v13263_v19  ;;  %v20802_v8 = vpack.i.bf16 %v13268_v4, %v13267_v47  ;;  %v27424_v4 = vld [vmem:[#allocation6_spill] sm:$0xff] }
0x31bb   :  { %13277 = vrot.lane.b32.xlu0 %v25634_v61, %s21406_s28  ;;  %13279 = vrot.lane.b32.xlu1 %v25657_v21, %s21406_s28  ;;  %v27414_v61 = vld [vmem:[#allocation41_spill] sm:$0xff] }
0x31bc   :  { %v27416_v21 = vld [vmem:[#allocation17_spill] sm:$0xff] }
0x31bd   :  { %v13266_v26 = vadd.f32 %v27416_v21, %v27415_v53 }
0x31bf   :  { %13281 = vrot.lane.b32.xlu0 %v27413_v27, %s21406_s28  ;;  %13283 = vrot.lane.b32.xlu1 %v27414_v61, %s21406_s28  ;;  %v20797_v7 = vpack.i.bf16 %v13266_v26, %v13265_v45 }
0x31c3   :  { %20788 = vrot.lane.b32.xlu0 %v20787_v48, %s21406_s28  ;;  %20793 = vrot.lane.b32.xlu1 %v20792_v63, %s21406_s28 }
0x31c7   :  { %20798 = vrot.lane.b32.xlu0 %v20797_v7, %s21406_s28  ;;  %20803 = vrot.lane.b32.xlu1 %v20802_v8, %s21406_s28 }
0x31ed   :  { %v12936_v38 = vpop.xlane.xlu0 %12935 }
0x31ee   :  { %v12933_v14 = vpop.xlane.xlu1 %12932 }
0x31ef   :  { %21291 = vrcp.f32 %v12933_v14 }
0x31f0   :  { %21293 = vrcp.f32 %v12936_v38 }
0x31f1   :  { %v20774_v35 = vpop.permute.xlu0 %20773 }
0x31f2   :  { %v20776_v52 = vunpack.i.h.bf16 %v20774_v35  ;;  %v20775_v58 = vunpack.i.l.bf16 %v20774_v35  ;;  %v20784_v46 = vpop.permute.xlu1 %20783 }
0x31f3   :  { %v20786_v19 = vunpack.i.h.bf16 %v20784_v46  ;;  %v20785_v27 = vunpack.i.l.bf16 %v20784_v46 }
0x31f4   :  { %v19924_v6 = vpack.c.bf16 %v20776_v52, %v20775_v58 }
0x31f5   :  { %v19932_v53 = vpack.c.bf16 %v20786_v19, %v20785_v27 }
0x31f6   :  { %19925 = vmatprep.subr.bf16.mxu1 %v19924_v6 }
0x31f7   :  { %19927 = vmatpush3.bf16.msra.mxu1 %v19924_v6 }
0x31f8   :  { %19929 = vmatprep.subr.bf16.mxu1 %v19928_v2 }
0x31f9   :  { %v21292_v61 = vpop.eup %21291 }
0x31fa   :  { %v12963_v21 = vmul.f32 %v21292_v61, %v26397_v9  ;;  %v21294_v26 = vpop.eup %21293  ;;  %v27425_v9 = vld [vmem:[#allocation7_spill] sm:$0xff] }
0x31fb   :  { %19931 = vmatpush3.bf16.msra.mxu1 %v19928_v2  ;;  %v12964_v3 = vmul.f32 %v21294_v26, %v26395_v29  ;;  %v27426_v29 = vld [vmem:[#allocation8_spill] sm:$0xff] }
0x31fc   :  { %19933 = vmatprep.subr.bf16.mxu1 %v19932_v53  ;;  %18508 = vmatprep.mubr.msk.f32.mxu1 %vm1138_vm4, %v12963_v21 }
0x31ff   :  { %19935 = vmatpush3.bf16.msra.mxu1 %v19932_v53 }
0x3200   :  { %19942 = vmatprep.subr.msk.bf16.mxu1 %vm21544_vm2, %v27423_v42 }
0x3202   :  { %18509 = vmatmul.mubr.msk.f32.vlgmr.msra.gmra.mrb[236].mxu1 %vm1138_vm4, %v12964_v3 }
0x3208   :  { %19945 = vmatpush3.bf16.xpose.msk.msra.mxu1 %vm21544_vm2, %v27423_v42 }
0x3209   :  { %19948 = vmatprep.subr.msk.bf16.mxu1 %vm21544_vm2, %v27424_v4 }
0x3210   :  { %19951 = vmatpush3.bf16.xpose.msk.msra.mxu1 %vm21544_vm2, %v27424_v4 }
0x3211   :  { %19954 = vmatprep.subr.msk.bf16.mxu1 %vm21544_vm2, %v27425_v9 }
0x3218   :  { %19957 = vmatpush3.bf16.xpose.msk.msra.mxu1 %vm21544_vm2, %v27425_v9 }
0x3219   :  { %19960 = vmatprep.subr.msk.bf16.mxu1 %vm21544_vm2, %v27426_v29 }
0x3220   :  { %19963 = vmatpush3.bf16.xpose.msk.msra.mxu1 %vm21544_vm2, %v27426_v29 }
0x3222   :  { %v12939_v48 = vpop.xlane.xlu0 %12938 }
0x3223   :  { %21295 = vrcp.f32 %v12939_v48  ;;  %v12942_v63 = vpop.xlane.xlu1 %12941 }
0x3224   :  { %21297 = vrcp.f32 %v12942_v63 }
0x3226   :  { %v12945_v33 = vpop.xlane.xlu0 %12944 }
0x3227   :  { %21299 = vrcp.f32 %v12945_v33 }
0x322a   :  { %v12948_v32 = vpop.xlane.xlu0 %12947 }
0x322b   :  { %21301 = vrcp.f32 %v12948_v32  ;;  %v12951_v45 = vpop.xlane.xlu1 %12950 }
0x322c   :  { %21303 = vrcp.f32 %v12951_v45 }
0x322d   :  { %v21296_v37 = vpop.eup %21295 }
0x322e   :  { %v21298_v13 = vpop.eup %21297  ;;  %v12954_v47 = vpop.xlane.xlu0 %12953  ;;  %v12965_v7 = vmul.f32 %v21296_v37, %v26407_v18 }
0x322f   :  { %21305 = vrcp.f32 %v12954_v47  ;;  %v12966_v8 = vmul.f32 %v21298_v13, %v26409_v59  ;;  %v26500_v14 = vpop.permute.xlu1 %13269 }
0x3230   :  { %18511 = vmatprep.mubr.msk.f32.mxu1 %vm1138_vm4, %v12965_v7 }
0x3231   :  { %v21300_v51 = vpop.eup %21299  ;;  %18512 = vmatmul.mubr.msk.f32.gmra.mrb[238].mxu1 %vm1138_vm4, %v12966_v8 }
0x3232   :  { %v12967_v38 = vmul.f32 %v21300_v51, %v26413_v60  ;;  %v26510_v60 = vpop.permute.xlu0 %13271 }
0x3233   :  { %v26506_v52 = vpop.permute.xlu1 %13273 }
0x3234   :  { %18514 = vmatprep.mubr.msk.f32.mxu1 %vm1138_vm4, %v12967_v38 }
0x3235   :  { %v21302_v35 = vpop.eup %21301 }
0x3236   :  { %v21304_v41 = vpop.eup %21303  ;;  %v12968_v49 = vmul.f32 %v21302_v35, %v26419_v30  ;;  %v26521_v30 = vpop.permute.xlu0 %13277 }
0x3237   :  { %v12969_v18 = vmul.f32 %v21304_v41, %v26421_v54  ;;  %v26515_v46 = vpop.permute.xlu1 %13275 }
0x3238   :  { %18515 = vmatmul.mubr.msk.f32.gmra.mrb[240].mxu1 %vm1138_vm4, %v12968_v49 }
0x3239   :  { %v21306_v59 = vpop.eup %21305  ;;  %18517 = vmatprep.mubr.msk.f32.mxu1 %vm1138_vm4, %v12969_v18 }
0x323a   :  { %v12970_v58 = vmul.f32 %v21306_v59, %v26425_v25  ;;  %v26529_v25 = vpop.permute.xlu0 %13281 }
0x323b   :  { %v26525_v54 = vpop.permute.xlu1 %13279 }
0x323c   :  { %18518 = vmatmul.mubr.msk.f32.gmra.mrb[242].mxu1 %vm1138_vm4, %v12970_v58 }
0x323d   :  { %18552 = vmatprep.mubr.msk.f32.mxu1 %vm976_vm1, %v26500_v14 }
0x323e   :  { %v20789_v27 = vpop.permute.xlu0 %20788 }
0x323f   :  { %v26535_v6 = vpop.permute.xlu1 %13283  ;;  %v20791_v61 = vunpack.i.h.bf16 %v20789_v27  ;;  %v20790_v53 = vunpack.i.l.bf16 %v20789_v27 }
0x3240   :  { %18553 = vmatmul.mubr.msk.f32.vlgmr.msra.gmra.mrb[244].mxu1 %vm976_vm1, %v26510_v60 }
0x3241   :  { %18555 = vmatprep.mubr.msk.f32.mxu1 %vm976_vm1, %v26506_v52  ;;  %v19980_v20 = vpack.c.bf16 %v20791_v61, %v20790_v53 }
0x3242   :  { %v20799_v37 = vpop.permute.xlu0 %20798 }
0x3243   :  { %v20794_v4 = vpop.permute.xlu1 %20793  ;;  %v20800_v7 = vunpack.i.l.bf16 %v20799_v37 }
0x3244   :  { %18556 = vmatmul.mubr.msk.f32.gmra.mrb[246].mxu1 %vm976_vm1, %v26515_v46  ;;  %v20796_v10 = vunpack.i.h.bf16 %v20794_v4  ;;  %v20795_v9 = vunpack.i.l.bf16 %v20794_v4 }
0x3245   :  { %18558 = vmatprep.mubr.msk.f32.mxu1 %vm976_vm1, %v26521_v30 }
0x3246   :  { %v19986_v32 = vpack.c.bf16 %v20796_v10, %v20795_v9 }
0x3247   :  { %v20804_v41 = vpop.permute.xlu1 %20803 }
0x3248   :  { %18559 = vmatmul.mubr.msk.f32.gmra.mrb[248].mxu1 %vm976_vm1, %v26525_v54 }
0x3249   :  { %18561 = vmatprep.mubr.msk.f32.mxu1 %vm976_vm1, %v26529_v25 }
0x324c   :  { %18562 = vmatmul.mubr.msk.f32.gmra.mrb[250].mxu1 %vm976_vm1, %v26535_v6 }
0x32d5   :  { %v18510_v2 = vpop.f32.mrb[236].mxu1 }
0x32d6   :  { %v13085_v19 = vpop.f32.mrb[237].mxu1 }
0x32d7   :  { %18524 = vmatprep.mubr.msk.f32.mxu0 %vm976_vm1, %v13085_v19 }
0x32d8   :  { %18525 = vmatmul.mubr.msk.f32.vlgmr.msra.gmra.mrb[196].mxu0 %vm976_vm1, %v18510_v2 }
0x32d9   :  { %19967 = vmatpush3.bf16.msk.msra.mxu0 %vm21872_vm5, %v27399_v12 }
0x32da   :  { %19969 = vmatprep.subr.msk.bf16.mxu0 %vm21957_vm8, %v27399_v12 }
0x32dd   :  { %19971 = vmatpush3.bf16.msk.msra.mxu0 %vm21957_vm8, %v27399_v12 }
0x32de   :  { %19973 = vmatprep.subr.msk.bf16.mxu0 %vm21985_vm11, %v27399_v12 }
0x32e1   :  { %19975 = vmatpush3.bf16.msk.msra.mxu0 %vm21985_vm11, %v27399_v12 }
0x32e2   :  { %19977 = vmatprep.subr.msk.bf16.mxu0 %vm22009_vm14, %v27399_v12 }
0x32e5   :  { %19979 = vmatpush3.bf16.msk.msra.mxu0 %vm22009_vm14, %v27399_v12 }
0x32e6   :  { %19982 = vmatprep.subr.msk.bf16.mxu0 %vm21544_vm2, %v19980_v20 }
0x3304   :  { %v18513_v57 = vpop.f32.mrb[238].mxu1 }
0x3305   :  { %v13095_v21 = vpop.f32.mrb[239].mxu1 }
0x3306   :  { %18527 = vmatprep.mubr.msk.f32.mxu0 %vm976_vm1, %v13095_v21 }
0x3307   :  { %18528 = vmatmul.mubr.msk.f32.gmra.mrb[198].mxu0 %vm976_vm1, %v18513_v57 }
0x330b   :  { %v18516_v0 = vpop.f32.mrb[240].mxu1 }
0x330c   :  { %v13105_v26 = vpop.f32.mrb[241].mxu1 }
0x330d   :  { %18530 = vmatprep.mubr.msk.f32.mxu0 %vm976_vm1, %v13105_v26 }
0x330e   :  { %18531 = vmatmul.mubr.msk.f32.gmra.mrb[200].mxu0 %vm976_vm1, %v18516_v0 }
0x330f   :  { %v18519_v3 = vpop.f32.mrb[242].mxu1 }
0x3310   :  { %v13115_v42 = vpop.f32.mrb[243].mxu1 }
0x3311   :  { %18533 = vmatprep.mubr.msk.f32.mxu0 %vm976_vm1, %v13115_v42 }
0x3312   :  { %18534 = vmatmul.mubr.msk.f32.gmra.mrb[202].mxu0 %vm976_vm1, %v18519_v3 }
0x3313   :  { %v18554_v12 = vpop.f32.mrb[244].mxu1 }
0x3314   :  { %v13367_v29 = vpop.f32.mrb[245].mxu1  ;;  %v13407_v63 = vmul.f32 %v18554_v12, %v22141_v62  ;;  %v20801_v62 = vunpack.i.h.bf16 %v20799_v37 }
0x3315   :  { %v13406_v48 = vmul.f32 %v22139_v56, %v13367_v29 }
0x3316   :  { %v19992_v35 = vpack.c.bf16 %v20801_v62, %v20800_v7 }
0x3317   :  { %v18557_v33 = vpop.f32.mrb[246].mxu1  ;;  %18580 = vmatprep.mubr.msk.f32.mxu0 %vm1138_vm4, %v13406_v48 }
0x3318   :  { %v13377_v45 = vpop.f32.mrb[247].mxu1  ;;  %18581 = vmatmul.mubr.msk.f32.vlgmr.msra.gmra.mrb[212].mxu0 %vm1138_vm4, %v13407_v63  ;;  %v13409_v47 = vmul.f32 %v18557_v33, %v27407_v55 }
0x3319   :  { %v13408_v13 = vmul.f32 %v27406_v11, %v13377_v45  ;;  %19985 = vmatpush3.bf16.xpose.msk.msra.mxu0 %vm21544_vm2, %v19980_v20 }
0x331a   :  { %19988 = vmatprep.subr.msk.bf16.mxu0 %vm21544_vm2, %v19986_v32 }
0x331b   :  { %v18560_v56 = vpop.f32.mrb[248].mxu1  ;;  %18583 = vmatprep.mubr.msk.f32.mxu0 %vm1138_vm4, %v13408_v13 }
0x331c   :  { %v13387_v8 = vpop.f32.mrb[249].mxu1  ;;  %18584 = vmatmul.mubr.msk.f32.gmra.mrb[214].mxu0 %vm1138_vm4, %v13409_v47  ;;  %v13411_v11 = vmul.f32 %v18560_v56, %v22191_v22  ;;  %v20805_v22 = vunpack.i.l.bf16 %v20804_v41 }
0x331d   :  { %v13410_v51 = vmul.f32 %v22186_v1, %v13387_v8  ;;  %v20806_v1 = vunpack.i.h.bf16 %v20804_v41 }
0x331f   :  { %v18563_v38 = vpop.f32.mrb[250].mxu1  ;;  %18586 = vmatprep.mubr.msk.f32.mxu0 %vm1138_vm4, %v13410_v51  ;;  %v19998_v59 = vpack.c.bf16 %v20806_v1, %v20805_v22 }
0x3320   :  { %v13397_v55 = vpop.f32.mrb[251].mxu1  ;;  %18587 = vmatmul.mubr.msk.f32.gmra.mrb[216].mxu0 %vm1138_vm4, %v13411_v11  ;;  %v13413_v18 = vmul.f32 %v18563_v38, %v22207_v31 }
0x3321   :  { %v13412_v49 = vmul.f32 %v22204_v24, %v13397_v55  ;;  %19991 = vmatpush3.bf16.xpose.msk.msra.mxu0 %vm21544_vm2, %v19986_v32  ;;  %v27427_v24 = vld [vmem:[#allocation83_spill] sm:$0xff] }
0x3322   :  { %19994 = vmatprep.subr.msk.bf16.mxu0 %vm21544_vm2, %v19992_v35 }
0x3323   :  { %18589 = vmatprep.mubr.msk.f32.mxu0 %vm1138_vm4, %v13412_v49 }
0x3324   :  { %18590 = vmatmul.mubr.msk.f32.gmra.mrb[218].mxu0 %vm1138_vm4, %v13413_v18 }
0x3325   :  { %18608 = vmatprep.mubr.msk.f32.mxu0 %vm976_vm1, %v26500_v14 }
0x3329   :  { %19997 = vmatpush3.bf16.xpose.msk.msra.mxu0 %vm21544_vm2, %v19992_v35 }
0x332a   :  { %20000 = vmatprep.subr.msk.bf16.mxu0 %vm21544_vm2, %v19998_v59 }
0x3331   :  { %20003 = vmatpush3.bf16.xpose.msk.msra.mxu0 %vm21544_vm2, %v19998_v59  ;;  %vm10845_vm2 = vcmask 785920  }
0x3332   :  { %20021 = vmatprep.subr.bf16.mxu0 %v27427_v24 }
0x3338   :  { %18609 = vmatmul.mubr.msk.f32.vlgmr.msra.gmra.mrb[212].mxu0 %vm976_vm1, %v26510_v60 }
0x3339   :  { %18611 = vmatprep.mubr.msk.f32.mxu0 %vm976_vm1, %v26506_v52  ;;  %20023 = vmatpush3.bf16.msra.mxu0 %v27427_v24 }
0x333c   :  { %18612 = vmatmul.mubr.msk.f32.gmra.mrb[214].mxu0 %vm976_vm1, %v26515_v46 }
0x333d   :  { %18614 = vmatprep.mubr.msk.f32.mxu0 %vm976_vm1, %v26521_v30 }
0x3340   :  { %18615 = vmatmul.mubr.msk.f32.gmra.mrb[216].mxu0 %vm976_vm1, %v26525_v54 }
0x3341   :  { %18617 = vmatprep.mubr.msk.f32.mxu0 %vm976_vm1, %v26529_v25 }
0x3344   :  { %18618 = vmatmul.mubr.msk.f32.gmra.mrb[218].mxu0 %vm976_vm1, %v26535_v6 }
0x340b   :  { %v18610_v23 = vpop.f32.mrb[212].mxu0 }
0x340c   :  { %v13689_v31 = vsel %vm22278_vm15, %v18610_v23, -1e+09  ;;  %v13649_v14 = vpop.f32.mrb[213].mxu0 }
0x340d   :  { %v13699_v52 = vsel %vm1138_vm4, %v13689_v31, -inf  ;;  %v13688_v58 = vsel %vm22283_vm3, %v13649_v14, -1e+09 }
0x340e   :  { %v13696_v60 = vsel %vm1138_vm4, %v13688_v58, -inf  ;;  %13700 = vmax.xlane.f32.xlu1 %v13699_v52 }
0x340f   :  { %13697 = vmax.xlane.f32.xlu0 %v13696_v60  ;;  %v18613_v46 = vpop.f32.mrb[214].mxu0 }
0x3410   :  { %v13659_v30 = vpop.f32.mrb[215].mxu0  ;;  %v13691_v17 = vsel %vm22303_vm7, %v18613_v46, -1e+09 }
0x3411   :  { %v13690_v54 = vsel %vm22294_vm6, %v13659_v30, -1e+09  ;;  %v13705_v19 = vsel %vm1138_vm4, %v13691_v17, -inf  ;;  %v26683_v30 = vld [vmem:[%s26818_s7] ss:$0 sm:$0xff]  ;;  %s21407_s7 = smov [#allocation2]  }
0x3412   :  { %v13702_v25 = vsel %vm1138_vm4, %v13690_v54, -inf }
0x3413   :  { %13703 = vmax.xlane.f32.xlu0 %v13702_v25  ;;  %v18616_v6 = vpop.f32.mrb[216].mxu0 }
0x3414   :  { %v13669_v2 = vpop.f32.mrb[217].mxu0  ;;  %v13693_v61 = vsel %vm22321_vm10, %v18616_v6, -1e+09 }
0x3415   :  { %v13692_v40 = vsel %vm22314_vm9, %v13669_v2, -1e+09  ;;  %v13711_v20 = vsel %vm1138_vm4, %v13693_v61, -inf  ;;  %v27430_v2 = vld [vmem:[#allocation60_spill] sm:$0xff] }
0x3416   :  { %v13708_v27 = vsel %vm1138_vm4, %v13692_v40, -inf }
0x3417   :  { %13706 = vmax.xlane.f32.xlu0 %v13705_v19  ;;  %13709 = vmax.xlane.f32.xlu1 %v13708_v27  ;;  %v18619_v5 = vpop.f32.mrb[218].mxu0  ;;  %v27432_v19 = vld [vmem:[#allocation21_spill] sm:$0xff] }
0x3418   :  { %v13679_v53 = vpop.f32.mrb[219].mxu0  ;;  %v13695_v16 = vsel %vm22331_vm12, %v18619_v5, -1e+09  ;;  %v7541_v27 = vadd.f32 %v26683_v30, %v27432_v19 }
0x3419   :  { %v13694_v36 = vsel %vm22346_vm13, %v13679_v53, -1e+09  ;;  %v13717_v21 = vsel %vm1138_vm4, %v13695_v16, -inf  ;;  %v27434_v53 = vld [vmem:[#allocation26_spill] sm:$0xff] }
0x341a   :  { %v13714_v57 = vsel %vm1138_vm4, %v13694_v36, -inf }
0x341b   :  { %13712 = vmax.xlane.f32.xlu0 %v13711_v20  ;;  %13715 = vmax.xlane.f32.xlu1 %v13714_v57  ;;  %v27436_v57 = vld [vmem:[#allocation30_spill] sm:$0xff] }
0x341f   :  { %13718 = vmax.xlane.f32.xlu0 %v13717_v21  ;;  %v27437_v21 = vld [vmem:[#allocation32_spill] sm:$0xff] }
0x342c   :  { %20808 = vrot.lane.b32.xlu1 %v27385_v28, %s21402_s15 }
0x349b   :  { %v13701_v15 = vpop.xlane.xlu1 %13700 }
0x349c   :  { %v13721_v0 = vsub.f32 %v13689_v31, %v13701_v15  ;;  %v13698_v26 = vpop.xlane.xlu0 %13697  ;;  %v10805_v15 = vadd.f32 %v26683_v30, %v27437_v21 }
0x349d   :  { %v13720_v34 = vsub.f32 %v13688_v58, %v13698_v26 }
0x349e   :  { %v13730_v3 = vmul.f32 1.442695, %v13721_v0  ;;  %v27438_v0 = vld [vmem:[#allocation10_spill] sm:$0xff] }
0x349f   :  { %v13728_v42 = vmul.f32 1.442695, %v13720_v34  ;;  %v10808_v26 = vadd.f32 %v26683_v30, %v27438_v0  ;;  %v27439_v34 = vld [vmem:[#allocation13_spill] sm:$0xff] }
0x34a0   :  { %21307 = vpow2.f32 %v13730_v3  ;;  %v13704_v4 = vpop.xlane.xlu0 %13703  ;;  %v10807_v3 = vadd.f32 %v26683_v30, %v27439_v34 }
0x34a1   :  { %21309 = vpow2.f32 %v13728_v42  ;;  %v13722_v12 = vsub.f32 %v13690_v54, %v13704_v4  ;;  %v27428_v54 = vld [vmem:[#allocation59_spill] sm:$0xff]  ;;  %v27440_v42 = vld [vmem:[#allocation12_spill] sm:$0xff] }
0x34a2   :  { %v7536_v25 = vadd.f32 %v26683_v30, %v27428_v54  ;;  %v10810_v4 = vadd.f32 %v26683_v30, %v27440_v42 }
0x34a3   :  { %v13732_v44 = vmul.f32 1.442695, %v13722_v12  ;;  %v27441_v12 = vld [vmem:[#allocation34_spill] sm:$0xff] }
0x34a4   :  { %v13707_v10 = vpop.xlane.xlu0 %13706  ;;  %v13710_v9 = vpop.xlane.xlu1 %13709 }
0x34a5   :  { %21311 = vpow2.f32 %v13732_v44  ;;  %v13723_v29 = vsub.f32 %v13691_v17, %v13707_v10  ;;  %v13724_v48 = vsub.f32 %v13692_v40, %v13710_v9  ;;  %v27429_v17 = vld [vmem:[#allocation58_spill] sm:$0xff]  ;;  %v10809_v44 = vadd.f32 %v26683_v30, %v27441_v12  ;;  %v27442_v10 = vld [vmem:[#allocation36_spill] sm:$0xff] }
0x34a6   :  { %v7537_v6 = vadd.f32 %v26683_v30, %v27429_v17  ;;  %v10812_v9 = vadd.f32 %v26683_v30, %v27442_v10 }
0x34a7   :  { %v13734_v63 = vmul.f32 1.442695, %v13723_v29  ;;  %v13736_v33 = vmul.f32 1.442695, %v13724_v48  ;;  %v27443_v29 = vld [vmem:[#allocation38_spill] sm:$0xff] }
0x34a8   :  { %v13713_v32 = vpop.xlane.xlu0 %13712  ;;  %v13716_v28 = vpop.xlane.xlu1 %13715  ;;  %v10811_v48 = vadd.f32 %v26683_v30, %v27443_v29 }
0x34a9   :  { %21313 = vpow2.f32 %v13734_v63  ;;  %v13725_v45 = vsub.f32 %v13693_v61, %v13713_v32  ;;  %v13726_v56 = vsub.f32 %v13694_v36, %v13716_v28  ;;  %v27433_v61 = vld [vmem:[#allocation28_spill] sm:$0xff]  ;;  %v7543_v36 = vadd.f32 %v26683_v30, %v27434_v53 }
0x34aa   :  { %v26644_v37 = vpop.eup %21307  ;;  %21315 = vpow2.f32 %v13736_v33  ;;  %v7540_v5 = vadd.f32 %v26683_v30, %v27433_v61 }
0x34ab   :  { %v26646_v13 = vpop.eup %21309  ;;  %v13738_v47 = vmul.f32 1.442695, %v13725_v45  ;;  %v13747_v62 = vsel %vm1138_vm4, %v26644_v37, 0.0  ;;  %v13740_v41 = vmul.f32 1.442695, %v13726_v56 }
0x34ac   :  { %13748 = vadd.xlane.f32.xlu0 %v13747_v62  ;;  %v13719_v7 = vpop.xlane.xlu0 %13718  ;;  %v20809_v8 = vpop.permute.xlu1 %20808  ;;  %v13744_v51 = vsel %vm1138_vm4, %v26646_v13, 0.0 }
0x34ad   :  { %21317 = vpow2.f32 %v13738_v47  ;;  %v13727_v11 = vsub.f32 %v13695_v16, %v13719_v7  ;;  %v20811_v38 = vunpack.i.h.bf16 %v20809_v8  ;;  %v20810_v35 = vunpack.i.l.bf16 %v20809_v8  ;;  %13745 = vadd.xlane.f32.xlu1 %v13744_v51 }
0x34ae   :  { %v10806_v16 = vadd.f32 %v26683_v30, %v27436_v57 }
0x34af   :  { %v26652_v55 = vpop.eup %21311  ;;  %v13742_v49 = vmul.f32 1.442695, %v13727_v11  ;;  %v20004_v18 = vpack.c.bf16 %v20811_v38, %v20810_v35 }
0x34b0   :  { %v13750_v1 = vsel %vm1138_vm4, %v26652_v55, 0.0 }
0x34b1   :  { %21319 = vpow2.f32 %v13742_v49  ;;  %13751 = vadd.xlane.f32.xlu1 %v13750_v1  ;;  %20005 = vmatprep.subr.bf16.mxu1 %v20004_v18 }
0x34b2   :  { %20007 = vmatpush3.bf16.msra.mxu1 %v20004_v18  ;;  %21321 = vpow2.f32 %v13740_v41 }
0x34b3   :  { %v26656_v22 = vpop.eup %21313 }
0x34b4   :  { %v26658_v59 = vpop.eup %21315  ;;  %v13753_v24 = vsel %vm1138_vm4, %v26656_v22, 0.0 }
0x34b5   :  { %13754 = vadd.xlane.f32.xlu0 %v13753_v24  ;;  %v13756_v23 = vsel %vm1138_vm4, %v26658_v59, 0.0 }
0x34b6   :  { %13757 = vadd.xlane.f32.xlu1 %v13756_v23 }
0x34b7   :  { %v26664_v31 = vpop.eup %21317 }
0x34b8   :  { %v13759_v14 = vsel %vm1138_vm4, %v26664_v31, 0.0 }
0x34b9   :  { %13760 = vadd.xlane.f32.xlu0 %v13759_v14 }
0x34bb   :  { %v26668_v52 = vpop.eup %21319 }
0x34bc   :  { %v13765_v58 = vsel %vm1138_vm4, %v26668_v52, 0.0  ;;  %v26672_v60 = vpop.eup %21321 }
0x34bd   :  { %13766 = vadd.xlane.f32.xlu0 %v13765_v58  ;;  %v13762_v46 = vsel %vm1138_vm4, %v26672_v60, 0.0 }
0x34c1   :  { %13763 = vadd.xlane.f32.xlu0 %v13762_v46 }
0x34c7   :  { %20818 = vrot.lane.b32.xlu1 %v27386_v43, %s21402_s15  ;;  %v7539_v43 = vadd.f32 %v26683_v30, %v27430_v2 }
0x34cb   :  { %20823 = vrot.lane.b32.xlu1 %v27387_v50, %s21402_s15  ;;  %v27431_v50 = vld [vmem:[#allocation61_spill] sm:$0xff] }
0x34cc   :  { %v7538_v40 = vadd.f32 %v26683_v30, %v27431_v50 }
0x34cf   :  { %7552 = vrot.lane.b32.xlu1 %v7536_v25, %s21405_s18 }
0x34d3   :  { %7554 = vrot.lane.b32.xlu1 %v7537_v6, %s21405_s18 }
0x34d7   :  { %7558 = vrot.lane.b32.xlu1 %v7539_v43, %s21405_s18  ;;  %20813 = vrot.lane.b32.xlu0 %v27388_v39, %s21402_s15  ;;  %v27435_v39 = vld [vmem:[#allocation33_spill] sm:$0xff] }
0x34d8   :  { %v7542_v20 = vadd.f32 %v26683_v30, %v27435_v39 }
0x34db   :  { %7562 = vrot.lane.b32.xlu1 %v7541_v27, %s21405_s18  ;;  %7556 = vrot.lane.b32.xlu0 %v7538_v40, %s21405_s18 }
0x34df   :  { %7566 = vrot.lane.b32.xlu1 %v7543_v36, %s21405_s18  ;;  %7560 = vrot.lane.b32.xlu0 %v7540_v5, %s21405_s18 }
0x34e3   :  { %10823 = vrot.lane.b32.xlu1 %v10806_v16, %s21400_s29  ;;  %7564 = vrot.lane.b32.xlu0 %v7542_v20, %s21405_s18 }
0x34e7   :  { %10827 = vrot.lane.b32.xlu1 %v10808_v26, %s21400_s29  ;;  %10821 = vrot.lane.b32.xlu0 %v10805_v15, %s21400_s29 }
0x34eb   :  { %10831 = vrot.lane.b32.xlu1 %v10810_v4, %s21400_s29  ;;  %10825 = vrot.lane.b32.xlu0 %v10807_v3, %s21400_s29 }
0x34ef   :  { %10835 = vrot.lane.b32.xlu1 %v10812_v9, %s21400_s29  ;;  %10829 = vrot.lane.b32.xlu0 %v10809_v44, %s21400_s29 }
0x34f3   :  { %10833 = vrot.lane.b32.xlu0 %v10811_v48, %s21400_s29  ;;  %s14128_s29 = sshll.u32 %s21407_s7, 4  ;;  %s14129_s29 = int_to_ptr.vmem [resolvable:$true] %s14128_s29 }
0x34f4   :  { %s21373_s15 = scalar_lea.vmem %s14129_s29, 1024  ;;  %p21378_p1 = scmp.lt.s32.totalorder %s14129_s29, %s14129_s29 }
0x34f5   :  { %p21374_p0 = scmp.ne.s32.totalorder %s14129_s29, %s21373_s15  ;;  %p21379_p2 = scmp.lt.s32.totalorder %s21373_s15, %s21373_s15 }
0x34f7   :  { %p21380_p3 = por %p21379_p2, %p21378_p1 }
0x34f9   :  { %p21381_p4 = pnand %p21380_p3, %p21374_p0 }
0x3539   :  { %v13749_v33 = vpop.xlane.xlu0 %13748 }
0x353a   :  { %v13746_v63 = vpop.xlane.xlu1 %13745 }
0x353b   :  { %21323 = vrcp.f32 %v13746_v63 }
0x353c   :  { %21325 = vrcp.f32 %v13749_v33 }
0x353e   :  { %v13752_v32 = vpop.xlane.xlu1 %13751 }
0x353f   :  { %21327 = vrcp.f32 %v13752_v32 }
0x3542   :  { %v13755_v28 = vpop.xlane.xlu0 %13754 }
0x3543   :  { %v13758_v45 = vpop.xlane.xlu1 %13757  ;;  %21329 = vrcp.f32 %v13755_v28 }
0x3544   :  { %21331 = vrcp.f32 %v13758_v45 }
0x3545   :  { %v21324_v47 = vpop.eup %21323 }
0x3546   :  { %v13761_v56 = vpop.xlane.xlu0 %13760  ;;  %v13776_v62 = vmul.f32 %v21324_v47, %v26646_v13  ;;  %v21326_v2 = vpop.eup %21325 }
0x3547   :  { %v20819_v7 = vpop.permute.xlu1 %20818  ;;  %21333 = vrcp.f32 %v13761_v56  ;;  %v13777_v19 = vmul.f32 %v21326_v2, %v26644_v37 }
0x3548   :  { %18636 = vmatprep.mubr.msk.f32.mxu1 %vm1138_vm4, %v13776_v62  ;;  %v20821_v41 = vunpack.i.h.bf16 %v20819_v7  ;;  %v20820_v49 = vunpack.i.l.bf16 %v20819_v7 }
0x3549   :  { %v21328_v50 = vpop.eup %21327 }
0x354a   :  { %v13767_v8 = vpop.xlane.xlu0 %13766  ;;  %v20012_v14 = vpack.c.bf16 %v20821_v41, %v20820_v49  ;;  %v13778_v5 = vmul.f32 %v21328_v50, %v26652_v55 }
0x354b   :  { %v20824_v51 = vpop.permute.xlu1 %20823 }
0x354c   :  { %v20826_v58 = vunpack.i.h.bf16 %v20824_v51  ;;  %v20825_v46 = vunpack.i.l.bf16 %v20824_v51 }
0x354d   :  { %v21330_v27 = vpop.eup %21329 }
0x354e   :  { %v13764_v11 = vpop.xlane.xlu0 %13763  ;;  %v20016_v17 = vpack.c.bf16 %v20826_v58, %v20825_v46  ;;  %v21332_v53 = vpop.eup %21331  ;;  %v13779_v39 = vmul.f32 %v21330_v27, %v26656_v22 }
0x354f   :  { %v7553_v38 = vpop.permute.xlu1 %7552  ;;  %21335 = vrcp.f32 %v13764_v11  ;;  %v13780_v37 = vmul.f32 %v21332_v53, %v26658_v59 }
0x3550   :  { %7577 = vst.msk [vmem:[#allocation2] sm:$0xff] %vm7576_vm0, %v7553_v38  ;;  %21337 = vrcp.f32 %v13767_v8 }
0x3551   :  { %v21334_v20 = vpop.eup %21333 }
0x3552   :  { %v20814_v35 = vpop.permute.xlu0 %20813  ;;  %v13781_v55 = vmul.f32 %v21334_v20, %v26664_v31 }
0x3553   :  { %v20816_v18 = vunpack.i.h.bf16 %v20814_v35  ;;  %v20815_v1 = vunpack.i.l.bf16 %v20814_v35  ;;  %v7555_v24 = vpop.permute.xlu1 %7554 }
0x3554   :  { %7578 = vst.msk [vmem:[#allocation2 + $0x8] sm:$0xff] %vm7576_vm0, %v7555_v24 }
0x3555   :  { %v20008_v13 = vpack.c.bf16 %v20816_v18, %v20815_v1 }
0x3556   :  { %v7557_v23 = vpop.permute.xlu0 %7556 }
0x3557   :  { %7579 = vst.msk [vmem:[#allocation2 + $0x10] sm:$0xff] %vm7576_vm0, %v7557_v23  ;;  %v7559_v54 = vpop.permute.xlu1 %7558  ;;  %20009 = vmatprep.subr.bf16.mxu1 %v20008_v13 }
0x3558   :  { %7580 = vst.msk [vmem:[#allocation2 + $0x18] sm:$0xff] %vm7576_vm0, %v7559_v54  ;;  %20011 = vmatpush3.bf16.msra.mxu1 %v20008_v13 }
0x3559   :  { %20013 = vmatprep.subr.bf16.mxu1 %v20012_v14  ;;  %v21336_v16 = vpop.eup %21335 }
0x355a   :  { %v7561_v25 = vpop.permute.xlu0 %7560  ;;  %v21338_v15 = vpop.eup %21337  ;;  %v13782_v22 = vmul.f32 %v21336_v16, %v26672_v60 }
0x355b   :  { %7581 = vst.msk [vmem:[#allocation2 + $0x20] sm:$0xff] %vm7576_vm0, %v7561_v25  ;;  %v7563_v6 = vpop.permute.xlu1 %7562  ;;  %v13783_v59 = vmul.f32 %v21338_v15, %v26668_v52 }
0x355c   :  { %7582 = vst.msk [vmem:[#allocation2 + $0x28] sm:$0xff] %vm7576_vm0, %v7563_v6  ;;  %20015 = vmatpush3.bf16.msra.mxu1 %v20012_v14 }
0x355d   :  { %20017 = vmatprep.subr.bf16.mxu1 %v20016_v17 }
0x355e   :  { %v7565_v43 = vpop.permute.xlu0 %7564 }
0x355f   :  { %v7567_v40 = vpop.permute.xlu1 %7566  ;;  %7583 = vst.msk [vmem:[#allocation2 + $0x30] sm:$0xff] %vm7576_vm0, %v7565_v43 }
0x3560   :  { %7584 = vst.msk [vmem:[#allocation2 + $0x38] sm:$0xff] %vm7576_vm0, %v7567_v40  ;;  %20019 = vmatpush3.bf16.msra.mxu1 %v20016_v17 }
0x3562   :  { %v10822_v61 = vpop.permute.xlu0 %10821 }
0x3563   :  { %v10824_v36 = vpop.permute.xlu1 %10823  ;;  %10846 = vst.msk [vmem:[#allocation2] sm:$0xff] %vm10845_vm2, %v10822_v61  ;;  %18637 = vmatmul.mubr.msk.f32.vlgmr.msra.gmra.mrb[252].mxu1 %vm1138_vm4, %v13777_v19 }
0x3564   :  { %10847 = vst.msk [vmem:[#allocation2 + $0x8] sm:$0xff] %vm10845_vm2, %v10824_v36  ;;  %18639 = vmatprep.mubr.msk.f32.mxu1 %vm1138_vm4, %v13778_v5 }
0x3566   :  { %v10826_v57 = vpop.permute.xlu0 %10825 }
0x3567   :  { %v10828_v21 = vpop.permute.xlu1 %10827  ;;  %10848 = vst.msk [vmem:[#allocation2 + $0x10] sm:$0xff] %vm10845_vm2, %v10826_v57  ;;  %18640 = vmatmul.mubr.msk.f32.gmra.mrb[254].mxu1 %vm1138_vm4, %v13779_v39 }
0x3568   :  { %10849 = vst.msk [vmem:[#allocation2 + $0x18] sm:$0xff] %vm10845_vm2, %v10828_v21  ;;  %18642 = vmatprep.mubr.msk.f32.mxu1 %vm1138_vm4, %v13780_v37 }
0x356a   :  { %v10830_v0 = vpop.permute.xlu0 %10829 }
0x356b   :  { %v10832_v26 = vpop.permute.xlu1 %10831  ;;  %10850 = vst.msk [vmem:[#allocation2 + $0x20] sm:$0xff] %vm10845_vm2, %v10830_v0  ;;  %18643 = vmatmul.mubr.msk.f32.gmra.mrb[0].mxu1 %vm1138_vm4, %v13781_v55 }
0x356c   :  { %10851 = vst.msk [vmem:[#allocation2 + $0x28] sm:$0xff] %vm10845_vm2, %v10832_v26  ;;  %18645 = vmatprep.mubr.msk.f32.mxu1 %vm1138_vm4, %v13782_v22 }
0x356e   :  { %v10834_v34 = vpop.permute.xlu0 %10833 }
0x356f   :  { %v10836_v3 = vpop.permute.xlu1 %10835  ;;  %10852 = vst.msk [vmem:[#allocation2 + $0x30] sm:$0xff] %vm10845_vm2, %v10834_v34  ;;  %18646 = vmatmul.mubr.msk.f32.gmra.mrb[2].mxu1 %vm1138_vm4, %v13783_v59 }
0x3570   :  { %10853 = vst.msk [vmem:[#allocation2 + $0x38] sm:$0xff] %vm10845_vm2, %v10836_v3 }
0x3636   :  { %v18638_v31 = vpop.f32.mrb[252].mxu1 }
0x3637   :  { %v13898_v60 = vpop.f32.mrb[253].mxu1 }
0x3638   :  { %18652 = vmatprep.mubr.msk.f32.mxu0 %vm976_vm1, %v13898_v60 }
0x3639   :  { %18653 = vmatmul.mubr.msk.f32.vlgmr.msra.gmra.mrb[196].mxu0 %vm976_vm1, %v18638_v31 }
0x363a   :  { %v18641_v42 = vpop.f32.mrb[254].mxu1 }
0x363b   :  { %v13908_v4 = vpop.f32.mrb[255].mxu1 }
0x363c   :  { %18655 = vmatprep.mubr.msk.f32.mxu0 %vm976_vm1, %v13908_v4 }
0x363d   :  { %18656 = vmatmul.mubr.msk.f32.gmra.mrb[198].mxu0 %vm976_vm1, %v18641_v42 }
0x363e   :  { %v18644_v52 = vpop.f32.mrb[0].mxu1 }
0x363f   :  { %v13918_v12 = vpop.f32.mrb[1].mxu1 }
0x3640   :  { %18658 = vmatprep.mubr.msk.f32.mxu0 %vm976_vm1, %v13918_v12 }
0x3641   :  { %18659 = vmatmul.mubr.msk.f32.gmra.mrb[200].mxu0 %vm976_vm1, %v18644_v52 }
0x3642   :  { %v18647_v44 = vpop.f32.mrb[2].mxu1 }
0x3643   :  { %v13928_v10 = vpop.f32.mrb[3].mxu1 }
0x3644   :  { %18661 = vmatprep.mubr.msk.f32.mxu0 %vm976_vm1, %v13928_v10 }
0x3645   :  { %18662 = vmatmul.mubr.msk.f32.gmra.mrb[202].mxu0 %vm976_vm1, %v18647_v44  ;;  %vm14114_vm1 = vcmask 1048320  }
0x370c   :  { %v18654_v9 = vpop.f32.mrb[196].mxu0 }
0x370d   :  { %v14075_v29 = vadd.f32 %v26683_v30, %v18654_v9  ;;  %v14027_v48 = vpop.f32.mrb[197].mxu0 }
0x370e   :  { %v14074_v63 = vadd.f32 %v26683_v30, %v14027_v48 }
0x370f   :  { %14092 = vrot.lane.b32.xlu1 %v14075_v29, %s21404_s11 }
0x3710   :  { %v18657_v33 = vpop.f32.mrb[198].mxu0  ;;  %14090 = vrot.lane.b32.xlu0 %v14074_v63, %s21404_s11 }
0x3711   :  { %v14077_v32 = vadd.f32 %v26683_v30, %v18657_v33  ;;  %v14037_v28 = vpop.f32.mrb[199].mxu0 }
0x3712   :  { %v14076_v45 = vadd.f32 %v26683_v30, %v14037_v28 }
0x3713   :  { %14096 = vrot.lane.b32.xlu1 %v14077_v32, %s21404_s11 }
0x3714   :  { %v18660_v47 = vpop.f32.mrb[200].mxu0  ;;  %14094 = vrot.lane.b32.xlu0 %v14076_v45, %s21404_s11 }
0x3715   :  { %v14079_v56 = vadd.f32 %v26683_v30, %v18660_v47  ;;  %v14047_v62 = vpop.f32.mrb[201].mxu0 }
0x3716   :  { %v14078_v7 = vadd.f32 %v26683_v30, %v14047_v62 }
0x3717   :  { %14100 = vrot.lane.b32.xlu1 %v14079_v56, %s21404_s11 }
0x3718   :  { %v18663_v8 = vpop.f32.mrb[202].mxu0  ;;  %14098 = vrot.lane.b32.xlu0 %v14078_v7, %s21404_s11 }
0x3719   :  { %v14081_v51 = vadd.f32 %v26683_v30, %v18663_v8  ;;  %v14057_v11 = vpop.f32.mrb[203].mxu0 }
0x371a   :  { %v14080_v38 = vadd.f32 %v26683_v30, %v14057_v11 }
0x371b   :  { %14104 = vrot.lane.b32.xlu1 %v14081_v51, %s21404_s11 }
0x371c   :  { %14102 = vrot.lane.b32.xlu0 %v14080_v38, %s21404_s11 }
0x3781   :  { %v14093_v35 = vpop.permute.xlu1 %14092 }
0x3782   :  { %14116 = vst.msk [vmem:[#allocation2 + $0x8] sm:$0xff] %vm14114_vm1, %v14093_v35  ;;  %v14091_v41 = vpop.permute.xlu0 %14090 }
0x3783   :  { %14115 = vst.msk [vmem:[#allocation2] sm:$0xff] %vm14114_vm1, %v14091_v41 }
0x3785   :  { %v14097_v49 = vpop.permute.xlu1 %14096 }
0x3786   :  { %14118 = vst.msk [vmem:[#allocation2 + $0x18] sm:$0xff] %vm14114_vm1, %v14097_v49  ;;  %v14095_v18 = vpop.permute.xlu0 %14094 }
0x3787   :  { %14117 = vst.msk [vmem:[#allocation2 + $0x10] sm:$0xff] %vm14114_vm1, %v14095_v18 }
0x3789   :  { %v14101_v1 = vpop.permute.xlu1 %14100 }
0x378a   :  { %14120 = vst.msk [vmem:[#allocation2 + $0x28] sm:$0xff] %vm14114_vm1, %v14101_v1  ;;  %v14099_v30 = vpop.permute.xlu0 %14098 }
0x378b   :  { %14119 = vst.msk [vmem:[#allocation2 + $0x20] sm:$0xff] %vm14114_vm1, %v14099_v30 }
0x378d   :  { %v14105_v24 = vpop.permute.xlu1 %14104 }
0x378e   :  { %14122 = vst.msk [vmem:[#allocation2 + $0x38] sm:$0xff] %vm14114_vm1, %v14105_v24  ;;  %v14103_v13 = vpop.permute.xlu0 %14102 }
0x378f   :  { %14121 = vst.msk [vmem:[#allocation2 + $0x30] sm:$0xff] %vm14114_vm1, %v14103_v13 }
0x3790   :  { %21384 = shalt.err (!%p21381_p4)
}
0x3791   :  { %s21385_s18 = scalar_lea.hbm %s26825_s14, 1024 }
0x3792   :  { %p21386_p5 = scmp.ne.s32.totalorder %s26825_s14, %s21385_s18  ;;  %p21389_p6 = scmp.lt.u32.totalorder %s21385_s18, %s26825_s14 }
0x3794   :  { %p21391_p7 = pnand %p21389_p6, %p21386_p5 }
0x3796   :  { %21394 = shalt.err (!%p21391_p7)
}
0x3797   :  { %s21408_s3 = smov 128   ;;  %s21409_s0 = smov 8  }
0x3798   :  { %14134 = dma.vmem_to_hbm [thread:$0]  %s14129_s29, 1024, %s26825_s14, [#allocation3], %s21408_s3, %s21408_s3, %s21409_s0  }
0x3799   :  { %21395 = dma.done.wait [#allocation3], 1024  }
0x379a   :  { %21396 = vsyncadd [#allocation3], 4294966272 }
0x379b   :  { %14138 = vsyncpa [#allocation3], 1 }

</bundles_post_ra>
